<compile_context>
chip_gen: v7x
topology: tpu7x:2x2x1
jax: 0.10.0
libtpu: 0.0.40
codegen_flags: <defaults>
</compile_context>

<pallas_src>
import functools

import numpy as np

import jax
import jax.numpy as jnp
from jax import lax
from jax.experimental import pallas as pl
from jax.experimental.pallas import tpu as pltpu

_LANES = 128
_SUBLANES = 8
_CHUNK_ROWS = 512                 # inner-loop chunk: bounds live VMEM temporaries (~0.25 MiB/array)
_DEFAULT_TILE_ROWS = 16384        # 16384*128*4 B = 8 MiB per f32 input buffer (16 MiB double-buffered)
_MAX_TILE_ROWS = 65536            # keeps the in-kernel index math exact in f32 (indices < 2**24)
_MIN_KERNEL_ELEMENTS = 1 << 17    # below this, kernel launch + relayout overhead dominates -> pure JAX


def _round_up(x: int, m: int) -> int:
    return ((x + m - 1) // m) * m


def _logsigmoid(x):
    # Numerically stable log(sigmoid(x)) = min(x, 0) - log1p(exp(-|x|)).
    return jnp.minimum(x, 0.0) - jnp.log1p(jnp.exp(-jnp.abs(x)))


def _reference_loss(scores):
    """Pure-JAX reference mirroring the PyTorch module (also the tiny-input fallback)."""
    scores = scores.astype(jnp.float32)
    batch_size = scores.shape[0]
    positive = _logsigmoid(scores[:, 0])
    negatives = jnp.sum(_logsigmoid(-scores[:, 1:]), axis=1)
    return -jnp.sum(positive + negatives) / batch_size


def _ns_partial_kernel(base_mod_ref, x_ref, neg_ref, pos_ref, *,
                       tile_rows, chunk_rows, kp1, total):
    """Per-tile lane partials over one (tile_rows, 128) slab of the flattened scores.

    neg_ref (1,1,128): per-lane sum of logsigmoid(-x) over all valid elements of the tile.
    pos_ref (1,1,128): per-lane sum of x over the tile's column-0 ("positive") elements.
    """
    i = pl.program_id(0)
    base_mod = base_mod_ref[i]                         # (i*tile_rows*128) % kp1, SMEM scalar
    limit = total - i * (tile_rows * _LANES)           # first invalid local flat index

    # Hoisted per-chunk local flat index (row-major within a chunk); < chunk_rows*128.
    row = lax.broadcasted_iota(jnp.int32, (chunk_rows, _LANES), 0)
    lane = lax.broadcasted_iota(jnp.int32, (chunk_rows, _LANES), 1)
    local0 = row * _LANES + lane

    inv_kp1 = jnp.float32(1.0 / kp1)
    n_chunks = tile_rows // chunk_rows

    def body(c, carry):
        neg_acc, pos_acc = carry
        start = c * chunk_rows
        if chunk_rows % _SUBLANES == 0:                # static; alignment hint for the slice
            start = pl.multiple_of(start, chunk_rows)
        x = x_ref[pl.ds(start, chunk_rows), :].astype(jnp.float32)

        chunk_off = c * (chunk_rows * _LANES)          # scalar
        valid = local0 < (limit - chunk_off)           # tail / out-of-bounds mask

        # Positive-column test: (global flat index) % kp1 == 0.
        # m = base_mod + chunk_off + local0 < 2**24 -> exact in f32; the rounded quotient
        # is within +-1 of the true one and the integer residual check below is exact.
        m = local0 + (chunk_off + base_mod)
        q = (m.astype(jnp.float32) * inv_kp1 + jnp.float32(0.5)).astype(jnp.int32)
        r = m - q * kp1
        is_pos = valid & ((r == 0) | (r == kp1) | (r == -kp1))

        # Numerically stable logsigmoid(-x) = min(-x, 0) - log1p(exp(-|x|)).
        ls = jnp.minimum(-x, 0.0) - jnp.log1p(jnp.exp(-jnp.abs(x)))

        neg_acc = neg_acc + jnp.sum(jnp.where(valid, ls, 0.0), axis=0, keepdims=True)
        pos_acc = pos_acc + jnp.sum(jnp.where(is_pos, x, 0.0), axis=0, keepdims=True)
        return neg_acc, pos_acc

    zeros = jnp.zeros((1, _LANES), jnp.float32)
    neg_acc, pos_acc = lax.fori_loop(0, n_chunks, body, (zeros, zeros))
    neg_ref[...] = neg_acc.reshape(1, 1, _LANES)
    pos_ref[...] = pos_acc.reshape(1, 1, _LANES)


def negative_sampling_loss(scores: jax.Array, *,
                           tile_rows: int = _DEFAULT_TILE_ROWS,
                           min_kernel_elements: int = _MIN_KERNEL_ELEMENTS) -> jax.Array:
    """scores: (batch, 1 + n_negative_samples) -> scalar loss (float32)."""
    if scores.ndim != 2:
        raise ValueError("scores must have shape (batch, 1 + n_negative_samples)")
    batch, kp1 = scores.shape
    # Keep bf16 inputs in bf16 (halves DMA bytes on a mem-bound kernel); everything else
    # streams as f32.  All in-kernel math and accumulation is f32 either way.
    if scores.dtype not in (jnp.bfloat16, jnp.float32):
        scores = scores.astype(jnp.float32)
    total = batch * kp1

    if total < min_kernel_elements:
        # Tiny inputs: launch + relayout overhead dominates -> pure JAX.
        return _reference_loss(scores)

    flat = scores.reshape(-1)                          # free row-major flatten
    if total % _LANES != 0:
        # TODO(synk): rare shape (batch*(1+n_neg) not a multiple of 128) -- this pad is one
        # extra HBM pass; the kernel's validity mask makes the pad value irrelevant.
        flat = jnp.pad(flat, (0, _LANES - total % _LANES))
    rows = flat.shape[0] // _LANES
    slab = flat.reshape(rows, _LANES)                  # free bitcast when no pad was needed

    if rows <= _CHUNK_ROWS:
        # Single tile whose block exactly matches the array (no out-of-bounds rows).
        tr = rows
        chunk = rows
        num_tiles = 1
    else:
        chunk = _CHUNK_ROWS
        cap = max(chunk, (min(int(tile_rows), _MAX_TILE_ROWS) // chunk) * chunk)
        # Prefer >= 2 tiles (feeds both v7x TensorCores) while capping the tile for VMEM.
        tr = min(cap, _round_up(pl.cdiv(rows, 2), chunk))
        num_tiles = pl.cdiv(rows, tr)

    # Static per-tile phase of the positive-column pattern, delivered via scalar prefetch.
    base_mod = jnp.asarray(
        np.array([(t * tr * _LANES) % kp1 for t in range(num_tiles)], dtype=np.int32))

    kernel = functools.partial(_ns_partial_kernel, tile_rows=tr, chunk_rows=chunk,
                               kp1=kp1, total=total)

    n_elems = num_tiles * tr * _LANES
    neg_p, pos_p = pl.pallas_call(
        kernel,
        out_shape=(jax.ShapeDtypeStruct((num_tiles, 1, _LANES), jnp.float32),
                   jax.ShapeDtypeStruct((num_tiles, 1, _LANES), jnp.float32)),
        grid_spec=pltpu.PrefetchScalarGridSpec(
            num_scalar_prefetch=1,
            grid=(num_tiles,),
            in_specs=[pl.BlockSpec((tr, _LANES), lambda i, bm: (i, 0))],
            out_specs=[pl.BlockSpec((1, 1, _LANES), lambda i, bm: (i, 0, 0)),
                       pl.BlockSpec((1, 1, _LANES), lambda i, bm: (i, 0, 0))],
        ),
        compiler_params=pltpu.CompilerParams(
            dimension_semantics=("parallel",),          # independent tiles -> both v7x TCs
            vmem_limit_bytes=48 * 1024 * 1024,          # big tiles also on v5e's 16 MiB default
        ),
        cost_estimate=pl.CostEstimate(
            flops=16 * n_elems,
            transcendentals=2 * n_elems,
            bytes_accessed=rows * _LANES * slab.dtype.itemsize + 2 * num_tiles * _LANES * 4,
        ),
    )(base_mod, slab)

    neg_sum = jnp.sum(neg_p)                            # sum(logsigmoid(-x)) over ALL elements
    pos_sum = jnp.sum(pos_p)                            # sum(scores[:, 0])
    # logsigmoid(s0) = s0 + logsigmoid(-s0)  =>  total objective = pos_sum + neg_sum.
    return -(pos_sum + neg_sum) / jnp.float32(batch)


if __name__ == "__main__":
    key = jax.random.PRNGKey(0)
    k1, k2, k3, k4 = jax.random.split(key, 4)

    # 1) Tiny module-sized input (batch=8, 1 positive + 8 negatives): pure-JAX fallback path.
    s1 = jax.random.normal(k1, (8, 9), dtype=jnp.float32)
    out1 = negative_sampling_loss(s1)
    ref1 = _reference_loss(s1)

    # 2) Kernel path, f32, multi-tile with a tail-masked last tile and kp1=10 phase logic:
    #    (8192, 10) -> 640 lane-rows -> 2 tiles of 512 rows.
    s2 = jax.random.normal(k2, (8192, 10), dtype=jnp.float32)
    out2 = negative_sampling_loss(s2, min_kernel_elements=0)
    ref2 = _reference_loss(s2)

    # 3) Kernel path, bf16 streaming + multi-chunk inner loop:
    #    (16384, 16) -> 2048 rows -> 2 tiles x 2 chunks of 512 rows.
    s3 = jax.random.normal(k3, (16384, 16), dtype=jnp.bfloat16)
    out3 = negative_sampling_loss(s3, min_kernel_elements=0)
    ref3 = _reference_loss(s3)

    # 4) Kernel path, padded case (9000 elements, not a multiple of 128) + exact-shape tile.
    s4 = jax.random.normal(k4, (1000, 9), dtype=jnp.float32)
    out4 = negative_sampling_loss(s4, min_kernel_elements=0)
    ref4 = _reference_loss(s4)

    jax.block_until_ready((out1, out2, out3, out4))
    for got, want in ((out1, ref1), (out2, ref2), (out3, ref3), (out4, ref4)):
        assert jnp.allclose(got, want, rtol=1e-4, atol=1e-5), (got, want)
    print("KERNEL_OK")
</pallas_src>

<mosaic_0001>
module attributes {stable_mosaic.version = 11 : i64} {
  func.func @_ns_partial_kernel(%arg0: i32, %arg1: memref<2xi32, #tpu.memory_space<smem>>, %arg2: memref<512x128xf32, #tpu.memory_space<vmem>>, %arg3: memref<1x1x128xf32, #tpu.memory_space<vmem>>, %arg4: memref<1x1x128xf32, #tpu.memory_space<vmem>>) attributes {dimension_semantics = [#tpu.dimension_semantics<parallel>], iteration_bounds = array<i64: 2>, scalar_prefetch = 1 : i64, scratch_operands = 0 : i64, tpu.core_type = #tpu.core_type<tc>, window_params = [{transform_indices = @transform_0, window_bounds = array<i64: 512, 128>}, {transform_indices = @transform_1, window_bounds = array<i64: 1, 1, 128>}, {transform_indices = @transform_2, window_bounds = array<i64: 1, 1, 128>}]} {
    %0 = arith.index_cast %arg0 : i32 to index
    %1 = memref.load %arg1[%0] : memref<2xi32, #tpu.memory_space<smem>>
    %c65536_i32 = arith.constant 65536 : i32
    %2 = arith.muli %arg0, %c65536_i32 : i32
    %c81920_i32 = arith.constant 81920 : i32
    %3 = arith.subi %c81920_i32, %2 : i32
    %4 = tpu.iota {dimensions = array<i32: 0>} : vector<512x128xi32>
    %5 = tpu.iota {dimensions = array<i32: 1>} : vector<512x128xi32>
    %c128_i32 = arith.constant 128 : i32
    %6 = vector.broadcast %c128_i32 : i32 to vector<512x128xi32>
    %7 = arith.muli %4, %6 : vector<512x128xi32>
    %8 = arith.addi %7, %5 : vector<512x128xi32>
    %cst = arith.constant 0.000000e+00 : f32
    %9 = vector.broadcast %cst : f32 to vector<1x128xf32>
    %cst_0 = arith.constant 1.000000e-01 : f32
    %c0_i32 = arith.constant 0 : i32
    %c512_i32 = arith.constant 512 : i32
    %10 = arith.muli %c0_i32, %c512_i32 : i32
    %11 = tpu.assume_multiple %10, 512 : i32
    %12 = arith.index_cast %11 : i32 to index
    %c0 = arith.constant 0 : index
    %13 = vector.load %arg2[%12, %c0] : memref<512x128xf32, #tpu.memory_space<vmem>>, vector<512x128xf32>
    %c65536_i32_1 = arith.constant 65536 : i32
    %14 = arith.muli %c0_i32, %c65536_i32_1 : i32
    %15 = arith.subi %3, %14 : i32
    %16 = vector.broadcast %15 : i32 to vector<512x128xi32>
    %17 = arith.cmpi slt, %8, %16 : vector<512x128xi32>
    %18 = arith.addi %14, %1 : i32
    %19 = vector.broadcast %18 : i32 to vector<512x128xi32>
    %20 = arith.addi %8, %19 : vector<512x128xi32>
    %21 = arith.sitofp %20 : vector<512x128xi32> to vector<512x128xf32>
    %22 = vector.broadcast %cst_0 : f32 to vector<512x128xf32>
    %23 = arith.mulf %21, %22 : vector<512x128xf32>
    %cst_2 = arith.constant 5.000000e-01 : f32
    %24 = vector.broadcast %cst_2 : f32 to vector<512x128xf32>
    %25 = arith.addf %23, %24 : vector<512x128xf32>
    %26 = arith.fptosi %25 : vector<512x128xf32> to vector<512x128xi32>
    %c10_i32 = arith.constant 10 : i32
    %27 = vector.broadcast %c10_i32 : i32 to vector<512x128xi32>
    %28 = arith.muli %26, %27 : vector<512x128xi32>
    %29 = arith.subi %20, %28 : vector<512x128xi32>
    %c0_i32_3 = arith.constant 0 : i32
    %30 = vector.broadcast %c0_i32_3 : i32 to vector<512x128xi32>
    %31 = arith.cmpi eq, %29, %30 : vector<512x128xi32>
    %c10_i32_4 = arith.constant 10 : i32
    %32 = vector.broadcast %c10_i32_4 : i32 to vector<512x128xi32>
    %33 = arith.cmpi eq, %29, %32 : vector<512x128xi32>
    %34 = arith.ori %31, %33 : vector<512x128xi1>
    %c-10_i32 = arith.constant -10 : i32
    %35 = vector.broadcast %c-10_i32 : i32 to vector<512x128xi32>
    %36 = arith.cmpi eq, %29, %35 : vector<512x128xi32>
    %37 = arith.ori %34, %36 : vector<512x128xi1>
    %38 = arith.andi %17, %37 : vector<512x128xi1>
    %cst_5 = arith.constant 0.000000e+00 : f32
    %39 = vector.broadcast %cst_5 : f32 to vector<512x128xf32>
    %40 = arith.subf %39, %13 : vector<512x128xf32>
    %cst_6 = arith.constant 0.000000e+00 : f32
    %41 = vector.broadcast %cst_6 : f32 to vector<512x128xf32>
    %42 = arith.minimumf %40, %41 : vector<512x128xf32>
    %43 = math.absf %13 : vector<512x128xf32>
    %cst_7 = arith.constant 0.000000e+00 : f32
    %44 = vector.broadcast %cst_7 : f32 to vector<512x128xf32>
    %45 = arith.subf %44, %43 : vector<512x128xf32>
    %46 = math.exp %45 : vector<512x128xf32>
    %47 = math.log1p %46 : vector<512x128xf32>
    %48 = arith.subf %42, %47 : vector<512x128xf32>
    %cst_8 = arith.constant 0.000000e+00 : f32
    %49 = vector.broadcast %cst_8 : f32 to vector<512x128xf32>
    %50 = arith.select %17, %48, %49 : vector<512x128xi1>, vector<512x128xf32>
    %cst_9 = arith.constant dense<0.000000e+00> : vector<128xf32>
    %51 = vector.multi_reduction <add>, %50, %cst_9 [0] : vector<512x128xf32> to vector<128xf32>
    %52 = vector.shape_cast %51 : vector<128xf32> to vector<1x128xf32>
    %53 = arith.addf %9, %52 : vector<1x128xf32>
    %cst_10 = arith.constant 0.000000e+00 : f32
    %54 = vector.broadcast %cst_10 : f32 to vector<512x128xf32>
    %55 = arith.select %38, %13, %54 : vector<512x128xi1>, vector<512x128xf32>
    %cst_11 = arith.constant dense<0.000000e+00> : vector<128xf32>
    %56 = vector.multi_reduction <add>, %55, %cst_11 [0] : vector<512x128xf32> to vector<128xf32>
    %57 = vector.shape_cast %56 : vector<128xf32> to vector<1x128xf32>
    %58 = arith.addf %9, %57 : vector<1x128xf32>
    %c1_i32 = arith.constant 1 : i32
    %59 = vector.shape_cast %53 : vector<1x128xf32> to vector<1x1x128xf32>
    %c0_12 = arith.constant 0 : index
    %c0_13 = arith.constant 0 : index
    %c0_14 = arith.constant 0 : index
    %60 = vector.load %arg3[%c0_12, %c0_13, %c0_14] : memref<1x1x128xf32, #tpu.memory_space<vmem>>, vector<1x1x128xf32>
    tpu.vector_store %arg3[%c0_12, %c0_13, %c0_14], %59 {strides = array<i32>} : memref<1x1x128xf32, #tpu.memory_space<vmem>>, vector<1x1x128xf32>,
    %61 = vector.shape_cast %58 : vector<1x128xf32> to vector<1x1x128xf32>
    %c0_15 = arith.constant 0 : index
    %c0_16 = arith.constant 0 : index
    %c0_17 = arith.constant 0 : index
    %62 = vector.load %arg4[%c0_15, %c0_16, %c0_17] : memref<1x1x128xf32, #tpu.memory_space<vmem>>, vector<1x1x128xf32>
    tpu.vector_store %arg4[%c0_15, %c0_16, %c0_17], %61 {strides = array<i32>} : memref<1x1x128xf32, #tpu.memory_space<vmem>>, vector<1x1x128xf32>,
    return
  }
  func.func @transform_0(%arg0: i32, %arg1: memref<2xi32, #tpu.memory_space<smem>>) -> (i32, i32) {
    %c0_i32 = arith.constant 0 : i32
    %c0_i32_0 = arith.constant 0 : i32
    return %arg0, %c0_i32 : i32, i32
  }
  func.func @transform_1(%arg0: i32, %arg1: memref<2xi32, #tpu.memory_space<smem>>) -> (i32, i32, i32) {
    %c0_i32 = arith.constant 0 : i32
    %c0_i32_0 = arith.constant 0 : i32
    %c0_i32_1 = arith.constant 0 : i32
    return %arg0, %c0_i32, %c0_i32_0 : i32, i32, i32
  }
  func.func @transform_2(%arg0: i32, %arg1: memref<2xi32, #tpu.memory_space<smem>>) -> (i32, i32, i32) {
    %c0_i32 = arith.constant 0 : i32
    %c0_i32_0 = arith.constant 0 : i32
    %c0_i32_1 = arith.constant 0 : i32
    return %arg0, %c0_i32, %c0_i32_0 : i32, i32, i32
  }
}

</mosaic_0001>

<bundles_post_ra>
// kernel: tpu_custom_call.1
= control target key start
LH: loop header
LB: loop body
LE: loop exit
PB: predicated region body
PF: predicated region fallthrough
CT: control target
= control target key end

     0   :  { %s9913_s0 = inlined_call_operand.hbm [shape: s32[2], index: 0, kind: input, shape index: {}]   ;;  %s9914_s1 = inlined_call_operand.hbm [shape: f32[640,128], index: 1, kind: input, shape index: {}]   ;;  %s9915_s2 = inlined_call_operand.hbm [shape: f32[2,1,128], index: 2, kind: output, shape index: {0}]   ;;  %s9916_s3 = inlined_call_operand.hbm [shape: f32[2,1,128], index: 3, kind: output, shape index: {1}]  }
   0x1   :  { %s3279_s14 = scalar_lea.hbm %s9913_s0, 16 }
   0x2   :  { %p3280_p0 = scmp.ne.s32.totalorder %s9913_s0, %s3279_s14  ;;  %p3283_p1 = scmp.lt.u32.totalorder %s3279_s14, %s9913_s0 }
   0x4   :  { %p3285_p2 = pnand %p3283_p1, %p3280_p0 }
   0x6   :  { %3288 = shalt.err (!%p3285_p2)  }
   0x7   :  { %s3419_s19 = smov [#allocation3]  }
   0x8   :  { %10 = dma.hbm_to_smem %s9913_s0, 16, %s3419_s19, [#allocation2] }
   0x9   :  { %3389 = dma.done.wait [#allocation2], 16 }
   0xa   :  { %3390 = vsyncadd [#allocation2], 4294967280 }
   0xb   :  { %12 = sfence }
   0xc   :  { %13 = vsyncpa [#allocation5], 0 }
   0xd   :  { %15 = vsyncpa [#allocation5 + $0x1], 0 }
   0xe   :  { %16 = vsyncpa [#allocation6], 0 }
   0xf   :  { %18 = vsyncpa [#allocation6 + $0x1], 0 }
  0x10   :  { %19 = vsyncpa [#allocation9], 0 }
  0x11   :  { %21 = vsyncpa [#allocation9 + $0x1], 0  ;;  %s3457_s22 = smov 0   ;;  %s3459_s23 = smov 0  }
  0x12   :  { %s3461_s24 = smov 0   ;;  %s3463_s25 = smov 0  }
  0x13 LB: > { %s3478_s0 = sadd.s32 4294967295, %s3417_s25   ;;  %s2765_s26 = sadd.s32 4294967294, %s3417_s25   ;;  %s3417_s25 = sphi %s3463_s25, %s12855_s25   ;;  %s3413_s24 = sphi %s3461_s24, %s12854_s24   ;;  %s3409_s23 = sphi %s3459_s23, %s12853_s23   ;;  %s3405_s22 = sphi %s3457_s22, %s12852_s22  }
  0x14   : > { %s3482_s27 = sadd.s32 1, %s3417_s25   ;;  %s34_s28 = sadd.s32 1, %s3413_s24 }
  0x15   : > { %s31_s29 = ssub.s32 %s3417_s25, %s3482_s27  ;;  %p41_p3 = scmp.ne.s32.totalorder %s3413_s24, %s3409_s23 }
  0x16   : > { %p32_p4 = scmp.eq.s32.totalorder %s31_s29, 0  ;;  %p42_p5 = scmp.eq.s32.totalorder %s3417_s25, 0 }
  0x17   : > { %p47_p6 = scmp.ne.s32.totalorder %s3409_s23, %s3405_s22  ;;  %p48_p7 = scmp.eq.s32.totalorder %s3478_s0, 0 }
  0x18   : > { %s3494_s30 = scalar_select %p32_p4, %s3413_s24, %s34_s28  }
  0x19   : > { %p43_p8 = por %p42_p5, %p41_p3  ;;  %p3496_p9 = por %p48_p7, %p47_p6 }
  0x1a   : > { %p71_p10 = scmp.eq.s32.totalorder %s3478_s0, 1  ;;  %p77_p11 = scmp.eq.s32.totalorder %s2765_s26, 1 }
  0x1b   : > { %p9917_p0 = scmp.ge.s32.totalorder %s3417_s25, 2 }
  0x1c   : > { %p3501_p12 = por %p71_p10, %p41_p3  ;;  %p3505_p13 = por %p77_p11, %p47_p6 }
  0x1d   : > { %119 = sbr.rel (%p9917_p0) target bundleno = 71 (0x47), region = 16 }
  0x1e   : > { %s10519_s6 = scalar_select %p3505_p13, 1, 0 }
  0x24   : > { %122 = sbr.rel (!%p43_p8) target bundleno = 71 (0x47), region = 20  ;;  %s123_s7 = sand.u32 (%p43_p8), 1, %s3413_s24  }
  0x25   : > { %s2769_s8 = sshll.u32 (%p43_p8), %s3417_s25, 6  ;;  %s2768_s9 = sshll.u32 (%p43_p8), %s123_s7, 9 }
  0x26   : > { %s129_s10 = ssub.s32 (%p43_p8), 80, %s2769_s8  ;;  %s3517_s13 = scalar_lea.sflag (%p43_p8), [#allocation5], %s123_s7 }
  0x27   : > { %p130_p1 = scmp.lt.s32.totalorder (%p43_p8), %s129_s10, 64  ;;  %s127_s14 = scalar_lea.vmem (%p43_p8), [#allocation4], %s2768_s9 }
  0x2b   : > { %s12857_s10 = smov (!%p130_p1, %s129_s10), 64 }
  0x2c   : > { %s3514_s11 = sshll.u32 %s12857_s10, 7 }
  0x2d   : > { %s134_s12 = ssub.s32 8192, %s3514_s11 }
  0x2e   : > { %135 = vsyncadd %s3517_s13, %s134_s12  ;;  %p2771_p2 = scmp.ne.s32.totalorder %s3514_s11, 0  ;;  %s2782_s15 = sshll.u32 %s3417_s25, 13 }
  0x2f   : > { %s3525_s18 = scalar_lea.hbm %s9914_s1, %s2782_s15  ;;  %s140_s19 = sshll.u32 %s127_s14, 4  ;;  %s3527_s19 = int_to_ptr.vmem [resolvable:$true] %s140_s19 }
  0x30   : > { %s3289_s20 = scalar_lea.hbm %s3525_s18, %s3514_s11  ;;  %s3293_s28 = scalar_lea.hbm %s9914_s1, 10240 }
  0x31   : > { %p3290_p3 = scmp.ne.s32.totalorder %s3525_s18, %s3289_s20  ;;  %p3294_p6 = scmp.lt.u32.totalorder %s3525_s18, %s9914_s1 }
  0x32   : > { %p3295_p7 = scmp.lt.u32.totalorder %s3293_s28, %s3289_s20  ;;  %p3297_p10 = scmp.lt.u32.totalorder %s3289_s20, %s3525_s18 }
  0x33   : > { %p3291_p4 = pnand %p3290_p3, %p2771_p2 }
  0x34   : > { %p3296_p8 = por %p3295_p7, %p3294_p6 }
  0x35   : > { %p3292_p5 = pneg %p3291_p4 }
  0x36   : > { %p3298_p11 = por %p3297_p10, %p3296_p8 }
  0x38   : > { %p3299_p1 = pnand %p3298_p11, %p3292_p5 }
  0x3a   : > { %3302 = shalt.err (!%p3299_p1)
}
  0x3b   : > { %s3303_s8 = scalar_lea.vmem %s3527_s19, %s3514_s11  ;;  %s3420_s9 = smov [#allocation4]  }
  0x3c   : > { %p3304_p3 = scmp.ne.s32.totalorder %s3527_s19, %s3303_s8  ;;  %s3307_s10 = sshll.u32 %s3420_s9, 4  ;;  %s3308_s10 = int_to_ptr.vmem [resolvable:$false] %s3307_s10 }
  0x3d   : > { %s3309_s12 = scalar_lea.vmem %s3308_s10, 16384  ;;  %p3310_p13 = scmp.lt.s32.totalorder %s3527_s19, %s3308_s10 }
  0x3e   : > { %p3305_p4 = pnand %p3304_p3, %p2771_p2  ;;  %p3311_p6 = scmp.lt.s32.totalorder %s3309_s12, %s3303_s8 }
  0x40   : > { %p3306_p0 = pneg %p3305_p4  ;;  %p3312_p7 = por %p3311_p6, %p3310_p13 }
  0x42   : > { %p3313_p8 = pnand %p3312_p7, %p3306_p0 }
  0x44   : > { %3316 = shalt.err (!%p3313_p8)
}
  0x45   : > { %s3421_s14 = smov 128   ;;  %s3422_s15 = smov 8  }
  0x46   : > { %146 = dma.hbm_to_vmem [thread:$0]  (%p2771_p2), %s3525_s18, %s3514_s11, %s3527_s19, %s3517_s13, %s3421_s14, %s3421_s14, %s3422_s15  }
  0x47 PF: > { %p2775_p5 = scmp.ge.s32.totalorder %s3417_s25, 1  ;;  %p148_p10 = scmp.lt.s32.totalorder %s3417_s25, 3 }
  0x49   : > { %p149_p11 = pnand %p2775_p5, %p148_p10 }
  0x4b   : > { %152 = sbr.rel (%p149_p11) target bundleno = 850 (0x352), region = 24 }
  0x52   : > { %s3557_s16 = sand.u32 1, %s3409_s23  }
  0x53   : > { %s2776_s17 = sshll.u32 %s3557_s16, 9  ;;  %s155_s20 = scalar_lea.sflag [#allocation5], %s3557_s16 }
  0x54   : > { %s3561_s21 = scalar_lea.vmem [#allocation4], %s2776_s17 }
  0x55   : > { %3392 = dma.done.wait (%p3496_p9), %s155_s20, 8192  }
  0x56   : > { %3394 = vsyncadd (%p3496_p9), %s155_s20, 4294959104  ;;  %v190_v0 = vlaneseq  ;;  %s2777_s4 = sshll.u32 %s3478_s0, 16  ;;  %s187_s13 = sld [smem:[#allocation3 + %s3478_s0]] }
  0x57   : > { %s189_s11 = ssub.s32 81920, %s2777_s4  ;;  %s2778_s18 = sshll.u32 %s3478_s0, 4 }
  0x58   : > { %v3567_v1 = vshrl.u32 %v190_v0, 7  ;;  %v3572_v5 = vand.u32 127, %v190_v0  ;;  %s175_s19 = scalar_lea.vmem [#allocation7], %s3557_s16  ;;  %s9831_s7 = scalar_lea.hbm %s9915_s2, %s2778_s18 }
  0x59   : > { %s2658_s26 = sshll.u32 %s175_s19, 4  ;;  %s2642_s8 = scalar_lea.sflag [#allocation6], %s3557_s16  ;;  %s9833_s26 = int_to_ptr.vmem [resolvable:$true] %s2658_s26 }
  0x5a   : > { %v224_v2 = vadd.s32 264, %v3567_v1  ;;  %v225_v3 = vadd.s32 272, %v3567_v1  ;;  %v226_v4 = vadd.s32 280, %v3567_v1  ;;  %v227_v6 = vadd.s32 288, %v3567_v1  ;;  %s3317_s9 = scalar_lea.vmem %s9833_s26, 16  ;;  %s3423_s10 = smov [#allocation7]  }
  0x5b   : > { %v228_v7 = vadd.s32 296, %v3567_v1  ;;  %v229_v8 = vadd.s32 304, %v3567_v1  ;;  %v230_v9 = vadd.s32 312, %v3567_v1  ;;  %v231_v10 = vadd.s32 320, %v3567_v1  ;;  %p3318_p9 = scmp.ne.s32.totalorder %s9833_s26, %s3317_s9  ;;  %s3321_s12 = sshll.u32 %s3423_s10, 4  ;;  %s3322_s12 = int_to_ptr.vmem [resolvable:$false] %s3321_s12 }
  0x5c   : > { %v232_v11 = vadd.s32 328, %v3567_v1  ;;  %v233_v12 = vadd.s32 336, %v3567_v1  ;;  %v234_v13 = vadd.s32 344, %v3567_v1  ;;  %v235_v14 = vadd.s32 352, %v3567_v1  ;;  %s3323_s14 = scalar_lea.vmem %s3322_s12, 32  ;;  %p3324_p2 = scmp.lt.s32.totalorder %s9833_s26, %s3322_s12 }
  0x5d   : > { %v236_v15 = vadd.s32 360, %v3567_v1  ;;  %v237_v16 = vadd.s32 368, %v3567_v1  ;;  %v238_v17 = vadd.s32 376, %v3567_v1  ;;  %v239_v18 = vadd.s32 384, %v3567_v1  ;;  %p3319_p13 = pnand %p3318_p9, %p3501_p12  ;;  %p3325_p1 = scmp.lt.s32.totalorder %s3323_s14, %s3317_s9 }
  0x5e   : > { %v240_v19 = vadd.s32 392, %v3567_v1  ;;  %v241_v20 = vadd.s32 400, %v3567_v1  ;;  %v242_v21 = vadd.s32 408, %v3567_v1  ;;  %v243_v22 = vadd.s32 416, %v3567_v1 }
  0x5f   : > { %v244_v23 = vadd.s32 424, %v3567_v1  ;;  %v245_v24 = vadd.s32 432, %v3567_v1  ;;  %v246_v25 = vadd.s32 440, %v3567_v1  ;;  %v247_v26 = vadd.s32 448, %v3567_v1  ;;  %p3320_p0 = pneg %p3319_p13  ;;  %p3326_p3 = por %p3325_p1, %p3324_p2 }
  0x60   : > { %v248_v27 = vadd.s32 456, %v3567_v1  ;;  %v249_v28 = vadd.s32 464, %v3567_v1  ;;  %v3598_v29 = vadd.s32 472, %v3567_v1  ;;  %v3601_v30 = vadd.s32 480, %v3567_v1 }
  0x61   : > { %v3604_v31 = vadd.s32 488, %v3567_v1  ;;  %v290_v32 = vmul.u32 128, %v224_v2  ;;  %v291_v33 = vmul.u32 128, %v225_v3  ;;  %v253_v34 = vadd.s32 496, %v3567_v1  ;;  %p3327_p4 = pnand %p3326_p3, %p3320_p0 }
  0x62   : > { %v254_v35 = vadd.s32 504, %v3567_v1  ;;  %v292_v36 = vmul.u32 128, %v226_v4  ;;  %v293_v37 = vmul.u32 128, %v227_v6 }
  0x63   : > { %v294_v38 = vmul.u32 128, %v228_v7  ;;  %v295_v39 = vmul.u32 128, %v229_v8  ;;  %v3609_v40 = vadd.s32 %v290_v32, %v3572_v5  ;;  %v3612_v41 = vadd.s32 %v291_v33, %v3572_v5 }
  0x64   : > { %v296_v42 = vmul.u32 128, %v230_v9  ;;  %v297_v43 = vmul.u32 128, %v231_v10  ;;  %v3615_v44 = vadd.s32 %v292_v36, %v3572_v5  ;;  %v3618_v45 = vadd.s32 %v293_v37, %v3572_v5 }
  0x65   : > { %10520 = vst [vmem:[#allocation14_spill] sm:$0xff] %v3609_v40  ;;  %10521 = vst [vmem:[#allocation15_spill] sm:$0xff] %v3612_v41  ;;  %v298_v46 = vmul.u32 128, %v232_v11  ;;  %v299_v47 = vmul.u32 128, %v233_v12  ;;  %v3621_v48 = vadd.s32 %v294_v38, %v3572_v5  ;;  %v3624_v49 = vadd.s32 %v295_v39, %v3572_v5 }
  0x66   : > { %10522 = vst [vmem:[#allocation16_spill] sm:$0xff] %v3615_v44  ;;  %10523 = vst [vmem:[#allocation17_spill] sm:$0xff] %v3618_v45  ;;  %v300_v50 = vmul.u32 128, %v234_v13  ;;  %v301_v51 = vmul.u32 128, %v235_v14  ;;  %v3627_v52 = vadd.s32 %v296_v42, %v3572_v5  ;;  %v3630_v53 = vadd.s32 %v297_v43, %v3572_v5 }
  0x67   : > { %10524 = vst [vmem:[#allocation18_spill] sm:$0xff] %v3621_v48  ;;  %10525 = vst [vmem:[#allocation19_spill] sm:$0xff] %v3624_v49  ;;  %v302_v54 = vmul.u32 128, %v236_v15  ;;  %v303_v55 = vmul.u32 128, %v237_v16  ;;  %v3633_v56 = vadd.s32 %v298_v46, %v3572_v5  ;;  %v3636_v57 = vadd.s32 %v299_v47, %v3572_v5 }
  0x68   : > { %10526 = vst [vmem:[#allocation20_spill] sm:$0xff] %v3627_v52  ;;  %10527 = vst [vmem:[#allocation21_spill] sm:$0xff] %v3630_v53  ;;  %v304_v58 = vmul.u32 128, %v238_v17  ;;  %v305_v59 = vmul.u32 128, %v239_v18  ;;  %v3639_v60 = vadd.s32 %v300_v50, %v3572_v5  ;;  %v3642_v61 = vadd.s32 %v301_v51, %v3572_v5 }
  0x69   : > { %10528 = vst [vmem:[#allocation22_spill] sm:$0xff] %v3633_v56  ;;  %10529 = vst [vmem:[#allocation23_spill] sm:$0xff] %v3636_v57  ;;  %v306_v62 = vmul.u32 128, %v240_v19  ;;  %v307_v63 = vmul.u32 128, %v241_v20  ;;  %v3645_v0 = vadd.s32 %v302_v54, %v3572_v5  ;;  %v3648_v2 = vadd.s32 %v303_v55, %v3572_v5 }
  0x6a   : > { %10530 = vst [vmem:[#allocation24_spill] sm:$0xff] %v3639_v60  ;;  %10531 = vst [vmem:[#allocation25_spill] sm:$0xff] %v3642_v61  ;;  %v308_v3 = vmul.u32 128, %v242_v21  ;;  %v309_v4 = vmul.u32 128, %v243_v22  ;;  %v3651_v6 = vadd.s32 %v304_v58, %v3572_v5  ;;  %v3654_v7 = vadd.s32 %v305_v59, %v3572_v5 }
  0x6b   : > { %10532 = vst [vmem:[#allocation26_spill] sm:$0xff] %v3645_v0  ;;  %10533 = vst [vmem:[#allocation27_spill] sm:$0xff] %v3648_v2  ;;  %v310_v8 = vmul.u32 128, %v244_v23  ;;  %v311_v9 = vmul.u32 128, %v245_v24  ;;  %v3657_v10 = vadd.s32 %v306_v62, %v3572_v5  ;;  %v3660_v11 = vadd.s32 %v307_v63, %v3572_v5 }
  0x6c   : > { %10534 = vst [vmem:[#allocation28_spill] sm:$0xff] %v3651_v6  ;;  %10535 = vst [vmem:[#allocation29_spill] sm:$0xff] %v3654_v7  ;;  %v312_v12 = vmul.u32 128, %v246_v25  ;;  %v313_v13 = vmul.u32 128, %v247_v26  ;;  %v3663_v14 = vadd.s32 %v308_v3, %v3572_v5  ;;  %v3666_v15 = vadd.s32 %v309_v4, %v3572_v5 }
  0x6d   : > { %10536 = vst [vmem:[#allocation30_spill] sm:$0xff] %v3657_v10  ;;  %10537 = vst [vmem:[#allocation31_spill] sm:$0xff] %v3660_v11  ;;  %v314_v16 = vmul.u32 128, %v248_v27  ;;  %v315_v17 = vmul.u32 128, %v249_v28  ;;  %v3669_v18 = vadd.s32 %v310_v8, %v3572_v5  ;;  %v3672_v19 = vadd.s32 %v311_v9, %v3572_v5 }
  0x6e   : > { %10538 = vst [vmem:[#allocation32_spill] sm:$0xff] %v3663_v14  ;;  %10539 = vst [vmem:[#allocation33_spill] sm:$0xff] %v3666_v15  ;;  %v316_v20 = vmul.u32 128, %v3598_v29  ;;  %v317_v21 = vmul.u32 128, %v3601_v30  ;;  %v3677_v22 = vadd.s32 %v312_v12, %v3572_v5  ;;  %v3680_v23 = vadd.s32 %v313_v13, %v3572_v5 }
  0x6f   : > { %10540 = vst [vmem:[#allocation34_spill] sm:$0xff] %v3669_v18  ;;  %10541 = vst [vmem:[#allocation35_spill] sm:$0xff] %v3672_v19  ;;  %v318_v24 = vmul.u32 128, %v3604_v31  ;;  %v319_v25 = vmul.u32 128, %v253_v34  ;;  %v3684_v26 = vadd.s32 %v314_v16, %v3572_v5  ;;  %v3687_v27 = vadd.s32 %v315_v17, %v3572_v5 }
  0x70   : > { %10542 = vst [vmem:[#allocation36_spill] sm:$0xff] %v3677_v22  ;;  %10543 = vst [vmem:[#allocation37_spill] sm:$0xff] %v3680_v23  ;;  %v320_v28 = vmul.u32 128, %v254_v35  ;;  %v3690_v29 = vadd.s32 %v316_v20, %v3572_v5  ;;  %v3693_v30 = vadd.s32 %v317_v21, %v3572_v5  ;;  %v3705_v34 = vstv %s189_s11 }
  0x71   : > { %10544 = vst [vmem:[#allocation38_spill] sm:$0xff] %v3684_v26  ;;  %10545 = vst [vmem:[#allocation39_spill] sm:$0xff] %v3687_v27  ;;  %v3696_v32 = vadd.s32 %v318_v24, %v3572_v5  ;;  %v3699_v33 = vadd.s32 %v319_v25, %v3572_v5  ;;  %v3770_v35 = vstv %s187_s13 }
  0x72   : > { %10546 = vst [vmem:[#allocation40_spill] sm:$0xff] %v3690_v29  ;;  %10547 = vst [vmem:[#allocation41_spill] sm:$0xff] %v3693_v30  ;;  %v3703_v31 = vadd.s32 %v320_v28, %v3572_v5  ;;  %v3774_v36 = vadd.s32 %v3770_v35, %v3609_v40  ;;  %v3778_v37 = vadd.s32 %v3770_v35, %v3612_v41  ;;  %v214_v41 = vadd.s32 184, %v3567_v1 }
  0x73   : > { %10548 = vst [vmem:[#allocation42_spill] sm:$0xff] %v3696_v32  ;;  %10549 = vst [vmem:[#allocation43_spill] sm:$0xff] %v3699_v33  ;;  %v3782_v38 = vadd.s32 %v3770_v35, %v3615_v44  ;;  %v3786_v39 = vadd.s32 %v3770_v35, %v3618_v45  ;;  %v3790_v42 = vadd.s32 %v3770_v35, %v3621_v48  ;;  %v3939_v48 = vadd.s32 176, %v3567_v1 }
  0x74   : > { %10550 = vst [vmem:[#allocation44_spill] sm:$0xff] %v3703_v31  ;;  %10551 = vst [vmem:[#allocation45_spill] sm:$0xff] %v3705_v34  ;;  %v3794_v43 = vadd.s32 %v3770_v35, %v3624_v49  ;;  %v3798_v46 = vadd.s32 %v3770_v35, %v3627_v52  ;;  %v3802_v47 = vadd.s32 %v3770_v35, %v3630_v53  ;;  %v3936_v49 = vadd.s32 168, %v3567_v1 }
  0x75   : > { %10552 = vst [vmem:[#allocation46_spill] sm:$0xff] %v3774_v36  ;;  %10553 = vst [vmem:[#allocation47_spill] sm:$0xff] %v3778_v37  ;;  %v3806_v50 = vadd.s32 %v3770_v35, %v3633_v56  ;;  %v3810_v51 = vadd.s32 %v3770_v35, %v3636_v57  ;;  %v3814_v54 = vadd.s32 %v3770_v35, %v3639_v60  ;;  %v257_v60 = vmul.u32 128, %v3567_v1 }
  0x76   : > { %10554 = vst [vmem:[#allocation48_spill] sm:$0xff] %v3782_v38  ;;  %10555 = vst [vmem:[#allocation49_spill] sm:$0xff] %v3786_v39  ;;  %v3818_v55 = vadd.s32 %v3770_v35, %v3642_v61  ;;  %v3822_v58 = vadd.s32 %v3770_v35, %v3645_v0  ;;  %v3826_v59 = vadd.s32 %v3770_v35, %v3648_v2  ;;  %v3920_v2 = vadd.s32 128, %v3567_v1 }
  0x77   : > { %10556 = vst [vmem:[#allocation50_spill] sm:$0xff] %v3790_v42  ;;  %10557 = vst [vmem:[#allocation51_spill] sm:$0xff] %v3794_v43  ;;  %v3830_v62 = vadd.s32 %v3770_v35, %v3651_v6  ;;  %v3834_v63 = vadd.s32 %v3770_v35, %v3654_v7  ;;  %v3838_v3 = vadd.s32 %v3770_v35, %v3657_v10  ;;  %v3911_v10 = vadd.s32 104, %v3567_v1 }
  0x78   : > { %10558 = vst [vmem:[#allocation52_spill] sm:$0xff] %v3798_v46  ;;  %10559 = vst [vmem:[#allocation53_spill] sm:$0xff] %v3802_v47  ;;  %v3842_v4 = vadd.s32 %v3770_v35, %v3660_v11  ;;  %v3846_v8 = vadd.s32 %v3770_v35, %v3663_v14  ;;  %v3850_v9 = vadd.s32 %v3770_v35, %v3666_v15  ;;  %v200_v15 = vadd.s32 72, %v3567_v1 }
  0x79   : > { %10560 = vst [vmem:[#allocation54_spill] sm:$0xff] %v3806_v50  ;;  %10561 = vst [vmem:[#allocation55_spill] sm:$0xff] %v3810_v51  ;;  %v3854_v12 = vadd.s32 %v3770_v35, %v3669_v18  ;;  %v3858_v13 = vadd.s32 %v3770_v35, %v3672_v19  ;;  %v3862_v16 = vadd.s32 %v3770_v35, %v3677_v22  ;;  %v194_v22 = vadd.s32 24, %v3567_v1 }
  0x7a   : > { %10562 = vst [vmem:[#allocation56_spill] sm:$0xff] %v3814_v54  ;;  %10563 = vst [vmem:[#allocation57_spill] sm:$0xff] %v3818_v55  ;;  %v3866_v17 = vadd.s32 %v3770_v35, %v3680_v23  ;;  %v3870_v20 = vadd.s32 %v3770_v35, %v3684_v26  ;;  %v3874_v21 = vadd.s32 %v3770_v35, %v3687_v27  ;;  %v192_v23 = vadd.s32 8, %v3567_v1 }
  0x7b   : > { %10564 = vst [vmem:[#allocation58_spill] sm:$0xff] %v3822_v58  ;;  %10565 = vst [vmem:[#allocation59_spill] sm:$0xff] %v3826_v59  ;;  %v3878_v24 = vadd.s32 %v3770_v35, %v3690_v29  ;;  %v3882_v25 = vadd.s32 %v3770_v35, %v3693_v30  ;;  %v3886_v28 = vadd.s32 %v3770_v35, %v3696_v32  ;;  %v193_v29 = vadd.s32 16, %v3567_v1 }
  0x7c   : > { %10566 = vst [vmem:[#allocation60_spill] sm:$0xff] %v3830_v62  ;;  %10567 = vst [vmem:[#allocation61_spill] sm:$0xff] %v3834_v63  ;;  %v3890_v26 = vadd.s32 %v3770_v35, %v3699_v33  ;;  %v3894_v27 = vadd.s32 %v3770_v35, %v3703_v31  ;;  %v195_v30 = vadd.s32 32, %v3567_v1  ;;  %v196_v19 = vadd.s32 40, %v3567_v1 }
  0x7d   : > { %10568 = vst [vmem:[#allocation62_spill] sm:$0xff] %v3838_v3  ;;  %10569 = vst [vmem:[#allocation63_spill] sm:$0xff] %v3842_v4  ;;  %v197_v32 = vadd.s32 48, %v3567_v1  ;;  %v198_v18 = vadd.s32 56, %v3567_v1  ;;  %v199_v33 = vadd.s32 64, %v3567_v1  ;;  %v201_v31 = vadd.s32 80, %v3567_v1 }
  0x7e   : > { %10570 = vst [vmem:[#allocation64_spill] sm:$0xff] %v3846_v8  ;;  %10571 = vst [vmem:[#allocation65_spill] sm:$0xff] %v3850_v9  ;;  %v202_v14 = vadd.s32 88, %v3567_v1  ;;  %v3908_v11 = vadd.s32 96, %v3567_v1  ;;  %v3914_v7 = vadd.s32 112, %v3567_v1  ;;  %v3917_v6 = vadd.s32 120, %v3567_v1 }
  0x7f   : > { %10572 = vst [vmem:[#allocation66_spill] sm:$0xff] %v3854_v12  ;;  %10573 = vst [vmem:[#allocation67_spill] sm:$0xff] %v3858_v13  ;;  %v3923_v0 = vadd.s32 136, %v3567_v1  ;;  %v3926_v61 = vadd.s32 144, %v3567_v1  ;;  %v3930_v57 = vadd.s32 152, %v3567_v1  ;;  %v3933_v56 = vadd.s32 160, %v3567_v1 }
  0x80   : > { %10574 = vst [vmem:[#allocation68_spill] sm:$0xff] %v3862_v16  ;;  %10575 = vst [vmem:[#allocation69_spill] sm:$0xff] %v3866_v17  ;;  %v258_v53 = vmul.u32 128, %v192_v23  ;;  %v259_v52 = vmul.u32 128, %v193_v29  ;;  %v215_v34 = vadd.s32 192, %v3567_v1  ;;  %v223_v16 = vadd.s32 256, %v3567_v1 }
  0x81   : > { %10576 = vst [vmem:[#allocation70_spill] sm:$0xff] %v3870_v20  ;;  %10577 = vst [vmem:[#allocation71_spill] sm:$0xff] %v3874_v21  ;;  %v260_v45 = vmul.u32 128, %v194_v22  ;;  %v261_v44 = vmul.u32 128, %v195_v30  ;;  %v220_v22 = vadd.s32 232, %v3567_v1  ;;  %v221_v30 = vadd.s32 240, %v3567_v1 }
  0x82   : > { %10578 = vst [vmem:[#allocation72_spill] sm:$0xff] %v3878_v24  ;;  %10579 = vst [vmem:[#allocation73_spill] sm:$0xff] %v3882_v25  ;;  %v262_v40 = vmul.u32 128, %v196_v19  ;;  %v264_v23 = vmul.u32 128, %v198_v18  ;;  %v218_v25 = vadd.s32 216, %v3567_v1  ;;  %v219_v24 = vadd.s32 224, %v3567_v1 }
  0x83   : > { %10580 = vst [vmem:[#allocation74_spill] sm:$0xff] %v3886_v28  ;;  %10581 = vst [vmem:[#allocation75_spill] sm:$0xff] %v3890_v26  ;;  %v216_v26 = vadd.s32 200, %v3567_v1  ;;  %v217_v28 = vadd.s32 208, %v3567_v1  ;;  %v265_v29 = vmul.u32 128, %v199_v33  ;;  %v266_v21 = vmul.u32 128, %v200_v15 }
  0x84   : > { %10582 = vst [vmem:[#allocation76_spill] sm:$0xff] %v3894_v27  ;;  %v263_v27 = vmul.u32 128, %v197_v32  ;;  %v267_v20 = vmul.u32 128, %v201_v31  ;;  %v222_v32 = vadd.s32 248, %v3567_v1  ;;  %v3957_v31 = vadd.s32 %v257_v60, %v3572_v5 }
  0x85   : > { %v268_v17 = vmul.u32 128, %v202_v14  ;;  %v269_v19 = vmul.u32 128, %v3908_v11  ;;  %v3960_v12 = vadd.s32 %v258_v53, %v3572_v5  ;;  %v3965_v1 = vadd.s32 %v259_v52, %v3572_v5 }
  0x86   : > { %v270_v18 = vmul.u32 128, %v3911_v10  ;;  %v271_v33 = vmul.u32 128, %v3914_v7  ;;  %10583 = vst [vmem:[#allocation77_spill] sm:$0xff] %v3957_v31  ;;  %v3968_v10 = vadd.s32 %v260_v45, %v3572_v5  ;;  %v3973_v60 = vadd.s32 %v261_v44, %v3572_v5 }
  0x87   : > { %v272_v13 = vmul.u32 128, %v3917_v6  ;;  %v273_v15 = vmul.u32 128, %v3920_v2  ;;  %10584 = vst [vmem:[#allocation78_spill] sm:$0xff] %v3960_v12  ;;  %10585 = vst [vmem:[#allocation79_spill] sm:$0xff] %v3965_v1  ;;  %v3976_v53 = vadd.s32 %v262_v40, %v3572_v5  ;;  %v3981_v52 = vadd.s32 %v263_v27, %v3572_v5 }
  0x88   : > { %v274_v11 = vmul.u32 128, %v3923_v0  ;;  %v275_v14 = vmul.u32 128, %v3926_v61  ;;  %10586 = vst [vmem:[#allocation80_spill] sm:$0xff] %v3968_v10  ;;  %10587 = vst [vmem:[#allocation81_spill] sm:$0xff] %v3973_v60  ;;  %v3984_v45 = vadd.s32 %v264_v23, %v3572_v5  ;;  %v3990_v44 = vadd.s32 %v266_v21, %v3572_v5 }
  0x89   : > { %v276_v6 = vmul.u32 128, %v3930_v57  ;;  %v277_v2 = vmul.u32 128, %v3933_v56  ;;  %10588 = vst [vmem:[#allocation82_spill] sm:$0xff] %v3976_v53  ;;  %10589 = vst [vmem:[#allocation83_spill] sm:$0xff] %v3981_v52  ;;  %v3987_v56 = vadd.s32 %v265_v29, %v3572_v5  ;;  %v3999_v23 = vadd.s32 %v269_v19, %v3572_v5 }
  0x8a   : > { %v278_v0 = vmul.u32 128, %v3936_v49  ;;  %v279_v61 = vmul.u32 128, %v3939_v48  ;;  %10590 = vst [vmem:[#allocation84_spill] sm:$0xff] %v3984_v45  ;;  %10592 = vst [vmem:[#allocation86_spill] sm:$0xff] %v3990_v44  ;;  %v3993_v49 = vadd.s32 %v267_v20, %v3572_v5  ;;  %v3996_v48 = vadd.s32 %v268_v17, %v3572_v5 }
  0x8b   : > { %v280_v7 = vmul.u32 128, %v214_v41  ;;  %v281_v57 = vmul.u32 128, %v215_v34  ;;  %10591 = vst [vmem:[#allocation85_spill] sm:$0xff] %v3987_v56  ;;  %10595 = vst [vmem:[#allocation89_spill] sm:$0xff] %v3999_v23  ;;  %v4002_v41 = vadd.s32 %v270_v18, %v3572_v5  ;;  %v4005_v21 = vadd.s32 %v271_v33, %v3572_v5 }
  0x8c   : > { %v282_v40 = vmul.u32 128, %v216_v26  ;;  %v283_v9 = vmul.u32 128, %v217_v28  ;;  %10593 = vst [vmem:[#allocation87_spill] sm:$0xff] %v3993_v49  ;;  %10594 = vst [vmem:[#allocation88_spill] sm:$0xff] %v3996_v48  ;;  %v4008_v26 = vadd.s32 %v272_v13, %v3572_v5  ;;  %v4011_v17 = vadd.s32 %v273_v15, %v3572_v5 }
  0x8d   : > { %v284_v27 = vmul.u32 128, %v218_v25  ;;  %v285_v8 = vmul.u32 128, %v219_v24  ;;  %10596 = vst [vmem:[#allocation90_spill] sm:$0xff] %v4002_v41  ;;  %10597 = vst [vmem:[#allocation91_spill] sm:$0xff] %v4005_v21  ;;  %v4014_v24 = vadd.s32 %v274_v11, %v3572_v5  ;;  %v4017_v25 = vadd.s32 %v275_v14, %v3572_v5 }
  0x8e   : > { %v286_v34 = vmul.u32 128, %v220_v22  ;;  %v287_v29 = vmul.u32 128, %v221_v30  ;;  %10598 = vst [vmem:[#allocation92_spill] sm:$0xff] %v4008_v26  ;;  %10599 = vst [vmem:[#allocation93_spill] sm:$0xff] %v4011_v17  ;;  %v4020_v22 = vadd.s32 %v276_v6, %v3572_v5  ;;  %v4023_v30 = vadd.s32 %v277_v2, %v3572_v5 }
  0x8f   : > { %v288_v20 = vmul.u32 128, %v222_v32  ;;  %v289_v28 = vmul.u32 128, %v223_v16  ;;  %10600 = vst [vmem:[#allocation94_spill] sm:$0xff] %v4014_v24  ;;  %10601 = vst [vmem:[#allocation95_spill] sm:$0xff] %v4017_v25  ;;  %v4026_v13 = vadd.s32 %v278_v0, %v3572_v5  ;;  %v4029_v16 = vadd.s32 %v279_v61, %v3572_v5 }
  0x90   : > { %10602 = vst [vmem:[#allocation96_spill] sm:$0xff] %v4020_v22  ;;  %10603 = vst [vmem:[#allocation97_spill] sm:$0xff] %v4023_v30  ;;  %v4032_v19 = vadd.s32 %v280_v7, %v3572_v5  ;;  %v4035_v32 = vadd.s32 %v281_v57, %v3572_v5  ;;  %v4038_v18 = vadd.s32 %v282_v40, %v3572_v5 }
  0x91   : > { %10604 = vst [vmem:[#allocation98_spill] sm:$0xff] %v4026_v13  ;;  %10605 = vst [vmem:[#allocation99_spill] sm:$0xff] %v4029_v16  ;;  %v4041_v33 = vadd.s32 %v283_v9, %v3572_v5  ;;  %v4044_v15 = vadd.s32 %v284_v27, %v3572_v5  ;;  %v4047_v11 = vadd.s32 %v285_v8, %v3572_v5 }
  0x92   : > { %10606 = vst [vmem:[#allocation100_spill] sm:$0xff] %v4032_v19  ;;  %10607 = vst [vmem:[#allocation101_spill] sm:$0xff] %v4035_v32  ;;  %v4050_v14 = vadd.s32 %v286_v34, %v3572_v5  ;;  %v4053_v6 = vadd.s32 %v287_v29, %v3572_v5  ;;  %v4056_v2 = vadd.s32 %v288_v20, %v3572_v5 }
  0x93   : > { %10608 = vst [vmem:[#allocation102_spill] sm:$0xff] %v4038_v18  ;;  %10609 = vst [vmem:[#allocation103_spill] sm:$0xff] %v4041_v33  ;;  %v4059_v0 = vadd.s32 %v289_v28, %v3572_v5  ;;  %v4063_v9 = vadd.s32 %v3770_v35, %v3957_v31  ;;  %v4067_v8 = vadd.s32 %v3770_v35, %v3960_v12 }
  0x94   : > { %10610 = vst [vmem:[#allocation104_spill] sm:$0xff] %v4044_v15  ;;  %10611 = vst [vmem:[#allocation105_spill] sm:$0xff] %v4047_v11  ;;  %v4071_v61 = vadd.s32 %v3770_v35, %v3965_v1  ;;  %v4075_v7 = vadd.s32 %v3770_v35, %v3968_v10  ;;  %v4079_v5 = vadd.s32 %v3770_v35, %v3973_v60 }
  0x95   : > { %10612 = vst [vmem:[#allocation106_spill] sm:$0xff] %v4050_v14  ;;  %10613 = vst [vmem:[#allocation107_spill] sm:$0xff] %v4053_v6  ;;  %v4083_v57 = vadd.s32 %v3770_v35, %v3976_v53  ;;  %v4087_v40 = vadd.s32 %v3770_v35, %v3981_v52  ;;  %v4091_v27 = vadd.s32 %v3770_v35, %v3984_v45  ;;  %v579_v52 = vcvt.s32.f32 %v4063_v9 }
  0x96   : > { %10614 = vst [vmem:[#allocation108_spill] sm:$0xff] %v4056_v2  ;;  %10615 = vst [vmem:[#allocation109_spill] sm:$0xff] %v4059_v0  ;;  %v4095_v34 = vadd.s32 %v3770_v35, %v3987_v56  ;;  %v4099_v29 = vadd.s32 %v3770_v35, %v3990_v44  ;;  %v4103_v20 = vadd.s32 %v3770_v35, %v3993_v49  ;;  %v581_v53 = vcvt.s32.f32 %v4071_v61 }
  0x97   : > { %10616 = vst [vmem:[#allocation110_spill] sm:$0xff] %v4063_v9  ;;  %10617 = vst [vmem:[#allocation111_spill] sm:$0xff] %v4067_v8  ;;  %v4107_v28 = vadd.s32 %v3770_v35, %v3996_v48  ;;  %v4111_v45 = vadd.s32 %v3770_v35, %v3999_v23  ;;  %v4115_v56 = vadd.s32 %v3770_v35, %v4002_v41  ;;  %v583_v60 = vcvt.s32.f32 %v4079_v5 }
  0x98   : > { %10618 = vst [vmem:[#allocation112_spill] sm:$0xff] %v4071_v61  ;;  %10619 = vst [vmem:[#allocation113_spill] sm:$0xff] %v4075_v7  ;;  %v4119_v44 = vadd.s32 %v3770_v35, %v4005_v21  ;;  %v4123_v49 = vadd.s32 %v3770_v35, %v4008_v26  ;;  %v4127_v48 = vadd.s32 %v3770_v35, %v4011_v17  ;;  %v585_v10 = vcvt.s32.f32 %v4087_v40 }
  0x99   : > { %10620 = vst [vmem:[#allocation114_spill] sm:$0xff] %v4079_v5  ;;  %10621 = vst [vmem:[#allocation115_spill] sm:$0xff] %v4083_v57  ;;  %v4131_v23 = vadd.s32 %v3770_v35, %v4014_v24  ;;  %v4135_v41 = vadd.s32 %v3770_v35, %v4017_v25  ;;  %v4139_v21 = vadd.s32 %v3770_v35, %v4020_v22  ;;  %v587_v1 = vcvt.s32.f32 %v4095_v34 }
  0x9a   : > { %10622 = vst [vmem:[#allocation116_spill] sm:$0xff] %v4087_v40  ;;  %10623 = vst [vmem:[#allocation117_spill] sm:$0xff] %v4091_v27  ;;  %v4143_v26 = vadd.s32 %v3770_v35, %v4023_v30  ;;  %v4147_v17 = vadd.s32 %v3770_v35, %v4026_v13  ;;  %v4151_v24 = vadd.s32 %v3770_v35, %v4029_v16  ;;  %v590_v12 = vcvt.s32.f32 %v4107_v28 }
  0x9b   : > { %10624 = vst [vmem:[#allocation118_spill] sm:$0xff] %v4095_v34  ;;  %10625 = vst [vmem:[#allocation119_spill] sm:$0xff] %v4099_v29  ;;  %v4155_v25 = vadd.s32 %v3770_v35, %v4032_v19  ;;  %v4159_v22 = vadd.s32 %v3770_v35, %v4035_v32  ;;  %v4163_v30 = vadd.s32 %v3770_v35, %v4038_v18  ;;  %v591_v31 = vcvt.s32.f32 %v4111_v45 }
  0x9c   : > { %10626 = vst [vmem:[#allocation120_spill] sm:$0xff] %v4103_v20  ;;  %10627 = vst [vmem:[#allocation121_spill] sm:$0xff] %v4107_v28  ;;  %v4167_v13 = vadd.s32 %v3770_v35, %v4041_v33  ;;  %v4171_v16 = vadd.s32 %v3770_v35, %v4044_v15  ;;  %v4175_v19 = vadd.s32 %v3770_v35, %v4047_v11  ;;  %v580_v11 = vcvt.s32.f32 %v4067_v8 }
  0x9d   : > { %10628 = vst [vmem:[#allocation122_spill] sm:$0xff] %v4111_v45  ;;  %10629 = vst [vmem:[#allocation123_spill] sm:$0xff] %v4115_v56  ;;  %v4179_v32 = vadd.s32 %v3770_v35, %v4050_v14  ;;  %v4183_v18 = vadd.s32 %v3770_v35, %v4053_v6  ;;  %v4187_v33 = vadd.s32 %v3770_v35, %v4056_v2  ;;  %v582_v14 = vcvt.s32.f32 %v4075_v7 }
  0x9e   : > { %10630 = vst [vmem:[#allocation124_spill] sm:$0xff] %v4119_v44  ;;  %10631 = vst [vmem:[#allocation125_spill] sm:$0xff] %v4123_v49  ;;  %v4191_v15 = vadd.s32 %v3770_v35, %v4059_v0  ;;  %v584_v6 = vcvt.s32.f32 %v4083_v57  ;;  %v586_v2 = vcvt.s32.f32 %v4091_v27  ;;  %v588_v35 = vcvt.s32.f32 %v4099_v29 }
  0x9f   : > { %10632 = vst [vmem:[#allocation126_spill] sm:$0xff] %v4127_v48  ;;  %10633 = vst [vmem:[#allocation127_spill] sm:$0xff] %v4131_v23  ;;  %v589_v0 = vcvt.s32.f32 %v4103_v20  ;;  %v592_v7 = vcvt.s32.f32 %v4115_v56  ;;  %v593_v5 = vcvt.s32.f32 %v4119_v44  ;;  %v594_v57 = vcvt.s32.f32 %v4123_v49 }
  0xa0   : > { %10634 = vst [vmem:[#allocation128_spill] sm:$0xff] %v4135_v41  ;;  %10635 = vst [vmem:[#allocation129_spill] sm:$0xff] %v4139_v21  ;;  %v595_v40 = vcvt.s32.f32 %v4127_v48  ;;  %v596_v27 = vcvt.s32.f32 %v4131_v23  ;;  %v597_v34 = vcvt.s32.f32 %v4135_v41  ;;  %v598_v29 = vcvt.s32.f32 %v4139_v21 }
  0xa1   : > { %10636 = vst [vmem:[#allocation130_spill] sm:$0xff] %v4143_v26  ;;  %10637 = vst [vmem:[#allocation131_spill] sm:$0xff] %v4147_v17  ;;  %v599_v20 = vcvt.s32.f32 %v4143_v26  ;;  %v600_v28 = vcvt.s32.f32 %v4147_v17  ;;  %v601_v45 = vcvt.s32.f32 %v4151_v24  ;;  %v602_v56 = vcvt.s32.f32 %v4155_v25 }
  0xa2   : > { %10638 = vst [vmem:[#allocation132_spill] sm:$0xff] %v4151_v24  ;;  %10639 = vst [vmem:[#allocation133_spill] sm:$0xff] %v4155_v25  ;;  %v603_v44 = vcvt.s32.f32 %v4159_v22  ;;  %v604_v49 = vcvt.s32.f32 %v4163_v30  ;;  %v605_v48 = vcvt.s32.f32 %v4167_v13  ;;  %v606_v23 = vcvt.s32.f32 %v4171_v16 }
  0xa3   : > { %10640 = vst [vmem:[#allocation134_spill] sm:$0xff] %v4159_v22  ;;  %10641 = vst [vmem:[#allocation135_spill] sm:$0xff] %v4163_v30  ;;  %v607_v41 = vcvt.s32.f32 %v4175_v19  ;;  %v608_v21 = vcvt.s32.f32 %v4179_v32  ;;  %v609_v26 = vcvt.s32.f32 %v4183_v18  ;;  %v610_v17 = vcvt.s32.f32 %v4187_v33 }
  0xa4   : > { %10642 = vst [vmem:[#allocation136_spill] sm:$0xff] %v4167_v13  ;;  %10643 = vst [vmem:[#allocation137_spill] sm:$0xff] %v4171_v16  ;;  %v611_v24 = vcvt.s32.f32 %v4191_v15  ;;  %v612_v25 = vcvt.s32.f32 %v3774_v36  ;;  %v613_v22 = vcvt.s32.f32 %v3778_v37  ;;  %v614_v30 = vcvt.s32.f32 %v3782_v38 }
  0xa5   : > { %10644 = vst [vmem:[#allocation138_spill] sm:$0xff] %v4175_v19  ;;  %10645 = vst [vmem:[#allocation139_spill] sm:$0xff] %v4179_v32  ;;  %v615_v13 = vcvt.s32.f32 %v3786_v39  ;;  %v616_v16 = vcvt.s32.f32 %v3790_v42  ;;  %v617_v19 = vcvt.s32.f32 %v3794_v43  ;;  %v618_v32 = vcvt.s32.f32 %v3798_v46 }
  0xa6   : > { %10646 = vst [vmem:[#allocation140_spill] sm:$0xff] %v4183_v18  ;;  %10647 = vst [vmem:[#allocation141_spill] sm:$0xff] %v4187_v33  ;;  %v619_v18 = vcvt.s32.f32 %v3802_v47  ;;  %v620_v33 = vcvt.s32.f32 %v3806_v50  ;;  %v622_v36 = vcvt.s32.f32 %v3814_v54  ;;  %v623_v37 = vcvt.s32.f32 %v3818_v55 }
  0xa7   : > { %10648 = vst [vmem:[#allocation142_spill] sm:$0xff] %v4191_v15  ;;  %v621_v15 = vcvt.s32.f32 %v3810_v51  ;;  %v624_v38 = vcvt.s32.f32 %v3822_v58  ;;  %v625_v39 = vcvt.s32.f32 %v3826_v59  ;;  %v4240_v61 = vmul.f32 0.1, %v579_v52 }
  0xa8   : > { %v626_v43 = vcvt.s32.f32 %v3830_v62  ;;  %v4243_v42 = vmul.f32 0.1, %v580_v11  ;;  %v4245_v46 = vmul.f32 0.1, %v581_v53  ;;  %v4247_v47 = vmul.f32 0.1, %v582_v14 }
  0xa9   : > { %v627_v51 = vcvt.s32.f32 %v3834_v63  ;;  %v4250_v50 = vmul.f32 0.1, %v583_v60  ;;  %v4252_v54 = vmul.f32 0.1, %v584_v6  ;;  %v4254_v55 = vmul.f32 0.1, %v585_v10 }
  0xaa   : > { %v628_v59 = vcvt.s32.f32 %v3838_v3  ;;  %v4257_v52 = vmul.f32 0.1, %v586_v2  ;;  %v4259_v58 = vmul.f32 0.1, %v587_v1  ;;  %v4261_v11 = vmul.f32 0.1, %v588_v35 }
  0xab   : > { %v629_v53 = vcvt.s32.f32 %v3842_v4  ;;  %v4264_v14 = vmul.f32 0.1, %v589_v0  ;;  %v4266_v62 = vmul.f32 0.1, %v590_v12  ;;  %v4268_v60 = vmul.f32 0.1, %v591_v31 }
  0xac   : > { %v10650_v6 = vld [vmem:[#allocation64_spill] sm:$0xff]  ;;  %v4271_v10 = vmul.f32 0.1, %v592_v7  ;;  %v4273_v8 = vmul.f32 0.1, %v593_v5  ;;  %v10652_v1 = vld [vmem:[#allocation65_spill] sm:$0xff] }
  0xad   : > { %10649 = vst [vmem:[#allocation143_spill] sm:$0xff] %v4268_v60  ;;  %v630_v63 = vcvt.s32.f32 %v10650_v6  ;;  %v4275_v2 = vmul.f32 0.1, %v594_v57  ;;  %v631_v3 = vcvt.s32.f32 %v10652_v1  ;;  %v4278_v35 = vmul.f32 0.1, %v595_v40  ;;  %v10654_v12 = vld [vmem:[#allocation66_spill] sm:$0xff] }
  0xae   : > { %v4280_v9 = vmul.f32 0.1, %v596_v27  ;;  %v4282_v0 = vmul.f32 0.1, %v597_v34  ;;  %v632_v4 = vcvt.s32.f32 %v10654_v12  ;;  %v4285_v31 = vmul.f32 0.1, %v598_v29 }
  0xaf   : > { %10651 = vst [vmem:[#allocation144_spill] sm:$0xff] %v4275_v2  ;;  %v4287_v60 = vmul.f32 0.1, %v599_v20  ;;  %v4289_v7 = vmul.f32 0.1, %v600_v28  ;;  %v10656_v5 = vld [vmem:[#allocation67_spill] sm:$0xff] }
  0xb0   : > { %10653 = vst [vmem:[#allocation145_spill] sm:$0xff] %v4282_v0  ;;  %v633_v6 = vcvt.s32.f32 %v10656_v5  ;;  %v4292_v57 = vmul.f32 0.1, %v601_v45  ;;  %v4294_v2 = vmul.f32 0.1, %v602_v56  ;;  %v10658_v27 = vld [vmem:[#allocation68_spill] sm:$0xff] }
  0xb1   : > { %10655 = vst [vmem:[#allocation146_spill] sm:$0xff] %v4289_v7  ;;  %v4296_v40 = vmul.f32 0.1, %v603_v44  ;;  %v634_v1 = vcvt.s32.f32 %v10658_v27  ;;  %v4299_v34 = vmul.f32 0.1, %v604_v49  ;;  %v10660_v20 = vld [vmem:[#allocation69_spill] sm:$0xff] }
  0xb2   : > { %v4301_v0 = vmul.f32 0.1, %v605_v48  ;;  %v4303_v29 = vmul.f32 0.1, %v606_v23  ;;  %v635_v12 = vcvt.s32.f32 %v10660_v20  ;;  %v4306_v28 = vmul.f32 0.1, %v607_v41 }
  0xb3   : > { %10657 = vst [vmem:[#allocation147_spill] sm:$0xff] %v4296_v40  ;;  %v4308_v7 = vmul.f32 0.1, %v608_v21  ;;  %v4310_v45 = vmul.f32 0.1, %v609_v26  ;;  %v10662_v56 = vld [vmem:[#allocation70_spill] sm:$0xff] }
  0xb4   : > { %10659 = vst [vmem:[#allocation148_spill] sm:$0xff] %v4303_v29  ;;  %v636_v5 = vcvt.s32.f32 %v10662_v56  ;;  %v4313_v44 = vmul.f32 0.1, %v610_v17  ;;  %v4315_v40 = vmul.f32 0.1, %v611_v24  ;;  %v10664_v48 = vld [vmem:[#allocation71_spill] sm:$0xff] }
  0xb5   : > { %10661 = vst [vmem:[#allocation149_spill] sm:$0xff] %v4310_v45  ;;  %v4317_v49 = vmul.f32 0.1, %v612_v25  ;;  %v637_v27 = vcvt.s32.f32 %v10664_v48  ;;  %v4320_v23 = vmul.f32 0.1, %v613_v22  ;;  %v10666_v21 = vld [vmem:[#allocation72_spill] sm:$0xff] }
  0xb6   : > { %v4322_v29 = vmul.f32 0.1, %v614_v30  ;;  %v4324_v41 = vmul.f32 0.1, %v615_v13  ;;  %v638_v20 = vcvt.s32.f32 %v10666_v21  ;;  %v4327_v26 = vmul.f32 0.1, %v616_v16 }
  0xb7   : > { %10663 = vst [vmem:[#allocation150_spill] sm:$0xff] %v4317_v49  ;;  %v4329_v45 = vmul.f32 0.1, %v617_v19  ;;  %v4331_v17 = vmul.f32 0.1, %v618_v32  ;;  %v10668_v24 = vld [vmem:[#allocation73_spill] sm:$0xff] }
  0xb8   : > { %10665 = vst [vmem:[#allocation151_spill] sm:$0xff] %v4324_v41  ;;  %v639_v56 = vcvt.s32.f32 %v10668_v24  ;;  %v4334_v25 = vmul.f32 0.1, %v619_v18  ;;  %v4336_v49 = vmul.f32 0.1, %v620_v33  ;;  %v10670_v30 = vld [vmem:[#allocation74_spill] sm:$0xff] }
  0xb9   : > { %10667 = vst [vmem:[#allocation152_spill] sm:$0xff] %v4331_v17  ;;  %v4338_v22 = vmul.f32 0.1, %v621_v15  ;;  %v640_v48 = vcvt.s32.f32 %v10670_v30  ;;  %v4341_v13 = vmul.f32 0.1, %v622_v36  ;;  %v10671_v19 = vld [vmem:[#allocation75_spill] sm:$0xff] }
  0xba   : > { %v4343_v41 = vmul.f32 0.1, %v623_v37  ;;  %v4345_v16 = vmul.f32 0.1, %v624_v38  ;;  %v641_v21 = vcvt.s32.f32 %v10671_v19  ;;  %v4348_v32 = vmul.f32 0.1, %v625_v39 }
  0xbb   : > { %10669 = vst [vmem:[#allocation153_spill] sm:$0xff] %v4338_v22  ;;  %v4350_v17 = vmul.f32 0.1, %v626_v43  ;;  %v4352_v18 = vmul.f32 0.1, %v627_v51  ;;  %v10672_v33 = vld [vmem:[#allocation76_spill] sm:$0xff] }
  0xbc   : > { %v642_v24 = vcvt.s32.f32 %v10672_v33  ;;  %v4355_v15 = vmul.f32 0.1, %v628_v59  ;;  %v4357_v22 = vmul.f32 0.1, %v629_v53  ;;  %v4359_v36 = vmul.f32 0.1, %v630_v63 }
  0xbd   : > { %v4361_v37 = vmul.f32 0.1, %v631_v3  ;;  %v4363_v38 = vmul.f32 0.1, %v632_v4  ;;  %v4365_v30 = vmul.f32 0.1, %v633_v6 }
  0xbe   : > { %v4367_v39 = vmul.f32 0.1, %v634_v1  ;;  %v4369_v43 = vmul.f32 0.1, %v635_v12  ;;  %v4371_v51 = vmul.f32 0.1, %v636_v5 }
  0xbf   : > { %v4373_v19 = vmul.f32 0.1, %v637_v27  ;;  %v4375_v59 = vmul.f32 0.1, %v638_v20  ;;  %v4377_v53 = vmul.f32 0.1, %v639_v56 }
  0xc0   : > { %v4379_v63 = vmul.f32 0.1, %v640_v48  ;;  %v4381_v3 = vmul.f32 0.1, %v641_v21  ;;  %v4383_v4 = vmul.f32 0.1, %v642_v24 }
  0xc1   : > { %v4386_v6 = vadd.f32 0.5, %v4240_v61  ;;  %v4389_v1 = vadd.f32 0.5, %v4243_v42  ;;  %v4392_v12 = vadd.f32 0.5, %v4245_v46  ;;  %v4395_v5 = vadd.f32 0.5, %v4247_v47 }
  0xc2   : > { %v4398_v27 = vadd.f32 0.5, %v4250_v50  ;;  %v4401_v20 = vadd.f32 0.5, %v4252_v54  ;;  %v4404_v56 = vadd.f32 0.5, %v4254_v55  ;;  %v4407_v61 = vadd.f32 0.5, %v4257_v52  ;;  %v10673_v54 = vld [vmem:[#allocation143_spill] sm:$0xff] }
  0xc3   : > { %v4410_v42 = vadd.f32 0.5, %v4259_v58  ;;  %v4413_v46 = vadd.f32 0.5, %v4261_v11  ;;  %v4416_v47 = vadd.f32 0.5, %v4264_v14  ;;  %v4419_v50 = vadd.f32 0.5, %v4266_v62  ;;  %v10674_v58 = vld [vmem:[#allocation144_spill] sm:$0xff]  ;;  %v10676_v62 = vld [vmem:[#allocation145_spill] sm:$0xff] }
  0xc4   : > { %v4422_v48 = vadd.f32 0.5, %v10673_v54  ;;  %v4425_v55 = vadd.f32 0.5, %v4271_v10  ;;  %v4428_v52 = vadd.f32 0.5, %v4273_v8  ;;  %v4431_v21 = vadd.f32 0.5, %v10674_v58  ;;  %v10678_v8 = vld [vmem:[#allocation146_spill] sm:$0xff] }
  0xc5   : > { %v4434_v11 = vadd.f32 0.5, %v4278_v35  ;;  %v4437_v14 = vadd.f32 0.5, %v4280_v9  ;;  %v4440_v24 = vadd.f32 0.5, %v10676_v62  ;;  %v4443_v54 = vadd.f32 0.5, %v4285_v31  ;;  %v10680_v9 = vld [vmem:[#allocation147_spill] sm:$0xff] }
  0xc6   : > { %v4446_v10 = vadd.f32 0.5, %v4287_v60  ;;  %v4449_v33 = vadd.f32 0.5, %v10678_v8  ;;  %v4452_v58 = vadd.f32 0.5, %v4292_v57  ;;  %v4455_v35 = vadd.f32 0.5, %v4294_v2  ;;  %v10682_v60 = vld [vmem:[#allocation148_spill] sm:$0xff]  ;;  %v10684_v2 = vld [vmem:[#allocation149_spill] sm:$0xff] }
  0xc7   : > { %10675 = vst [vmem:[#allocation143_spill] sm:$0xff] %v4437_v14  ;;  %v4458_v14 = vadd.f32 0.5, %v10680_v9  ;;  %v4461_v62 = vadd.f32 0.5, %v4299_v34  ;;  %v4464_v31 = vadd.f32 0.5, %v4301_v0  ;;  %v4470_v8 = vadd.f32 0.5, %v4306_v28  ;;  %v10686_v0 = vld [vmem:[#allocation150_spill] sm:$0xff] }
  0xc8   : > { %10677 = vst [vmem:[#allocation144_spill] sm:$0xff] %v4446_v10  ;;  %10679 = vst [vmem:[#allocation145_spill] sm:$0xff] %v4455_v35  ;;  %v4467_v10 = vadd.f32 0.5, %v10682_v60  ;;  %v4473_v57 = vadd.f32 0.5, %v4308_v7  ;;  %v4476_v35 = vadd.f32 0.5, %v10684_v2  ;;  %v4479_v9 = vadd.f32 0.5, %v4313_v44 }
  0xc9   : > { %10681 = vst [vmem:[#allocation146_spill] sm:$0xff] %v4464_v31  ;;  %v4482_v34 = vadd.f32 0.5, %v4315_v40  ;;  %v4485_v31 = vadd.f32 0.5, %v10686_v0  ;;  %v4488_v60 = vadd.f32 0.5, %v4320_v23  ;;  %v4491_v28 = vadd.f32 0.5, %v4322_v29  ;;  %v10688_v7 = vld [vmem:[#allocation151_spill] sm:$0xff] }
  0xca   : > { %10683 = vst [vmem:[#allocation147_spill] sm:$0xff] %v4473_v57  ;;  %v4494_v57 = vadd.f32 0.5, %v10688_v7  ;;  %v4497_v2 = vadd.f32 0.5, %v4327_v26  ;;  %v4500_v44 = vadd.f32 0.5, %v4329_v45  ;;  %v10689_v40 = vld [vmem:[#allocation152_spill] sm:$0xff]  ;;  %v4506_v0 = vadd.f32 0.5, %v4334_v25 }
  0xcb   : > { %10685 = vst [vmem:[#allocation148_spill] sm:$0xff] %v4482_v34  ;;  %10687 = vst [vmem:[#allocation149_spill] sm:$0xff] %v4491_v28  ;;  %v4503_v34 = vadd.f32 0.5, %v10689_v40  ;;  %v4509_v23 = vadd.f32 0.5, %v4336_v49  ;;  %v10690_v29 = vld [vmem:[#allocation153_spill] sm:$0xff]  ;;  %v4515_v7 = vadd.f32 0.5, %v4341_v13 }
  0xcc   : > { %v4512_v28 = vadd.f32 0.5, %v10690_v29  ;;  %v4518_v26 = vadd.f32 0.5, %v4343_v41  ;;  %v4521_v45 = vadd.f32 0.5, %v4345_v16  ;;  %v4524_v40 = vadd.f32 0.5, %v4348_v32 }
  0xcd   : > { %v4527_v25 = vadd.f32 0.5, %v4350_v17  ;;  %v4530_v49 = vadd.f32 0.5, %v4352_v18  ;;  %v4533_v29 = vadd.f32 0.5, %v4355_v15  ;;  %v4536_v13 = vadd.f32 0.5, %v4357_v22 }
  0xce   : > { %v4539_v41 = vadd.f32 0.5, %v4359_v36  ;;  %v4542_v16 = vadd.f32 0.5, %v4361_v37  ;;  %v4545_v32 = vadd.f32 0.5, %v4363_v38  ;;  %v4548_v17 = vadd.f32 0.5, %v4365_v30 }
  0xcf   : > { %10691 = vst [vmem:[#allocation150_spill] sm:$0xff] %v4536_v13  ;;  %v4551_v18 = vadd.f32 0.5, %v4367_v39  ;;  %v2783_v15 = vtrunc.f32 %v4386_v6  ;;  %v2785_v22 = vtrunc.f32 %v4389_v1  ;;  %v2787_v13 = vtrunc.f32 %v4392_v12 }
  0xd0   : > { %10692 = vst [vmem:[#allocation151_spill] sm:$0xff] %v4548_v17  ;;  %v2789_v36 = vtrunc.f32 %v4395_v5  ;;  %v4558_v37 = vadd.f32 0.5, %v4369_v43  ;;  %v4561_v38 = vadd.f32 0.5, %v4371_v51  ;;  %v2791_v30 = vtrunc.f32 %v4398_v27 }
  0xd1   : > { %v2793_v17 = vtrunc.f32 %v4401_v20  ;;  %v4566_v39 = vadd.f32 0.5, %v4373_v19  ;;  %v4569_v6 = vadd.f32 0.5, %v4375_v59  ;;  %v2795_v1 = vtrunc.f32 %v4404_v56 }
  0xd2   : > { %v2797_v12 = vtrunc.f32 %v4407_v61  ;;  %v4574_v43 = vadd.f32 0.5, %v4377_v53  ;;  %v4577_v51 = vadd.f32 0.5, %v4379_v63  ;;  %v4580_v5 = vadd.f32 0.5, %v4381_v3 }
  0xd3   : > { %v4583_v27 = vadd.f32 0.5, %v4383_v4  ;;  %v4585_v19 = vcvt.f32.s32 %v2783_v15  ;;  %v4587_v59 = vcvt.f32.s32 %v2785_v22  ;;  %v4589_v20 = vcvt.f32.s32 %v2787_v13 }
  0xd4   : > { %10693 = vst [vmem:[#allocation152_spill] sm:$0xff] %v4580_v5  ;;  %v4591_v56 = vcvt.f32.s32 %v2789_v36  ;;  %v4593_v61 = vcvt.f32.s32 %v2791_v30  ;;  %v4595_v53 = vcvt.f32.s32 %v2793_v17  ;;  %v2799_v63 = vtrunc.f32 %v4410_v42 }
  0xd5   : > { %v2801_v3 = vtrunc.f32 %v4413_v46  ;;  %v4599_v5 = vcvt.f32.s32 %v2795_v1  ;;  %v4601_v4 = vcvt.f32.s32 %v2797_v12  ;;  %v2803_v15 = vtrunc.f32 %v4416_v47 }
  0xd6   : > { %10694 = vst [vmem:[#allocation153_spill] sm:$0xff] %v4593_v61  ;;  %10695 = vst [vmem:[#allocation154_spill] sm:$0xff] %v4595_v53  ;;  %v2805_v22 = vtrunc.f32 %v4419_v50  ;;  %v2807_v13 = vtrunc.f32 %v4422_v48  ;;  %v2809_v36 = vtrunc.f32 %v4425_v55  ;;  %v2811_v30 = vtrunc.f32 %v4428_v52  ;;  %v10698_v53 = vld [vmem:[#allocation143_spill] sm:$0xff]  ;;  %v10699_v50 = vld [vmem:[#allocation144_spill] sm:$0xff] }
  0xd7   : > { %10696 = vst [vmem:[#allocation155_spill] sm:$0xff] %v4599_v5  ;;  %10697 = vst [vmem:[#allocation156_spill] sm:$0xff] %v4601_v4  ;;  %v2813_v17 = vtrunc.f32 %v4431_v21  ;;  %v2815_v42 = vtrunc.f32 %v4434_v11  ;;  %v2817_v46 = vtrunc.f32 %v10698_v53  ;;  %v2819_v1 = vtrunc.f32 %v4440_v24  ;;  %v10700_v11 = vld [vmem:[#allocation145_spill] sm:$0xff] }
  0xd8   : > { %v2821_v12 = vtrunc.f32 %v4443_v54  ;;  %v4613_v4 = vcvt.f32.s32 %v2799_v63  ;;  %v4615_v47 = vcvt.f32.s32 %v2801_v3  ;;  %v2823_v48 = vtrunc.f32 %v10699_v50 }
  0xd9   : > { %v2825_v55 = vtrunc.f32 %v4449_v33  ;;  %v4619_v5 = vcvt.f32.s32 %v2803_v15  ;;  %v4621_v52 = vcvt.f32.s32 %v2805_v22  ;;  %v2827_v21 = vtrunc.f32 %v4452_v58 }
  0xda   : > { %v2829_v53 = vtrunc.f32 %v10700_v11  ;;  %v4625_v61 = vcvt.f32.s32 %v2807_v13  ;;  %v4627_v24 = vcvt.f32.s32 %v2809_v36  ;;  %v4629_v54 = vcvt.f32.s32 %v2811_v30 }
  0xdb   : > { %v4631_v63 = vcvt.f32.s32 %v2813_v17  ;;  %v4633_v3 = vcvt.f32.s32 %v2815_v42  ;;  %v4635_v50 = vcvt.f32.s32 %v2817_v46  ;;  %v4637_v33 = vcvt.f32.s32 %v2819_v1  ;;  %v10705_v42 = vld [vmem:[#allocation146_spill] sm:$0xff] }
  0xdc   : > { %v4639_v15 = vcvt.f32.s32 %v2821_v12  ;;  %v4641_v22 = vcvt.f32.s32 %v2823_v48  ;;  %v4643_v58 = vcvt.f32.s32 %v2825_v55  ;;  %v2831_v13 = vtrunc.f32 %v4458_v14  ;;  %v10706_v12 = vld [vmem:[#allocation147_spill] sm:$0xff] }
  0xdd   : > { %v2833_v36 = vtrunc.f32 %v4461_v62  ;;  %v4647_v30 = vcvt.f32.s32 %v2827_v21  ;;  %v4649_v17 = vcvt.f32.s32 %v2829_v53  ;;  %v2835_v11 = vtrunc.f32 %v10705_v42  ;;  %v10708_v53 = vld [vmem:[#allocation149_spill] sm:$0xff] }
  0xde   : > { %10701 = vst [vmem:[#allocation143_spill] sm:$0xff] %v4639_v15  ;;  %10702 = vst [vmem:[#allocation144_spill] sm:$0xff] %v4643_v58  ;;  %v2837_v46 = vtrunc.f32 %v4467_v10  ;;  %v2839_v1 = vtrunc.f32 %v4470_v8  ;;  %v2841_v15 = vtrunc.f32 %v10706_v12  ;;  %v2843_v48 = vtrunc.f32 %v4476_v35  ;;  %v10707_v58 = vld [vmem:[#allocation148_spill] sm:$0xff] }
  0xdf   : > { %10703 = vst [vmem:[#allocation145_spill] sm:$0xff] %v4647_v30  ;;  %10704 = vst [vmem:[#allocation157_spill] sm:$0xff] %v4649_v17  ;;  %v2845_v55 = vtrunc.f32 %v4479_v9  ;;  %v2847_v14 = vtrunc.f32 %v10707_v58  ;;  %v2849_v62 = vtrunc.f32 %v4485_v31  ;;  %v2851_v21 = vtrunc.f32 %v4488_v60 }
  0xe0   : > { %v2853_v17 = vtrunc.f32 %v10708_v53  ;;  %v4661_v30 = vcvt.f32.s32 %v2831_v13  ;;  %v4663_v42 = vcvt.f32.s32 %v2833_v36  ;;  %v2855_v10 = vtrunc.f32 %v4494_v57 }
  0xe1   : > { %v2857_v8 = vtrunc.f32 %v4497_v2  ;;  %v4667_v12 = vcvt.f32.s32 %v2835_v11  ;;  %v4669_v35 = vcvt.f32.s32 %v2837_v46  ;;  %v2859_v9 = vtrunc.f32 %v4500_v44 }
  0xe2   : > { %v2861_v31 = vtrunc.f32 %v4503_v34  ;;  %v4673_v58 = vcvt.f32.s32 %v2839_v1  ;;  %v4675_v60 = vcvt.f32.s32 %v2841_v15  ;;  %v4677_v13 = vcvt.f32.s32 %v2843_v48 }
  0xe3   : > { %v4679_v36 = vcvt.f32.s32 %v2845_v55  ;;  %v4681_v53 = vcvt.f32.s32 %v2847_v14  ;;  %v4683_v57 = vcvt.f32.s32 %v2849_v62  ;;  %v4685_v2 = vcvt.f32.s32 %v2851_v21 }
  0xe4   : > { %10709 = vst [vmem:[#allocation146_spill] sm:$0xff] %v4677_v13  ;;  %v4687_v11 = vcvt.f32.s32 %v2853_v17  ;;  %v4689_v46 = vcvt.f32.s32 %v2855_v10  ;;  %v4691_v44 = vcvt.f32.s32 %v2857_v8  ;;  %v2863_v34 = vtrunc.f32 %v4506_v0  ;;  %v10714_v8 = vld [vmem:[#allocation150_spill] sm:$0xff] }
  0xe5   : > { %10710 = vst [vmem:[#allocation147_spill] sm:$0xff] %v4679_v36  ;;  %10711 = vst [vmem:[#allocation148_spill] sm:$0xff] %v4681_v53  ;;  %v2865_v15 = vtrunc.f32 %v4509_v23  ;;  %v4695_v1 = vcvt.f32.s32 %v2859_v9  ;;  %v4697_v48 = vcvt.f32.s32 %v2861_v31  ;;  %v2867_v55 = vtrunc.f32 %v4512_v28  ;;  %v5056_v53 = vld [vmem:[%s3561_s21 + $0x90] sm:$0xff]  ;;  %v5059_v36 = vld [vmem:[%s3561_s21 + $0x98] sm:$0xff] }
  0xe6   : > { %v2869_v14 = vtrunc.f32 %v4515_v7  ;;  %v2871_v62 = vtrunc.f32 %v4518_v26  ;;  %v2873_v17 = vtrunc.f32 %v4521_v45  ;;  %v2875_v21 = vtrunc.f32 %v4524_v40 }
  0xe7   : > { %10712 = vst [vmem:[#allocation149_spill] sm:$0xff] %v4695_v1  ;;  %10713 = vst [vmem:[#allocation158_spill] sm:$0xff] %v4697_v48  ;;  %v2877_v10 = vtrunc.f32 %v4527_v25  ;;  %v2879_v0 = vtrunc.f32 %v4530_v49  ;;  %v2881_v23 = vtrunc.f32 %v4533_v29  ;;  %v2883_v9 = vtrunc.f32 %v10714_v8  ;;  %v10715_v25 = vld [vmem:[#allocation151_spill] sm:$0xff] }
  0xe8   : > { %v2885_v31 = vtrunc.f32 %v4539_v41  ;;  %v4709_v48 = vcvt.f32.s32 %v2863_v34  ;;  %v4711_v28 = vcvt.f32.s32 %v2865_v15  ;;  %v2887_v7 = vtrunc.f32 %v4542_v16 }
  0xe9   : > { %v2889_v26 = vtrunc.f32 %v4545_v32  ;;  %v4715_v45 = vcvt.f32.s32 %v2867_v55  ;;  %v4717_v40 = vcvt.f32.s32 %v2869_v14  ;;  %v2891_v49 = vtrunc.f32 %v10715_v25 }
  0xea   : > { %v2893_v29 = vtrunc.f32 %v4551_v18  ;;  %v4721_v1 = vcvt.f32.s32 %v2871_v62  ;;  %v4723_v8 = vcvt.f32.s32 %v2873_v17  ;;  %v4725_v41 = vcvt.f32.s32 %v2875_v21 }
  0xeb   : > { %v4727_v34 = vcvt.f32.s32 %v2877_v10  ;;  %v4729_v15 = vcvt.f32.s32 %v2879_v0  ;;  %v4731_v16 = vcvt.f32.s32 %v2881_v23  ;;  %v4733_v32 = vcvt.f32.s32 %v2883_v9 }
  0xec   : > { %v4735_v55 = vcvt.f32.s32 %v2885_v31  ;;  %v4737_v14 = vcvt.f32.s32 %v2887_v7  ;;  %v4739_v25 = vcvt.f32.s32 %v2889_v26  ;;  %v2895_v18 = vtrunc.f32 %v4558_v37  ;;  %v10721_v26 = vld [vmem:[#allocation152_spill] sm:$0xff] }
  0xed   : > { %v2897_v62 = vtrunc.f32 %v4561_v38  ;;  %v4743_v17 = vcvt.f32.s32 %v2891_v49  ;;  %v4745_v21 = vcvt.f32.s32 %v2893_v29  ;;  %v2899_v10 = vtrunc.f32 %v4566_v39 }
  0xee   : > { %10716 = vst [vmem:[#allocation150_spill] sm:$0xff] %v4735_v55  ;;  %10717 = vst [vmem:[#allocation151_spill] sm:$0xff] %v4737_v14  ;;  %v2901_v0 = vtrunc.f32 %v4569_v6  ;;  %v2903_v23 = vtrunc.f32 %v4574_v43  ;;  %v2905_v9 = vtrunc.f32 %v4577_v51  ;;  %v835_v31 = vmul.u32 10, %v4585_v19  ;;  %v10722_v6 = vld [vmem:[#allocation153_spill] sm:$0xff]  ;;  %v10727_v14 = vld [vmem:[#allocation156_spill] sm:$0xff] }
  0xef   : > { %10718 = vst [vmem:[#allocation159_spill] sm:$0xff] %v4739_v25  ;;  %10719 = vst [vmem:[#allocation160_spill] sm:$0xff] %v4743_v17  ;;  %v836_v7 = vmul.u32 10, %v4587_v59  ;;  %v2907_v37 = vtrunc.f32 %v10721_v26  ;;  %v2909_v38 = vtrunc.f32 %v4583_v27  ;;  %v837_v49 = vmul.u32 10, %v4589_v20  ;;  %v10723_v17 = vld [vmem:[#allocation154_spill] sm:$0xff]  ;;  %v10726_v59 = vld [vmem:[#allocation155_spill] sm:$0xff] }
  0xf0   : > { %10720 = vst [vmem:[#allocation161_spill] sm:$0xff] %v4745_v21  ;;  %v838_v29 = vmul.u32 10, %v4591_v56  ;;  %v4757_v21 = vcvt.f32.s32 %v2895_v18  ;;  %v4759_v39 = vcvt.f32.s32 %v2897_v62  ;;  %v839_v43 = vmul.u32 10, %v10722_v6 }
  0xf1   : > { %v840_v51 = vmul.u32 10, %v10723_v17  ;;  %v4763_v25 = vcvt.f32.s32 %v2899_v10  ;;  %v4765_v19 = vcvt.f32.s32 %v2901_v0  ;;  %v841_v26 = vmul.u32 10, %v10726_v59 }
  0xf2   : > { %v842_v27 = vmul.u32 10, %v10727_v14  ;;  %v4769_v55 = vcvt.f32.s32 %v2903_v23  ;;  %v4771_v20 = vcvt.f32.s32 %v2905_v9  ;;  %v843_v56 = vmul.u32 10, %v4613_v4  ;;  %v10732_v23 = vld [vmem:[#allocation110_spill] sm:$0xff]  ;;  %v10734_v9 = vld [vmem:[#allocation111_spill] sm:$0xff] }
  0xf3   : > { %10724 = vst [vmem:[#allocation152_spill] sm:$0xff] %v4763_v25  ;;  %10725 = vst [vmem:[#allocation153_spill] sm:$0xff] %v4765_v19  ;;  %v844_v18 = vmul.u32 10, %v4615_v47  ;;  %v4775_v62 = vcvt.f32.s32 %v2907_v37  ;;  %v4777_v6 = vcvt.f32.s32 %v2909_v38  ;;  %v845_v17 = vmul.u32 10, %v4619_v5  ;;  %v10736_v37 = vld [vmem:[#allocation112_spill] sm:$0xff]  ;;  %v10738_v5 = vld [vmem:[#allocation113_spill] sm:$0xff] }
  0xf4   : > { %10728 = vst [vmem:[#allocation154_spill] sm:$0xff] %v4769_v55  ;;  %10729 = vst [vmem:[#allocation155_spill] sm:$0xff] %v4771_v20  ;;  %v846_v10 = vmul.u32 10, %v4621_v52  ;;  %v847_v0 = vmul.u32 10, %v4625_v61  ;;  %v4784_v59 = vsub.s32 %v10732_v23, %v835_v31  ;;  %v4787_v20 = vsub.s32 %v10734_v9, %v836_v7  ;;  %v10742_v23 = vld [vmem:[#allocation115_spill] sm:$0xff] }
  0xf5   : > { %10730 = vst [vmem:[#allocation156_spill] sm:$0xff] %v4775_v62  ;;  %10731 = vst [vmem:[#allocation162_spill] sm:$0xff] %v4777_v6  ;;  %v848_v14 = vmul.u32 10, %v4627_v24  ;;  %v849_v4 = vmul.u32 10, %v4629_v54  ;;  %v4792_v38 = vsub.s32 %v10736_v37, %v837_v49  ;;  %v4795_v6 = vsub.s32 %v10738_v5, %v838_v29  ;;  %v10740_v24 = vld [vmem:[#allocation114_spill] sm:$0xff]  ;;  %v10744_v9 = vld [vmem:[#allocation143_spill] sm:$0xff] }
  0xf6   : > { %10733 = vst [vmem:[#allocation110_spill] sm:$0xff] %v4784_v59  ;;  %10735 = vst [vmem:[#allocation111_spill] sm:$0xff] %v4787_v20  ;;  %v850_v47 = vmul.u32 10, %v4631_v63  ;;  %v851_v61 = vmul.u32 10, %v4633_v3  ;;  %v4800_v31 = vsub.s32 %v10740_v24, %v839_v43  ;;  %v4803_v7 = vsub.s32 %v10742_v23, %v840_v51  ;;  %v10745_v20 = vld [vmem:[#allocation116_spill] sm:$0xff]  ;;  %v10747_v37 = vld [vmem:[#allocation117_spill] sm:$0xff] }
  0xf7   : > { %10737 = vst [vmem:[#allocation112_spill] sm:$0xff] %v4792_v38  ;;  %10739 = vst [vmem:[#allocation113_spill] sm:$0xff] %v4795_v6  ;;  %v852_v52 = vmul.u32 10, %v4635_v50  ;;  %v853_v54 = vmul.u32 10, %v4637_v33  ;;  %v4808_v49 = vsub.s32 %v10745_v20, %v841_v26  ;;  %v4811_v29 = vsub.s32 %v10747_v37, %v842_v27  ;;  %v10749_v5 = vld [vmem:[#allocation144_spill] sm:$0xff]  ;;  %v10750_v6 = vld [vmem:[#allocation118_spill] sm:$0xff] }
  0xf8   : > { %10741 = vst [vmem:[#allocation114_spill] sm:$0xff] %v4800_v31  ;;  %10743 = vst [vmem:[#allocation115_spill] sm:$0xff] %v4803_v7  ;;  %v854_v63 = vmul.u32 10, %v10744_v9  ;;  %v855_v3 = vmul.u32 10, %v4641_v22  ;;  %v4816_v43 = vsub.s32 %v10750_v6, %v843_v56  ;;  %v10752_v24 = vld [vmem:[#allocation119_spill] sm:$0xff]  ;;  %v10754_v23 = vld [vmem:[#allocation145_spill] sm:$0xff] }
  0xf9   : > { %10746 = vst [vmem:[#allocation143_spill] sm:$0xff] %v4808_v49  ;;  %10748 = vst [vmem:[#allocation116_spill] sm:$0xff] %v4811_v29  ;;  %v856_v50 = vmul.u32 10, %v10749_v5  ;;  %v4819_v51 = vsub.s32 %v10752_v24, %v844_v18  ;;  %v857_v33 = vmul.u32 10, %v10754_v23  ;;  %v10755_v7 = vld [vmem:[#allocation157_spill] sm:$0xff]  ;;  %v10756_v31 = vld [vmem:[#allocation120_spill] sm:$0xff] }
  0xfa   : > { %10751 = vst [vmem:[#allocation117_spill] sm:$0xff] %v4816_v43  ;;  %v858_v9 = vmul.u32 10, %v10755_v7  ;;  %v4824_v26 = vsub.s32 %v10756_v31, %v845_v17  ;;  %v10758_v20 = vld [vmem:[#allocation121_spill] sm:$0xff]  ;;  %v859_v22 = vmul.u32 10, %v4661_v30  ;;  %v10760_v5 = vld [vmem:[#allocation122_spill] sm:$0xff]  ;;  %v10762_v6 = vld [vmem:[#allocation123_spill] sm:$0xff] }
  0xfb   : > { %10753 = vst [vmem:[#allocation144_spill] sm:$0xff] %v4819_v51  ;;  %v4827_v27 = vsub.s32 %v10758_v20, %v846_v10  ;;  %v860_v37 = vmul.u32 10, %v4663_v42  ;;  %v4832_v56 = vsub.s32 %v10760_v5, %v847_v0  ;;  %v4835_v18 = vsub.s32 %v10762_v6, %v848_v14  ;;  %v10764_v23 = vld [vmem:[#allocation124_spill] sm:$0xff]  ;;  %v10766_v31 = vld [vmem:[#allocation125_spill] sm:$0xff]  ;;  %v10768_v20 = vld [vmem:[#allocation126_spill] sm:$0xff] }
  0xfc   : > { %10757 = vst [vmem:[#allocation118_spill] sm:$0xff] %v4824_v26  ;;  %v861_v24 = vmul.u32 10, %v4667_v12  ;;  %v862_v7 = vmul.u32 10, %v4669_v35  ;;  %v4840_v17 = vsub.s32 %v10764_v23, %v849_v4  ;;  %v4843_v10 = vsub.s32 %v10766_v31, %v850_v47  ;;  %v10770_v5 = vld [vmem:[#allocation127_spill] sm:$0xff]  ;;  %v10772_v6 = vld [vmem:[#allocation128_spill] sm:$0xff]  ;;  %v10774_v23 = vld [vmem:[#allocation129_spill] sm:$0xff] }
  0xfd   : > { %10759 = vst [vmem:[#allocation119_spill] sm:$0xff] %v4827_v27  ;;  %10761 = vst [vmem:[#allocation145_spill] sm:$0xff] %v4832_v56  ;;  %v863_v30 = vmul.u32 10, %v4673_v58  ;;  %v864_v42 = vmul.u32 10, %v4675_v60  ;;  %v4848_v0 = vsub.s32 %v10768_v20, %v851_v61  ;;  %v4851_v14 = vsub.s32 %v10770_v5, %v852_v52  ;;  %v10776_v31 = vld [vmem:[#allocation130_spill] sm:$0xff]  ;;  %v10778_v20 = vld [vmem:[#allocation131_spill] sm:$0xff] }
  0xfe   : > { %10763 = vst [vmem:[#allocation157_spill] sm:$0xff] %v4835_v18  ;;  %10765 = vst [vmem:[#allocation120_spill] sm:$0xff] %v4840_v17  ;;  %v4856_v4 = vsub.s32 %v10772_v6, %v853_v54  ;;  %v4859_v47 = vsub.s32 %v10774_v23, %v854_v63  ;;  %v868_v60 = vmul.u32 10, %v4683_v57  ;;  %v4864_v61 = vsub.s32 %v10776_v31, %v855_v3  ;;  %v10780_v12 = vld [vmem:[#allocation132_spill] sm:$0xff]  ;;  %v10782_v6 = vld [vmem:[#allocation133_spill] sm:$0xff] }
  0xff   : > { %10767 = vst [vmem:[#allocation121_spill] sm:$0xff] %v4843_v10  ;;  %10769 = vst [vmem:[#allocation122_spill] sm:$0xff] %v4848_v0  ;;  %v4867_v52 = vsub.s32 %v10778_v20, %v856_v50  ;;  %v869_v5 = vmul.u32 10, %v4685_v2  ;;  %v870_v35 = vmul.u32 10, %v4687_v11  ;;  %v4872_v54 = vsub.s32 %v10780_v12, %v857_v33  ;;  %v10784_v58 = vld [vmem:[#allocation134_spill] sm:$0xff]  ;;  %v10786_v31 = vld [vmem:[#allocation135_spill] sm:$0xff] }
 0x100   : > { %10771 = vst [vmem:[#allocation123_spill] sm:$0xff] %v4851_v14  ;;  %10773 = vst [vmem:[#allocation124_spill] sm:$0xff] %v4856_v4  ;;  %v4875_v63 = vsub.s32 %v10782_v6, %v858_v9  ;;  %v871_v23 = vmul.u32 10, %v4689_v46  ;;  %v872_v57 = vmul.u32 10, %v4691_v44  ;;  %v4880_v3 = vsub.s32 %v10784_v58, %v859_v22  ;;  %v10788_v20 = vld [vmem:[#allocation149_spill] sm:$0xff]  ;;  %v10794_v6 = vld [vmem:[#allocation138_spill] sm:$0xff] }
 0x101   : > { %10775 = vst [vmem:[#allocation125_spill] sm:$0xff] %v4859_v47  ;;  %10777 = vst [vmem:[#allocation126_spill] sm:$0xff] %v4864_v61  ;;  %v4883_v50 = vsub.s32 %v10786_v31, %v860_v37  ;;  %v873_v2 = vmul.u32 10, %v10788_v20  ;;  %v10790_v61 = vld [vmem:[#allocation136_spill] sm:$0xff]  ;;  %v10792_v12 = vld [vmem:[#allocation137_spill] sm:$0xff]  ;;  %v875_v46 = vmul.u32 10, %v4709_v48  ;;  %v4896_v22 = vsub.s32 %v10794_v6, %v863_v30 }
 0x102   : > { %10779 = vst [vmem:[#allocation127_spill] sm:$0xff] %v4867_v52  ;;  %10781 = vst [vmem:[#allocation128_spill] sm:$0xff] %v4872_v54  ;;  %v10789_v52 = vld [vmem:[#allocation158_spill] sm:$0xff]  ;;  %v4888_v33 = vsub.s32 %v10790_v61, %v861_v24  ;;  %v4891_v9 = vsub.s32 %v10792_v12, %v862_v7  ;;  %v876_v44 = vmul.u32 10, %v4711_v28  ;;  %v10796_v58 = vld [vmem:[#allocation139_spill] sm:$0xff]  ;;  %v877_v31 = vmul.u32 10, %v4715_v45 }
 0x103   : > { %10783 = vst [vmem:[#allocation129_spill] sm:$0xff] %v4875_v63  ;;  %10785 = vst [vmem:[#allocation130_spill] sm:$0xff] %v4880_v3  ;;  %v874_v11 = vmul.u32 10, %v10789_v52  ;;  %v4899_v37 = vsub.s32 %v10796_v58, %v864_v42  ;;  %v878_v52 = vmul.u32 10, %v4717_v40  ;;  %v10798_v20 = vld [vmem:[#allocation46_spill] sm:$0xff]  ;;  %v10799_v61 = vld [vmem:[#allocation47_spill] sm:$0xff] }
 0x104   : > { %10787 = vst [vmem:[#allocation131_spill] sm:$0xff] %v4883_v50  ;;  %10791 = vst [vmem:[#allocation132_spill] sm:$0xff] %v4888_v33  ;;  %v4904_v24 = vsub.s32 %v10798_v20, %v868_v60  ;;  %v4907_v7 = vsub.s32 %v10799_v61, %v869_v5  ;;  %v879_v48 = vmul.u32 10, %v4721_v1  ;;  %v880_v28 = vmul.u32 10, %v4723_v8  ;;  %v10800_v12 = vld [vmem:[#allocation48_spill] sm:$0xff]  ;;  %v10801_v6 = vld [vmem:[#allocation49_spill] sm:$0xff] }
 0x105   : > { %10793 = vst [vmem:[#allocation133_spill] sm:$0xff] %v4891_v9  ;;  %10795 = vst [vmem:[#allocation134_spill] sm:$0xff] %v4896_v22  ;;  %v4912_v30 = vsub.s32 %v10800_v12, %v870_v35  ;;  %v4915_v42 = vsub.s32 %v10801_v6, %v871_v23  ;;  %v881_v45 = vmul.u32 10, %v4725_v41  ;;  %v882_v40 = vmul.u32 10, %v4727_v34  ;;  %v10802_v58 = vld [vmem:[#allocation50_spill] sm:$0xff]  ;;  %v10803_v20 = vld [vmem:[#allocation51_spill] sm:$0xff] }
 0x106   : > { %10797 = vst [vmem:[#allocation135_spill] sm:$0xff] %v4899_v37  ;;  %v4920_v60 = vsub.s32 %v10802_v58, %v872_v57  ;;  %v4923_v5 = vsub.s32 %v10803_v20, %v873_v2  ;;  %v883_v1 = vmul.u32 10, %v4729_v15  ;;  %v884_v8 = vmul.u32 10, %v4731_v16  ;;  %v10804_v61 = vld [vmem:[#allocation52_spill] sm:$0xff]  ;;  %v10805_v12 = vld [vmem:[#allocation53_spill] sm:$0xff]  ;;  %v10806_v6 = vld [vmem:[#allocation150_spill] sm:$0xff] }
 0x107   : > { %v4928_v35 = vsub.s32 %v10804_v61, %v874_v11  ;;  %v4931_v23 = vsub.s32 %v10805_v12, %v875_v46  ;;  %v885_v41 = vmul.u32 10, %v4733_v32  ;;  %v886_v34 = vmul.u32 10, %v10806_v6  ;;  %v10807_v57 = vld [vmem:[#allocation54_spill] sm:$0xff]  ;;  %v10808_v2 = vld [vmem:[#allocation55_spill] sm:$0xff]  ;;  %v10811_v46 = vld [vmem:[#allocation56_spill] sm:$0xff] }
 0x108   : > { %v4936_v58 = vsub.s32 %v10807_v57, %v876_v44  ;;  %v4939_v15 = vsub.s32 %v10808_v2, %v877_v31  ;;  %v10809_v16 = vld [vmem:[#allocation151_spill] sm:$0xff]  ;;  %v4944_v12 = vsub.s32 %v10811_v46, %v878_v52  ;;  %v10812_v32 = vld [vmem:[#allocation57_spill] sm:$0xff]  ;;  %v10813_v6 = vld [vmem:[#allocation160_spill] sm:$0xff]  ;;  %v1365_v55 = vsub.f32 0.0, %v5056_v53 }
 0x109   : > { %v887_v11 = vmul.u32 10, %v10809_v16  ;;  %v10810_v20 = vld [vmem:[#allocation159_spill] sm:$0xff]  ;;  %v4947_v37 = vsub.s32 %v10812_v32, %v879_v48  ;;  %v889_v22 = vmul.u32 10, %v10813_v6  ;;  %v10814_v9 = vld [vmem:[#allocation161_spill] sm:$0xff]  ;;  %v10815_v57 = vld [vmem:[#allocation58_spill] sm:$0xff]  ;;  %vm996_vm9 = vcmp.eq.s32.totalorder %v4904_v24, 0 }
 0x10a   : > { %v888_v61 = vmul.u32 10, %v10810_v20  ;;  %v4952_v31 = vsub.s32 %v10815_v57, %v880_v28  ;;  %v10816_v2 = vld [vmem:[#allocation59_spill] sm:$0xff]  ;;  %v10818_v48 = vld [vmem:[#allocation60_spill] sm:$0xff]  ;;  %v10820_v32 = vld [vmem:[#allocation61_spill] sm:$0xff]  ;;  %vm1060_vm15 = vcmp.eq.s32.totalorder %v4904_v24, 10  ;;  %vm997_vm14 = vcmp.eq.s32.totalorder %v4907_v7, 0 }
 0x10b   : > { %v4955_v16 = vsub.s32 %v10816_v2, %v881_v45  ;;  %v4960_v46 = vsub.s32 %v10818_v48, %v882_v40  ;;  %v4963_v6 = vsub.s32 %v10820_v32, %v883_v1  ;;  %v4966_v44 = vld [vmem:[%s3561_s21] sm:$0xff]  ;;  %v4969_v28 = vld [vmem:[%s3561_s21 + $0x8] sm:$0xff]  ;;  %v4972_v57 = vld [vmem:[%s3561_s21 + $0x10] sm:$0xff]  ;;  %vm1061_vm13 = vcmp.eq.s32.totalorder %v4907_v7, 10 }
 0x10c   : > { %10822 = vst [vmem:[#allocation137_spill] sm:$0xff] %v4966_v44  ;;  %10823 = vst [vmem:[#allocation138_spill] sm:$0xff] %v4969_v28  ;;  %v4975_v45 = vld [vmem:[%s3561_s21 + $0x18] sm:$0xff]  ;;  %v10826_v48 = vld [vmem:[#allocation62_spill] sm:$0xff]  ;;  %v1347_v18 = vsub.f32 0.0, %v4966_v44  ;;  %v1348_v56 = vsub.f32 0.0, %v4969_v28 }
 0x10d   : > { %10817 = vst [vmem:[#allocation149_spill] sm:$0xff] %v4955_v16  ;;  %10819 = vst [vmem:[#allocation158_spill] sm:$0xff] %v4960_v46  ;;  %v4980_v20 = vsub.s32 %v10826_v48, %v884_v8  ;;  %v10828_v1 = vld [vmem:[#allocation63_spill] sm:$0xff]  ;;  %v4986_v52 = vld [vmem:[%s3561_s21 + $0x20] sm:$0xff]  ;;  %v1349_v2 = vsub.f32 0.0, %v4972_v57  ;;  %v1350_v40 = vsub.f32 0.0, %v4975_v45 }
 0x10e   : > { %10821 = vst [vmem:[#allocation136_spill] sm:$0xff] %v4963_v6  ;;  %10824 = vst [vmem:[#allocation139_spill] sm:$0xff] %v4972_v57  ;;  %v4983_v32 = vsub.s32 %v10828_v1, %v885_v41  ;;  %v4989_v33 = vld [vmem:[%s3561_s21 + $0x28] sm:$0xff]  ;;  %v4992_v50 = vld [vmem:[%s3561_s21 + $0x30] sm:$0xff]  ;;  %v5077_v19 = vmin.f32 %v1347_v18, 0.0  ;;  %v5079_v46 = vmin.f32 %v1348_v56, 0.0 }
 0x10f   : > { %10825 = vst [vmem:[#allocation46_spill] sm:$0xff] %v4975_v45  ;;  %10827 = vst [vmem:[#allocation47_spill] sm:$0xff] %v4980_v20  ;;  %v4995_v3 = vld [vmem:[%s3561_s21 + $0x38] sm:$0xff]  ;;  %v5006_v1 = vld [vmem:[%s3561_s21 + $0x40] sm:$0xff]  ;;  %v5086_v16 = vmin.f32 %v1349_v2, 0.0  ;;  %vm998_vm12 = vcmp.eq.s32.totalorder %v4912_v30, 0 }
 0x110   : > { %10829 = vst [vmem:[#allocation48_spill] sm:$0xff] %v4983_v32  ;;  %10830 = vst [vmem:[#allocation49_spill] sm:$0xff] %v4986_v52  ;;  %v10835_v54 = vld [vmem:[#allocation64_spill] sm:$0xff]  ;;  %v10837_v48 = vld [vmem:[#allocation65_spill] sm:$0xff]  ;;  %v1354_v26 = vsub.f32 0.0, %v4995_v3  ;;  %v1355_v29 = vsub.f32 0.0, %v5006_v1 }
 0x111   : > { %10831 = vst [vmem:[#allocation50_spill] sm:$0xff] %v4989_v33  ;;  %10832 = vst [vmem:[#allocation51_spill] sm:$0xff] %v4992_v50  ;;  %v5000_v8 = vsub.s32 %v10835_v54, %v886_v34  ;;  %v5003_v41 = vsub.s32 %v10837_v48, %v887_v11  ;;  %v5009_v47 = vld [vmem:[%s3561_s21 + $0x48] sm:$0xff]  ;;  %v5012_v4 = vld [vmem:[%s3561_s21 + $0x50] sm:$0xff]  ;;  %v1366_v32 = vsub.f32 0.0, %v5059_v36  ;;  %vm1062_vm11 = vcmp.eq.s32.totalorder %v4912_v30, 10 }
 0x112   : > { %10833 = vst [vmem:[#allocation52_spill] sm:$0xff] %v4995_v3  ;;  %10839 = vst [vmem:[#allocation54_spill] sm:$0xff] %v5006_v1  ;;  %v5015_v14 = vld [vmem:[%s3561_s21 + $0x58] sm:$0xff]  ;;  %v10844_v54 = vld [vmem:[#allocation66_spill] sm:$0xff]  ;;  %v1356_v49 = vsub.f32 0.0, %v5009_v47  ;;  %v1357_v38 = vsub.f32 0.0, %v5012_v4 }
 0x113   : > { %10836 = vst [vmem:[#allocation53_spill] sm:$0xff] %v5000_v8  ;;  %10838 = vst [vmem:[#allocation150_spill] sm:$0xff] %v5003_v41  ;;  %v5020_v34 = vsub.s32 %v10844_v54, %v888_v61  ;;  %v10846_v11 = vld [vmem:[#allocation67_spill] sm:$0xff]  ;;  %v5026_v10 = vld [vmem:[%s3561_s21 + $0x60] sm:$0xff]  ;;  %v1352_v54 = vsub.f32 0.0, %v4989_v33  ;;  %v1358_v59 = vsub.f32 0.0, %v5015_v14 }
 0x114   : > { %10840 = vst [vmem:[#allocation55_spill] sm:$0xff] %v5009_v47  ;;  %10841 = vst [vmem:[#allocation151_spill] sm:$0xff] %v5012_v4  ;;  %v5023_v48 = vsub.s32 %v10846_v11, %v889_v22  ;;  %v5029_v17 = vld [vmem:[%s3561_s21 + $0x68] sm:$0xff]  ;;  %v5036_v27 = vld [vmem:[%s3561_s21 + $0x70] sm:$0xff]  ;;  %v1351_v22 = vsub.f32 0.0, %v4986_v52  ;;  %v1353_v11 = vsub.f32 0.0, %v4992_v50 }
 0x115   : > { %10842 = vst [vmem:[#allocation159_spill] sm:$0xff] %v5015_v14  ;;  %10845 = vst [vmem:[#allocation56_spill] sm:$0xff] %v5020_v34  ;;  %v5039_v61 = vld [vmem:[%s3561_s21 + $0x78] sm:$0xff]  ;;  %v5046_v51 = vld [vmem:[%s3561_s21 + $0x80] sm:$0xff]  ;;  %v1359_v13 = vsub.f32 0.0, %v5026_v10  ;;  %v1360_v0 = vsub.f32 0.0, %v5029_v17 }
 0x116   : > { %10847 = vst [vmem:[#allocation57_spill] sm:$0xff] %v5023_v48  ;;  %10848 = vst [vmem:[#allocation160_spill] sm:$0xff] %v5026_v10  ;;  %v5049_v43 = vld [vmem:[%s3561_s21 + $0x88] sm:$0xff]  ;;  %v1361_v62 = vsub.f32 0.0, %v5036_v27  ;;  %v1362_v48 = vsub.f32 0.0, %v5039_v61  ;;  %v5066_v34 = vld [vmem:[%s3561_s21 + $0xa0] sm:$0xff] }
 0x117   : > { %10849 = vst [vmem:[#allocation161_spill] sm:$0xff] %v5029_v17  ;;  %10850 = vst [vmem:[#allocation58_spill] sm:$0xff] %v5036_v27  ;;  %v5069_v41 = vld [vmem:[%s3561_s21 + $0xa8] sm:$0xff]  ;;  %v1363_v63 = vsub.f32 0.0, %v5046_v51  ;;  %v1364_v8 = vsub.f32 0.0, %v5049_v43  ;;  %v1367_v20 = vsub.f32 0.0, %v5066_v34 }
 0x118   : > { %10851 = vst [vmem:[#allocation59_spill] sm:$0xff] %v5039_v61  ;;  %10852 = vst [vmem:[#allocation60_spill] sm:$0xff] %v5046_v51  ;;  %v1368_v6 = vsub.f32 0.0, %v5069_v41  ;;  %v5082_v25 = vld [vmem:[%s3561_s21 + $0xb0] sm:$0xff]  ;;  %v5100_v18 = vmin.f32 %v1353_v11, 0.0  ;;  %v5102_v2 = vmin.f32 %v1354_v26, 0.0 }
 0x119   : > { %10853 = vst [vmem:[#allocation61_spill] sm:$0xff] %v5049_v43  ;;  %10854 = vst [vmem:[#allocation62_spill] sm:$0xff] %v5056_v53  ;;  %v5088_v43 = vmin.f32 %v1350_v40, 0.0  ;;  %v1369_v56 = vsub.f32 0.0, %v5082_v25  ;;  %v5104_v40 = vmin.f32 %v1355_v29, 0.0  ;;  %v5116_v11 = vld [vmem:[%s3561_s21 + $0xc0] sm:$0xff] }
 0x11a   : > { %10855 = vst [vmem:[#allocation63_spill] sm:$0xff] %v5059_v36  ;;  %10856 = vst [vmem:[#allocation64_spill] sm:$0xff] %v5066_v34  ;;  %v5090_v36 = vmin.f32 %v1351_v22, 0.0  ;;  %v5092_v34 = vmin.f32 %v1352_v54, 0.0  ;;  %v5109_v54 = vmin.f32 %v1356_v49, 0.0  ;;  %vm999_vm10 = vcmp.eq.s32.totalorder %v4915_v42, 0 }
 0x11b   : > { %10857 = vst [vmem:[#allocation65_spill] sm:$0xff] %v5069_v41  ;;  %10858 = vst [vmem:[#allocation66_spill] sm:$0xff] %v5077_v19  ;;  %v5095_v41 = vld [vmem:[%s3561_s21 + $0xb8] sm:$0xff]  ;;  %vm1063_vm8 = vcmp.eq.s32.totalorder %v4915_v42, 10  ;;  %v5120_v29 = vmin.f32 %v1359_v13, 0.0  ;;  %v5122_v26 = vmin.f32 %v1360_v0, 0.0 }
 0x11c   : > { %10859 = vst [vmem:[#allocation67_spill] sm:$0xff] %v5079_v46  ;;  %10860 = vst [vmem:[#allocation163_spill] sm:$0xff] %v5082_v25  ;;  %v1370_v22 = vsub.f32 0.0, %v5095_v41  ;;  %v5126_v49 = vmin.f32 %v1362_v48, 0.0  ;;  %vm1000_vm7 = vcmp.eq.s32.totalorder %v4920_v60, 0  ;;  %vm1064_vm6 = vcmp.eq.s32.totalorder %v4920_v60, 10 }
 0x11d   : > { %10861 = vst [vmem:[#allocation164_spill] sm:$0xff] %v5086_v16  ;;  %10862 = vst [vmem:[#allocation165_spill] sm:$0xff] %v5088_v43  ;;  %v5138_v13 = vmin.f32 %v1365_v55, 0.0  ;;  %v5141_v0 = vld [vmem:[%s3561_s21 + $0xd0] sm:$0xff]  ;;  %vm1001_vm5 = vcmp.eq.s32.totalorder %v4923_v5, 0  ;;  %vm1065_vm4 = vcmp.eq.s32.totalorder %v4923_v5, 10 }
 0x11e   : > { %10863 = vst [vmem:[#allocation166_spill] sm:$0xff] %v5090_v36  ;;  %10864 = vst [vmem:[#allocation167_spill] sm:$0xff] %v5092_v34  ;;  %v5111_v34 = vmin.f32 %v1357_v38, 0.0  ;;  %v5113_v36 = vmin.f32 %v1358_v59, 0.0  ;;  %v5129_v38 = vld [vmem:[%s3561_s21 + $0xc8] sm:$0xff]  ;;  %v1371_v59 = vsub.f32 0.0, %v5116_v11 }
 0x11f   : > { %10865 = vst [vmem:[#allocation168_spill] sm:$0xff] %v5095_v41  ;;  %10866 = vst [vmem:[#allocation169_spill] sm:$0xff] %v5100_v18  ;;  %v5146_v48 = vmin.f32 %v1366_v32, 0.0  ;;  %v5157_v55 = vmin.f32 %v1369_v56, 0.0  ;;  %v10915_v43 = vld [vmem:[#allocation71_spill] sm:$0xff]  ;;  %v10916_v46 = vld [vmem:[#allocation158_spill] sm:$0xff] }
 0x120   : > { %10867 = vst [vmem:[#allocation170_spill] sm:$0xff] %v5102_v2  ;;  %10868 = vst [vmem:[#allocation171_spill] sm:$0xff] %v5104_v40  ;;  %v5124_v40 = vmin.f32 %v1361_v62, 0.0  ;;  %v1372_v62 = vsub.f32 0.0, %v5129_v38  ;;  %v5176_v32 = vmin.f32 %v1371_v59, 0.0  ;;  %v5191_v59 = vld [vmem:[%s3561_s21 + $0xe8] sm:$0xff] }
 0x121   : > { %10869 = vst [vmem:[#allocation172_spill] sm:$0xff] %v5109_v54  ;;  %10870 = vst [vmem:[#allocation173_spill] sm:$0xff] %v5111_v34  ;;  %v5136_v34 = vmin.f32 %v1364_v8, 0.0  ;;  %v5159_v8 = vmin.f32 %v1370_v22, 0.0  ;;  %v5267_v54 = vld [vmem:[%s3561_s21 + $0x110] sm:$0xff]  ;;  %v5289_v19 = vld [vmem:[%s3561_s21 + $0x118] sm:$0xff] }
 0x122   : > { %10871 = vst [vmem:[#allocation174_spill] sm:$0xff] %v5113_v36  ;;  %10872 = vst [vmem:[#allocation175_spill] sm:$0xff] %v5116_v11  ;;  %v5134_v36 = vmin.f32 %v1363_v63, 0.0  ;;  %v5153_v63 = vld [vmem:[%s3561_s21 + $0xd8] sm:$0xff]  ;;  %v5186_v56 = vmin.f32 %v1372_v62, 0.0  ;;  %v5292_v53 = vld [vmem:[%s3561_s21 + $0x120] sm:$0xff] }
 0x123   : > { %10873 = vst [vmem:[#allocation176_spill] sm:$0xff] %v5120_v29  ;;  %10874 = vst [vmem:[#allocation177_spill] sm:$0xff] %v5122_v26  ;;  %v1374_v22 = vsub.f32 0.0, %v5153_v63  ;;  %v5242_v62 = vld [vmem:[%s3561_s21 + $0xf8] sm:$0xff]  ;;  %v5261_v26 = vld [vmem:[%s3561_s21 + $0x100] sm:$0xff]  ;;  %vm10964_vm1 = vcmp.eq.s32.totalorder %v4944_v12, 10 }
 0x124   : > { %10875 = vst [vmem:[#allocation178_spill] sm:$0xff] %v5124_v40  ;;  %10876 = vst [vmem:[#allocation179_spill] sm:$0xff] %v5126_v49  ;;  %v5148_v49 = vmin.f32 %v1367_v20, 0.0  ;;  %v5150_v40 = vmin.f32 %v1368_v6, 0.0  ;;  %v10888_v20 = vmul.u32 10, %v10814_v9  ;;  %v1373_v9 = vsub.f32 0.0, %v5141_v0 }
 0x125   : > { %10877 = vst [vmem:[#allocation180_spill] sm:$0xff] %v5129_v38  ;;  %10878 = vst [vmem:[#allocation181_spill] sm:$0xff] %v5134_v36  ;;  %v5264_v29 = vld [vmem:[%s3561_s21 + $0x108] sm:$0xff]  ;;  %v10913_v2 = vld [vmem:[#allocation152_spill] sm:$0xff]  ;;  %v1378_v11 = vsub.f32 0.0, %v5242_v62  ;;  %v10966_v28 = vmov 0 }
 0x126   : > { %10879 = vst [vmem:[#allocation182_spill] sm:$0xff] %v5136_v34  ;;  %10880 = vst [vmem:[#allocation183_spill] sm:$0xff] %v5138_v13  ;;  %v5181_v13 = vld [vmem:[%s3561_s21 + $0xe0] sm:$0xff]  ;;  %v10914_v18 = vmul.u32 10, %v10913_v2  ;;  %v10924_v61 = vld [vmem:[#allocation72_spill] sm:$0xff]  ;;  %v11004_v34 = vmov 0 }
 0x127   : > { %10881 = vst [vmem:[#allocation184_spill] sm:$0xff] %v5141_v0  ;;  %10882 = vst [vmem:[#allocation185_spill] sm:$0xff] %v5146_v48  ;;  %v10925_v17 = vld [vmem:[#allocation136_spill] sm:$0xff]  ;;  %v5339_v25 = vld [vmem:[%s3561_s21 + $0x140] sm:$0xff] }
 0x128   : > { %10883 = vst [vmem:[#allocation186_spill] sm:$0xff] %v5148_v49  ;;  %10884 = vst [vmem:[#allocation187_spill] sm:$0xff] %v5150_v40  ;;  %v10889_v49 = vld [vmem:[#allocation68_spill] sm:$0xff]  ;;  %v10897_v40 = vmul.u32 10, %v4759_v39  ;;  %v5256_v39 = vmin.f32 %v1374_v22, 0.0  ;;  %v5272_v16 = vsub.s32 %v10915_v43, %v10914_v18  ;;  %v5314_v18 = vld [vmem:[%s3561_s21 + $0x128] sm:$0xff] }
 0x129   : > { %10885 = vst [vmem:[#allocation188_spill] sm:$0xff] %v5153_v63  ;;  %10886 = vst [vmem:[#allocation189_spill] sm:$0xff] %v5157_v55  ;;  %v5166_v6 = vsub.s32 %v10889_v49, %v10888_v20  ;;  %v10895_v49 = vmul.u32 10, %v4757_v21  ;;  %v10906_v55 = vld [vmem:[#allocation149_spill] sm:$0xff]  ;;  %v5317_v36 = vld [vmem:[%s3561_s21 + $0x130] sm:$0xff]  ;;  %v11036_v43 = vmov 0 }
 0x12a   : > { %10887 = vst [vmem:[#allocation190_spill] sm:$0xff] %v5159_v8  ;;  %10891 = vst [vmem:[#allocation191_spill] sm:$0xff] %v5176_v32  ;;  %v10896_v32 = vld [vmem:[#allocation69_spill] sm:$0xff]  ;;  %v10898_v8 = vld [vmem:[#allocation70_spill] sm:$0xff] }
 0x12b   : > { %10890 = vst [vmem:[#allocation68_spill] sm:$0xff] %v5166_v6  ;;  %10892 = vst [vmem:[#allocation192_spill] sm:$0xff] %v5181_v13  ;;  %v5196_v20 = vsub.s32 %v10896_v32, %v10895_v49  ;;  %v5206_v48 = vsub.s32 %v10898_v8, %v10897_v40  ;;  %v1375_v49 = vsub.f32 0.0, %v5181_v13  ;;  %v5234_v8 = vmin.f32 %v1373_v9, 0.0  ;;  %v10922_v40 = vld [vmem:[#allocation153_spill] sm:$0xff]  ;;  %v5342_v2 = vld [vmem:[%s3561_s21 + $0x148] sm:$0xff] }
 0x12c   : > { %10893 = vst [vmem:[#allocation193_spill] sm:$0xff] %v5186_v56  ;;  %10894 = vst [vmem:[#allocation194_spill] sm:$0xff] %v5191_v59  ;;  %v5239_v56 = vld [vmem:[%s3561_s21 + $0xf0] sm:$0xff]  ;;  %v1376_v9 = vsub.f32 0.0, %v5191_v59  ;;  %v10923_v51 = vmul.u32 10, %v10922_v40  ;;  %v5336_v41 = vld [vmem:[%s3561_s21 + $0x138] sm:$0xff] }
 0x12d   : > { %vm5214_vm3 = vmor %vm996_vm9, %vm1060_vm15  ;;  %10903 = vst [vmem:[#allocation69_spill] sm:$0xff] %v5234_v8  ;;  %v10928_v8 = vld [vmem:[#allocation47_spill] sm:$0xff]  ;;  %v1377_v40 = vsub.f32 0.0, %v5239_v56  ;;  %v10932_v10 = vld [vmem:[#allocation48_spill] sm:$0xff]  ;;  %v10996_v32 = vmov 0 }
 0x12e   : > { %vm5228_vm9 = vmor %vm997_vm14, %vm1061_vm13  ;;  %10904 = vst [vmem:[#allocation70_spill] sm:$0xff] %v5239_v56  ;;  %v5297_v27 = vsub.s32 %v10924_v61, %v10923_v51  ;;  %v5331_v61 = vmin.f32 %v1375_v49, 0.0  ;;  %v5356_v51 = vmin.f32 %v1376_v9, 0.0  ;;  %v5361_v38 = vld [vmem:[%s3561_s21 + $0x150] sm:$0xff]  ;;  %v5364_v14 = vld [vmem:[%s3561_s21 + $0x158] sm:$0xff]  ;;  %v10959_v56 = vmov 0 }
 0x12f   : > { %10905 = vst [vmem:[#allocation195_spill] sm:$0xff] %v5242_v62  ;;  %vm5250_vm15 = vmor %vm998_vm12, %vm1062_vm11  ;;  %vm10933_vm11 = vcmp.eq.s32.totalorder %v4928_v35, 10  ;;  %v5367_v4 = vld [vmem:[%s3561_s21 + $0x160] sm:$0xff]  ;;  %v5389_v0 = vld [vmem:[%s3561_s21 + $0x168] sm:$0xff]  ;;  %vm10951_vm12 = vcmp.eq.s32.totalorder %v4936_v58, 10  ;;  %vm10973_vm14 = vcmp.eq.s32.totalorder %v4947_v37, 0 }
 0x130   : > { %10909 = vst [vmem:[#allocation149_spill] sm:$0xff] %v5256_v39  ;;  %10911 = vst [vmem:[#allocation196_spill] sm:$0xff] %v5261_v26  ;;  %v10938_v47 = vld [vmem:[#allocation154_spill] sm:$0xff]  ;;  %v10940_v3 = vld [vmem:[#allocation73_spill] sm:$0xff]  ;;  %v11046_v49 = vmov 0  ;;  %v11058_v9 = vmov 0 }
 0x131   : > { %10912 = vst [vmem:[#allocation197_spill] sm:$0xff] %v5264_v29  ;;  %vm5280_vm0 = vmor %vm999_vm10, %vm1063_vm8  ;;  %vm10934_vm8 = vcmp.eq.s32.totalorder %v4928_v35, 0  ;;  %v10939_v1 = vmul.u32 10, %v10938_v47  ;;  %v10942_v33 = vld [vmem:[#allocation53_spill] sm:$0xff]  ;;  %vm10943_vm10 = vcmp.eq.s32.totalorder %v4931_v23, 10  ;;  %v10949_v63 = vld [vmem:[#allocation74_spill] sm:$0xff] }
 0x132   : > { %vm5305_vm13 = vmor %vm1000_vm7, %vm1064_vm6  ;;  %10931 = vst [vmem:[#allocation152_spill] sm:$0xff] %v5331_v61  ;;  %v5392_v61 = vld [vmem:[%s3561_s21 + $0x170] sm:$0xff]  ;;  %v10950_v45 = vld [vmem:[#allocation150_spill] sm:$0xff] }
 0x133   : > { %vm5325_vm7 = vmor %vm1001_vm5, %vm1065_vm4  ;;  %10937 = vst [vmem:[#allocation71_spill] sm:$0xff] %v5356_v51  ;;  %v5372_v50 = vsub.s32 %v10940_v3, %v10939_v1  ;;  %vm10944_vm4 = vcmp.eq.s32.totalorder %v4931_v23, 0  ;;  %v10947_v51 = vld [vmem:[#allocation155_spill] sm:$0xff]  ;;  %v10953_v3 = vmov 0  ;;  %v5417_v47 = vld [vmem:[%s3561_s21 + $0x180] sm:$0xff] }
 0x134   : > { %vm5350_vm6 = vmor %vm10934_vm8, %vm10933_vm11  ;;  %v10948_v13 = vmul.u32 10, %v10947_v51  ;;  %vm10952_vm11 = vcmp.eq.s32.totalorder %v4936_v58, 0  ;;  %10955 = vst [vmem:[#allocation153_spill] sm:$0xff] %v5417_v47  ;;  %v10956_v62 = vld [vmem:[#allocation56_spill] sm:$0xff]  ;;  %v5431_v51 = vmin.f32 %v1377_v40, 0.0  ;;  %v1380_v40 = vsub.f32 0.0, %v5264_v29 }
 0x135   : > { %10941 = vst [vmem:[#allocation158_spill] sm:$0xff] %v5372_v50  ;;  %vm5380_vm5 = vmor %vm10944_vm4, %vm10943_vm10  ;;  %v10971_v57 = vld [vmem:[#allocation75_spill] sm:$0xff]  ;;  %vm10972_vm10 = vcmp.eq.s32.totalorder %v4947_v37, 10  ;;  %v10980_v59 = vld [vmem:[#allocation162_spill] sm:$0xff] }
 0x136   : > { %v5397_v52 = vsub.s32 %v10949_v63, %v10948_v13  ;;  %vm5405_vm8 = vmor %vm10952_vm11, %vm10951_vm12  ;;  %v5414_v63 = vld [vmem:[%s3561_s21 + $0x178] sm:$0xff]  ;;  %vm10957_vm12 = vcmp.eq.s32.totalorder %v4939_v15, 10  ;;  %vm10958_vm11 = vcmp.eq.s32.totalorder %v4939_v15, 0  ;;  %v1379_v13 = vsub.f32 0.0, %v5261_v26  ;;  %10962 = vst [vmem:[#allocation136_spill] sm:$0xff] %v5431_v51 }
 0x137   : > { %v10954_v3 = vsel %vm5405_vm8, 4294967295, %v10953_v3  ;;  %vm5425_vm2 = vmor %vm10958_vm11, %vm10957_vm12  ;;  %vm10965_vm12 = vcmp.eq.s32.totalorder %v4944_v12, 0  ;;  %v5447_v51 = vmin.f32 %v1378_v11, 0.0  ;;  %v10969_v26 = vld [vmem:[#allocation156_spill] sm:$0xff]  ;;  %v10974_v11 = vmov 0 }
 0x138   : > { %v10960_v56 = vsel %vm5425_vm2, 4294967295, %v10959_v56  ;;  %vm5441_vm11 = vmor %vm10965_vm12, %vm10964_vm1  ;;  %v10970_v44 = vmul.u32 10, %v10969_v26  ;;  %vm10977_vm2 = vcmp.eq.s32.totalorder %v4904_v24, 4294967286  ;;  %v10982_v29 = vld [vmem:[#allocation76_spill] sm:$0xff]  ;;  %vm10988_vm12 = vcmp.eq.s32.totalorder %v4907_v7, 4294967286 }
 0x139   : > { %10961 = vst [vmem:[#allocation72_spill] sm:$0xff] %v10960_v56  ;;  %v10967_v28 = vsel %vm5441_vm11, 4294967295, %v10966_v28  ;;  %10968 = vst [vmem:[#allocation154_spill] sm:$0xff] %v5447_v51  ;;  %v10981_v51 = vmul.u32 10, %v10980_v59  ;;  %vm10991_vm1 = vcmp.eq.s32.totalorder %v10906_v55, 10  ;;  %v5525_v21 = vmin.f32 %v1379_v13, 0.0 }
 0x13a   : > { %v5454_v56 = vsub.s32 %v10971_v57, %v10970_v44  ;;  %vm5462_vm4 = vmor %vm10973_vm14, %vm10972_vm10  ;;  %v10978_v44 = vmov 0  ;;  %vm10992_vm14 = vcmp.eq.s32.totalorder %v10906_v55, 0  ;;  %v5549_v1 = vmin.f32 %v1380_v40, 0.0  ;;  %v5554_v57 = vld [vmem:[%s3561_s21 + $0x188] sm:$0xff]  ;;  %v5560_v22 = vld [vmem:[%s3561_s21 + $0x198] sm:$0xff] }
 0x13b   : > { %v10975_v11 = vsel %vm5462_vm4, 4294967295, %v10974_v11  ;;  %vm5471_vm8 = vmor %vm5214_vm3, %vm10977_vm2  ;;  %vm10984_vm2 = vcmp.eq.s32.totalorder %v4952_v31, 10  ;;  %vm10985_vm3 = vcmp.eq.s32.totalorder %v4952_v31, 0  ;;  %10998 = vst [vmem:[#allocation74_spill] sm:$0xff] %v5525_v21  ;;  %v11009_v40 = vmov 0  ;;  %v5586_v21 = vld [vmem:[%s3561_s21 + $0x1a0] sm:$0xff] }
 0x13c   : > { %10976 = vst [vmem:[#allocation73_spill] sm:$0xff] %v10975_v11  ;;  %v10979_v44 = vsel %vm5471_vm8, 4294967295, %v10978_v44  ;;  %v5481_v11 = vsub.s32 %v10982_v29, %v10981_v51  ;;  %vm5489_vm11 = vmor %vm10985_vm3, %vm10984_vm2  ;;  %v10989_v29 = vmov 0  ;;  %vm11003_vm3 = vcmp.eq.s32.totalorder %v4915_v42, 4294967286  ;;  %v5557_v42 = vld [vmem:[%s3561_s21 + $0x190] sm:$0xff]  ;;  %v5595_v39 = vld [vmem:[%s3561_s21 + $0x1b8] sm:$0xff] }
 0x13d   : > { %vm5498_vm8 = vmor %vm5228_vm9, %vm10988_vm12  ;;  %vm10995_vm12 = vcmp.eq.s32.totalorder %v4912_v30, 4294967286  ;;  %vm10999_vm9 = vcmp.eq.s32.totalorder %v10916_v46, 10  ;;  %11006 = vst [vmem:[#allocation56_spill] sm:$0xff] %v5549_v1  ;;  %v11013_v26 = vmov 0  ;;  %v11022_v51 = vmov 0 }
 0x13e   : > { %10983 = vst [vmem:[#allocation155_spill] sm:$0xff] %v5481_v11  ;;  %v10990_v29 = vsel %vm5498_vm8, 4294967295, %v10989_v29  ;;  %vm5511_vm10 = vmor %vm10992_vm14, %vm10991_vm1  ;;  %vm11012_vm14 = vcmp.eq.s32.totalorder %v4920_v60, 4294967286  ;;  %v5592_v60 = vld [vmem:[%s3561_s21 + $0x1b0] sm:$0xff]  ;;  %v11026_v1 = vmov 0  ;;  %v1395_v13 = vsub.f32 0.0, %v5417_v47 }
 0x13f   : > { %vm5520_vm8 = vmor %vm5250_vm15, %vm10995_vm12  ;;  %vm11000_vm15 = vcmp.eq.s32.totalorder %v10916_v46, 0  ;;  %11016 = vst [vmem:[#allocation162_spill] sm:$0xff] %v5586_v21  ;;  %v1396_v59 = vsub.f32 0.0, %v5554_v57  ;;  %v1401_v47 = vsub.f32 0.0, %v5592_v60  ;;  %v1402_v11 = vsub.f32 0.0, %v5595_v39 }
 0x140   : > { %v10997_v32 = vsel %vm5520_vm8, 4294967295, %v10996_v32  ;;  %vm5535_vm12 = vmor %vm11000_vm15, %vm10999_vm9  ;;  %vm11007_vm9 = vcmp.eq.s32.totalorder %v10925_v17, 10  ;;  %vm11008_vm15 = vcmp.eq.s32.totalorder %v10925_v17, 0  ;;  %11018 = vst [vmem:[#allocation198_spill] sm:$0xff] %v5592_v60 }
 0x141   : > { %vm5544_vm8 = vmor %vm5280_vm0, %vm11003_vm3  ;;  %11019 = vst [vmem:[#allocation199_spill] sm:$0xff] %v5595_v39  ;;  %vm11025_vm3 = vcmp.eq.s32.totalorder %v4923_v5, 4294967286  ;;  %v11032_v5 = vmov 0  ;;  %v11070_v39 = vmov 0 }
 0x142   : > { %v11005_v34 = vsel %vm5544_vm8, 4294967295, %v11004_v34  ;;  %vm5568_vm2 = vmor %vm11008_vm15, %vm11007_vm9  ;;  %vm11020_vm9 = vcmp.eq.s32.totalorder %v10928_v8, 10  ;;  %vm11021_vm15 = vcmp.eq.s32.totalorder %v10928_v8, 0  ;;  %v5624_v8 = vld [vmem:[%s3561_s21 + $0x1c8] sm:$0xff] }
 0x143   : > { %v11010_v40 = vsel %vm5568_vm2, 4294967295, %v11009_v40  ;;  %vm5577_vm8 = vmor %vm5305_vm13, %vm11012_vm14  ;;  %11029 = vst [vmem:[#allocation202_spill] sm:$0xff] %v5624_v8  ;;  %vm11035_vm14 = vcmp.eq.s32.totalorder %v4928_v35, 4294967286  ;;  %v11042_v35 = vmov 0 }
 0x144   : > { %11011 = vst [vmem:[#allocation156_spill] sm:$0xff] %v11010_v40  ;;  %v11014_v26 = vsel %vm5577_vm8, 4294967295, %v11013_v26  ;;  %v5589_v40 = vld [vmem:[%s3561_s21 + $0x1a8] sm:$0xff]  ;;  %vm5603_vm1 = vmor %vm11021_vm15, %vm11020_vm9  ;;  %vm11031_vm15 = vcmp.eq.s32.totalorder %v10932_v10, 0 }
 0x145   : > { %11015 = vst [vmem:[#allocation75_spill] sm:$0xff] %v11014_v26  ;;  %11017 = vst [vmem:[#allocation76_spill] sm:$0xff] %v5589_v40  ;;  %v11023_v51 = vsel %vm5603_vm1, 4294967295, %v11022_v51  ;;  %v5621_v26 = vld [vmem:[%s3561_s21 + $0x1c0] sm:$0xff]  ;;  %v1400_v50 = vsub.f32 0.0, %v5589_v40  ;;  %v1404_v40 = vsub.f32 0.0, %v5624_v8 }
 0x146   : > { %11024 = vst [vmem:[#allocation200_spill] sm:$0xff] %v11023_v51  ;;  %vm5612_vm8 = vmor %vm5325_vm7, %vm11025_vm3  ;;  %vm11030_vm3 = vcmp.eq.s32.totalorder %v10932_v10, 10  ;;  %v5653_v10 = vld [vmem:[%s3561_s21 + $0x1d8] sm:$0xff]  ;;  %vm11045_vm7 = vcmp.eq.s32.totalorder %v4931_v23, 4294967286  ;;  %v11053_v23 = vmov 0  ;;  %v1399_v51 = vsub.f32 0.0, %v5586_v21 }
 0x147   : > { %v11027_v1 = vsel %vm5612_vm8, 4294967295, %v11026_v1  ;;  %11028 = vst [vmem:[#allocation201_spill] sm:$0xff] %v5621_v26  ;;  %vm5632_vm0 = vmor %vm11031_vm15, %vm11030_vm3  ;;  %vm11041_vm15 = vcmp.eq.s32.totalorder %v10942_v33, 0  ;;  %vm11067_vm3 = vcmp.eq.s32.totalorder %v4939_v15, 4294967286  ;;  %v1403_v60 = vsub.f32 0.0, %v5621_v26  ;;  %v11072_v21 = vld [vmem:[#allocation57_spill] sm:$0xff] }
 0x148   : > { %v11033_v5 = vsel %vm5632_vm0, 4294967295, %v11032_v5  ;;  %vm5641_vm8 = vmor %vm5350_vm6, %vm11035_vm14  ;;  %11039 = vst [vmem:[#allocation205_spill] sm:$0xff] %v5653_v10  ;;  %vm11040_vm14 = vcmp.eq.s32.totalorder %v10942_v33, 10  ;;  %v5682_v33 = vld [vmem:[%s3561_s21 + $0x1e8] sm:$0xff]  ;;  %vm11056_vm6 = vcmp.eq.s32.totalorder %v4936_v58, 4294967286  ;;  %v11065_v58 = vmov 0 }
 0x149   : > { %11034 = vst [vmem:[#allocation203_spill] sm:$0xff] %v11033_v5  ;;  %v11037_v43 = vsel %vm5641_vm8, 4294967295, %v11036_v43  ;;  %v5650_v5 = vld [vmem:[%s3561_s21 + $0x1d0] sm:$0xff]  ;;  %vm5661_vm13 = vmor %vm11041_vm15, %vm11040_vm14  ;;  %vm11052_vm15 = vcmp.eq.s32.totalorder %v10950_v45, 0  ;;  %v11075_v15 = vmov 0  ;;  %v11092_v26 = vld [vmem:[#allocation14_spill] sm:$0xff] }
 0x14a   : > { %11038 = vst [vmem:[#allocation204_spill] sm:$0xff] %v5650_v5  ;;  %v11043_v35 = vsel %vm5661_vm13, 4294967295, %v11042_v35  ;;  %vm5670_vm8 = vmor %vm5380_vm5, %vm11045_vm7  ;;  %vm11051_vm7 = vcmp.eq.s32.totalorder %v10950_v45, 10  ;;  %v1406_v45 = vsub.f32 0.0, %v5653_v10  ;;  %v11093_v8 = vld [vmem:[#allocation45_spill] sm:$0xff] }
 0x14b   : > { %11044 = vst [vmem:[#allocation206_spill] sm:$0xff] %v11043_v35  ;;  %v11047_v49 = vsel %vm5670_vm8, 4294967295, %v11046_v49  ;;  %v5679_v35 = vld [vmem:[%s3561_s21 + $0x1e0] sm:$0xff]  ;;  %11050 = vst [vmem:[#allocation209_spill] sm:$0xff] %v5682_v33  ;;  %vm11057_vm8 = vnez %v10954_v3  ;;  %v11068_v3 = vld [vmem:[#allocation72_spill] sm:$0xff] }
 0x14c   : > { %11048 = vst [vmem:[#allocation207_spill] sm:$0xff] %v11047_v49  ;;  %11049 = vst [vmem:[#allocation208_spill] sm:$0xff] %v5679_v35  ;;  %v5708_v49 = vld [vmem:[%s3561_s21 + $0x1f0] sm:$0xff]  ;;  %vm11069_vm14 = vnez %v11068_v3  ;;  %v11079_v3 = vmov 0  ;;  %v1407_v10 = vsub.f32 0.0, %v5679_v35 }
 0x14d   : > { %vm5690_vm9 = vmor %vm11052_vm15, %vm11051_vm7  ;;  %11061 = vst [vmem:[#allocation212_spill] sm:$0xff] %v5708_v49  ;;  %vm11063_vm7 = vcmp.eq.s32.totalorder %v10956_v62, 10  ;;  %vm11064_vm15 = vcmp.eq.s32.totalorder %v10956_v62, 0  ;;  %v11098_v49 = vsub.f32 0.0, %v5267_v54 }
 0x14e   : > { %v11054_v23 = vsel %vm5690_vm9, 4294967295, %v11053_v23  ;;  %vm5699_vm13 = vmor %vm11057_vm8, %vm11056_vm6 }
 0x14f   : > { %11055 = vst [vmem:[#allocation210_spill] sm:$0xff] %v11054_v23  ;;  %v11059_v9 = vsel %vm5699_vm13, 4294967295, %v11058_v9  ;;  %v5711_v23 = vld [vmem:[%s3561_s21 + $0x1f8] sm:$0xff]  ;;  %vm5717_vm8 = vmor %vm11064_vm15, %vm11063_vm7  ;;  %vm11073_vm7 = vcmp.eq.s32.totalorder %v11072_v21, 10  ;;  %vm11074_vm15 = vcmp.eq.s32.totalorder %v11072_v21, 0  ;;  %vm11094_vm13 = vcmp.lt.s32.totalorder %v11092_v26, %v11093_v8 }
 0x150   : > { %11060 = vst [vmem:[#allocation211_spill] sm:$0xff] %v11059_v9  ;;  %11062 = vst [vmem:[#allocation213_spill] sm:$0xff] %v5711_v23  ;;  %v11066_v58 = vsel %vm5717_vm8, 4294967295, %v11065_v58  ;;  %v1405_v9 = vsub.f32 0.0, %v5650_v5  ;;  %v11088_v5 = vmov 0  ;;  %v11095_v23 = vmov 0 }
 0x151   : > { %vm5726_vm5 = vmor %vm11069_vm14, %vm11067_vm3  ;;  %vm11077_vm14 = vcmp.eq.s32.totalorder %v4944_v12, 4294967286  ;;  %v11083_v12 = vmov 0 }
 0x152   : > { %v11071_v39 = vsel %vm5726_vm5, 4294967295, %v11070_v39  ;;  %vm5738_vm6 = vmor %vm11074_vm15, %vm11073_vm7  ;;  %vm11078_vm5 = vnez %v10967_v28  ;;  %vm11081_vm7 = vcmp.eq.s32.totalorder %v5166_v6, 10  ;;  %vm11082_vm15 = vcmp.eq.s32.totalorder %v5166_v6, 0 }
 0x153   : > { %v11076_v15 = vsel %vm5738_vm6, 4294967295, %v11075_v15  ;;  %vm5747_vm8 = vmor %vm11078_vm5, %vm11077_vm14  ;;  %vm11086_vm14 = vcmp.eq.s32.totalorder %v4947_v37, 4294967286  ;;  %vm11091_vm6 = vnez %v10979_v44  ;;  %v11100_v37 = vsub.f32 0.0, %v5289_v19 }
 0x154   : > { %v11080_v3 = vsel %vm5747_vm8, 4294967295, %v11079_v3  ;;  %vm5759_vm3 = vmor %vm11082_vm15, %vm11081_vm7  ;;  %v11102_v6 = vsub.f32 0.0, %v5292_v53  ;;  %v11104_v44 = vsub.f32 0.0, %v5314_v18  ;;  %vm11110_vm15 = vcmp.eq.s32.totalorder %v4952_v31, 4294967286 }
 0x155   : > { %v11084_v12 = vsel %vm5759_vm3, 4294967295, %v11083_v12  ;;  %vm5768_vm8 = vmor %vm5462_vm4, %vm11086_vm14  ;;  %v5787_v28 = vmin.f32 %v11100_v37, 0.0  ;;  %vm11106_vm4 = vcmp.eq.s32.totalorder %v5196_v20, 10  ;;  %vm11113_vm5 = vnez %v10990_v29 }
 0x156   : > { %11085 = vst [vmem:[#allocation72_spill] sm:$0xff] %v11084_v12  ;;  %v11089_v5 = vsel %vm5768_vm8, 4294967295, %v11088_v5  ;;  %vm5777_vm9 = vmand %vm11094_vm13, %vm11091_vm6  ;;  %v5783_v12 = vmin.f32 %v11098_v49, 0.0  ;;  %v5795_v35 = vmin.f32 %v11104_v44, 0.0  ;;  %vm11107_vm13 = vcmp.eq.s32.totalorder %v5196_v20, 0  ;;  %v11114_v49 = vld [vmem:[#allocation15_spill] sm:$0xff] }
 0x157   : > { %11090 = vst [vmem:[#allocation57_spill] sm:$0xff] %v11089_v5  ;;  %v11096_v23 = vsel %vm5777_vm9, 4294967295, %v11095_v23  ;;  %11101 = vst [vmem:[#allocation215_spill] sm:$0xff] %v5787_v28  ;;  %v5791_v5 = vmin.f32 %v11102_v6, 0.0  ;;  %v11111_v6 = vmov 0  ;;  %vm11115_vm9 = vcmp.lt.s32.totalorder %v11114_v49, %v11093_v8 }
 0x158   : > { %11097 = vst [vmem:[#allocation73_spill] sm:$0xff] %v11096_v23  ;;  %11099 = vst [vmem:[#allocation214_spill] sm:$0xff] %v5783_v12  ;;  %v11116_v37 = vmov 0  ;;  %v11119_v44 = vsub.f32 0.0, %v5317_v36  ;;  %v11121_v31 = vsub.f32 0.0, %v5336_v41  ;;  %v11125_v29 = vsub.f32 0.0, %v5342_v2 }
 0x159   : > { %11103 = vst [vmem:[#allocation216_spill] sm:$0xff] %v5791_v5  ;;  %11105 = vst [vmem:[#allocation217_spill] sm:$0xff] %v5795_v35  ;;  %v11123_v5 = vsub.f32 0.0, %v5339_v25  ;;  %vm11134_vm7 = vnez %v10997_v32  ;;  %v11146_v32 = vsub.f32 0.0, %v5389_v0  ;;  %v11275_v12 = vld [vmem:[#allocation142_spill] sm:$0xff] }
 0x15a   : > { %vm5801_vm6 = vmor %vm11107_vm13, %vm11106_vm4  ;;  %v5825_v35 = vmin.f32 %v11119_v44, 0.0  ;;  %v5829_v24 = vmin.f32 %v11121_v31, 0.0  ;;  %v5837_v28 = vmin.f32 %v11125_v29, 0.0  ;;  %vm11131_vm13 = vcmp.eq.s32.totalorder %v10906_v55, 4294967286  ;;  %v11135_v44 = vld [vmem:[#allocation16_spill] sm:$0xff] }
 0x15b   : > { %vm5810_vm14 = vmor %vm5489_vm11, %vm11110_vm15  ;;  %v5833_v26 = vmin.f32 %v11123_v5, 0.0  ;;  %vm11127_vm11 = vcmp.eq.s32.totalorder %v5206_v48, 10  ;;  %v11132_v5 = vmov 0  ;;  %v11137_v31 = vmov 0 }
 0x15c   : > { %v11112_v6 = vsel %vm5810_vm14, 4294967295, %v11111_v6  ;;  %vm5819_vm8 = vmand %vm11115_vm9, %vm11113_vm5  ;;  %11120 = vst [vmem:[#allocation219_spill] sm:$0xff] %v5825_v35  ;;  %vm11128_vm9 = vcmp.eq.s32.totalorder %v5206_v48, 0  ;;  %v11140_v29 = vsub.f32 0.0, %v5361_v38  ;;  %v11142_v55 = vsub.f32 0.0, %v5364_v14 }
 0x15d   : > { %v11117_v37 = vsel %vm5819_vm8, 4294967295, %v11116_v37  ;;  %11122 = vst [vmem:[#allocation220_spill] sm:$0xff] %v5829_v24  ;;  %11124 = vst [vmem:[#allocation221_spill] sm:$0xff] %v5833_v26  ;;  %vm11136_vm8 = vcmp.lt.s32.totalorder %v11135_v44, %v11093_v8  ;;  %v11144_v26 = vsub.f32 0.0, %v5367_v4  ;;  %v5879_v35 = vmin.f32 %v11146_v32, 0.0 }
 0x15e   : > { %11118 = vst [vmem:[#allocation218_spill] sm:$0xff] %v11117_v37  ;;  %11126 = vst [vmem:[#allocation222_spill] sm:$0xff] %v5837_v28  ;;  %v5867_v28 = vmin.f32 %v11140_v29, 0.0  ;;  %v5871_v7 = vmin.f32 %v11142_v55, 0.0  ;;  %vm11155_vm4 = vnez %v11005_v34  ;;  %v11156_v29 = vld [vmem:[#allocation17_spill] sm:$0xff]  ;;  %v11158_v55 = vmov 0 }
 0x15f   : > { %vm5843_vm5 = vmor %vm11128_vm9, %vm11127_vm11  ;;  %v5875_v24 = vmin.f32 %v11144_v26, 0.0  ;;  %11147 = vst [vmem:[#allocation227_spill] sm:$0xff] %v5879_v35  ;;  %vm11152_vm9 = vcmp.eq.s32.totalorder %v10916_v46, 4294967286  ;;  %v11153_v26 = vmov 0  ;;  %v11161_v32 = vsub.f32 0.0, %v5392_v61  ;;  %v11352_v37 = vld [vmem:[#allocation52_spill] sm:$0xff] }
 0x160   : > { %vm5852_vm15 = vmor %vm5511_vm10, %vm11131_vm13  ;;  %11141 = vst [vmem:[#allocation224_spill] sm:$0xff] %v5867_v28  ;;  %vm11148_vm10 = vcmp.eq.s32.totalorder %v5272_v16, 10  ;;  %v11163_v46 = vsub.f32 0.0, %v5414_v63  ;;  %v11284_v44 = vmov 0  ;;  %v11384_v34 = vld [vmem:[#allocation58_spill] sm:$0xff] }
 0x161   : > { %v11133_v5 = vsel %vm5852_vm15, 4294967295, %v11132_v5  ;;  %vm5861_vm14 = vmand %vm11136_vm8, %vm11134_vm7  ;;  %11143 = vst [vmem:[#allocation225_spill] sm:$0xff] %v5871_v7  ;;  %vm11149_vm8 = vcmp.eq.s32.totalorder %v5272_v16, 0  ;;  %v5909_v35 = vmin.f32 %v11161_v32, 0.0  ;;  %v5917_v7 = vmin.f32 %v1396_v59, 0.0  ;;  %v11175_v59 = vld [vmem:[#allocation75_spill] sm:$0xff] }
 0x162   : > { %v11138_v31 = vsel %vm5861_vm14, 4294967295, %v11137_v31  ;;  %11145 = vst [vmem:[#allocation226_spill] sm:$0xff] %v5875_v24  ;;  %vm5885_vm7 = vmor %vm11149_vm8, %vm11148_vm10  ;;  %vm11157_vm14 = vcmp.lt.s32.totalorder %v11156_v29, %v11093_v8  ;;  %v5913_v30 = vmin.f32 %v11163_v46, 0.0  ;;  %v5915_v24 = vmin.f32 %v1395_v13, 0.0  ;;  %v11177_v13 = vld [vmem:[#allocation18_spill] sm:$0xff] }
 0x163   : > { %11139 = vst [vmem:[#allocation223_spill] sm:$0xff] %v11138_v31  ;;  %vm5894_vm13 = vmor %vm5535_vm12, %vm11152_vm9  ;;  %vm11167_vm12 = vcmp.eq.s32.totalorder %v5297_v27, 10  ;;  %vm11168_vm10 = vcmp.eq.s32.totalorder %v5297_v27, 0  ;;  %vm11171_vm8 = vcmp.eq.s32.totalorder %v10925_v17, 4294967286  ;;  %v11173_v46 = vmov 0  ;;  %v11369_v31 = vld [vmem:[#allocation159_spill] sm:$0xff] }
 0x164   : > { %v11154_v26 = vsel %vm5894_vm13, 4294967295, %v11153_v26  ;;  %vm5903_vm15 = vmand %vm11157_vm14, %vm11155_vm4  ;;  %11162 = vst [vmem:[#allocation229_spill] sm:$0xff] %v5909_v35  ;;  %vm11176_vm11 = vnez %v11175_v59  ;;  %v11184_v17 = vsub.f32 0.0, %v5560_v22  ;;  %v5955_v35 = vmin.f32 %v1400_v50, 0.0  ;;  %v11188_v59 = vld [vmem:[#allocation158_spill] sm:$0xff]  ;;  %v11199_v50 = vld [vmem:[#allocation19_spill] sm:$0xff] }
 0x165   : > { %v11159_v55 = vsel %vm5903_vm15, 4294967295, %v11158_v55  ;;  %11164 = vst [vmem:[#allocation230_spill] sm:$0xff] %v5913_v30  ;;  %11165 = vst [vmem:[#allocation231_spill] sm:$0xff] %v5915_v24  ;;  %vm11178_vm15 = vcmp.lt.s32.totalorder %v11177_v13, %v11093_v8  ;;  %v11182_v24 = vsub.f32 0.0, %v5557_v42  ;;  %v5953_v30 = vmin.f32 %v1399_v51, 0.0 }
 0x166   : > { %11160 = vst [vmem:[#allocation228_spill] sm:$0xff] %v11159_v55  ;;  %11166 = vst [vmem:[#allocation232_spill] sm:$0xff] %v5917_v7  ;;  %v11179_v7 = vmov 0  ;;  %v5951_v32 = vmin.f32 %v11184_v17, 0.0  ;;  %v11196_v17 = vmov 0  ;;  %vm11198_vm4 = vnez %v11027_v1 }
 0x167   : > { %vm5923_vm14 = vmor %vm11168_vm10, %vm11167_vm12  ;;  %v5947_v55 = vmin.f32 %v11182_v24, 0.0  ;;  %11186 = vst [vmem:[#allocation234_spill] sm:$0xff] %v5953_v30  ;;  %vm11190_vm12 = vcmp.eq.s32.totalorder %v11188_v59, 0  ;;  %v11193_v24 = vld [vmem:[#allocation47_spill] sm:$0xff]  ;;  %v11201_v51 = vmov 0  ;;  %v5985_v30 = vmin.f32 %v1402_v11, 0.0 }
 0x168   : > { %vm5932_vm9 = vmor %vm5568_vm2, %vm11171_vm8  ;;  %11185 = vst [vmem:[#allocation233_spill] sm:$0xff] %v5951_v32  ;;  %vm11189_vm2 = vcmp.eq.s32.totalorder %v11188_v59, 10  ;;  %vm11194_vm10 = vcmp.eq.s32.totalorder %v11193_v24, 4294967286  ;;  %v5987_v24 = vmin.f32 %v1403_v60, 0.0  ;;  %v11210_v1 = vmov 0  ;;  %v11212_v32 = vld [vmem:[#allocation48_spill] sm:$0xff] }
 0x169   : > { %v11174_v46 = vsel %vm5932_vm9, 4294967295, %v11173_v46  ;;  %vm5941_vm13 = vmand %vm11178_vm15, %vm11176_vm11  ;;  %11183 = vst [vmem:[#allocation75_spill] sm:$0xff] %v5947_v55  ;;  %v5989_v55 = vmin.f32 %v1404_v40, 0.0  ;;  %v11215_v11 = vmov 0  ;;  %vm11217_vm11 = vnez %v11037_v43  ;;  %v11218_v40 = vld [vmem:[#allocation20_spill] sm:$0xff] }
 0x16a   : > { %v11180_v7 = vsel %vm5941_vm13, 4294967295, %v11179_v7  ;;  %11187 = vst [vmem:[#allocation235_spill] sm:$0xff] %v5955_v35  ;;  %vm5961_vm15 = vmor %vm11190_vm12, %vm11189_vm2  ;;  %vm11200_vm13 = vcmp.lt.s32.totalorder %v11199_v50, %v11093_v8  ;;  %v5983_v35 = vmin.f32 %v1401_v47, 0.0  ;;  %vm11209_vm2 = vcmp.eq.s32.totalorder %v5397_v52, 0  ;;  %v11252_v50 = vld [vmem:[#allocation155_spill] sm:$0xff]  ;;  %v11257_v47 = vld [vmem:[#allocation150_spill] sm:$0xff] }
 0x16b   : > { %11181 = vst [vmem:[#allocation156_spill] sm:$0xff] %v11180_v7  ;;  %vm5970_vm8 = vmor %vm5603_vm1, %vm11194_vm10  ;;  %vm11208_vm1 = vcmp.eq.s32.totalorder %v5397_v52, 10  ;;  %v11220_v60 = vmov 0  ;;  %v11232_v43 = vmov 0  ;;  %v11300_v29 = vsub.f32 0.0, %v5682_v33 }
 0x16c   : > { %v11197_v17 = vsel %vm5970_vm8, 4294967295, %v11196_v17  ;;  %vm5979_vm9 = vmand %vm11200_vm13, %vm11198_vm4  ;;  %11204 = vst [vmem:[#allocation47_spill] sm:$0xff] %v5983_v35  ;;  %vm11213_vm4 = vcmp.eq.s32.totalorder %v11212_v32, 4294967286  ;;  %v6021_v32 = vmin.f32 %v1407_v10, 0.0  ;;  %v11236_v10 = vld [vmem:[#allocation206_spill] sm:$0xff] }
 0x16d   : > { %v11202_v51 = vsel %vm5979_vm9, 4294967295, %v11201_v51  ;;  %11205 = vst [vmem:[#allocation200_spill] sm:$0xff] %v5985_v30  ;;  %11206 = vst [vmem:[#allocation236_spill] sm:$0xff] %v5987_v24  ;;  %vm11219_vm9 = vcmp.lt.s32.totalorder %v11218_v40, %v11093_v8  ;;  %v6019_v24 = vmin.f32 %v1406_v45, 0.0  ;;  %v11226_v30 = vld [vmem:[#allocation146_spill] sm:$0xff]  ;;  %v11234_v45 = vld [vmem:[#allocation53_spill] sm:$0xff] }
 0x16e   : > { %11203 = vst [vmem:[#allocation158_spill] sm:$0xff] %v11202_v51  ;;  %11207 = vst [vmem:[#allocation237_spill] sm:$0xff] %v5989_v55  ;;  %v6017_v55 = vmin.f32 %v1405_v9, 0.0  ;;  %v11227_v35 = vmul.u32 10, %v11226_v30  ;;  %v11228_v51 = vld [vmem:[#allocation140_spill] sm:$0xff]  ;;  %v11238_v9 = vmov 0 }
 0x16f   : > { %vm5995_vm12 = vmor %vm11209_vm2, %vm11208_vm1  ;;  %11224 = vst [vmem:[#allocation238_spill] sm:$0xff] %v6019_v24  ;;  %vm11235_vm2 = vcmp.eq.s32.totalorder %v11234_v45, 4294967286  ;;  %v11242_v30 = vld [vmem:[#allocation21_spill] sm:$0xff]  ;;  %v11247_v45 = vld [vmem:[#allocation162_spill] sm:$0xff] }
 0x170   : > { %v11211_v1 = vsel %vm5995_vm12, 4294967295, %v11210_v1  ;;  %vm6004_vm10 = vmor %vm5632_vm0, %vm11213_vm4  ;;  %11223 = vst [vmem:[#allocation203_spill] sm:$0xff] %v6017_v55  ;;  %v6027_v7 = vsub.s32 %v11228_v51, %v11227_v35  ;;  %vm11230_vm0 = vcmp.eq.s32.totalorder %v5454_v56, 10  ;;  %vm11237_vm4 = vnez %v11236_v10  ;;  %v11240_v35 = vld [vmem:[#allocation207_spill] sm:$0xff]  ;;  %v11443_v24 = vld [vmem:[#allocation34_spill] sm:$0xff] }
 0x171   : > { %v11216_v11 = vsel %vm6004_vm10, 4294967295, %v11215_v11  ;;  %vm6013_vm8 = vmand %vm11219_vm9, %vm11217_vm11  ;;  %11225 = vst [vmem:[#allocation239_spill] sm:$0xff] %v6021_v32  ;;  %vm11231_vm9 = vcmp.eq.s32.totalorder %v5454_v56, 0  ;;  %vm11243_vm10 = vcmp.lt.s32.totalorder %v11242_v30, %v11093_v8  ;;  %v11244_v51 = vmov 0  ;;  %v11248_v10 = vld [vmem:[#allocation147_spill] sm:$0xff]  ;;  %v11259_v32 = vld [vmem:[#allocation210_spill] sm:$0xff] }
 0x172   : > { %v11221_v60 = vsel %vm6013_vm8, 4294967295, %v11220_v60  ;;  %11229 = vst [vmem:[#allocation146_spill] sm:$0xff] %v6027_v7  ;;  %vm6033_vm11 = vmor %vm11231_vm9, %vm11230_vm0  ;;  %vm11241_vm8 = vnez %v11240_v35  ;;  %v11249_v55 = vmul.u32 10, %v11248_v10  ;;  %vm11253_vm0 = vcmp.eq.s32.totalorder %v11252_v50, 10  ;;  %v11282_v30 = vld [vmem:[#allocation23_spill] sm:$0xff] }
 0x173   : > { %11222 = vst [vmem:[#allocation48_spill] sm:$0xff] %v11221_v60  ;;  %v11233_v43 = vsel %vm6033_vm11, 4294967295, %v11232_v43  ;;  %vm6042_vm13 = vmor %vm11237_vm4, %vm11235_vm2  ;;  %v11250_v60 = vld [vmem:[#allocation141_spill] sm:$0xff]  ;;  %vm11254_vm9 = vcmp.eq.s32.totalorder %v11252_v50, 0  ;;  %vm11260_vm4 = vnez %v11259_v32  ;;  %v11267_v10 = vmov 0  ;;  %v11273_v32 = vld [vmem:[#allocation148_spill] sm:$0xff] }
 0x174   : > { %v11239_v9 = vsel %vm6042_vm13, 4294967295, %v11238_v9  ;;  %vm6051_vm12 = vmand %vm11243_vm10, %vm11241_vm8  ;;  %v6061_v40 = vsub.s32 %v11250_v60, %v11249_v55  ;;  %vm11258_vm10 = vcmp.eq.s32.totalorder %v11257_v47, 4294967286  ;;  %v11263_v55 = vld [vmem:[#allocation211_spill] sm:$0xff]  ;;  %v11265_v60 = vld [vmem:[#allocation22_spill] sm:$0xff]  ;;  %v11274_v49 = vmul.u32 10, %v11273_v32 }
 0x175   : > { %v11245_v51 = vsel %vm6051_vm12, 4294967295, %v11244_v51  ;;  %vm6067_vm2 = vmor %vm11254_vm9, %vm11253_vm0  ;;  %vm11264_vm12 = vnez %v11263_v55  ;;  %vm11266_vm13 = vcmp.lt.s32.totalorder %v11265_v60, %v11093_v8  ;;  %vm11277_vm0 = vcmp.eq.s32.totalorder %v10956_v62, 4294967286  ;;  %v11304_v60 = vld [vmem:[#allocation137_spill] sm:$0xff]  ;;  %v11306_v62 = vld [vmem:[#allocation68_spill] sm:$0xff] }
 0x176   : > { %11246 = vst [vmem:[#allocation140_spill] sm:$0xff] %v11245_v51  ;;  %11251 = vst [vmem:[#allocation53_spill] sm:$0xff] %v6061_v40  ;;  %v6095_v40 = vsub.s32 %v11275_v12, %v11274_v49  ;;  %vm11278_vm9 = vnez %v11066_v58  ;;  %v11313_v49 = vld [vmem:[#allocation25_spill] sm:$0xff]  ;;  %v11321_v12 = vld [vmem:[#allocation138_spill] sm:$0xff] }
 0x177   : > { %vm6076_vm1 = vmor %vm11260_vm4, %vm11258_vm10  ;;  %v11452_v55 = vld [vmem:[#allocation35_spill] sm:$0xff]  ;;  %v11461_v58 = vld [vmem:[#allocation36_spill] sm:$0xff] }
 0x178   : > { %vm6085_vm11 = vmand %vm11266_vm13, %vm11264_vm12  ;;  %11276 = vst [vmem:[#allocation207_spill] sm:$0xff] %v6095_v40  ;;  %vm11281_vm12 = vnez %v11071_v39  ;;  %vm11283_vm13 = vcmp.lt.s32.totalorder %v11282_v30, %v11093_v8  ;;  %v11295_v39 = vld [vmem:[#allocation24_spill] sm:$0xff]  ;;  %v11305_v40 = vand.u32 2147483647, %v11304_v60 }
 0x179   : > { %v11268_v10 = vsel %vm6085_vm11, 4294967295, %v11267_v10  ;;  %vm6101_vm10 = vmor %vm11278_vm9, %vm11277_vm0  ;;  %vm11290_vm0 = vcmp.eq.s32.totalorder %v11072_v21, 4294967286  ;;  %vm11291_vm9 = vnez %v11076_v15  ;;  %vm11294_vm11 = vnez %v11080_v3  ;;  %v11318_v30 = vld [vmem:[#allocation212_spill] sm:$0xff]  ;;  %v11354_v3 = vld [vmem:[#allocation54_spill] sm:$0xff] }
 0x17a   : > { %11269 = vst [vmem:[#allocation206_spill] sm:$0xff] %v11268_v10  ;;  %vm6110_vm4 = vmand %vm11283_vm13, %vm11281_vm12  ;;  %vm11296_vm12 = vcmp.lt.s32.totalorder %v11295_v39, %v11093_v8  ;;  %v6136_v10 = vmin.f32 %v11300_v29, 0.0  ;;  %v1539_v7 = vsub.f32 0.0, %v11305_v40  ;;  %v11315_v29 = vmov 0  ;;  %v11470_v39 = vld [vmem:[#allocation37_spill] sm:$0xff] }
 0x17b   : > { %v11285_v44 = vsel %vm6110_vm4, 4294967295, %v11284_v44  ;;  %vm6121_vm8 = vmor %vm11291_vm9, %vm11290_vm0  ;;  %vm11307_vm0 = vcmp.eq.s32.totalorder %v11306_v62, 4294967286  ;;  %v11319_v60 = vsub.f32 0.0, %v11318_v30  ;;  %v11337_v30 = vld [vmem:[#allocation49_spill] sm:$0xff]  ;;  %v11355_v32 = vand.u32 2147483647, %v11354_v3 }
 0x17c   : > { %11286 = vst [vmem:[#allocation162_spill] sm:$0xff] %v11285_v44  ;;  %vm6130_vm13 = vmand %vm11296_vm12, %vm11294_vm11  ;;  %v11297_v44 = vmov 0  ;;  %vm11314_vm12 = vcmp.lt.s32.totalorder %v11313_v49, %v11093_v8  ;;  %v11338_v33 = vand.u32 2147483647, %v11337_v30 }
 0x17d   : > { %v11298_v44 = vsel %vm6130_vm13, 4294967295, %v11297_v44  ;;  %11301 = vst [vmem:[#allocation141_spill] sm:$0xff] %v6136_v10  ;;  %vm6146_vm9 = vmor %vm5759_vm3, %vm11307_vm0  ;;  %v6161_v40 = vmin.f32 %v11319_v60, 0.0  ;;  %v11322_v10 = vand.u32 2147483647, %v11321_v12  ;;  %vm11323_vm3 = vcmp.eq.s32.totalorder %v5196_v20, 4294967286 }
 0x17e   : > { %11299 = vst [vmem:[#allocation147_spill] sm:$0xff] %v11298_v44  ;;  %v11311_v44 = vld [vmem:[#allocation57_spill] sm:$0xff]  ;;  %vm6171_vm0 = vmor %vm5801_vm6, %vm11323_vm3  ;;  %v11329_v60 = vmov 0  ;;  %v1543_v21 = vsub.f32 0.0, %v11338_v33  ;;  %vm11339_vm6 = vcmp.eq.s32.totalorder %v5206_v48, 4294967286  ;;  %v11343_v12 = vld [vmem:[#allocation27_spill] sm:$0xff] }
 0x17f   : > { %vm11312_vm11 = vnez %v11311_v44  ;;  %11320 = vst [vmem:[#allocation150_spill] sm:$0xff] %v6161_v40  ;;  %v1540_v15 = vsub.f32 0.0, %v11322_v10  ;;  %v11333_v10 = vld [vmem:[#allocation139_spill] sm:$0xff]  ;;  %v11335_v40 = vld [vmem:[#allocation46_spill] sm:$0xff]  ;;  %vm6195_vm3 = vmor %vm5843_vm5, %vm11339_vm6  ;;  %v1547_v47 = vsub.f32 0.0, %v11355_v32  ;;  %vm11356_vm5 = vcmp.eq.s32.totalorder %v5272_v16, 4294967286 }
 0x180   : > { %vm6155_vm13 = vmand %vm11314_vm12, %vm11312_vm11  ;;  %vm11326_vm11 = vnez %v11112_v6  ;;  %v11334_v62 = vand.u32 2147483647, %v11333_v10  ;;  %v11336_v23 = vand.u32 2147483647, %v11335_v40  ;;  %v11348_v40 = vld [vmem:[#allocation50_spill] sm:$0xff]  ;;  %v11350_v10 = vld [vmem:[#allocation51_spill] sm:$0xff] }
 0x181   : > { %v11316_v29 = vsel %vm6155_vm13, 4294967295, %v11315_v29  ;;  %v11349_v30 = vand.u32 2147483647, %v11348_v40  ;;  %v11351_v48 = vand.u32 2147483647, %v11350_v10  ;;  %vm6220_vm6 = vmor %vm5885_vm7, %vm11356_vm5  ;;  %v11360_v40 = vld [vmem:[#allocation28_spill] sm:$0xff] }
 0x182   : > { %11317 = vst [vmem:[#allocation155_spill] sm:$0xff] %v11316_v29  ;;  %v11327_v29 = vld [vmem:[#allocation26_spill] sm:$0xff]  ;;  %v1541_v20 = vsub.f32 0.0, %v11334_v62  ;;  %v1542_v49 = vsub.f32 0.0, %v11336_v23  ;;  %v11345_v62 = vmov 0  ;;  %v11367_v10 = vld [vmem:[#allocation151_spill] sm:$0xff] }
 0x183   : > { %vm11328_vm12 = vcmp.lt.s32.totalorder %v11327_v29, %v11093_v8  ;;  %v1544_v33 = vsub.f32 0.0, %v11349_v30  ;;  %v1545_v23 = vsub.f32 0.0, %v11351_v48  ;;  %v11362_v30 = vmov 0  ;;  %v11487_v6 = vld [vmem:[#allocation39_spill] sm:$0xff] }
 0x184   : > { %vm6180_vm13 = vmand %vm11328_vm12, %vm11326_vm11  ;;  %vm11342_vm11 = vnez %v11133_v5  ;;  %vm11344_vm12 = vcmp.lt.s32.totalorder %v11343_v12, %v11093_v8  ;;  %v11368_v16 = vand.u32 2147483647, %v11367_v10  ;;  %v1603_v12 = vmul.f32 1.442695, %v1539_v7  ;;  %v11494_v5 = vld [vmem:[#allocation40_spill] sm:$0xff] }
 0x185   : > { %v11330_v60 = vsel %vm6180_vm13, 4294967295, %v11329_v60  ;;  %vm6204_vm13 = vmand %vm11344_vm12, %vm11342_vm11  ;;  %vm11359_vm11 = vnez %v11154_v26  ;;  %vm11361_vm12 = vcmp.lt.s32.totalorder %v11360_v40, %v11093_v8  ;;  %vm11371_vm7 = vcmp.eq.s32.totalorder %v5297_v27, 4294967286 }
 0x186   : > { %11331 = vst [vmem:[#allocation210_spill] sm:$0xff] %v11330_v60  ;;  %v11346_v62 = vsel %vm6204_vm13, 4294967295, %v11345_v62  ;;  %v11353_v60 = vand.u32 2147483647, %v11352_v37  ;;  %vm6229_vm13 = vmand %vm11361_vm12, %vm11359_vm11  ;;  %v1549_v48 = vsub.f32 0.0, %v11368_v16  ;;  %vm11374_vm11 = vnez %v11174_v46  ;;  %v11382_v16 = vld [vmem:[#allocation161_spill] sm:$0xff] }
 0x187   : > { %11347 = vst [vmem:[#allocation211_spill] sm:$0xff] %v11346_v62  ;;  %v11363_v30 = vsel %vm6229_vm13, 4294967295, %v11362_v30  ;;  %v11370_v37 = vand.u32 2147483647, %v11369_v31  ;;  %vm6243_vm5 = vmor %vm5923_vm14, %vm11371_vm7  ;;  %v11383_v27 = vand.u32 2147483647, %v11382_v16  ;;  %2959 = vpow2.f32 %v1603_v12 }
 0x188   : > { %v1546_v29 = vsub.f32 0.0, %v11353_v60  ;;  %11364 = vst [vmem:[#allocation148_spill] sm:$0xff] %v11363_v30  ;;  %v11365_v60 = vld [vmem:[#allocation55_spill] sm:$0xff]  ;;  %v11375_v30 = vld [vmem:[#allocation29_spill] sm:$0xff]  ;;  %v1605_v13 = vmul.f32 1.442695, %v1540_v15 }
 0x189   : > { %v11366_v3 = vand.u32 2147483647, %v11365_v60  ;;  %v1550_v62 = vsub.f32 0.0, %v11370_v37  ;;  %vm11376_vm12 = vcmp.lt.s32.totalorder %v11375_v30, %v11093_v8  ;;  %v11377_v60 = vmov 0  ;;  %v11395_v16 = vld [vmem:[#allocation59_spill] sm:$0xff]  ;;  %v11509_v46 = vld [vmem:[#allocation42_spill] sm:$0xff] }
 0x18a   : > { %vm6252_vm13 = vmand %vm11376_vm12, %vm11374_vm11  ;;  %v6260_v31 = vsub.f32 0.0, %v11383_v27  ;;  %v11385_v37 = vand.u32 2147483647, %v11384_v34  ;;  %vm11386_vm14 = vcmp.eq.s32.totalorder %v11188_v59, 4294967286  ;;  %vm11389_vm11 = vnez %v11197_v17  ;;  %v11397_v59 = vld [vmem:[#allocation60_spill] sm:$0xff] }
 0x18b   : > { %v1548_v32 = vsub.f32 0.0, %v11366_v3  ;;  %v11378_v60 = vsel %vm6252_vm13, 4294967295, %v11377_v60  ;;  %v11380_v3 = vld [vmem:[#allocation160_spill] sm:$0xff]  ;;  %vm6270_vm7 = vmor %vm5961_vm15, %vm11386_vm14  ;;  %v11396_v27 = vand.u32 2147483647, %v11395_v16  ;;  %vm11401_vm15 = vcmp.eq.s32.totalorder %v5397_v52, 4294967286 }
 0x18c   : > { %11379 = vst [vmem:[#allocation142_spill] sm:$0xff] %v11378_v60  ;;  %v11381_v10 = vand.u32 2147483647, %v11380_v3  ;;  %v6264_v40 = vsub.f32 0.0, %v11385_v37  ;;  %v11390_v3 = vld [vmem:[#allocation30_spill] sm:$0xff]  ;;  %v11399_v37 = vld [vmem:[#allocation61_spill] sm:$0xff]  ;;  %vm11402_vm14 = vnez %v11211_v1  ;;  %2961 = vpow2.f32 %v1605_v13 }
 0x18d   : > { %vm11391_vm12 = vcmp.lt.s32.totalorder %v11390_v3, %v11093_v8  ;;  %v6285_v15 = vsub.f32 0.0, %v11396_v27  ;;  %v11398_v34 = vand.u32 2147483647, %v11397_v59  ;;  %v11400_v60 = vand.u32 2147483647, %v11399_v37  ;;  %v11406_v16 = vld [vmem:[#allocation31_spill] sm:$0xff] }
 0x18e   : > { %v1551_v7 = vsub.f32 0.0, %v11381_v10  ;;  %vm6279_vm13 = vmand %vm11391_vm12, %vm11389_vm11  ;;  %v11392_v10 = vmov 0  ;;  %v1607_v17 = vmul.f32 1.442695, %v1541_v20  ;;  %v11403_v3 = vmov 0  ;;  %v11413_v52 = vld [vmem:[#allocation63_spill] sm:$0xff] }
 0x18f   : > { %v11393_v10 = vsel %vm6279_vm13, 4294967295, %v11392_v10  ;;  %v6289_v28 = vsub.f32 0.0, %v11398_v34  ;;  %v6293_v30 = vsub.f32 0.0, %v11400_v60  ;;  %vm6299_vm11 = vmor %vm11402_vm14, %vm11401_vm15  ;;  %vm11405_vm12 = vnez %v11216_v11  ;;  %v11411_v60 = vld [vmem:[#allocation62_spill] sm:$0xff]  ;;  %v11415_v37 = vld [vmem:[#allocation64_spill] sm:$0xff] }
 0x190   : > { %11394 = vst [vmem:[#allocation137_spill] sm:$0xff] %v11393_v10  ;;  %v11404_v3 = vsel %vm6299_vm11, 4294967295, %v11403_v3  ;;  %vm11407_vm13 = vcmp.lt.s32.totalorder %v11406_v16, %v11093_v8  ;;  %v11408_v27 = vmov 0  ;;  %v11412_v59 = vand.u32 2147483647, %v11411_v60  ;;  %v11422_v60 = vld [vmem:[#allocation32_spill] sm:$0xff] }
 0x191   : > { %vm6308_vm4 = vmand %vm11407_vm13, %vm11405_vm12  ;;  %v11414_v34 = vand.u32 2147483647, %v11413_v52  ;;  %v11416_v10 = vand.u32 2147483647, %v11415_v37  ;;  %v1609_v11 = vmul.f32 1.442695, %v1542_v49  ;;  %vm11418_vm13 = vnez %v11233_v43 }
 0x192   : > { %v11409_v27 = vsel %vm6308_vm4, 4294967295, %v11408_v27  ;;  %v6314_v20 = vsub.f32 0.0, %v11412_v59  ;;  %vm11417_vm15 = vcmp.eq.s32.totalorder %v5454_v56, 4294967286  ;;  %vm11421_vm12 = vnez %v11239_v9  ;;  %v11429_v56 = vld [vmem:[#allocation163_spill] sm:$0xff]  ;;  %v11523_v16 = vld [vmem:[#allocation44_spill] sm:$0xff] }
 0x193   : > { %11410 = vst [vmem:[#allocation68_spill] sm:$0xff] %v11409_v27  ;;  %v6318_v1 = vsub.f32 0.0, %v11414_v34  ;;  %v6322_v51 = vsub.f32 0.0, %v11416_v10  ;;  %vm6328_vm14 = vmor %vm11418_vm13, %vm11417_vm15  ;;  %vm11423_vm4 = vcmp.lt.s32.totalorder %v11422_v60, %v11093_v8  ;;  %v11424_v59 = vmov 0  ;;  %v11427_v10 = vld [vmem:[#allocation65_spill] sm:$0xff] }
 0x194   : > { %vm6337_vm11 = vmand %vm11423_vm4, %vm11421_vm12  ;;  %v11428_v52 = vand.u32 2147483647, %v11427_v10  ;;  %v11430_v34 = vand.u32 2147483647, %v11429_v56  ;;  %v1611_v37 = vmul.f32 1.442695, %v1543_v21  ;;  %2963 = vpow2.f32 %v1607_v17 }
 0x195   : > { %v11425_v59 = vsel %vm6337_vm11, 4294967295, %v11424_v59  ;;  %vm11431_vm15 = vcmp.eq.s32.totalorder %v11252_v50, 4294967286  ;;  %v11436_v10 = vmov 0  ;;  %v11441_v50 = vld [vmem:[#allocation175_spill] sm:$0xff]  ;;  %v11445_v27 = vmov 0 }
 0x196   : > { %11426 = vst [vmem:[#allocation72_spill] sm:$0xff] %v11425_v59  ;;  %v6343_v49 = vsub.f32 0.0, %v11428_v52  ;;  %v6347_v43 = vsub.f32 0.0, %v11430_v34  ;;  %vm6353_vm13 = vmor %vm6067_vm2, %vm11431_vm15  ;;  %v11434_v59 = vld [vmem:[#allocation33_spill] sm:$0xff]  ;;  %v11439_v52 = vld [vmem:[#allocation168_spill] sm:$0xff]  ;;  %vm11444_vm2 = vcmp.lt.s32.totalorder %v11443_v24, %v11093_v8  ;;  %2965 = vpow2.f32 %v1609_v11 }
 0x197   : > { %vm11435_vm4 = vcmp.lt.s32.totalorder %v11434_v59, %v11093_v8  ;;  %v11440_v12 = vand.u32 2147483647, %v11439_v52  ;;  %v11442_v56 = vand.u32 2147483647, %v11441_v50  ;;  %v1613_v34 = vmul.f32 1.442695, %v1544_v33  ;;  %vm6379_vm15 = vmand %vm11444_vm2, %vm6101_vm10 }
 0x198   : > { %vm6362_vm12 = vmand %vm11435_vm4, %vm6076_vm1  ;;  %v11446_v27 = vsel %vm6379_vm15, 4294967295, %v11445_v27  ;;  %v1615_v13 = vmul.f32 1.442695, %v1545_v23  ;;  %vm11453_vm1 = vcmp.lt.s32.totalorder %v11452_v55, %v11093_v8  ;;  %v11454_v33 = vmov 0 }
 0x199   : > { %v11437_v10 = vsel %vm6362_vm12, 4294967295, %v11436_v10  ;;  %v6368_v21 = vsub.f32 0.0, %v11440_v12  ;;  %v6372_v35 = vsub.f32 0.0, %v11442_v56  ;;  %11447 = vst [vmem:[#allocation138_spill] sm:$0xff] %v11446_v27  ;;  %v11450_v12 = vld [vmem:[#allocation184_spill] sm:$0xff]  ;;  %vm6396_vm4 = vmand %vm11453_vm1, %vm6121_vm8  ;;  %vm11462_vm10 = vcmp.lt.s32.totalorder %v11461_v58, %v11093_v8 }
 0x19a   : > { %11438 = vst [vmem:[#allocation57_spill] sm:$0xff] %v11437_v10  ;;  %v11448_v10 = vld [vmem:[#allocation180_spill] sm:$0xff]  ;;  %v11451_v60 = vand.u32 2147483647, %v11450_v12  ;;  %v11455_v33 = vsel %vm6396_vm4, 4294967295, %v11454_v33  ;;  %vm6413_vm2 = vmand %vm11462_vm10, %vm6146_vm9  ;;  %v11463_v23 = vmov 0  ;;  %2967 = vpow2.f32 %v1611_v37 }
 0x19b   : > { %v11449_v59 = vand.u32 2147483647, %v11448_v10  ;;  %11456 = vst [vmem:[#allocation139_spill] sm:$0xff] %v11455_v33  ;;  %v11457_v56 = vld [vmem:[#allocation188_spill] sm:$0xff]  ;;  %v1617_v17 = vmul.f32 1.442695, %v1546_v29  ;;  %vm11471_vm8 = vcmp.lt.s32.totalorder %v11470_v39, %v11093_v8  ;;  %2969 = vpow2.f32 %v1613_v34 }
 0x19c   : > { %v6389_v50 = vsub.f32 0.0, %v11451_v60  ;;  %v11458_v27 = vand.u32 2147483647, %v11457_v56  ;;  %v11464_v23 = vsel %vm6413_vm2, 4294967295, %v11463_v23  ;;  %v11466_v60 = vld [vmem:[#allocation194_spill] sm:$0xff]  ;;  %vm6430_vm1 = vmand %vm11471_vm8, %vm6171_vm0  ;;  %v11472_v29 = vmov 0 }
 0x19d   : > { %v6385_v52 = vsub.f32 0.0, %v11449_v59  ;;  %v11459_v59 = vld [vmem:[#allocation192_spill] sm:$0xff]  ;;  %11465 = vst [vmem:[#allocation46_spill] sm:$0xff] %v11464_v23  ;;  %v11467_v33 = vand.u32 2147483647, %v11466_v60  ;;  %v11473_v29 = vsel %vm6430_vm1, 4294967295, %v11472_v29  ;;  %2971 = vpow2.f32 %v1615_v13 }
 0x19e   : > { %v6402_v10 = vsub.f32 0.0, %v11458_v27  ;;  %v11460_v24 = vand.u32 2147483647, %v11459_v59  ;;  %v11468_v27 = vld [vmem:[#allocation70_spill] sm:$0xff]  ;;  %v1619_v11 = vmul.f32 1.442695, %v1547_v47  ;;  %vm11488_vm0 = vcmp.lt.s32.totalorder %v11487_v6, %v11093_v8 }
 0x19f   : > { %v6419_v56 = vsub.f32 0.0, %v11467_v33  ;;  %v11469_v55 = vand.u32 2147483647, %v11468_v27  ;;  %11474 = vst [vmem:[#allocation49_spill] sm:$0xff] %v11473_v29  ;;  %v11477_v33 = vld [vmem:[#allocation196_spill] sm:$0xff]  ;;  %v11479_v47 = vld [vmem:[#allocation38_spill] sm:$0xff]  ;;  %vm6464_vm8 = vmand %vm11488_vm0, %vm6220_vm6  ;;  %2973 = vpow2.f32 %v1617_v17 }
 0x1a0   : > { %v6406_v12 = vsub.f32 0.0, %v11460_v24  ;;  %v11475_v24 = vld [vmem:[#allocation195_spill] sm:$0xff]  ;;  %v11478_v58 = vand.u32 2147483647, %v11477_v33  ;;  %v1621_v37 = vmul.f32 1.442695, %v1548_v32  ;;  %vm11480_vm9 = vcmp.lt.s32.totalorder %v11479_v47, %v11093_v8 }
 0x1a1   : > { %v6423_v59 = vsub.f32 0.0, %v11469_v55  ;;  %v11476_v23 = vand.u32 2147483647, %v11475_v24  ;;  %vm6447_vm10 = vmand %vm11480_vm9, %vm6195_vm3  ;;  %v11481_v44 = vmov 0  ;;  %v11484_v55 = vld [vmem:[#allocation197_spill] sm:$0xff]  ;;  %v11489_v32 = vmov 0 }
 0x1a2   : > { %v6440_v27 = vsub.f32 0.0, %v11478_v58  ;;  %v11482_v44 = vsel %vm6447_vm10, 4294967295, %v11481_v44  ;;  %v11485_v29 = vand.u32 2147483647, %v11484_v55  ;;  %v1623_v34 = vmul.f32 1.442695, %v1549_v48 }
 0x1a3   : > { %v6436_v60 = vsub.f32 0.0, %v11476_v23  ;;  %11483 = vst [vmem:[#allocation50_spill] sm:$0xff] %v11482_v44  ;;  %v11486_v23 = vand.u32 2147483647, %v5267_v54  ;;  %v11490_v32 = vsel %vm6464_vm8, 4294967295, %v11489_v32  ;;  %vm11495_vm3 = vcmp.lt.s32.totalorder %v11494_v5, %v11093_v8 }
 0x1a4   : > { %v6453_v24 = vsub.f32 0.0, %v11485_v29  ;;  %11491 = vst [vmem:[#allocation51_spill] sm:$0xff] %v11490_v32  ;;  %v11492_v58 = vand.u32 2147483647, %v5289_v19  ;;  %v11493_v29 = vand.u32 2147483647, %v5292_v53  ;;  %vm6481_vm9 = vmand %vm11495_vm3, %vm6243_vm5  ;;  %2975 = vpow2.f32 %v1619_v11  ;;  %v6511_v11 = vpop.eup %2959 }
 0x1a5   : > { %v6457_v33 = vsub.f32 0.0, %v11486_v23  ;;  %v1625_v13 = vmul.f32 1.442695, %v1550_v62  ;;  %v11496_v48 = vmov 0  ;;  %v11499_v23 = vand.u32 2147483647, %v5314_v18 }
 0x1a6   : > { %v6470_v55 = vsub.f32 0.0, %v11492_v58  ;;  %v6474_v54 = vsub.f32 0.0, %v11493_v29  ;;  %v11497_v48 = vsel %vm6481_vm9, 4294967295, %v11496_v48  ;;  %v11500_v58 = vand.u32 2147483647, %v5317_v36  ;;  %v11501_v62 = vld [vmem:[#allocation41_spill] sm:$0xff] }
 0x1a7   : > { %11498 = vst [vmem:[#allocation52_spill] sm:$0xff] %v11497_v48  ;;  %v6487_v19 = vsub.f32 0.0, %v11499_v23  ;;  %v1627_v17 = vmul.f32 1.442695, %v1551_v7  ;;  %vm11502_vm6 = vcmp.lt.s32.totalorder %v11501_v62, %v11093_v8  ;;  %v11503_v26 = vmov 0  ;;  %v11531_v48 = vld [vmem:[#allocation153_spill] sm:$0xff] }
 0x1a8   : > { %v6491_v53 = vsub.f32 0.0, %v11500_v58  ;;  %vm6498_vm0 = vmand %vm11502_vm6, %vm6270_vm7  ;;  %v11506_v29 = vand.u32 2147483647, %v5336_v41  ;;  %v11507_v23 = vand.u32 2147483647, %v5339_v25  ;;  %2977 = vpow2.f32 %v1621_v37 }
 0x1a9   : > { %v11504_v26 = vsel %vm6498_vm0, 4294967295, %v11503_v26  ;;  %v1629_v7 = vmul.f32 1.442695, %v6260_v31  ;;  %vm11508_vm5 = vnez %v11404_v3  ;;  %vm11510_vm7 = vcmp.lt.s32.totalorder %v11509_v46, %v11093_v8  ;;  %v11516_v3 = vld [vmem:[#allocation43_spill] sm:$0xff] }
 0x1aa   : > { %11505 = vst [vmem:[#allocation54_spill] sm:$0xff] %v11504_v26  ;;  %v6504_v18 = vsub.f32 0.0, %v11506_v29  ;;  %v6508_v36 = vsub.f32 0.0, %v11507_v23  ;;  %vm6518_vm3 = vmand %vm11510_vm7, %vm11508_vm5  ;;  %v11511_v58 = vmov 0  ;;  %v11514_v41 = vand.u32 2147483647, %v5342_v2  ;;  %v6531_v23 = vpop.eup %2961 }
 0x1ab   : > { %v11512_v58 = vsel %vm6518_vm3, 4294967295, %v11511_v58  ;;  %v11515_v25 = vand.u32 2147483647, %v5361_v38  ;;  %2979 = vpow2.f32 %v1623_v34  ;;  %v1631_v31 = vmul.f32 1.442695, %v6264_v40 }
 0x1ac   : > { %11513 = vst [vmem:[#allocation55_spill] sm:$0xff] %v11512_v58  ;;  %v6524_v29 = vsub.f32 0.0, %v11514_v41  ;;  %vm11517_vm6 = vcmp.lt.s32.totalorder %v11516_v3, %v11093_v8  ;;  %v11518_v58 = vmov 0  ;;  %v11521_v2 = vand.u32 2147483647, %v5364_v14 }
 0x1ad   : > { %v6528_v37 = vsub.f32 0.0, %v11515_v25  ;;  %vm6538_vm5 = vmand %vm11517_vm6, %vm6328_vm14  ;;  %v11522_v38 = vand.u32 2147483647, %v5367_v4  ;;  %2981 = vpow2.f32 %v1625_v13  ;;  %v1633_v40 = vmul.f32 1.442695, %v6285_v15  ;;  %v6551_v25 = vpop.eup %2963 }
 0x1ae   : > { %v11519_v58 = vsel %vm6538_vm5, 4294967295, %v11518_v58  ;;  %v6544_v41 = vsub.f32 0.0, %v11521_v2  ;;  %vm11524_vm14 = vcmp.lt.s32.totalorder %v11523_v16, %v11093_v8  ;;  %v11528_v14 = vand.u32 2147483647, %v5389_v0 }
 0x1af   : > { %11520 = vst [vmem:[#allocation151_spill] sm:$0xff] %v11519_v58  ;;  %v6548_v34 = vsub.f32 0.0, %v11522_v38  ;;  %vm6558_vm7 = vmand %vm11524_vm14, %vm6353_vm13  ;;  %v11525_v58 = vmov 0  ;;  %v11529_v4 = vand.u32 2147483647, %v5392_v61  ;;  %2983 = vpow2.f32 %v1627_v17  ;;  %v6571_v38 = vpop.eup %2965 }
 0x1b0   : > { %v11526_v58 = vsel %vm6558_vm7, 4294967295, %v11525_v58  ;;  %v6564_v2 = vsub.f32 0.0, %v11528_v14  ;;  %v1635_v15 = vmul.f32 1.442695, %v6289_v28  ;;  %v11530_v9 = vand.u32 2147483647, %v5414_v63  ;;  %v6582_v14 = vpop.eup %2967 }
 0x1b1   : > { %11527 = vst [vmem:[#allocation159_spill] sm:$0xff] %v11526_v58  ;;  %v6568_v13 = vsub.f32 0.0, %v11529_v4  ;;  %v11532_v32 = vand.u32 2147483647, %v11531_v48  ;;  %2985 = vpow2.f32 %v1629_v7  ;;  %v1637_v0 = vmul.f32 1.442695, %v6293_v30 }
 0x1b2   : > { %v6575_v26 = vsub.f32 0.0, %v11530_v9  ;;  %v11533_v61 = vand.u32 2147483647, %v5554_v57  ;;  %v11534_v28 = vand.u32 2147483647, %v5557_v42  ;;  %2987 = vpow2.f32 %v1631_v31  ;;  %v6593_v9 = vpop.eup %2969  ;;  %v11537_v42 = vld [vmem:[#allocation76_spill] sm:$0xff] }
 0x1b3   : > { %v6579_v58 = vsub.f32 0.0, %v11532_v32  ;;  %v1639_v63 = vmul.f32 1.442695, %v6314_v20  ;;  %v11535_v32 = vand.u32 2147483647, %v5560_v22  ;;  %2989 = vpow2.f32 %v1633_v40  ;;  %v11539_v20 = vld [vmem:[#allocation198_spill] sm:$0xff] }
 0x1b4   : > { %v6586_v17 = vsub.f32 0.0, %v11533_v61  ;;  %v6590_v4 = vsub.f32 0.0, %v11534_v28  ;;  %v11536_v30 = vand.u32 2147483647, %v11247_v45  ;;  %v1641_v57 = vmul.f32 1.442695, %v6318_v1  ;;  %v6604_v61 = vpop.eup %2971 }
 0x1b5   : > { %v6597_v48 = vsub.f32 0.0, %v11535_v32  ;;  %v11538_v28 = vand.u32 2147483647, %v11537_v42  ;;  %v11540_v44 = vand.u32 2147483647, %v11539_v20  ;;  %2991 = vpow2.f32 %v1635_v15  ;;  %v6615_v32 = vpop.eup %2973  ;;  %v11541_v45 = vld [vmem:[#allocation199_spill] sm:$0xff] }
 0x1b6   : > { %v6601_v7 = vsub.f32 0.0, %v11536_v30  ;;  %v1643_v22 = vmul.f32 1.442695, %v6322_v51  ;;  %v11542_v30 = vand.u32 2147483647, %v11541_v45  ;;  %v11543_v1 = vld [vmem:[#allocation201_spill] sm:$0xff]  ;;  %2993 = vpow2.f32 %v1637_v0 }
 0x1b7   : > { %v6608_v31 = vsub.f32 0.0, %v11538_v28  ;;  %v6612_v16 = vsub.f32 0.0, %v11540_v44  ;;  %v11544_v3 = vand.u32 2147483647, %v11543_v1  ;;  %v1645_v42 = vmul.f32 1.442695, %v6343_v49  ;;  %v6626_v28 = vpop.eup %2975 }
 0x1b8   : > { %v6619_v40 = vsub.f32 0.0, %v11542_v30  ;;  %v11545_v44 = vld [vmem:[#allocation202_spill] sm:$0xff]  ;;  %v11547_v51 = vld [vmem:[#allocation204_spill] sm:$0xff]  ;;  %2995 = vpow2.f32 %v1639_v63  ;;  %v1647_v45 = vmul.f32 1.442695, %v6347_v43  ;;  %v6637_v30 = vpop.eup %2977 }
 0x1b9   : > { %v6623_v46 = vsub.f32 0.0, %v11544_v3  ;;  %v11546_v20 = vand.u32 2147483647, %v11545_v44  ;;  %v11548_v62 = vand.u32 2147483647, %v11547_v51  ;;  %v11549_v3 = vld [vmem:[#allocation205_spill] sm:$0xff]  ;;  %2997 = vpow2.f32 %v1641_v57 }
 0x1ba   : > { %v11550_v1 = vand.u32 2147483647, %v11549_v3  ;;  %v11551_v49 = vld [vmem:[#allocation208_spill] sm:$0xff]  ;;  %v1649_v44 = vmul.f32 1.442695, %v6368_v21  ;;  %2999 = vpow2.f32 %v1643_v22 }
 0x1bb   : > { %v6630_v15 = vsub.f32 0.0, %v11546_v20  ;;  %v6634_v5 = vsub.f32 0.0, %v11548_v62  ;;  %v11552_v6 = vand.u32 2147483647, %v11551_v49  ;;  %v6648_v20 = vpop.eup %2979  ;;  %v11553_v62 = vld [vmem:[#allocation209_spill] sm:$0xff]  ;;  %v11555_v43 = vld [vmem:[#allocation212_spill] sm:$0xff]  ;;  %3001 = vpow2.f32 %v1645_v42 }
 0x1bc   : > { %v6641_v0 = vsub.f32 0.0, %v11550_v1  ;;  %v11554_v51 = vand.u32 2147483647, %v11553_v62  ;;  %v11556_v39 = vand.u32 2147483647, %v11555_v43  ;;  %v6659_v1 = vpop.eup %2981  ;;  %3003 = vpow2.f32 %v1647_v45 }
 0x1bd   : > { %v6645_v47 = vsub.f32 0.0, %v11552_v6  ;;  %v1651_v3 = vmul.f32 1.442695, %v6372_v35  ;;  %v11557_v6 = vld [vmem:[#allocation213_spill] sm:$0xff]  ;;  %v1653_v21 = vmul.f32 1.442695, %v6385_v52  ;;  %3005 = vpow2.f32 %v1649_v44 }
 0x1be   : > { %v6652_v63 = vsub.f32 0.0, %v11554_v51  ;;  %v6656_v8 = vsub.f32 0.0, %v11556_v39  ;;  %v11558_v49 = vand.u32 2147483647, %v11557_v6  ;;  %v1655_v62 = vmul.f32 1.442695, %v6389_v50  ;;  %v6667_v51 = vpop.eup %2983 }
 0x1bf   : > { %v1657_v39 = vmul.f32 1.442695, %v6402_v10  ;;  %v1659_v22 = vmul.f32 1.442695, %v6406_v12  ;;  %v1661_v35 = vmul.f32 1.442695, %v6419_v56  ;;  %v6672_v43 = vpop.eup %2985  ;;  %3007 = vpow2.f32 %v1651_v3 }
 0x1c0   : > { %v6663_v57 = vsub.f32 0.0, %v11558_v49  ;;  %v1663_v49 = vmul.f32 1.442695, %v6423_v59  ;;  %v1665_v42 = vmul.f32 1.442695, %v6436_v60  ;;  %v6677_v6 = vpop.eup %2987  ;;  %3009 = vpow2.f32 %v1653_v21 }
 0x1c1   : > { %v1667_v52 = vmul.f32 1.442695, %v6440_v27  ;;  %v1669_v50 = vmul.f32 1.442695, %v6453_v24  ;;  %v1671_v10 = vmul.f32 1.442695, %v6457_v33  ;;  %v6682_v45 = vpop.eup %2989  ;;  %3011 = vpow2.f32 %v1655_v62 }
 0x1c2   : > { %v1673_v12 = vmul.f32 1.442695, %v6470_v55  ;;  %v1675_v56 = vmul.f32 1.442695, %v6474_v54  ;;  %v1677_v59 = vmul.f32 1.442695, %v6487_v19  ;;  %v6687_v44 = vpop.eup %2991  ;;  %3013 = vpow2.f32 %v1657_v39 }
 0x1c3   : > { %v1679_v60 = vmul.f32 1.442695, %v6491_v53  ;;  %v6690_v27 = vmul.f32 1.442695, %v6504_v18  ;;  %v6693_v24 = vmul.f32 1.442695, %v6508_v36  ;;  %v6698_v55 = vpop.eup %2993  ;;  %3015 = vpow2.f32 %v1659_v22 }
 0x1c4   : > { %v6696_v33 = vmul.f32 1.442695, %v6524_v29  ;;  %v6701_v54 = vmul.f32 1.442695, %v6528_v37  ;;  %v6704_v19 = vmul.f32 1.442695, %v6544_v41  ;;  %v6709_v18 = vpop.eup %2995  ;;  %3017 = vpow2.f32 %v1661_v35 }
 0x1c5   : > { %v6707_v53 = vmul.f32 1.442695, %v6548_v34  ;;  %v6712_v36 = vmul.f32 1.442695, %v6564_v2  ;;  %v6715_v29 = vmul.f32 1.442695, %v6568_v13  ;;  %v6720_v37 = vpop.eup %2997  ;;  %3019 = vpow2.f32 %v1663_v49 }
 0x1c6   : > { %v6718_v3 = vmul.f32 1.442695, %v6575_v26  ;;  %v6723_v41 = vmul.f32 1.442695, %v6579_v58  ;;  %v6726_v34 = vmul.f32 1.442695, %v6586_v17  ;;  %v6731_v2 = vpop.eup %2999  ;;  %3021 = vpow2.f32 %v1665_v42 }
 0x1c7   : > { %v6729_v21 = vmul.f32 1.442695, %v6590_v4  ;;  %v6734_v13 = vmul.f32 1.442695, %v6597_v48  ;;  %v6737_v26 = vmul.f32 1.442695, %v6601_v7  ;;  %v6742_v58 = vpop.eup %3001  ;;  %3023 = vpow2.f32 %v1667_v52 }
 0x1c8   : > { %v6740_v62 = vmul.f32 1.442695, %v6608_v31  ;;  %v6745_v17 = vmul.f32 1.442695, %v6612_v16  ;;  %v6748_v4 = vmul.f32 1.442695, %v6619_v40  ;;  %v6751_v22 = vpop.eup %3003  ;;  %3025 = vpow2.f32 %v1669_v50 }
 0x1c9   : > { %v1734_v39 = vmul.f32 -0.5, %v6511_v11  ;;  %11559 = vst [vmem:[#allocation160_spill] sm:$0xff] %v6751_v22  ;;  %v6754_v48 = vmul.f32 1.442695, %v6623_v46  ;;  %v6757_v7 = vmul.f32 1.442695, %v6630_v15  ;;  %v6760_v35 = vpop.eup %3005  ;;  %3027 = vpow2.f32 %v1671_v10 }
 0x1ca   : > { %v1743_v31 = vmul.f32 -0.5, %v6531_v23  ;;  %11560 = vst [vmem:[#allocation161_spill] sm:$0xff] %v6760_v35  ;;  %v6763_v16 = vmul.f32 1.442695, %v6634_v5  ;;  %v6766_v40 = vmul.f32 1.442695, %v6641_v0  ;;  %v6769_v42 = vpop.eup %3007  ;;  %3029 = vpow2.f32 %v1673_v12 }
 0x1cb   : > { %v1752_v49 = vmul.f32 -0.5, %v6551_v25  ;;  %11561 = vst [vmem:[#allocation58_spill] sm:$0xff] %v6769_v42  ;;  %v6772_v46 = vmul.f32 1.442695, %v6645_v47  ;;  %v6775_v15 = vmul.f32 1.442695, %v6652_v63  ;;  %v6780_v50 = vpop.eup %3009  ;;  %3031 = vpow2.f32 %v1675_v56 }
 0x1cc   : > { %v6778_v52 = vmul.f32 1.442695, %v6656_v8  ;;  %11562 = vst [vmem:[#allocation59_spill] sm:$0xff] %v6780_v50  ;;  %v6783_v5 = vmul.f32 1.442695, %v6663_v57  ;;  %v6786_v0 = vadd.f32 1.0, %v6511_v11  ;;  %v6788_v10 = vpop.eup %3011  ;;  %3033 = vpow2.f32 %v1677_v59 }
 0x1cd   : > { %v1735_v42 = vadd.f32 1.0, %v1734_v39  ;;  %11563 = vst [vmem:[#allocation60_spill] sm:$0xff] %v6788_v10  ;;  %v1744_v63 = vadd.f32 1.0, %v1743_v31  ;;  %v1761_v35 = vmul.f32 -0.5, %v6571_v38  ;;  %v6792_v8 = vpop.eup %3013  ;;  %v6795_v12 = vadd.f32 1.0, %v6531_v23 }
 0x1ce   : > { %11564 = vst [vmem:[#allocation61_spill] sm:$0xff] %v6792_v8  ;;  %v1753_v57 = vadd.f32 1.0, %v1752_v49  ;;  %v1770_v50 = vmul.f32 -0.5, %v6582_v14  ;;  %v6798_v22 = vpop.eup %3015  ;;  %3035 = vpow2.f32 %v1679_v60  ;;  %v6802_v56 = vadd.f32 1.0, %v6551_v25 }
 0x1cf   : > { %11565 = vst [vmem:[#allocation62_spill] sm:$0xff] %v6798_v22  ;;  %v6805_v47 = vpop.eup %3017  ;;  %3037 = vpow2.f32 %v6690_v27  ;;  %v6809_v59 = vmul.f32 %v6511_v11, %v1735_v42  ;;  %v6812_v49 = vadd.f32 1.0, %v6571_v38  ;;  %v1779_v22 = vmul.f32 -0.5, %v6593_v9 }
 0x1d0   : > { %11566 = vst [vmem:[#allocation63_spill] sm:$0xff] %v6805_v47  ;;  %v6815_v60 = vpop.eup %3019  ;;  %3039 = vpow2.f32 %v6693_v24  ;;  %v6819_v39 = vmul.f32 %v6531_v23, %v1744_v63  ;;  %v1762_v31 = vadd.f32 1.0, %v1761_v35  ;;  %v1788_v47 = vmul.f32 -0.5, %v6604_v61 }
 0x1d1   : > { %11567 = vst [vmem:[#allocation64_spill] sm:$0xff] %v6809_v59  ;;  %11568 = vst [vmem:[#allocation65_spill] sm:$0xff] %v6815_v60  ;;  %v6822_v8 = vpop.eup %3021  ;;  %3041 = vpow2.f32 %v6696_v33  ;;  %v6826_v27 = vmul.f32 %v6551_v25, %v1753_v57  ;;  %v1771_v59 = vadd.f32 1.0, %v1770_v50  ;;  %v6833_v24 = vadd.f32 1.0, %v6582_v14 }
 0x1d2   : > { %11569 = vst [vmem:[#allocation163_spill] sm:$0xff] %v6819_v39  ;;  %11570 = vst [vmem:[#allocation168_spill] sm:$0xff] %v6822_v8  ;;  %v6829_v10 = vpop.eup %3023  ;;  %3043 = vpow2.f32 %v6701_v54  ;;  %v1797_v35 = vmul.f32 -0.5, %v6615_v32  ;;  %v1806_v63 = vmul.f32 -0.5, %v6626_v28  ;;  %v6842_v57 = vadd.f32 1.0, %v6593_v9 }
 0x1d3   : > { %11571 = vst [vmem:[#allocation175_spill] sm:$0xff] %v6826_v27  ;;  %11572 = vst [vmem:[#allocation180_spill] sm:$0xff] %v6829_v10  ;;  %v6837_v8 = vpop.eup %3025  ;;  %3045 = vpow2.f32 %v6704_v19  ;;  %v1780_v50 = vadd.f32 1.0, %v1779_v22  ;;  %v6848_v54 = vmul.f32 %v6571_v38, %v1762_v31  ;;  %v1789_v60 = vadd.f32 1.0, %v1788_v47 }
 0x1d4   : > { %11573 = vst [vmem:[#allocation184_spill] sm:$0xff] %v6837_v8  ;;  %v6844_v42 = vpop.eup %3027  ;;  %3047 = vpow2.f32 %v6707_v53  ;;  %v6855_v19 = vmul.f32 %v6582_v14, %v1771_v59  ;;  %v6858_v33 = vadd.f32 1.0, %v6604_v61  ;;  %v1798_v53 = vadd.f32 1.0, %v1797_v35 }
 0x1d5   : > { %11574 = vst [vmem:[#allocation188_spill] sm:$0xff] %v6844_v42  ;;  %v6851_v27 = vpop.eup %3029  ;;  %3049 = vpow2.f32 %v6712_v36  ;;  %v1807_v31 = vadd.f32 1.0, %v1806_v63  ;;  %v1815_v47 = vmul.f32 -0.5, %v6637_v30  ;;  %v6869_v36 = vmul.f32 %v6593_v9, %v1780_v50 }
 0x1d6   : > { %11575 = vst [vmem:[#allocation192_spill] sm:$0xff] %v6851_v27  ;;  %v6861_v42 = vpop.eup %3031  ;;  %3051 = vpow2.f32 %v6715_v29  ;;  %v6872_v59 = vadd.f32 1.0, %v6615_v32  ;;  %v1824_v22 = vmul.f32 -0.5, %v6648_v20  ;;  %v6879_v29 = vmul.f32 %v6604_v61, %v1789_v60 }
 0x1d7   : > { %11576 = vst [vmem:[#allocation194_spill] sm:$0xff] %v6861_v42  ;;  %v6865_v10 = vpop.eup %3033  ;;  %3053 = vpow2.f32 %v6718_v3  ;;  %v6883_v63 = vadd.f32 1.0, %v6626_v28  ;;  %v6897_v60 = vmul.f32 %v6615_v32, %v1798_v53  ;;  %v6900_v35 = vmul.f32 %v6626_v28, %v1807_v31 }
 0x1d8   : > { %11577 = vst [vmem:[#allocation70_spill] sm:$0xff] %v6865_v10  ;;  %v6875_v27 = vpop.eup %3035  ;;  %3055 = vpow2.f32 %v6723_v41  ;;  %11579 = vst [vmem:[#allocation196_spill] sm:$0xff] %v6879_v29  ;;  %v6890_v10 = vadd.f32 1.0, %v6637_v30  ;;  %v1825_v50 = vadd.f32 1.0, %v1824_v22  ;;  %v1842_v8 = vmul.f32 -0.5, %v6667_v51 }
 0x1d9   : > { %11578 = vst [vmem:[#allocation195_spill] sm:$0xff] %v6875_v27  ;;  %v6885_v3 = vpop.eup %3037  ;;  %3057 = vpow2.f32 %v6726_v34  ;;  %v1833_v27 = vmul.f32 -0.5, %v6659_v1  ;;  %11582 = vst [vmem:[#allocation76_spill] sm:$0xff] %v6897_v60  ;;  %v1851_v53 = vmul.f32 -0.5, %v6672_v43  ;;  %v1860_v31 = vmul.f32 -0.5, %v6677_v6 }
 0x1da   : > { %11580 = vst [vmem:[#allocation197_spill] sm:$0xff] %v6885_v3  ;;  %v6893_v41 = vpop.eup %3039  ;;  %3059 = vpow2.f32 %v6729_v21  ;;  %11583 = vst [vmem:[#allocation198_spill] sm:$0xff] %v6900_v35  ;;  %v1816_v3 = vadd.f32 1.0, %v1815_v47  ;;  %v6911_v21 = vadd.f32 1.0, %v6648_v20  ;;  %v6920_v22 = vadd.f32 1.0, %v6659_v1 }
 0x1db   : > { %11581 = vst [vmem:[#allocation153_spill] sm:$0xff] %v6893_v41  ;;  %v6902_v42 = vpop.eup %3041  ;;  %3061 = vpow2.f32 %v6734_v13  ;;  %v1834_v34 = vadd.f32 1.0, %v1833_v27  ;;  %v6930_v41 = vadd.f32 1.0, %v6667_v51  ;;  %v1843_v27 = vadd.f32 1.0, %v1842_v8 }
 0x1dc   : > { %11584 = vst [vmem:[#allocation199_spill] sm:$0xff] %v6902_v42  ;;  %v6907_v29 = vpop.eup %3043  ;;  %3063 = vpow2.f32 %v6737_v26  ;;  %v6926_v26 = vmul.f32 %v6637_v30, %v1816_v3  ;;  %v1861_v3 = vadd.f32 1.0, %v1860_v31  ;;  %v1869_v42 = vmul.f32 -0.5, %v6682_v45 }
 0x1dd   : > { %11585 = vst [vmem:[#allocation201_spill] sm:$0xff] %v6907_v29  ;;  %v6915_v47 = vpop.eup %3045  ;;  %3065 = vpow2.f32 %v6740_v62  ;;  %v6936_v62 = vmul.f32 %v6648_v20, %v1825_v50  ;;  %v6950_v50 = vadd.f32 1.0, %v6672_v43  ;;  %v1878_v8 = vmul.f32 -0.5, %v6687_v44 }
 0x1de   : > { %11586 = vst [vmem:[#allocation202_spill] sm:$0xff] %v6915_v47  ;;  %v6922_v29 = vpop.eup %3047  ;;  %3067 = vpow2.f32 %v6745_v17  ;;  %11588 = vst [vmem:[#allocation205_spill] sm:$0xff] %v6926_v26  ;;  %v1852_v17 = vadd.f32 1.0, %v1851_v53  ;;  %v6958_v53 = vadd.f32 1.0, %v6677_v6  ;;  %v1887_v31 = vmul.f32 -0.5, %v6698_v55 }
 0x1df   : > { %11587 = vst [vmem:[#allocation204_spill] sm:$0xff] %v6922_v29  ;;  %v6932_v47 = vpop.eup %3049  ;;  %3069 = vpow2.f32 %v6748_v4  ;;  %11590 = vst [vmem:[#allocation209_spill] sm:$0xff] %v6936_v62  ;;  %v6947_v4 = vmul.f32 %v6659_v1, %v1834_v34  ;;  %v6965_v34 = vmul.f32 %v6667_v51, %v1843_v27  ;;  %v1914_v27 = vmul.f32 -0.5, %v6731_v2 }
 0x1e0   : > { %11589 = vst [vmem:[#allocation208_spill] sm:$0xff] %v6932_v47  ;;  %v6939_v29 = vpop.eup %3051  ;;  %3071 = vpow2.f32 %v6754_v48  ;;  %v6975_v48 = vmul.f32 %v6672_v43, %v1852_v17  ;;  %v1896_v47 = vmul.f32 -0.5, %v6709_v18  ;;  %v1888_v17 = vadd.f32 1.0, %v1887_v31 }
 0x1e1   : > { %11591 = vst [vmem:[#allocation212_spill] sm:$0xff] %v6939_v29  ;;  %v6943_v26 = vpop.eup %3053  ;;  %3073 = vpow2.f32 %v6757_v7  ;;  %11593 = vst [vmem:[#allocation241_spill] sm:$0xff] %v6947_v4  ;;  %v6978_v29 = vmul.f32 %v6677_v6, %v1861_v3  ;;  %v1905_v3 = vmul.f32 -0.5, %v6720_v37  ;;  %v1923_v31 = vmul.f32 -0.5, %v6742_v58 }
 0x1e2   : > { %11592 = vst [vmem:[#allocation240_spill] sm:$0xff] %v6943_v26  ;;  %v6953_v13 = vpop.eup %3055  ;;  %3075 = vpow2.f32 %v6763_v16  ;;  %11596 = vst [vmem:[#allocation244_spill] sm:$0xff] %v6965_v34  ;;  %v1879_v26 = vadd.f32 1.0, %v1878_v8  ;;  %v6997_v8 = vadd.f32 1.0, %v6698_v55  ;;  %v11644_v4 = vand.u32 2147483647, %v6593_v9 }
 0x1e3   : > { %11594 = vst [vmem:[#allocation242_spill] sm:$0xff] %v6953_v13  ;;  %v6961_v7 = vpop.eup %3057  ;;  %3077 = vpow2.f32 %v6766_v40  ;;  %v6969_v13 = vadd.f32 1.0, %v6682_v45  ;;  %11598 = vst [vmem:[#allocation246_spill] sm:$0xff] %v6975_v48  ;;  %v11636_v48 = vmov 0  ;;  %v11687_v39 = vmov 0 }
 0x1e4   : > { %11595 = vst [vmem:[#allocation243_spill] sm:$0xff] %v6961_v7  ;;  %v6971_v16 = vpop.eup %3059  ;;  %3079 = vpow2.f32 %v6772_v46  ;;  %11599 = vst [vmem:[#allocation247_spill] sm:$0xff] %v6978_v29  ;;  %v1870_v7 = vadd.f32 1.0, %v1869_v42  ;;  %v6989_v46 = vadd.f32 1.0, %v6687_v44  ;;  %vm7133_vm3 = vcmp.lt.f32.partialorder %v11644_v4, 0.0004427343 }
 0x1e5   : > { %11597 = vst [vmem:[#allocation245_spill] sm:$0xff] %v6971_v16  ;;  %v6980_v40 = vpop.eup %3061  ;;  %3081 = vpow2.f32 %v6775_v15  ;;  %v7014_v15 = vmul.f32 %v6687_v44, %v1879_v26  ;;  %v11610_v26 = vld [vmem:[#allocation160_spill] sm:$0xff] }
 0x1e6   : > { %11600 = vst [vmem:[#allocation248_spill] sm:$0xff] %v6980_v40  ;;  %v6985_v34 = vpop.eup %3063  ;;  %3083 = vpow2.f32 %v6778_v52  ;;  %v7004_v52 = vmul.f32 %v6682_v45, %v1870_v7  ;;  %v1897_v40 = vadd.f32 1.0, %v1896_v47  ;;  %v1906_v7 = vadd.f32 1.0, %v1905_v3  ;;  %v11612_v3 = vld [vmem:[#allocation161_spill] sm:$0xff] }
 0x1e7   : > { %11601 = vst [vmem:[#allocation249_spill] sm:$0xff] %v6985_v34  ;;  %v6992_v42 = vpop.eup %3065  ;;  %3085 = vpow2.f32 %v6783_v5  ;;  %11606 = vst [vmem:[#allocation254_spill] sm:$0xff] %v7014_v15  ;;  %v1915_v47 = vadd.f32 1.0, %v1914_v27  ;;  %v11617_v15 = vld [vmem:[#allocation58_spill] sm:$0xff] }
 0x1e8   : > { %11602 = vst [vmem:[#allocation250_spill] sm:$0xff] %v6992_v42  ;;  %v7000_v34 = vpop.eup %3067  ;;  %3087 = vlog2.f32 %v6786_v0  ;;  %11604 = vst [vmem:[#allocation252_spill] sm:$0xff] %v7004_v52  ;;  %v7008_v42 = vadd.f32 1.0, %v6709_v18  ;;  %v7021_v0 = vmul.f32 %v6698_v55, %v1888_v17  ;;  %v7036_v17 = vadd.f32 1.0, %v6731_v2 }
 0x1e9   : > { %11603 = vst [vmem:[#allocation251_spill] sm:$0xff] %v7000_v34  ;;  %v7010_v5 = vpop.eup %3069  ;;  %3089 = vlog2.f32 %v6795_v12  ;;  %v7028_v12 = vadd.f32 1.0, %v6720_v37  ;;  %v1932_v34 = vmul.f32 -0.5, %v11610_v26 }
 0x1ea   : > { %11605 = vst [vmem:[#allocation253_spill] sm:$0xff] %v7010_v5  ;;  %v7017_v16 = vpop.eup %3071  ;;  %3091 = vlog2.f32 %v6802_v56  ;;  %11608 = vst [vmem:[#allocation256_spill] sm:$0xff] %v7021_v0  ;;  %v7053_v56 = vmul.f32 %v6720_v37, %v1906_v7  ;;  %v1924_v0 = vadd.f32 1.0, %v1923_v31  ;;  %v7073_v31 = vadd.f32 1.0, %v11610_v26 }
 0x1eb   : > { %11607 = vst [vmem:[#allocation255_spill] sm:$0xff] %v7017_v16  ;;  %v7024_v52 = vpop.eup %3073  ;;  %3093 = vlog2.f32 %v6812_v49  ;;  %v1941_v16 = vmul.f32 -0.5, %v11612_v3  ;;  %v7043_v49 = vmul.f32 %v6709_v18, %v1897_v40  ;;  %v1933_v27 = vadd.f32 1.0, %v1932_v34 }
 0x1ec   : > { %11609 = vst [vmem:[#allocation257_spill] sm:$0xff] %v7024_v52  ;;  %v7031_v5 = vpop.eup %3075  ;;  %3095 = vlog2.f32 %v6833_v24  ;;  %11616 = vst [vmem:[#allocation262_spill] sm:$0xff] %v7053_v56  ;;  %v11626_v34 = vand.u32 2147483647, %v6531_v23  ;;  %v11627_v40 = vmov 0  ;;  %v7098_v23 = vmul.f32 %v6742_v58, %v1924_v0 }
 0x1ed   : > { %11611 = vst [vmem:[#allocation258_spill] sm:$0xff] %v7031_v5  ;;  %v7039_v52 = vpop.eup %3077  ;;  %3097 = vlog2.f32 %v6842_v57  ;;  %11614 = vst [vmem:[#allocation260_spill] sm:$0xff] %v7043_v49  ;;  %v7047_v5 = vadd.f32 1.0, %v6742_v58  ;;  %v7060_v57 = vmul.f32 %v6731_v2, %v1915_v47  ;;  %v11635_v56 = vand.u32 2147483647, %v6571_v38 }
 0x1ee   : > { %11613 = vst [vmem:[#allocation259_spill] sm:$0xff] %v7039_v52  ;;  %v7049_v24 = vpop.eup %3079  ;;  %3099 = vlog2.f32 %v6858_v33  ;;  %v1950_v52 = vmul.f32 -0.5, %v11617_v15  ;;  %v11621_v33 = vand.u32 2147483647, %v6511_v11  ;;  %vm7080_vm6 = vcmp.lt.f32.partialorder %v11626_v34, 0.0004427343 }
 0x1ef   : > { %11615 = vst [vmem:[#allocation261_spill] sm:$0xff] %v7049_v24  ;;  %v7056_v29 = vpop.eup %3081  ;;  %3101 = vlog2.f32 %v6872_v59  ;;  %11619 = vst [vmem:[#allocation264_spill] sm:$0xff] %v7060_v57  ;;  %v1942_v59 = vadd.f32 1.0, %v1941_v16  ;;  %v11628_v40 = vsel %vm7080_vm6, 4294967295, %v11627_v40  ;;  %v11631_v57 = vand.u32 2147483647, %v6551_v25 }
 0x1f0   : > { %11618 = vst [vmem:[#allocation263_spill] sm:$0xff] %v7056_v29  ;;  %v7063_v49 = vpop.eup %3083  ;;  %vm7067_vm13 = vcmp.lt.f32.partialorder %v11621_v33, 0.0004427343  ;;  %3103 = vlog2.f32 %v6883_v63  ;;  %v11624_v29 = vld [vmem:[#allocation59_spill] sm:$0xff]  ;;  %11629 = vst [vmem:[#allocation266_spill] sm:$0xff] %v11628_v40  ;;  %v7087_v63 = vadd.f32 1.0, %v11612_v3  ;;  %v7109_v25 = vmul.f32 %v11610_v26, %v1933_v27 }
 0x1f1   : > { %11620 = vst [vmem:[#allocation265_spill] sm:$0xff] %v7063_v49  ;;  %v1959_v47 = vmul.f32 -0.5, %v11624_v29  ;;  %v7076_v24 = vpop.eup %3085  ;;  %3105 = vlog2.f32 %v6890_v10  ;;  %v11630_v33 = vld [vmem:[#allocation60_spill] sm:$0xff]  ;;  %vm7092_vm14 = vcmp.lt.f32.partialorder %v11631_v57, 0.0004427343  ;;  %v1951_v34 = vadd.f32 1.0, %v1950_v52 }
 0x1f2   : > { %11625 = vst [vmem:[#allocation59_spill] sm:$0xff] %v7076_v24  ;;  %v1968_v49 = vmul.f32 -0.5, %v11630_v33  ;;  %v3088_v16 = vpop.eup %3087  ;;  %v11632_v24 = vmov 0  ;;  %3107 = vlog2.f32 %v6911_v21  ;;  %11634 = vst [vmem:[#allocation60_spill] sm:$0xff] %v7098_v23  ;;  %vm7103_vm7 = vcmp.lt.f32.partialorder %v11635_v56, 0.0004427343 }
 0x1f3   : > { %v11633_v24 = vsel %vm7092_vm14, 4294967295, %v11632_v24  ;;  %v3090_v11 = vpop.eup %3089  ;;  %v11637_v48 = vsel %vm7103_vm7, 4294967295, %v11636_v48  ;;  %3109 = vlog2.f32 %v6920_v22  ;;  %11638 = vst [vmem:[#allocation267_spill] sm:$0xff] %v7109_v25  ;;  %v7112_v21 = vadd.f32 1.0, %v11617_v15  ;;  %v11643_v56 = vld [vmem:[#allocation61_spill] sm:$0xff] }
 0x1f4   : > { %v3092_v57 = vpop.eup %3091  ;;  %v11639_v52 = vand.u32 2147483647, %v6582_v14  ;;  %v11640_v10 = vmov 0  ;;  %3111 = vlog2.f32 %v6930_v41  ;;  %v7123_v38 = vmul.f32 %v11612_v3, %v1942_v59  ;;  %v11651_v14 = vld [vmem:[#allocation62_spill] sm:$0xff] }
 0x1f5   : > { %v1960_v22 = vadd.f32 1.0, %v1959_v47  ;;  %v1977_v27 = vmul.f32 -0.5, %v11643_v56  ;;  %v3094_v25 = vpop.eup %3093  ;;  %3113 = vlog2.f32 %v6950_v50  ;;  %v7128_v0 = vadd.f32 1.0, %v11624_v29 }
 0x1f6   : > { %vm7117_vm5 = vcmp.lt.f32.partialorder %v11639_v52, 0.0004427343  ;;  %11642 = vst [vmem:[#allocation268_spill] sm:$0xff] %v7123_v38  ;;  %v1969_v52 = vadd.f32 1.0, %v1968_v49  ;;  %v3096_v23 = vpop.eup %3095  ;;  %v11645_v41 = vmov 0  ;;  %v11648_v47 = vmov 0 }
 0x1f7   : > { %v11641_v10 = vsel %vm7117_vm5, 4294967295, %v11640_v10  ;;  %v11646_v41 = vsel %vm7133_vm3, 4294967295, %v11645_v41  ;;  %v11647_v59 = vand.u32 2147483647, %v6604_v61  ;;  %3115 = vlog2.f32 %v6958_v53  ;;  %v3098_v4 = vpop.eup %3097 }
 0x1f8   : > { %v7145_v50 = vmul.f32 %v11617_v15, %v1951_v34  ;;  %v7148_v49 = vadd.f32 1.0, %v11630_v33  ;;  %v1986_v9 = vmul.f32 -0.5, %v11651_v14  ;;  %v7151_v38 = vmul.f32 0.6931472, %v3088_v16 }
 0x1f9   : > { %vm7139_vm0 = vcmp.lt.f32.partialorder %v11647_v59, 0.0004427343  ;;  %v11653_v3 = vand.u32 2147483647, %v6615_v32  ;;  %v11654_v61 = vmov 0  ;;  %3117 = vlog2.f32 %v6969_v13  ;;  %v3100_v59 = vpop.eup %3099 }
 0x1fa   : > { %v11649_v47 = vsel %vm7139_vm0, 4294967295, %v11648_v47  ;;  %11650 = vst [vmem:[#allocation61_spill] sm:$0xff] %v7145_v50  ;;  %11652 = vst [vmem:[#allocation62_spill] sm:$0xff] %v7151_v38  ;;  %v7162_v34 = vadd.f32 1.0, %v11643_v56  ;;  %v7164_v50 = vmul.f32 0.6931472, %v3090_v11  ;;  %3119 = vlog2.f32 %v6989_v46 }
 0x1fb   : > { %vm7155_vm9 = vcmp.lt.f32.partialorder %v11653_v3, 0.0004427343  ;;  %v11658_v15 = vand.u32 2147483647, %v6626_v28  ;;  %v11659_v16 = vmov 0  ;;  %v7174_v32 = vmul.f32 %v11624_v29, %v1960_v22  ;;  %v3102_v3 = vpop.eup %3101  ;;  %v11683_v38 = vld [vmem:[#allocation175_spill] sm:$0xff] }
 0x1fc   : > { %v11655_v61 = vsel %vm7155_vm9, 4294967295, %v11654_v61  ;;  %11657 = vst [vmem:[#allocation270_spill] sm:$0xff] %v7164_v50  ;;  %v1978_v13 = vadd.f32 1.0, %v1977_v27  ;;  %v7176_v53 = vmul.f32 0.6931472, %v3092_v57  ;;  %v11664_v11 = vmov 0  ;;  %v3104_v22 = vpop.eup %3103 }
 0x1fd   : > { %11656 = vst [vmem:[#allocation269_spill] sm:$0xff] %v11655_v61  ;;  %vm7168_vm8 = vcmp.lt.f32.partialorder %v11658_v15, 0.0004427343  ;;  %11662 = vst [vmem:[#allocation272_spill] sm:$0xff] %v7174_v32  ;;  %v11663_v26 = vand.u32 2147483647, %v6637_v30  ;;  %3121 = vlog2.f32 %v6997_v8  ;;  %v7192_v46 = vmul.f32 %v11630_v33, %v1969_v52 }
 0x1fe   : > { %v11660_v16 = vsel %vm7168_vm8, 4294967295, %v11659_v16  ;;  %v11667_v28 = vand.u32 2147483647, %v6648_v20  ;;  %v11668_v15 = vmov 0  ;;  %v7195_v27 = vmul.f32 0.6931472, %v3094_v25 }
 0x1ff   : > { %11661 = vst [vmem:[#allocation271_spill] sm:$0xff] %v11660_v16  ;;  %vm7180_vm10 = vcmp.lt.f32.partialorder %v11663_v26, 0.0004427343  ;;  %11671 = vst [vmem:[#allocation275_spill] sm:$0xff] %v7192_v46  ;;  %3123 = vlog2.f32 %v7008_v42  ;;  %v7199_v30 = vadd.f32 1.0, %v11651_v14  ;;  %v1987_v20 = vadd.f32 1.0, %v1986_v9  ;;  %v3106_v26 = vpop.eup %3105 }
 0x200   : > { %v11665_v11 = vsel %vm7180_vm10, 4294967295, %v11664_v11  ;;  %vm7186_vm1 = vcmp.lt.f32.partialorder %v11667_v28, 0.0004427343  ;;  %v11672_v28 = vld [vmem:[#allocation64_spill] sm:$0xff]  ;;  %v7205_v32 = vmul.f32 0.6931472, %v3096_v23  ;;  %3125 = vlog2.f32 %v7028_v12  ;;  %v3108_v25 = vpop.eup %3107 }
 0x201   : > { %11666 = vst [vmem:[#allocation273_spill] sm:$0xff] %v11665_v11  ;;  %v11669_v15 = vsel %vm7186_vm1, 4294967295, %v11668_v15  ;;  %v11674_v52 = vand.u32 2147483647, %v6659_v1  ;;  %v11677_v8 = vand.u32 2147483647, %v6667_v51  ;;  %3127 = vlog2.f32 %v7036_v17  ;;  %v3110_v42 = vpop.eup %3109 }
 0x202   : > { %11670 = vst [vmem:[#allocation274_spill] sm:$0xff] %v11669_v15  ;;  %11673 = vst [vmem:[#allocation64_spill] sm:$0xff] %v7205_v32  ;;  %v11678_v23 = vmov 0  ;;  %v7227_v1 = vmul.f32 %v11643_v56, %v1978_v13  ;;  %v11682_v12 = vld [vmem:[#allocation63_spill] sm:$0xff]  ;;  %v7234_v9 = vmul.f32 0.6931472, %v3098_v4  ;;  %3129 = vlog2.f32 %v7047_v5 }
 0x203   : > { %vm7209_vm2 = vcmp.lt.f32.partialorder %v11674_v52, 0.0004427343  ;;  %vm7221_vm4 = vcmp.lt.f32.partialorder %v11677_v8, 0.0004427343  ;;  %v1995_v52 = vmul.f32 -0.5, %v11682_v12  ;;  %v3112_v8 = vpop.eup %3111  ;;  %v11694_v40 = vmov 0 }
 0x204   : > { %v11679_v23 = vsel %vm7221_vm4, 4294967295, %v11678_v23  ;;  %11681 = vst [vmem:[#allocation277_spill] sm:$0xff] %v7227_v1  ;;  %v7236_v51 = vmul.f32 0.6931472, %v3100_v59  ;;  %v7243_v13 = vmul.f32 0.6931472, %v3102_v3  ;;  %3131 = vlog2.f32 %v7073_v31 }
 0x205   : > { %11680 = vst [vmem:[#allocation276_spill] sm:$0xff] %v11679_v23  ;;  %v11686_v50 = vand.u32 2147483647, %v6672_v43  ;;  %v11689_v4 = vand.u32 2147483647, %v6677_v6  ;;  %v11690_v59 = vmov 0  ;;  %v7265_v43 = vmul.f32 %v11651_v14, %v1987_v20 }
 0x206   : > { %11684 = vst [vmem:[#allocation63_spill] sm:$0xff] %v7236_v51  ;;  %11685 = vst [vmem:[#allocation175_spill] sm:$0xff] %v7243_v13  ;;  %v11693_v5 = vand.u32 2147483647, %v6682_v45  ;;  %v7271_v3 = vmul.f32 0.6931472, %v3104_v22  ;;  %3133 = vlog2.f32 %v7087_v63 }
 0x207   : > { %vm7247_vm15 = vcmp.lt.f32.partialorder %v11686_v50, 0.0004427343  ;;  %vm7253_vm12 = vcmp.lt.f32.partialorder %v11689_v4, 0.0004427343  ;;  %11697 = vst [vmem:[#allocation280_spill] sm:$0xff] %v7265_v43  ;;  %v3114_v50 = vpop.eup %3113  ;;  %v11700_v45 = vmov 0  ;;  %3135 = vlog2.f32 %v7112_v21 }
 0x208   : > { %v11688_v39 = vsel %vm7247_vm15, 4294967295, %v11687_v39  ;;  %v11691_v59 = vsel %vm7253_vm12, 4294967295, %v11690_v59  ;;  %vm7259_vm11 = vcmp.lt.f32.partialorder %v11693_v5, 0.0004427343  ;;  %11698 = vst [vmem:[#allocation281_spill] sm:$0xff] %v7271_v3  ;;  %v1992_v31 = vadd.f32 1.0, %v11682_v12  ;;  %v3116_v20 = vpop.eup %3115 }
 0x209   : > { %11692 = vst [vmem:[#allocation278_spill] sm:$0xff] %v11691_v59  ;;  %v11695_v40 = vsel %vm7259_vm11, 4294967295, %v11694_v40  ;;  %v11699_v4 = vand.u32 2147483647, %v6687_v44  ;;  %v7281_v5 = vmul.f32 0.6931472, %v3106_v26  ;;  %v3118_v22 = vpop.eup %3117  ;;  %3137 = vlog2.f32 %v7128_v0 }
 0x20a   : > { %11696 = vst [vmem:[#allocation279_spill] sm:$0xff] %v11695_v40  ;;  %v7283_v17 = vmul.f32 0.6931472, %v3108_v25  ;;  %v1996_v6 = vadd.f32 1.0, %v1995_v52  ;;  %v11706_v32 = vand.u32 2147483647, %v6698_v55  ;;  %v3120_v44 = vpop.eup %3119  ;;  %3139 = vlog2.f32 %v7148_v49 }
 0x20b   : > { %vm7275_vm7 = vcmp.lt.f32.partialorder %v11699_v4, 0.0004427343  ;;  %11703 = vst [vmem:[#allocation283_spill] sm:$0xff] %v7281_v5  ;;  %v11705_v4 = vld [vmem:[#allocation196_spill] sm:$0xff]  ;;  %v11707_v26 = vmov 0  ;;  %v11711_v25 = vmov 0  ;;  %v3122_v51 = vpop.eup %3121  ;;  %3141 = vlog2.f32 %v7162_v34 }
 0x20c   : > { %v11701_v45 = vsel %vm7275_vm7, 4294967295, %v11700_v45  ;;  %11704 = vst [vmem:[#allocation284_spill] sm:$0xff] %v7283_v17  ;;  %vm7296_vm5 = vcmp.lt.f32.partialorder %v11706_v32, 0.0004427343  ;;  %v11710_v21 = vand.u32 2147483647, %v6709_v18  ;;  %v7351_v34 = vmul.f32 %v11682_v12, %v1996_v6 }
 0x20d   : > { %11702 = vst [vmem:[#allocation282_spill] sm:$0xff] %v11701_v45  ;;  %v11708_v26 = vsel %vm7296_vm5, 4294967295, %v11707_v26  ;;  %v7312_v32 = vmul.f32 0.6931472, %v3110_v42  ;;  %v11715_v63 = vand.u32 2147483647, %v6720_v37  ;;  %3143 = vlog2.f32 %v7199_v30 }
 0x20e   : > { %11709 = vst [vmem:[#allocation196_spill] sm:$0xff] %v11708_v26  ;;  %vm7302_vm14 = vcmp.lt.f32.partialorder %v11710_v21, 0.0004427343  ;;  %v11716_v18 = vmov 0  ;;  %v11719_v21 = vld [vmem:[#allocation65_spill] sm:$0xff]  ;;  %v11722_v37 = vmov 0  ;;  %3145 = vlog2.f32 %v1992_v31 }
 0x20f   : > { %v11712_v25 = vsel %vm7302_vm14, 4294967295, %v11711_v25  ;;  %11714 = vst [vmem:[#allocation286_spill] sm:$0xff] %v7312_v32  ;;  %vm7316_vm0 = vcmp.lt.f32.partialorder %v11715_v63, 0.0004427343  ;;  %v2004_v0 = vmul.f32 -0.5, %v11719_v21  ;;  %v2001_v49 = vadd.f32 1.0, %v11719_v21  ;;  %v3124_v63 = vpop.eup %3123 }
 0x210   : > { %11713 = vst [vmem:[#allocation285_spill] sm:$0xff] %v11712_v25  ;;  %v11717_v18 = vsel %vm7316_vm0, 4294967295, %v11716_v18  ;;  %v7326_v61 = vmul.f32 0.6931472, %v3112_v8  ;;  %v11721_v42 = vand.u32 2147483647, %v6731_v2  ;;  %v3126_v35 = vpop.eup %3125 }
 0x211   : > { %11718 = vst [vmem:[#allocation287_spill] sm:$0xff] %v11717_v18  ;;  %v11726_v2 = vand.u32 2147483647, %v6742_v58  ;;  %11730 = vst [vmem:[#allocation290_spill] sm:$0xff] %v7351_v34  ;;  %v11731_v52 = vld [vmem:[#allocation168_spill] sm:$0xff]  ;;  %v11737_v58 = vmov 0  ;;  %3147 = vlog2.f32 %v2001_v49 }
 0x212   : > { %11720 = vst [vmem:[#allocation65_spill] sm:$0xff] %v7326_v61  ;;  %vm7330_vm9 = vcmp.lt.f32.partialorder %v11721_v42, 0.0004427343  ;;  %v11727_v42 = vmov 0  ;;  %v2010_v3 = vadd.f32 1.0, %v11731_v52  ;;  %v11735_v15 = vld [vmem:[#allocation160_spill] sm:$0xff] }
 0x213   : > { %v11723_v37 = vsel %vm7330_vm9, 4294967295, %v11722_v37  ;;  %vm7346_vm8 = vcmp.lt.f32.partialorder %v11726_v2, 0.0004427343  ;;  %v7354_v16 = vmul.f32 0.6931472, %v3114_v50  ;;  %v3128_v2 = vpop.eup %3127  ;;  %v11748_v11 = vld [vmem:[#allocation58_spill] sm:$0xff] }
 0x214   : > { %11724 = vst [vmem:[#allocation288_spill] sm:$0xff] %v11723_v37  ;;  %v11728_v42 = vsel %vm7346_vm8, 4294967295, %v11727_v42  ;;  %v7356_v13 = vmul.f32 0.6931472, %v3116_v20  ;;  %v7358_v5 = vmul.f32 0.6931472, %v3118_v22  ;;  %3149 = vlog2.f32 %v2010_v3 }
 0x215   : > { %11729 = vst [vmem:[#allocation289_spill] sm:$0xff] %v11728_v42  ;;  %11732 = vst [vmem:[#allocation168_spill] sm:$0xff] %v7354_v16  ;;  %v11736_v8 = vand.u32 2147483647, %v11735_v15  ;;  %v7371_v50 = vmul.f32 0.6931472, %v3120_v44 }
 0x216   : > { %11733 = vst [vmem:[#allocation291_spill] sm:$0xff] %v7356_v13  ;;  %11734 = vst [vmem:[#allocation292_spill] sm:$0xff] %v7358_v5  ;;  %v11742_v20 = vld [vmem:[#allocation161_spill] sm:$0xff]  ;;  %v11744_v22 = vmov 0  ;;  %v2005_v15 = vadd.f32 1.0, %v2004_v0  ;;  %v11750_v17 = vmov 0 }
 0x217   : > { %vm7362_vm1 = vcmp.lt.f32.partialorder %v11736_v8, 0.0004427343  ;;  %11741 = vst [vmem:[#allocation293_spill] sm:$0xff] %v7371_v50  ;;  %v11743_v62 = vand.u32 2147483647, %v11742_v20  ;;  %v3130_v8 = vpop.eup %3129  ;;  %v2013_v44 = vmul.f32 -0.5, %v11731_v52 }
 0x218   : > { %v11738_v58 = vsel %vm7362_vm1, 4294967295, %v11737_v58  ;;  %v11749_v60 = vand.u32 2147483647, %v11748_v11  ;;  %v3132_v20 = vpop.eup %3131  ;;  %v7391_v31 = vmul.f32 0.6931472, %v3122_v51  ;;  %v11755_v32 = vld [vmem:[#allocation180_spill] sm:$0xff] }
 0x219   : > { %11739 = vst [vmem:[#allocation160_spill] sm:$0xff] %v11738_v58  ;;  %vm7375_vm10 = vcmp.lt.f32.partialorder %v11743_v62, 0.0004427343  ;;  %v2007_v62 = vand.u32 2147483647, %v11719_v21  ;;  %v2019_v23 = vadd.f32 1.0, %v11755_v32  ;;  %v3134_v30 = vpop.eup %3133 }
 0x21a   : > { %v11745_v22 = vsel %vm7375_vm10, 4294967295, %v11744_v22  ;;  %vm7385_vm3 = vcmp.lt.f32.partialorder %v11749_v60, 0.0004427343  ;;  %11753 = vst [vmem:[#allocation294_spill] sm:$0xff] %v7391_v31  ;;  %v7393_v0 = vmul.f32 0.6931472, %v3124_v63 }
 0x21b   : > { %11746 = vst [vmem:[#allocation161_spill] sm:$0xff] %v11745_v22  ;;  %v11751_v17 = vsel %vm7385_vm3, 4294967295, %v11750_v17  ;;  %v7408_v63 = vmul.f32 0.6931472, %v3126_v35  ;;  %v11760_v3 = vand.u32 2147483647, %v11624_v29  ;;  %v3136_v35 = vpop.eup %3135  ;;  %3151 = vlog2.f32 %v2019_v23 }
 0x21c   : > { %11752 = vst [vmem:[#allocation58_spill] sm:$0xff] %v11751_v17  ;;  %11754 = vst [vmem:[#allocation295_spill] sm:$0xff] %v7393_v0  ;;  %v11761_v6 = vmov 0  ;;  %v11764_v60 = vand.u32 2147483647, %v11630_v33  ;;  %v11765_v16 = vmov 0  ;;  %v7435_v33 = vmul.f32 %v11719_v21, %v2005_v15  ;;  %v3138_v55 = vpop.eup %3137 }
 0x21d   : > { %11759 = vst [vmem:[#allocation180_spill] sm:$0xff] %v7408_v63  ;;  %vm7412_vm4 = vcmp.lt.f32.partialorder %v11760_v3, 0.0004427343  ;;  %v11768_v61 = vand.u32 2147483647, %v11643_v56  ;;  %v11769_v13 = vmov 0  ;;  %v3140_v59 = vpop.eup %3139 }
 0x21e   : > { %v11762_v6 = vsel %vm7412_vm4, 4294967295, %v11761_v6  ;;  %vm7418_vm15 = vcmp.lt.f32.partialorder %v11764_v60, 0.0004427343  ;;  %v7432_v3 = vmul.f32 0.6931472, %v3128_v2  ;;  %11774 = vst [vmem:[#allocation300_spill] sm:$0xff] %v7435_v33  ;;  %v3142_v2 = vpop.eup %3141 }
 0x21f   : > { %11763 = vst [vmem:[#allocation296_spill] sm:$0xff] %v11762_v6  ;;  %v11766_v16 = vsel %vm7418_vm15, 4294967295, %v11765_v16  ;;  %vm7424_vm12 = vcmp.lt.f32.partialorder %v11768_v61, 0.0004427343  ;;  %v11775_v60 = vld [vmem:[#allocation184_spill] sm:$0xff]  ;;  %v2014_v56 = vadd.f32 1.0, %v2013_v44 }
 0x220   : > { %11767 = vst [vmem:[#allocation297_spill] sm:$0xff] %v11766_v16  ;;  %v11770_v13 = vsel %vm7424_vm12, 4294967295, %v11769_v13  ;;  %11773 = vst [vmem:[#allocation299_spill] sm:$0xff] %v7432_v3  ;;  %v2028_v5 = vadd.f32 1.0, %v11775_v60  ;;  %v7438_v40 = vmul.f32 0.6931472, %v3130_v8 }
 0x221   : > { %11771 = vst [vmem:[#allocation298_spill] sm:$0xff] %v11770_v13  ;;  %v2016_v61 = vand.u32 2147483647, %v11731_v52  ;;  %v2022_v49 = vmul.f32 -0.5, %v11755_v32  ;;  %v7450_v15 = vmul.f32 0.6931472, %v3132_v20  ;;  %v7488_v63 = vmul.f32 %v11731_v52, %v2014_v56 }
 0x222   : > { %11776 = vst [vmem:[#allocation184_spill] sm:$0xff] %v7438_v40  ;;  %v11780_v8 = vand.u32 2147483647, %v11651_v14  ;;  %v11781_v44 = vmov 0  ;;  %v11784_v50 = vand.u32 2147483647, %v11682_v12  ;;  %3153 = vlog2.f32 %v2028_v5 }
 0x223   : > { %11779 = vst [vmem:[#allocation301_spill] sm:$0xff] %v7450_v15  ;;  %v11785_v51 = vmov 0  ;;  %v7468_v21 = vmul.f32 0.6931472, %v3134_v30  ;;  %vm7470_vm14 = vcmp.lt.f32.partialorder %v2007_v62, 0.0004427343  ;;  %v3144_v30 = vpop.eup %3143 }
 0x224   : > { %vm7454_vm7 = vcmp.lt.f32.partialorder %v11780_v8, 0.0004427343  ;;  %vm7460_vm11 = vcmp.lt.f32.partialorder %v11784_v50, 0.0004427343  ;;  %v11790_v14 = vmov 0  ;;  %v2031_v8 = vmul.f32 -0.5, %v11775_v60  ;;  %v3146_v23 = vpop.eup %3145 }
 0x225   : > { %v11782_v44 = vsel %vm7454_vm7, 4294967295, %v11781_v44  ;;  %v11786_v51 = vsel %vm7460_vm11, 4294967295, %v11785_v51  ;;  %11789 = vst [vmem:[#allocation304_spill] sm:$0xff] %v7468_v21  ;;  %v11791_v14 = vsel %vm7470_vm14, 4294967295, %v11790_v14  ;;  %v11793_v12 = vld [vmem:[#allocation188_spill] sm:$0xff]  ;;  %11797 = vst [vmem:[#allocation306_spill] sm:$0xff] %v7488_v63  ;;  %v3148_v20 = vpop.eup %3147 }
 0x226   : > { %11783 = vst [vmem:[#allocation302_spill] sm:$0xff] %v11782_v44  ;;  %11787 = vst [vmem:[#allocation303_spill] sm:$0xff] %v11786_v51  ;;  %v2037_v50 = vadd.f32 1.0, %v11793_v12  ;;  %v7480_v29 = vmul.f32 0.6931472, %v3136_v35  ;;  %v11798_v31 = vmov 0  ;;  %v3150_v62 = vpop.eup %3149 }
 0x227   : > { %11792 = vst [vmem:[#allocation305_spill] sm:$0xff] %v11791_v14  ;;  %v2025_v18 = vand.u32 2147483647, %v11755_v32  ;;  %vm7490_vm0 = vcmp.lt.f32.partialorder %v2016_v61, 0.0004427343  ;;  %v2023_v37 = vadd.f32 1.0, %v2022_v49 }
 0x228   : > { %11795 = vst [vmem:[#allocation188_spill] sm:$0xff] %v7480_v29  ;;  %v11799_v31 = vsel %vm7490_vm0, 4294967295, %v11798_v31  ;;  %v7498_v3 = vmul.f32 0.6931472, %v3138_v55  ;;  %v7500_v0 = vmul.f32 0.6931472, %v3140_v59  ;;  %3155 = vlog2.f32 %v2037_v50 }
 0x229   : > { %11800 = vst [vmem:[#allocation307_spill] sm:$0xff] %v11799_v31  ;;  %v7502_v42 = vmul.f32 0.6931472, %v3142_v2  ;;  %v2032_v61 = vadd.f32 1.0, %v2031_v8  ;;  %v11806_v49 = vld [vmem:[#allocation192_spill] sm:$0xff]  ;;  %v11808_v59 = vmov 0  ;;  %v7524_v50 = vmul.f32 %v11755_v32, %v2023_v37 }
 0x22a   : > { %11802 = vst [vmem:[#allocation308_spill] sm:$0xff] %v7498_v3  ;;  %11803 = vst [vmem:[#allocation309_spill] sm:$0xff] %v7500_v0  ;;  %v2046_v40 = vadd.f32 1.0, %v11806_v49  ;;  %vm7513_vm1 = vcmp.lt.f32.partialorder %v2025_v18, 0.0004427343  ;;  %v2040_v2 = vmul.f32 -0.5, %v11793_v12  ;;  %v3152_v3 = vpop.eup %3151 }
 0x22b   : > { %11804 = vst [vmem:[#allocation310_spill] sm:$0xff] %v7502_v42  ;;  %v11809_v59 = vsel %vm7513_vm1, 4294967295, %v11808_v59  ;;  %v11811_v5 = vld [vmem:[#allocation194_spill] sm:$0xff]  ;;  %v7519_v22 = vmul.f32 0.6931472, %v3144_v30  ;;  %11814 = vst [vmem:[#allocation312_spill] sm:$0xff] %v7524_v50  ;;  %v7544_v37 = vmul.f32 %v11775_v60, %v2032_v61  ;;  %vm11870_vm1 = vnez %v11633_v24 }
 0x22c   : > { %11810 = vst [vmem:[#allocation192_spill] sm:$0xff] %v11809_v59  ;;  %v2055_v15 = vadd.f32 1.0, %v11811_v5  ;;  %v7521_v8 = vmul.f32 0.6931472, %v3146_v23  ;;  %v2034_v56 = vand.u32 2147483647, %v11775_v60  ;;  %3157 = vlog2.f32 %v2046_v40  ;;  %v3154_v61 = vpop.eup %3153 }
 0x22d   : > { %11812 = vst [vmem:[#allocation194_spill] sm:$0xff] %v7519_v22  ;;  %v7539_v30 = vmul.f32 0.6931472, %v3148_v20  ;;  %v7541_v32 = vmul.f32 0.6931472, %v3150_v62  ;;  %11818 = vst [vmem:[#allocation315_spill] sm:$0xff] %v7544_v37 }
 0x22e   : > { %11813 = vst [vmem:[#allocation311_spill] sm:$0xff] %v7521_v8  ;;  %v11819_v6 = vld [vmem:[#allocation70_spill] sm:$0xff]  ;;  %v2041_v17 = vadd.f32 1.0, %v2040_v2  ;;  %v2043_v16 = vand.u32 2147483647, %v11793_v12  ;;  %v2049_v55 = vmul.f32 -0.5, %v11806_v49  ;;  %3159 = vlog2.f32 %v2055_v15 }
 0x22f   : > { %11816 = vst [vmem:[#allocation313_spill] sm:$0xff] %v7539_v30  ;;  %11817 = vst [vmem:[#allocation314_spill] sm:$0xff] %v7541_v32  ;;  %v2064_v18 = vadd.f32 1.0, %v11819_v6  ;;  %vm7557_vm12 = vcmp.lt.f32.partialorder %v2034_v56, 0.0004427343  ;;  %v11820_v40 = vmov 0 }
 0x230   : > { %v11821_v40 = vsel %vm7557_vm12, 4294967295, %v11820_v40  ;;  %v2058_v62 = vmul.f32 -0.5, %v11811_v5  ;;  %v2052_v2 = vand.u32 2147483647, %v11806_v49  ;;  %v2067_v20 = vmul.f32 -0.5, %v11819_v6  ;;  %v11823_v23 = vld [vmem:[#allocation195_spill] sm:$0xff] }
 0x231   : > { %11822 = vst [vmem:[#allocation70_spill] sm:$0xff] %v11821_v40  ;;  %v2073_v22 = vadd.f32 1.0, %v11823_v23  ;;  %v11824_v51 = vld [vmem:[#allocation45_spill] sm:$0xff]  ;;  %v11826_v56 = vld [vmem:[#allocation78_spill] sm:$0xff]  ;;  %v7573_v8 = vmul.f32 0.6931472, %v3152_v3  ;;  %3161 = vlog2.f32 %v2064_v18  ;;  %v7582_v30 = vmul.f32 %v11793_v12, %v2041_v17 }
 0x232   : > { %v11825_v60 = vld [vmem:[#allocation77_spill] sm:$0xff]  ;;  %v2061_v34 = vand.u32 2147483647, %v11811_v5  ;;  %v2076_v14 = vmul.f32 -0.5, %v11823_v23  ;;  %vm7584_vm14 = vcmp.lt.f32.partialorder %v2043_v16, 0.0004427343  ;;  %v3156_v3 = vpop.eup %3155  ;;  %vm11883_vm15 = vcmp.lt.s32.totalorder %v11826_v56, %v11824_v51 }
 0x233   : > { %11827 = vst [vmem:[#allocation195_spill] sm:$0xff] %v7573_v8  ;;  %11828 = vst [vmem:[#allocation45_spill] sm:$0xff] %v7582_v30  ;;  %v11829_v33 = vmov 0  ;;  %v2050_v43 = vadd.f32 1.0, %v2049_v55  ;;  %v11832_v44 = vld [vmem:[#allocation79_spill] sm:$0xff]  ;;  %v2059_v42 = vadd.f32 1.0, %v2058_v62  ;;  %3163 = vlog2.f32 %v2073_v22 }
 0x234   : > { %v11830_v33 = vsel %vm7584_vm14, 4294967295, %v11829_v33  ;;  %v7590_v18 = vmul.f32 0.6931472, %v3154_v61  ;;  %v2070_v1 = vand.u32 2147483647, %v11819_v6  ;;  %v11834_v13 = vld [vmem:[#allocation197_spill] sm:$0xff] }
 0x235   : > { %11831 = vst [vmem:[#allocation77_spill] sm:$0xff] %v11830_v33  ;;  %v2085_v31 = vmul.f32 -0.5, %v11834_v13  ;;  %vm7594_vm11 = vcmp.lt.f32.partialorder %v2052_v2, 0.0004427343  ;;  %v11835_v15 = vmov 0  ;;  %v2068_v16 = vadd.f32 1.0, %v2067_v20 }
 0x236   : > { %11833 = vst [vmem:[#allocation78_spill] sm:$0xff] %v7590_v18  ;;  %v11836_v15 = vsel %vm7594_vm11, 4294967295, %v11835_v15  ;;  %v2082_v17 = vadd.f32 1.0, %v11834_v13  ;;  %v11838_v12 = vld [vmem:[#allocation80_spill] sm:$0xff]  ;;  %vm7605_vm7 = vcmp.lt.f32.partialorder %v2061_v34, 0.0004427343  ;;  %v7613_v22 = vmul.f32 %v11806_v49, %v2050_v43  ;;  %v3158_v46 = vpop.eup %3157 }
 0x237   : > { %11837 = vst [vmem:[#allocation79_spill] sm:$0xff] %v11836_v15  ;;  %v11839_v62 = vmov 0  ;;  %v2077_v61 = vadd.f32 1.0, %v2076_v14  ;;  %v11842_v2 = vld [vmem:[#allocation153_spill] sm:$0xff]  ;;  %v7610_v63 = vmul.f32 0.6931472, %v3156_v3  ;;  %v7626_v43 = vmul.f32 %v11811_v5, %v2059_v42 }
 0x238   : > { %v11840_v62 = vsel %vm7605_vm7, 4294967295, %v11839_v62  ;;  %v2094_v32 = vmul.f32 -0.5, %v11842_v2  ;;  %11844 = vst [vmem:[#allocation153_spill] sm:$0xff] %v7613_v22  ;;  %v2079_v20 = vand.u32 2147483647, %v11823_v23  ;;  %v2091_v0 = vadd.f32 1.0, %v11842_v2  ;;  %v3160_v50 = vpop.eup %3159 }
 0x239   : > { %11841 = vst [vmem:[#allocation197_spill] sm:$0xff] %v11840_v62  ;;  %11843 = vst [vmem:[#allocation80_spill] sm:$0xff] %v7610_v63  ;;  %v11845_v59 = vld [vmem:[#allocation81_spill] sm:$0xff]  ;;  %v11846_v34 = vld [vmem:[#allocation110_spill] sm:$0xff]  ;;  %vm7628_vm4 = vcmp.lt.f32.partialorder %v2070_v1, 0.0004427343  ;;  %v7636_v58 = vmul.f32 %v11819_v6, %v2068_v16  ;;  %3165 = vlog2.f32 %v2082_v17  ;;  %v7655_v7 = vmul.f32 %v11823_v23, %v2077_v61 }
 0x23a   : > { %11847 = vst [vmem:[#allocation81_spill] sm:$0xff] %v7626_v43  ;;  %v11848_v49 = vmov 0  ;;  %v2086_v3 = vadd.f32 1.0, %v2085_v31  ;;  %v11851_v55 = vld [vmem:[#allocation199_spill] sm:$0xff]  ;;  %v11854_v42 = vld [vmem:[#allocation62_spill] sm:$0xff]  ;;  %v11863_v6 = vld [vmem:[#allocation112_spill] sm:$0xff]  ;;  %3167 = vlog2.f32 %v2091_v0  ;;  %v11871_v23 = vsel %vm11870_vm1, %v11683_v38, %v7176_v53 }
 0x23b   : > { %v11849_v49 = vsel %vm7628_vm4, 4294967295, %v11848_v49  ;;  %v2100_v8 = vadd.f32 1.0, %v11851_v55  ;;  %v11852_v29 = vld [vmem:[#allocation111_spill] sm:$0xff]  ;;  %11853 = vst [vmem:[#allocation199_spill] sm:$0xff] %v7636_v58  ;;  %v11855_v1 = vsel %vm7067_vm13, %v11672_v28, %v11854_v42  ;;  %v11856_v5 = vld [vmem:[#allocation66_spill] sm:$0xff]  ;;  %v2095_v16 = vadd.f32 1.0, %v2094_v32  ;;  %v3162_v42 = vpop.eup %3161 }
 0x23c   : > { %11850 = vst [vmem:[#allocation110_spill] sm:$0xff] %v11849_v49  ;;  %v2307_v14 = vsub.f32 %v11856_v5, %v11855_v1  ;;  %v11858_v31 = vld [vmem:[#allocation163_spill] sm:$0xff]  ;;  %v11859_v37 = vld [vmem:[#allocation270_spill] sm:$0xff]  ;;  %11864 = vst [vmem:[#allocation111_spill] sm:$0xff] %v7655_v7  ;;  %v2088_v28 = vand.u32 2147483647, %v11834_v13  ;;  %vm11879_vm13 = vnez %v11637_v48  ;;  %vm11918_vm7 = vnez %v11649_v47 }
 0x23d   : > { %v11860_v40 = vsel %vm7080_vm6, %v11858_v31, %v11859_v37  ;;  %v11861_v21 = vld [vmem:[#allocation67_spill] sm:$0xff]  ;;  %v11862_v35 = vld [vmem:[#allocation82_spill] sm:$0xff]  ;;  %v2103_v18 = vmul.f32 -0.5, %v11851_v55  ;;  %v11865_v17 = vld [vmem:[#allocation113_spill] sm:$0xff]  ;;  %v7665_v37 = vmul.f32 0.6931472, %v3158_v46  ;;  %3169 = vlog2.f32 %v2100_v8 }
 0x23e   : > { %v2308_v52 = vsub.f32 %v11861_v21, %v11860_v40  ;;  %vm7667_vm0 = vcmp.lt.f32.partialorder %v2079_v20, 0.0004427343  ;;  %v11867_v40 = vmov 0  ;;  %v11872_v32 = vld [vmem:[#allocation164_spill] sm:$0xff]  ;;  %v11873_v1 = vld [vmem:[#allocation83_spill] sm:$0xff]  ;;  %v11874_v5 = vld [vmem:[#allocation114_spill] sm:$0xff]  ;;  %v7684_v20 = vmul.f32 %v11834_v13, %v2086_v3 }
 0x23f   : > { %11866 = vst [vmem:[#allocation62_spill] sm:$0xff] %v7665_v37  ;;  %v11868_v40 = vsel %vm7667_vm0, 4294967295, %v11867_v40  ;;  %v2309_v61 = vsub.f32 %v11872_v32, %v11871_v23  ;;  %v7681_v46 = vmul.f32 0.6931472, %v3160_v50  ;;  %v2097_v24 = vand.u32 2147483647, %v11842_v2 }
 0x240   : > { %11869 = vst [vmem:[#allocation66_spill] sm:$0xff] %v11868_v40  ;;  %11876 = vst [vmem:[#allocation163_spill] sm:$0xff] %v7684_v20  ;;  %v11877_v0 = vld [vmem:[#allocation115_spill] sm:$0xff]  ;;  %v11878_v38 = vld [vmem:[#allocation201_spill] sm:$0xff]  ;;  %v11880_v31 = vsel %vm11879_vm13, %v6848_v54, %v7195_v27  ;;  %vm11882_vm6 = vcmp.lt.s32.totalorder %v11825_v60, %v11824_v51  ;;  %v2372_v8 = vsel %vm11883_vm15, %v2308_v52, 0.0  ;;  %v7708_v54 = vmul.f32 %v11842_v2, %v2095_v16 }
 0x241   : > { %11875 = vst [vmem:[#allocation266_spill] sm:$0xff] %v7681_v46  ;;  %v2112_v53 = vmul.f32 -0.5, %v11878_v38  ;;  %v11881_v23 = vld [vmem:[#allocation165_spill] sm:$0xff]  ;;  %v2371_v13 = vsel %vm11882_vm6, %v2307_v14, 0.0  ;;  %v11884_v3 = vld [vmem:[#allocation84_spill] sm:$0xff]  ;;  %v11885_v32 = vld [vmem:[#allocation143_spill] sm:$0xff]  ;;  %vm11891_vm6 = vnez %v11641_v10  ;;  %vm11895_vm15 = vcmp.lt.s32.totalorder %v11832_v44, %v11824_v51 }
 0x242   : > { %v2310_v50 = vsub.f32 %v11881_v23, %v11880_v31  ;;  %11886 = vst [vmem:[#allocation270_spill] sm:$0xff] %v7708_v54  ;;  %v2104_v48 = vadd.f32 1.0, %v2103_v18  ;;  %v2106_v27 = vand.u32 2147483647, %v11851_v55  ;;  %v2109_v14 = vadd.f32 1.0, %v11878_v38  ;;  %v3164_v31 = vpop.eup %3163  ;;  %v11892_v2 = vld [vmem:[#allocation64_spill] sm:$0xff] }
 0x243   : > { %v7717_v23 = vmul.f32 0.6931472, %v3162_v42  ;;  %vm7719_vm13 = vcmp.lt.f32.partialorder %v2088_v28, 0.0004427343  ;;  %v11888_v21 = vmov 0  ;;  %v11893_v16 = vsel %vm11891_vm6, %v6855_v19, %v11892_v2  ;;  %v11894_v18 = vld [vmem:[#allocation166_spill] sm:$0xff] }
 0x244   : > { %v11889_v21 = vsel %vm7719_vm13, 4294967295, %v11888_v21  ;;  %v2311_v63 = vsub.f32 %v11894_v18, %v11893_v16  ;;  %v2373_v30 = vsel %vm11895_vm15, %v2309_v61, 0.0  ;;  %v11896_v15 = vld [vmem:[#allocation85_spill] sm:$0xff]  ;;  %v11897_v42 = vld [vmem:[#allocation116_spill] sm:$0xff]  ;;  %v11898_v28 = vld [vmem:[#allocation202_spill] sm:$0xff]  ;;  %v2435_v16 = vadd.f32 %v2372_v8, %v2371_v13  ;;  %v3166_v13 = vpop.eup %3165 }
 0x245   : > { %11887 = vst [vmem:[#allocation67_spill] sm:$0xff] %v7717_v23  ;;  %11890 = vst [vmem:[#allocation112_spill] sm:$0xff] %v11889_v21  ;;  %v2121_v2 = vmul.f32 -0.5, %v11898_v28  ;;  %v2113_v61 = vadd.f32 1.0, %v2112_v53  ;;  %v2118_v18 = vadd.f32 1.0, %v11898_v28  ;;  %vm11899_vm15 = vnez %v11646_v41  ;;  %v11901_v37 = vld [vmem:[#allocation167_spill] sm:$0xff] }
 0x246   : > { %v11900_v52 = vsel %vm11899_vm15, %v6869_v36, %v7234_v9  ;;  %vm11902_vm6 = vcmp.lt.s32.totalorder %v11838_v12, %v11824_v51  ;;  %v11903_v19 = vld [vmem:[#allocation86_spill] sm:$0xff]  ;;  %v11904_v10 = vld [vmem:[#allocation117_spill] sm:$0xff]  ;;  %v7757_v53 = vmul.f32 0.6931472, %v3164_v31  ;;  %vm7759_vm14 = vcmp.lt.f32.partialorder %v2097_v24, 0.0004427343 }
 0x247   : > { %v2312_v22 = vsub.f32 %v11901_v37, %v11900_v52  ;;  %v2374_v62 = vsel %vm11902_vm6, %v2310_v50, 0.0  ;;  %v11906_v41 = vmov 0  ;;  %3171 = vlog2.f32 %v2109_v14  ;;  %v11909_v36 = vld [vmem:[#allocation204_spill] sm:$0xff]  ;;  %v11919_v14 = vld [vmem:[#allocation63_spill] sm:$0xff]  ;;  %v11921_v52 = vld [vmem:[#allocation169_spill] sm:$0xff] }
 0x248   : > { %11905 = vst [vmem:[#allocation113_spill] sm:$0xff] %v7757_v53  ;;  %v11907_v41 = vsel %vm7759_vm14, 4294967295, %v11906_v41  ;;  %v2127_v9 = vadd.f32 1.0, %v11909_v36  ;;  %v2436_v37 = vadd.f32 %v2435_v16, %v2373_v30  ;;  %vm11910_vm15 = vcmp.eq.s32.totalorder %v11846_v34, 10  ;;  %v11923_v24 = vld [vmem:[#allocation87_spill] sm:$0xff]  ;;  %v11941_v33 = vld [vmem:[#allocation88_spill] sm:$0xff] }
 0x249   : > { %11908 = vst [vmem:[#allocation164_spill] sm:$0xff] %v11907_v41  ;;  %vm11911_vm6 = vcmp.eq.s32.totalorder %v11846_v34, 0  ;;  %v7778_v8 = vmul.f32 %v11851_v55, %v2104_v48  ;;  %vm7780_vm3 = vcmp.lt.f32.partialorder %v2106_v27, 0.0004427343  ;;  %v11915_v30 = vmov 0  ;;  %v11924_v55 = vld [vmem:[#allocation144_spill] sm:$0xff] }
 0x24a   : > { %vm7768_vm1 = vmor %vm11911_vm6, %vm11910_vm15  ;;  %v11916_v30 = vsel %vm7780_vm3, 4294967295, %v11915_v30  ;;  %v11920_v31 = vsel %vm11918_vm7, %v11705_v4, %v11919_v14  ;;  %vm11922_vm15 = vcmp.lt.s32.totalorder %v11845_v59, %v11824_v51  ;;  %vm11925_vm11 = vcmp.eq.s32.totalorder %v11852_v29, 10  ;;  %v3168_v14 = vpop.eup %3167  ;;  %v11936_v48 = vld [vmem:[#allocation76_spill] sm:$0xff]  ;;  %v11937_v23 = vld [vmem:[#allocation175_spill] sm:$0xff] }
 0x24b   : > { %11914 = vst [vmem:[#allocation114_spill] sm:$0xff] %v7778_v8  ;;  %11917 = vst [vmem:[#allocation115_spill] sm:$0xff] %v11916_v30  ;;  %v2313_v16 = vsub.f32 %v11921_v52, %v11920_v31  ;;  %v2375_v46 = vsel %vm11922_vm15, %v2311_v63, 0.0  ;;  %vm11926_vm10 = vcmp.eq.s32.totalorder %v11852_v29, 0  ;;  %v2122_v4 = vadd.f32 1.0, %v2121_v2  ;;  %v11934_v2 = vld [vmem:[#allocation269_spill] sm:$0xff]  ;;  %v3170_v43 = vpop.eup %3169 }
 0x24c   : > { %vm7801_vm8 = vmor %vm11926_vm10, %vm11925_vm11  ;;  %v2130_v63 = vmul.f32 -0.5, %v11909_v36  ;;  %v2437_v27 = vadd.f32 %v2436_v37, %v2374_v62  ;;  %vm11929_vm7 = vcmp.eq.s32.totalorder %v11863_v6, 10  ;;  %vm11930_vm15 = vcmp.eq.s32.totalorder %v11863_v6, 0  ;;  %v11939_v37 = vld [vmem:[#allocation170_spill] sm:$0xff]  ;;  %v11953_v40 = vld [vmem:[#allocation271_spill] sm:$0xff] }
 0x24d   : > { %vm7811_vm6 = vmor %vm11930_vm15, %vm11929_vm7  ;;  %v7817_v52 = vmul.f32 %v11878_v38, %v2113_v61  ;;  %3173 = vlog2.f32 %v2118_v18  ;;  %vm11935_vm10 = vnez %v11934_v2  ;;  %vm11940_vm12 = vcmp.lt.s32.totalorder %v11862_v35, %v11824_v51  ;;  %v11942_v25 = vld [vmem:[#allocation118_spill] sm:$0xff]  ;;  %v11952_v2 = vld [vmem:[#allocation208_spill] sm:$0xff] }
 0x24e   : > { %v11938_v62 = vsel %vm11935_vm10, %v11936_v48, %v11937_v23  ;;  %v2376_v49 = vsel %vm11940_vm12, %v2312_v22, 0.0  ;;  %vm11943_vm4 = vcmp.eq.s32.totalorder %v11865_v17, 10  ;;  %vm11944_vm9 = vcmp.eq.s32.totalorder %v11865_v17, 0  ;;  %v11956_v22 = vld [vmem:[#allocation281_spill] sm:$0xff]  ;;  %v11961_v11 = vld [vmem:[#allocation119_spill] sm:$0xff]  ;;  %v11986_v50 = vld [vmem:[#allocation172_spill] sm:$0xff] }
 0x24f   : > { %11933 = vst [vmem:[#allocation201_spill] sm:$0xff] %v7817_v52  ;;  %v2314_v58 = vsub.f32 %v11939_v37, %v11938_v62  ;;  %vm7836_vm5 = vmor %vm11944_vm9, %vm11943_vm4  ;;  %v7844_v61 = vmul.f32 0.6931472, %v3166_v13  ;;  %3175 = vlog2.f32 %v2127_v9  ;;  %v2438_v18 = vadd.f32 %v2437_v27, %v2375_v46  ;;  %v11955_v13 = vld [vmem:[#allocation198_spill] sm:$0xff]  ;;  %v11958_v46 = vld [vmem:[#allocation171_spill] sm:$0xff] }
 0x250   : > { %vm11948_vm12 = vcmp.eq.s32.totalorder %v11874_v5, 10  ;;  %vm11949_vm10 = vcmp.eq.s32.totalorder %v11874_v5, 0  ;;  %v11950_v48 = vmov 0  ;;  %v2136_v62 = vadd.f32 1.0, %v11952_v2  ;;  %v11960_v7 = vld [vmem:[#allocation89_spill] sm:$0xff]  ;;  %v12001_v47 = vld [vmem:[#allocation274_spill] sm:$0xff] }
 0x251   : > { %11947 = vst [vmem:[#allocation165_spill] sm:$0xff] %v7844_v61  ;;  %vm7850_vm7 = vmor %vm11949_vm10, %vm11948_vm12  ;;  %v2139_v37 = vmul.f32 -0.5, %v11952_v2  ;;  %vm11954_vm9 = vnez %v11953_v40  ;;  %vm11959_vm15 = vcmp.lt.s32.totalorder %v11873_v1, %v11824_v51  ;;  %vm11962_vm11 = vcmp.eq.s32.totalorder %v11877_v0, 10  ;;  %v11981_v45 = vld [vmem:[#allocation273_spill] sm:$0xff]  ;;  %v12008_v31 = vld [vmem:[#allocation91_spill] sm:$0xff] }
 0x252   : > { %v11951_v48 = vsel %vm7850_vm7, 4294967295, %v11950_v48  ;;  %v11957_v9 = vsel %vm11954_vm9, %v11955_v13, %v11956_v22  ;;  %v2377_v53 = vsel %vm11959_vm15, %v2313_v16, 0.0  ;;  %vm11963_vm0 = vcmp.eq.s32.totalorder %v11877_v0, 0  ;;  %v11967_v16 = vld [vmem:[#allocation212_spill] sm:$0xff]  ;;  %v11983_v1 = vld [vmem:[#allocation205_spill] sm:$0xff]  ;;  %v3216_v54 = vld [vmem:[%s3561_s21 + $0x8] sm:$0xff] }
 0x253   : > { %v2315_v27 = vsub.f32 %v11958_v46, %v11957_v9  ;;  %vm7874_vm7 = vmor %vm11963_vm0, %vm11962_vm11  ;;  %v7879_v22 = vmul.f32 %v11898_v28, %v2122_v4  ;;  %v2131_v13 = vadd.f32 1.0, %v2130_v63  ;;  %v2145_v9 = vadd.f32 1.0, %v11967_v16  ;;  %v12009_v61 = vld [vmem:[#allocation157_spill] sm:$0xff]  ;;  %v12028_v20 = vld [vmem:[#allocation120_spill] sm:$0xff] }
 0x254   : > { %v2439_v46 = vadd.f32 %v2438_v18, %v2376_v49  ;;  %vm11968_vm15 = vcmp.eq.s32.totalorder %v11885_v32, 10  ;;  %vm11969_vm9 = vcmp.eq.s32.totalorder %v11885_v32, 0  ;;  %v11970_v26 = vmov 0  ;;  %v12046_v8 = vld [vmem:[#allocation176_spill] sm:$0xff] }
 0x255   : > { %11966 = vst [vmem:[#allocation84_spill] sm:$0xff] %v7879_v22  ;;  %vm7886_vm12 = vmor %vm11969_vm9, %vm11968_vm15  ;;  %vm11973_vm11 = vcmp.eq.s32.totalorder %v11846_v34, 4294967286  ;;  %v7899_v63 = vmul.f32 0.6931472, %v3168_v14  ;;  %v11977_v49 = vand.u32 2147483647, %v11878_v38  ;;  %vm11982_vm15 = vnez %v11981_v45 }
 0x256   : > { %v11971_v26 = vsel %vm7886_vm12, 4294967295, %v11970_v26  ;;  %vm7895_vm10 = vmor %vm7768_vm1, %vm11973_vm11  ;;  %v11978_v18 = vmov 0  ;;  %v11984_v34 = vld [vmem:[#allocation283_spill] sm:$0xff]  ;;  %vm11987_vm1 = vcmp.lt.s32.totalorder %v11884_v3, %v11824_v51  ;;  %v11989_v38 = vld [vmem:[#allocation145_spill] sm:$0xff]  ;;  %3177 = vlog2.f32 %v2136_v62 }
 0x257   : > { %11972 = vst [vmem:[#allocation143_spill] sm:$0xff] %v11971_v26  ;;  %11976 = vst [vmem:[#allocation64_spill] sm:$0xff] %v7899_v63  ;;  %vm7903_vm4 = vcmp.lt.f32.partialorder %v11977_v49, 0.0004427343  ;;  %v11985_v35 = vsel %vm11982_vm15, %v11983_v1, %v11984_v34  ;;  %v2378_v14 = vsel %vm11987_vm1, %v2314_v58, 0.0  ;;  %v11988_v26 = vld [vmem:[#allocation90_spill] sm:$0xff]  ;;  %v2440_v49 = vadd.f32 %v2439_v46, %v2377_v53 }
 0x258   : > { %v11979_v18 = vsel %vm7903_vm4, 4294967295, %v11978_v18  ;;  %v2316_v52 = vsub.f32 %v11986_v50, %v11985_v35  ;;  %vm11990_vm4 = vcmp.eq.s32.totalorder %v11852_v29, 4294967286  ;;  %v7933_v35 = vmul.f32 0.6931472, %v3170_v43  ;;  %v12003_v46 = vld [vmem:[#allocation209_spill] sm:$0xff]  ;;  %v12004_v34 = vld [vmem:[#allocation284_spill] sm:$0xff] }
 0x259   : > { %11980 = vst [vmem:[#allocation166_spill] sm:$0xff] %v11979_v18  ;;  %vm7925_vm12 = vmor %vm7801_vm8, %vm11990_vm4  ;;  %vm11994_vm15 = vcmp.eq.s32.totalorder %v11897_v42, 10  ;;  %vm11995_vm1 = vcmp.eq.s32.totalorder %v11897_v42, 0  ;;  %vm11998_vm4 = vcmp.eq.s32.totalorder %v11863_v6, 4294967286  ;;  %v2140_v53 = vadd.f32 1.0, %v2139_v37  ;;  %v12006_v58 = vld [vmem:[#allocation173_spill] sm:$0xff]  ;;  %v3172_v6 = vpop.eup %3171 }
 0x25a   : > { %11993 = vst [vmem:[#allocation85_spill] sm:$0xff] %v7933_v35  ;;  %vm7940_vm9 = vmor %vm11995_vm1, %vm11994_vm15  ;;  %vm12002_vm0 = vnez %v12001_v47  ;;  %vm12007_vm15 = vcmp.lt.s32.totalorder %v11896_v15, %v11824_v51  ;;  %vm12010_vm8 = vcmp.lt.s32.totalorder %v11825_v60, %v11824_v51  ;;  %v7976_v37 = vmul.f32 %v11909_v36, %v2131_v13  ;;  %v12023_v47 = vld [vmem:[#allocation286_spill] sm:$0xff]  ;;  %v12043_v13 = vld [vmem:[#allocation244_spill] sm:$0xff] }
 0x25b   : > { %vm7949_vm11 = vmor %vm7811_vm6, %vm11998_vm4  ;;  %v12005_v50 = vsel %vm12002_vm0, %v12003_v46, %v12004_v34  ;;  %v2379_v22 = vsel %vm12007_vm15, %v2315_v27, 0.0  ;;  %3179 = vlog2.f32 %v2145_v9  ;;  %v2148_v27 = vmul.f32 -0.5, %v11967_v16  ;;  %v12021_v9 = vld [vmem:[#allocation240_spill] sm:$0xff]  ;;  %v12025_v45 = vld [vmem:[#allocation174_spill] sm:$0xff] }
 0x25c   : > { %v2317_v1 = vsub.f32 %v12006_v58, %v12005_v50  ;;  %vm7971_vm0 = vmand %vm12010_vm8, %vm7895_vm10  ;;  %12013 = vst [vmem:[#allocation116_spill] sm:$0xff] %v7976_v37  ;;  %v2441_v58 = vadd.f32 %v2440_v49, %v2378_v14  ;;  %vm12014_vm15 = vcmp.eq.s32.totalorder %v11904_v10, 10  ;;  %vm12015_vm6 = vcmp.eq.s32.totalorder %v11904_v10, 0  ;;  %v12022_v49 = vld [vmem:[#allocation241_spill] sm:$0xff]  ;;  %v12027_v50 = vld [vmem:[#allocation92_spill] sm:$0xff] }
 0x25d   : > { %vm7983_vm1 = vmor %vm12015_vm6, %vm12014_vm15  ;;  %vm12018_vm8 = vcmp.lt.s32.totalorder %v11826_v56, %v11824_v51  ;;  %v2154_v14 = vadd.f32 1.0, %v12021_v9  ;;  %v12024_v46 = vsel %vm7209_vm2, %v12022_v49, %v12023_v47  ;;  %vm12029_vm10 = vcmp.eq.s32.totalorder %v11865_v17, 4294967286  ;;  %v12044_v49 = vld [vmem:[#allocation65_spill] sm:$0xff]  ;;  %v12066_v62 = vld [vmem:[#allocation246_spill] sm:$0xff] }
 0x25e   : > { %vm7993_vm4 = vmand %vm12018_vm8, %vm7925_vm12  ;;  %v2318_v34 = vsub.f32 %v12025_v45, %v12024_v46  ;;  %vm12026_vm12 = vcmp.lt.s32.totalorder %v11903_v19, %v11824_v51  ;;  %v2157_v47 = vmul.f32 -0.5, %v12021_v9  ;;  %v2442_v46 = vadd.f32 %v2441_v58, %v2379_v22  ;;  %v8029_v45 = vpop.eup %3173  ;;  %v12048_v63 = vld [vmem:[#allocation93_spill] sm:$0xff]  ;;  %v12133_v29 = vld [vmem:[#allocation83_spill] sm:$0xff] }
 0x25f   : > { %v2380_v56 = vsel %vm12026_vm12, %v2316_v52, 0.0  ;;  %vm8019_vm14 = vmor %vm7836_vm5, %vm12029_vm10  ;;  %vm12032_vm2 = vcmp.eq.s32.totalorder %v11924_v55, 10  ;;  %vm12033_vm12 = vcmp.eq.s32.totalorder %v11924_v55, 0  ;;  %vm12036_vm6 = vcmp.lt.s32.totalorder %v11832_v44, %v11824_v51  ;;  %v12041_v52 = vld [vmem:[#allocation276_spill] sm:$0xff]  ;;  %v8063_v30 = vpop.eup %3175 }
 0x260   : > { %vm8035_vm5 = vmor %vm12033_vm12, %vm12032_vm2  ;;  %v8049_v22 = vmul.f32 0.6931472, %v3172_v6  ;;  %v8052_v58 = vmul.f32 %v11952_v2, %v2140_v53  ;;  %vm12042_vm2 = vnez %v12041_v52  ;;  %vm12047_vm12 = vcmp.lt.s32.totalorder %v11923_v24, %v11824_v51  ;;  %v12049_v6 = vld [vmem:[#allocation121_spill] sm:$0xff]  ;;  %v12228_v17 = vld [vmem:[#allocation288_spill] sm:$0xff] }
 0x261   : > { %vm8045_vm15 = vmand %vm12036_vm6, %vm7949_vm11  ;;  %v12045_v35 = vsel %vm12042_vm2, %v12043_v13, %v12044_v49  ;;  %v2381_v44 = vsel %vm12047_vm12, %v2317_v1, 0.0  ;;  %vm12050_vm8 = vcmp.eq.s32.totalorder %v11874_v5, 4294967286  ;;  %vm12051_vm3 = vnez %v11951_v48  ;;  %v3215_v52 = vld [vmem:[%s3561_s21] sm:$0xff]  ;;  %v12162_v48 = vld [vmem:[#allocation196_spill] sm:$0xff] }
 0x262   : > { %12039 = vst [vmem:[#allocation202_spill] sm:$0xff] %v8049_v22  ;;  %12040 = vst [vmem:[#allocation167_spill] sm:$0xff] %v8052_v58  ;;  %v2319_v43 = vsub.f32 %v12046_v8, %v12045_v35  ;;  %v12054_v8 = vand.u32 2147483647, %v11898_v28  ;;  %v12055_v35 = vmov 0  ;;  %v2149_v1 = vadd.f32 1.0, %v2148_v27 }
 0x263   : > { %vm8073_vm2 = vmor %vm12051_vm3, %vm12050_vm8  ;;  %v2443_v13 = vadd.f32 %v2442_v46, %v2380_v56  ;;  %v2505_v49 = vsel %vm7971_vm0, %v3215_v52, 0.0  ;;  %v2506_v5 = vsel %vm7993_vm4, %v3216_v54, 0.0  ;;  %vm12058_vm3 = vcmp.eq.s32.totalorder %v11942_v25, 10  ;;  %v12067_v27 = vld [vmem:[#allocation168_spill] sm:$0xff]  ;;  %v12069_v56 = vld [vmem:[#allocation177_spill] sm:$0xff] }
 0x264   : > { %vm8079_vm12 = vcmp.lt.f32.partialorder %v12054_v8, 0.0004427343  ;;  %vm12059_vm8 = vcmp.eq.s32.totalorder %v11942_v25, 0  ;;  %vm12062_vm0 = vcmp.lt.s32.totalorder %v11838_v12, %v11824_v51  ;;  %3181 = vlog2.f32 %v2154_v14  ;;  %v12071_v12 = vld [vmem:[#allocation94_spill] sm:$0xff] }
 0x265   : > { %v12056_v35 = vsel %vm8079_vm12, 4294967295, %v12055_v35  ;;  %vm8093_vm11 = vmor %vm12059_vm8, %vm12058_vm3  ;;  %vm12065_vm4 = vnez %v11688_v39  ;;  %vm12070_vm3 = vcmp.lt.s32.totalorder %v11941_v33, %v11824_v51  ;;  %v12072_v8 = vld [vmem:[#allocation122_spill] sm:$0xff]  ;;  %vm12073_vm6 = vcmp.eq.s32.totalorder %v11877_v0, 4294967286 }
 0x266   : > { %12057 = vst [vmem:[#allocation86_spill] sm:$0xff] %v12056_v35  ;;  %vm8103_vm10 = vmand %vm12062_vm0, %vm8019_vm14  ;;  %v12068_v60 = vsel %vm12065_vm4, %v12066_v62, %v12067_v27  ;;  %v2382_v57 = vsel %vm12070_vm3, %v2318_v34, 0.0  ;;  %v2158_v14 = vadd.f32 1.0, %v2157_v47  ;;  %v12076_v52 = vld [vmem:[#allocation242_spill] sm:$0xff]  ;;  %v2444_v27 = vadd.f32 %v2443_v13, %v2381_v44  ;;  %v3217_v34 = vld [vmem:[%s3561_s21 + $0x10] sm:$0xff] }
 0x267   : > { %v2320_v46 = vsub.f32 %v12069_v56, %v12068_v60  ;;  %vm8125_vm13 = vmor %vm7874_vm7, %vm12073_vm6  ;;  %v2163_v62 = vadd.f32 1.0, %v12076_v52  ;;  %v2507_v60 = vsel %vm8045_vm15, %v3217_v34, 0.0  ;;  %vm12077_vm4 = vcmp.eq.s32.totalorder %v11961_v11, 10  ;;  %v12088_v13 = vld [vmem:[#allocation278_spill] sm:$0xff]  ;;  %v12090_v56 = vld [vmem:[#allocation247_spill] sm:$0xff] }
 0x268   : > { %vm12078_vm3 = vcmp.eq.s32.totalorder %v11961_v11, 0  ;;  %v12079_v0 = vmov 0  ;;  %vm12081_vm6 = vcmp.lt.s32.totalorder %v11845_v59, %v11824_v51  ;;  %v12084_v47 = vand.u32 2147483647, %v11909_v36  ;;  %v12091_v34 = vld [vmem:[#allocation291_spill] sm:$0xff]  ;;  %v12093_v54 = vld [vmem:[#allocation178_spill] sm:$0xff] }
 0x269   : > { %vm8137_vm14 = vmor %vm12078_vm3, %vm12077_vm4  ;;  %v12085_v23 = vmov 0  ;;  %v2166_v44 = vmul.f32 -0.5, %v12076_v52  ;;  %vm12089_vm4 = vnez %v12088_v13  ;;  %v2569_v21 = vadd.f32 %v2506_v5, %v2505_v49  ;;  %v12095_v36 = vld [vmem:[#allocation95_spill] sm:$0xff]  ;;  %v12283_v35 = vld [vmem:[#allocation189_spill] sm:$0xff] }
 0x26a   : > { %v12080_v0 = vsel %vm8137_vm14, 4294967295, %v12079_v0  ;;  %vm8147_vm8 = vmand %vm12081_vm6, %vm8073_vm2  ;;  %vm8153_vm15 = vcmp.lt.f32.partialorder %v12084_v47, 0.0004427343  ;;  %v12092_v53 = vsel %vm12089_vm4, %v12090_v56, %v12091_v34  ;;  %vm12094_vm2 = vcmp.lt.s32.totalorder %v11960_v7, %v11824_v51  ;;  %v12096_v47 = vld [vmem:[#allocation123_spill] sm:$0xff]  ;;  %v3218_v34 = vld [vmem:[%s3561_s21 + $0x18] sm:$0xff] }
 0x26b   : > { %v12086_v23 = vsel %vm8153_vm15, 4294967295, %v12085_v23  ;;  %v2321_v41 = vsub.f32 %v12093_v54, %v12092_v53  ;;  %v2383_v59 = vsel %vm12094_vm2, %v2319_v43, 0.0  ;;  %vm12097_vm0 = vcmp.eq.s32.totalorder %v11885_v32, 4294967286  ;;  %v12098_v13 = vld [vmem:[#allocation143_spill] sm:$0xff]  ;;  %v8189_v32 = vpop.eup %3177  ;;  %v12116_v43 = vld [vmem:[#allocation292_spill] sm:$0xff] }
 0x26c   : > { %12087 = vst [vmem:[#allocation117_spill] sm:$0xff] %v12086_v23  ;;  %vm12099_vm15 = vnez %v12098_v13  ;;  %v8184_v49 = vmul.f32 %v11967_v16, %v2149_v1  ;;  %v2445_v5 = vadd.f32 %v2444_v27, %v2382_v57  ;;  %v2508_v53 = vsel %vm8103_vm10, %v3218_v34, 0.0  ;;  %v12109_v1 = vld [vmem:[#allocation82_spill] sm:$0xff]  ;;  %v12113_v27 = vld [vmem:[#allocation279_spill] sm:$0xff]  ;;  %v12115_v34 = vld [vmem:[#allocation252_spill] sm:$0xff]  ;;  %v8219_v58 = vpop.eup %3179 }
 0x26d   : > { %vm8175_vm14 = vmor %vm12099_vm15, %vm12097_vm0  ;;  %vm12105_vm0 = vcmp.eq.s32.totalorder %v11989_v38, 10  ;;  %vm12106_vm15 = vcmp.eq.s32.totalorder %v11989_v38, 0  ;;  %vm12110_vm6 = vcmp.lt.s32.totalorder %v12109_v1, %v11824_v51  ;;  %vm12114_vm10 = vnez %v12113_v27  ;;  %v12118_v54 = vld [vmem:[#allocation179_spill] sm:$0xff]  ;;  %12120 = vst [vmem:[#allocation63_spill] sm:$0xff] %v8219_v58  ;;  %v12121_v1 = vld [vmem:[#allocation96_spill] sm:$0xff] }
 0x26e   : > { %12104 = vst [vmem:[#allocation204_spill] sm:$0xff] %v8184_v49  ;;  %vm8195_vm2 = vmor %vm12106_vm15, %vm12105_vm0  ;;  %v12117_v22 = vsel %vm12114_vm10, %v12115_v34, %v12116_v43  ;;  %vm12119_vm0 = vcmp.lt.s32.totalorder %v11988_v26, %v11824_v51  ;;  %v2570_v49 = vadd.f32 %v2569_v21, %v2507_v60  ;;  %v12122_v7 = vld [vmem:[#allocation124_spill] sm:$0xff]  ;;  %vm12123_vm3 = vcmp.eq.s32.totalorder %v11897_v42, 4294967286  ;;  %v12127_v21 = vld [vmem:[#allocation243_spill] sm:$0xff] }
 0x26f   : > { %vm8205_vm7 = vmand %vm12110_vm6, %vm8125_vm13  ;;  %v2322_v18 = vsub.f32 %v12118_v54, %v12117_v22  ;;  %v2384_v39 = vsel %vm12119_vm0, %v2320_v46, 0.0  ;;  %v8234_v46 = vmul.f32 0.6931472, %v8029_v45  ;;  %v2172_v60 = vadd.f32 1.0, %v12127_v21  ;;  %v3219_v43 = vld [vmem:[%s3561_s21 + $0x20] sm:$0xff]  ;;  %v12248_v13 = vld [vmem:[#allocation248_spill] sm:$0xff] }
 0x270   : > { %vm8229_vm10 = vmor %vm7940_vm9, %vm12123_vm3  ;;  %v2446_v54 = vadd.f32 %v2445_v5, %v2383_v59  ;;  %v2509_v27 = vsel %vm8147_vm8, %v3219_v43, 0.0  ;;  %vm12128_vm0 = vcmp.eq.s32.totalorder %v12009_v61, 10  ;;  %vm12129_vm13 = vcmp.eq.s32.totalorder %v12009_v61, 0  ;;  %v12138_v59 = vld [vmem:[#allocation282_spill] sm:$0xff]  ;;  %v12141_v34 = vld [vmem:[#allocation293_spill] sm:$0xff] }
 0x271   : > { %12126 = vst [vmem:[#allocation169_spill] sm:$0xff] %v8234_v46  ;;  %vm8244_vm6 = vmor %vm12129_vm13, %vm12128_vm0  ;;  %v12130_v42 = vmov 0  ;;  %vm12134_vm3 = vcmp.lt.s32.totalorder %v12133_v29, %v11824_v51  ;;  %v8259_v40 = vmul.f32 %v12021_v9, %v2158_v14  ;;  %vm12139_vm8 = vnez %v12138_v59  ;;  %v12140_v5 = vld [vmem:[#allocation254_spill] sm:$0xff]  ;;  %v12143_v57 = vld [vmem:[#allocation181_spill] sm:$0xff] }
 0x272   : > { %v12131_v42 = vsel %vm8244_vm6, 4294967295, %v12130_v42  ;;  %vm8254_vm15 = vmand %vm12134_vm3, %vm8175_vm14  ;;  %v12142_v43 = vsel %vm12139_vm8, %v12140_v5, %v12141_v34  ;;  %vm12144_vm13 = vcmp.lt.s32.totalorder %v12008_v31, %v11824_v51  ;;  %v2571_v58 = vadd.f32 %v2570_v49, %v2508_v53  ;;  %v12145_v29 = vld [vmem:[#allocation97_spill] sm:$0xff]  ;;  %v12165_v22 = vld [vmem:[#allocation294_spill] sm:$0xff] }
 0x273   : > { %12132 = vst [vmem:[#allocation87_spill] sm:$0xff] %v12131_v42  ;;  %12137 = vst [vmem:[#allocation144_spill] sm:$0xff] %v8259_v40  ;;  %v2323_v26 = vsub.f32 %v12143_v57, %v12142_v43  ;;  %v2385_v56 = vsel %vm12144_vm13, %v2321_v41, 0.0  ;;  %v12146_v42 = vld [vmem:[#allocation125_spill] sm:$0xff]  ;;  %vm12147_vm9 = vcmp.eq.s32.totalorder %v11904_v10, 4294967286  ;;  %3183 = vlog2.f32 %v2163_v62  ;;  %v3220_v41 = vld [vmem:[%s3561_s21 + $0x28] sm:$0xff] }
 0x274   : > { %vm8278_vm4 = vmor %vm7983_vm1, %vm12147_vm9  ;;  %v2167_v57 = vadd.f32 1.0, %v2166_v44  ;;  %v2447_v59 = vadd.f32 %v2446_v54, %v2384_v39  ;;  %v2510_v49 = vsel %vm8205_vm7, %v3220_v41, 0.0  ;;  %vm12150_vm8 = vcmp.eq.s32.totalorder %v12028_v20, 10  ;;  %v12164_v39 = vld [vmem:[#allocation256_spill] sm:$0xff]  ;;  %v12167_v5 = vld [vmem:[#allocation182_spill] sm:$0xff] }
 0x275   : > { %vm12151_vm13 = vcmp.eq.s32.totalorder %v12028_v20, 0  ;;  %vm12154_vm9 = vcmp.lt.s32.totalorder %v11884_v3, %v11824_v51  ;;  %v8304_v62 = vmul.f32 0.6931472, %v8063_v30  ;;  %v12158_v44 = vand.u32 2147483647, %v11952_v2  ;;  %v12169_v30 = vld [vmem:[#allocation98_spill] sm:$0xff] }
 0x276   : > { %vm8289_vm14 = vmor %vm12151_vm13, %vm12150_vm8  ;;  %v12159_v53 = vmov 0  ;;  %vm12163_vm8 = vnez %v12162_v48  ;;  %v2572_v43 = vadd.f32 %v2571_v58, %v2509_v27  ;;  %v12170_v2 = vld [vmem:[#allocation126_spill] sm:$0xff]  ;;  %vm12171_vm3 = vcmp.eq.s32.totalorder %v11924_v55, 4294967286  ;;  %v3221_v58 = vld [vmem:[%s3561_s21 + $0x30] sm:$0xff]  ;;  %v8337_v48 = vpop.eup %3181 }
 0x277   : > { %vm8299_vm0 = vmand %vm12154_vm9, %vm8229_vm10  ;;  %12157 = vst [vmem:[#allocation269_spill] sm:$0xff] %v8304_v62  ;;  %vm8308_vm7 = vcmp.lt.f32.partialorder %v12158_v44, 0.0004427343  ;;  %v12166_v54 = vsel %vm12163_vm8, %v12164_v39, %v12165_v22  ;;  %vm12168_vm10 = vcmp.lt.s32.totalorder %v12027_v50, %v11824_v51  ;;  %3185 = vlog2.f32 %v2172_v60  ;;  %v12185_v39 = vld [vmem:[#allocation295_spill] sm:$0xff]  ;;  %v12215_v46 = vld [vmem:[#allocation128_spill] sm:$0xff] }
 0x278   : > { %v12160_v53 = vsel %vm8308_vm7, 4294967295, %v12159_v53  ;;  %v2324_v3 = vsub.f32 %v12167_v5, %v12166_v54  ;;  %v2386_v34 = vsel %vm12168_vm10, %v2322_v18, 0.0  ;;  %vm8329_vm7 = vmor %vm8035_vm5, %vm12171_vm3  ;;  %v2175_v44 = vmul.f32 -0.5, %v12127_v21  ;;  %v12187_v54 = vld [vmem:[#allocation183_spill] sm:$0xff]  ;;  %v12236_v62 = vld [vmem:[#allocation129_spill] sm:$0xff] }
 0x279   : > { %12161 = vst [vmem:[#allocation76_spill] sm:$0xff] %v12160_v53  ;;  %v2448_v18 = vadd.f32 %v2447_v59, %v2385_v56  ;;  %v2511_v27 = vsel %vm8254_vm15, %v3221_v58, 0.0  ;;  %vm12174_vm8 = vcmp.eq.s32.totalorder %v12049_v6, 10  ;;  %vm12175_vm10 = vcmp.eq.s32.totalorder %v12049_v6, 0  ;;  %v12182_v56 = vld [vmem:[#allocation285_spill] sm:$0xff]  ;;  %v12184_v59 = vld [vmem:[#allocation260_spill] sm:$0xff] }
 0x27a   : > { %vm8343_vm13 = vmor %vm12175_vm10, %vm12174_vm8  ;;  %vm12178_vm3 = vcmp.lt.s32.totalorder %v11896_v15, %v11824_v51  ;;  %vm12183_vm15 = vnez %v12182_v56  ;;  %vm12188_vm8 = vcmp.lt.s32.totalorder %v12048_v63, %v11824_v51  ;;  %v2573_v14 = vadd.f32 %v2572_v43, %v2510_v49  ;;  %v12189_v58 = vld [vmem:[#allocation99_spill] sm:$0xff]  ;;  %v12258_v60 = vld [vmem:[#allocation130_spill] sm:$0xff] }
 0x27b   : > { %vm8353_vm9 = vmand %vm12178_vm3, %vm8278_vm4  ;;  %v12186_v22 = vsel %vm12183_vm15, %v12184_v59, %v12185_v39  ;;  %v2387_v15 = vsel %vm12188_vm8, %v2323_v26, 0.0  ;;  %v12190_v40 = vld [vmem:[#allocation127_spill] sm:$0xff]  ;;  %vm12191_vm5 = vcmp.eq.s32.totalorder %v11942_v25, 4294967286  ;;  %v12194_v59 = vand.u32 2147483647, %v11967_v16  ;;  %v12296_v10 = vld [vmem:[#allocation90_spill] sm:$0xff] }
 0x27c   : > { %v2325_v5 = vsub.f32 %v12187_v54, %v12186_v22  ;;  %vm8378_vm1 = vmor %vm8093_vm11, %vm12191_vm5  ;;  %v12195_v26 = vmov 0  ;;  %v8389_v49 = vmul.f32 %v12076_v52, %v2167_v57  ;;  %v2449_v39 = vadd.f32 %v2448_v18, %v2386_v34  ;;  %v3222_v22 = vld [vmem:[%s3561_s21 + $0x38] sm:$0xff]  ;;  %v12207_v34 = vld [vmem:[#allocation287_spill] sm:$0xff] }
 0x27d   : > { %vm8384_vm15 = vcmp.lt.f32.partialorder %v12194_v59, 0.0004427343  ;;  %v2512_v25 = vsel %vm8299_vm0, %v3222_v22, 0.0  ;;  %vm12199_vm11 = vcmp.eq.s32.totalorder %v12072_v8, 10  ;;  %vm12200_vm5 = vcmp.eq.s32.totalorder %v12072_v8, 0  ;;  %v12206_v57 = vld [vmem:[#allocation245_spill] sm:$0xff]  ;;  %v8517_v23 = vpop.eup %3183 }
 0x27e   : > { %v12196_v26 = vsel %vm8384_vm15, 4294967295, %v12195_v26  ;;  %12198 = vst [vmem:[#allocation170_spill] sm:$0xff] %v8389_v49  ;;  %vm8399_vm8 = vmor %vm12200_vm5, %vm12199_vm11  ;;  %v12201_v16 = vmov 0  ;;  %vm12203_vm10 = vcmp.lt.s32.totalorder %v11903_v19, %v11824_v51  ;;  %v2181_v4 = vadd.f32 1.0, %v12206_v57  ;;  %v12209_v18 = vld [vmem:[#allocation262_spill] sm:$0xff]  ;;  %v12210_v54 = vld [vmem:[#allocation180_spill] sm:$0xff] }
 0x27f   : > { %12197 = vst [vmem:[#allocation175_spill] sm:$0xff] %v12196_v26  ;;  %v12202_v16 = vsel %vm8399_vm8, 4294967295, %v12201_v16  ;;  %vm8409_vm3 = vmand %vm12203_vm10, %vm8329_vm7  ;;  %vm12208_vm0 = vnez %v12207_v34  ;;  %v12212_v22 = vld [vmem:[#allocation185_spill] sm:$0xff]  ;;  %vm12213_vm11 = vcmp.lt.s32.totalorder %v12071_v12, %v11824_v51  ;;  %v2574_v43 = vadd.f32 %v2573_v14, %v2511_v27  ;;  %v12214_v19 = vld [vmem:[#allocation100_spill] sm:$0xff] }
 0x280   : > { %v12211_v59 = vsel %vm12208_vm0, %v12209_v18, %v12210_v54  ;;  %v2388_v41 = vsel %vm12213_vm11, %v2324_v3, 0.0  ;;  %vm12216_vm4 = vcmp.eq.s32.totalorder %v11961_v11, 4294967286  ;;  %vm12217_vm12 = vnez %v12080_v0  ;;  %v3223_v18 = vld [vmem:[%s3561_s21 + $0x40] sm:$0xff]  ;;  %12256 = vst [vmem:[#allocation118_spill] sm:$0xff] %v8517_v23 }
 0x281   : > { %v2326_v45 = vsub.f32 %v12212_v22, %v12211_v59  ;;  %vm8431_vm8 = vmor %vm12217_vm12, %vm12216_vm4  ;;  %v2176_v27 = vadd.f32 1.0, %v2175_v44  ;;  %v2450_v14 = vadd.f32 %v2449_v39, %v2387_v15  ;;  %v2513_v54 = vsel %vm8353_vm9, %v3223_v18, 0.0  ;;  %v12230_v15 = vld [vmem:[#allocation264_spill] sm:$0xff]  ;;  %v12231_v39 = vld [vmem:[#allocation299_spill] sm:$0xff] }
 0x282   : > { %vm12221_vm11 = vcmp.eq.s32.totalorder %v12096_v47, 10  ;;  %vm12222_vm7 = vcmp.eq.s32.totalorder %v12096_v47, 0  ;;  %vm12225_vm10 = vcmp.lt.s32.totalorder %v11923_v24, %v11824_v51  ;;  %v2184_v44 = vmul.f32 -0.5, %v12206_v57  ;;  %v12233_v22 = vld [vmem:[#allocation186_spill] sm:$0xff]  ;;  %v12235_v24 = vld [vmem:[#allocation101_spill] sm:$0xff] }
 0x283   : > { %vm8446_vm12 = vmor %vm12222_vm7, %vm12221_vm11  ;;  %vm12229_vm9 = vnez %v12228_v17  ;;  %vm12234_vm7 = vcmp.lt.s32.totalorder %v12095_v36, %v11824_v51  ;;  %v2575_v3 = vadd.f32 %v2574_v43, %v2512_v25  ;;  %vm12237_vm4 = vcmp.eq.s32.totalorder %v11989_v38, 4294967286  ;;  %v3224_v25 = vld [vmem:[%s3561_s21 + $0x48] sm:$0xff]  ;;  %v12281_v17 = vld [vmem:[#allocation301_spill] sm:$0xff] }
 0x284   : > { %vm8456_vm5 = vmand %vm12225_vm10, %vm8378_vm1  ;;  %v12232_v59 = vsel %vm12229_vm9, %v12230_v15, %v12231_v39  ;;  %v2389_v56 = vsel %vm12234_vm7, %v2325_v5, 0.0  ;;  %v8483_v15 = vmul.f32 0.6931472, %v8189_v32  ;;  %v2451_v43 = vadd.f32 %v2450_v14, %v2388_v41  ;;  %v12249_v41 = vld [vmem:[#allocation289_spill] sm:$0xff]  ;;  %v12251_v14 = vld [vmem:[#allocation60_spill] sm:$0xff] }
 0x285   : > { %v2327_v18 = vsub.f32 %v12233_v22, %v12232_v59  ;;  %vm8478_vm0 = vmor %vm8195_vm2, %vm12237_vm4  ;;  %v2514_v39 = vsel %vm8409_vm3, %v3224_v25, 0.0  ;;  %vm12241_vm9 = vcmp.eq.s32.totalorder %v12122_v7, 10  ;;  %vm12242_vm7 = vcmp.eq.s32.totalorder %v12122_v7, 0  ;;  %v12252_v59 = vld [vmem:[#allocation184_spill] sm:$0xff]  ;;  %v12254_v25 = vld [vmem:[#allocation187_spill] sm:$0xff] }
 0x286   : > { %12240 = vst [vmem:[#allocation88_spill] sm:$0xff] %v8483_v15  ;;  %vm8493_vm1 = vmor %vm12242_vm7, %vm12241_vm9  ;;  %vm12245_vm4 = vcmp.lt.s32.totalorder %v11941_v33, %v11824_v51  ;;  %v2190_v28 = vadd.f32 1.0, %v12248_v13  ;;  %vm12250_vm3 = vnez %v12249_v41  ;;  %vm12255_vm9 = vcmp.lt.s32.totalorder %v12121_v1, %v11824_v51  ;;  %v12257_v33 = vld [vmem:[#allocation102_spill] sm:$0xff]  ;;  %v12278_v41 = vld [vmem:[#allocation160_spill] sm:$0xff] }
 0x287   : > { %vm8503_vm10 = vmand %vm12245_vm4, %vm8431_vm8  ;;  %v12253_v22 = vsel %vm12250_vm3, %v12251_v14, %v12252_v59  ;;  %v2390_v34 = vsel %vm12255_vm9, %v2326_v45, 0.0  ;;  %v2576_v37 = vadd.f32 %v2575_v3, %v2513_v54  ;;  %vm12259_vm2 = vcmp.eq.s32.totalorder %v12009_v61, 4294967286  ;;  %v12263_v59 = vld [vmem:[#allocation63_spill] sm:$0xff]  ;;  %v12300_v32 = vld [vmem:[#allocation161_spill] sm:$0xff] }
 0x288   : > { %v2328_v5 = vsub.f32 %v12254_v25, %v12253_v22  ;;  %vm8527_vm3 = vmor %vm8244_vm6, %vm12259_vm2  ;;  %v8532_v45 = vmul.f32 0.6931472, %v12263_v59  ;;  %3187 = vlog2.f32 %v2181_v4  ;;  %v2452_v3 = vadd.f32 %v2451_v43, %v2389_v56  ;;  %v3225_v54 = vld [vmem:[%s3561_s21 + $0x50] sm:$0xff]  ;;  %v12269_v25 = vld [vmem:[#allocation89_spill] sm:$0xff] }
 0x289   : > { %v2515_v22 = vsel %vm8456_vm5, %v3225_v54, 0.0  ;;  %vm12265_vm9 = vcmp.eq.s32.totalorder %v12146_v42, 10  ;;  %vm12266_vm8 = vcmp.eq.s32.totalorder %v12146_v42, 0  ;;  %vm12270_vm2 = vcmp.lt.s32.totalorder %v12269_v25, %v11824_v51  ;;  %v12280_v59 = vld [vmem:[#allocation267_spill] sm:$0xff]  ;;  %v12307_v15 = vld [vmem:[#allocation104_spill] sm:$0xff]  ;;  %v12328_v53 = vld [vmem:[#allocation133_spill] sm:$0xff] }
 0x28a   : > { %12264 = vst [vmem:[#allocation208_spill] sm:$0xff] %v8532_v45  ;;  %vm8541_vm7 = vmor %vm12266_vm8, %vm12265_vm9  ;;  %v12273_v0 = vand.u32 2147483647, %v12021_v9  ;;  %v12274_v56 = vmov 0  ;;  %v8562_v43 = vmul.f32 %v12127_v21, %v2176_v27  ;;  %vm12279_vm8 = vnez %v12278_v41  ;;  %v8573_v9 = vpop.eup %3185  ;;  %v12286_v1 = vld [vmem:[#allocation131_spill] sm:$0xff]  ;;  %v3226_v41 = vld [vmem:[%s3561_s21 + $0x58] sm:$0xff] }
 0x28b   : > { %vm8551_vm4 = vmand %vm12270_vm2, %vm8478_vm0  ;;  %v12282_v54 = vsel %vm12279_vm8, %v12280_v59, %v12281_v17  ;;  %vm12284_vm0 = vcmp.lt.s32.totalorder %v12145_v29, %v11824_v51  ;;  %v2577_v23 = vadd.f32 %v2576_v37, %v2514_v39  ;;  %vm12287_vm11 = vcmp.eq.s32.totalorder %v12028_v20, 4294967286  ;;  %v12327_v27 = vld [vmem:[#allocation105_spill] sm:$0xff]  ;;  %v12350_v26 = vld [vmem:[#allocation134_spill] sm:$0xff] }
 0x28c   : > { %vm8557_vm5 = vcmp.lt.f32.partialorder %v12273_v0, 0.0004427343  ;;  %12277 = vst [vmem:[#allocation198_spill] sm:$0xff] %v8562_v43  ;;  %v2329_v25 = vsub.f32 %v12283_v35, %v12282_v54  ;;  %v2391_v49 = vsel %vm12284_vm0, %v2327_v18, 0.0  ;;  %v12285_v0 = vld [vmem:[#allocation103_spill] sm:$0xff]  ;;  %vm8583_vm8 = vmor %vm8289_vm14, %vm12287_vm11  ;;  %v2185_v18 = vadd.f32 1.0, %v2184_v44 }
 0x28d   : > { %v12275_v56 = vsel %vm8557_vm5, 4294967295, %v12274_v56  ;;  %v2453_v39 = vadd.f32 %v2452_v3, %v2390_v34  ;;  %v2516_v59 = vsel %vm8503_vm10, %v3226_v41, 0.0  ;;  %vm12292_vm9 = vcmp.eq.s32.totalorder %v12170_v2, 10  ;;  %v12302_v34 = vld [vmem:[#allocation268_spill] sm:$0xff]  ;;  %v12305_v54 = vld [vmem:[#allocation190_spill] sm:$0xff]  ;;  %v12347_v4 = vld [vmem:[#allocation193_spill] sm:$0xff] }
 0x28e   : > { %12276 = vst [vmem:[#allocation271_spill] sm:$0xff] %v12275_v56  ;;  %vm12293_vm2 = vcmp.eq.s32.totalorder %v12170_v2, 0  ;;  %v12294_v20 = vmov 0  ;;  %vm12297_vm6 = vcmp.lt.s32.totalorder %v12296_v10, %v11824_v51  ;;  %3189 = vlog2.f32 %v2190_v28  ;;  %v12303_v3 = vld [vmem:[#allocation304_spill] sm:$0xff]  ;;  %v12365_v11 = vld [vmem:[#allocation250_spill] sm:$0xff]  ;;  %v12366_v55 = vld [vmem:[#allocation297_spill] sm:$0xff] }
 0x28f   : > { %vm8598_vm14 = vmor %vm12293_vm2, %vm12292_vm9  ;;  %vm12301_vm10 = vnez %v12300_v32  ;;  %vm12306_vm9 = vcmp.lt.s32.totalorder %v12169_v30, %v11824_v51  ;;  %v2578_v14 = vadd.f32 %v2577_v23, %v2515_v22  ;;  %v12308_v10 = vld [vmem:[#allocation132_spill] sm:$0xff]  ;;  %vm12309_vm11 = vcmp.eq.s32.totalorder %v12049_v6, 4294967286  ;;  %v3227_v22 = vld [vmem:[%s3561_s21 + $0x60] sm:$0xff] }
 0x290   : > { %v12295_v20 = vsel %vm8598_vm14, 4294967295, %v12294_v20  ;;  %vm8608_vm0 = vmand %vm12297_vm6, %vm8527_vm3  ;;  %v12304_v17 = vsel %vm12301_vm10, %v12302_v34, %v12303_v3  ;;  %v2392_v37 = vsel %vm12306_vm9, %v2328_v5, 0.0  ;;  %v2193_v32 = vmul.f32 -0.5, %v12248_v13  ;;  %v12322_v3 = vld [vmem:[#allocation61_spill] sm:$0xff]  ;;  %v12342_v44 = vld [vmem:[#allocation296_spill] sm:$0xff] }
 0x291   : > { %v2330_v41 = vsub.f32 %v12305_v54, %v12304_v17  ;;  %vm8629_vm14 = vmor %vm8343_vm13, %vm12309_vm11  ;;  %v2454_v23 = vadd.f32 %v2453_v39, %v2391_v49  ;;  %v2517_v34 = vsel %vm8551_vm4, %v3227_v22, 0.0  ;;  %vm12312_vm10 = vcmp.eq.s32.totalorder %v12190_v40, 10  ;;  %v12320_v39 = vld [vmem:[#allocation58_spill] sm:$0xff]  ;;  %v12323_v17 = vld [vmem:[#allocation188_spill] sm:$0xff] }
 0x292   : > { %vm12313_vm9 = vcmp.eq.s32.totalorder %v12190_v40, 0  ;;  %vm12316_vm11 = vcmp.lt.s32.totalorder %v12008_v31, %v11824_v51  ;;  %vm12321_vm4 = vnez %v12320_v39  ;;  %v12325_v22 = vld [vmem:[#allocation191_spill] sm:$0xff]  ;;  %v2579_v35 = vadd.f32 %v2578_v14, %v2516_v59  ;;  %v12416_v56 = vld [vmem:[#allocation53_spill] sm:$0xff]  ;;  %v12429_v38 = vld [vmem:[#allocation118_spill] sm:$0xff] }
 0x293   : > { %vm8642_vm2 = vmor %vm12313_vm9, %vm12312_vm10  ;;  %v12324_v54 = vsel %vm12321_vm4, %v12322_v3, %v12323_v17  ;;  %vm12326_vm10 = vcmp.lt.s32.totalorder %v12189_v58, %v11824_v51  ;;  %vm12329_vm13 = vcmp.eq.s32.totalorder %v12072_v8, 4294967286  ;;  %vm12330_vm6 = vnez %v12202_v16  ;;  %v12333_v3 = vld [vmem:[#allocation249_spill] sm:$0xff]  ;;  %v3228_v14 = vld [vmem:[%s3561_s21 + $0x68] sm:$0xff] }
 0x294   : > { %vm8652_vm3 = vmand %vm12316_vm11, %vm8583_vm8  ;;  %v2331_v5 = vsub.f32 %v12325_v22, %v12324_v54  ;;  %v2393_v31 = vsel %vm12326_vm10, %v2329_v25, 0.0  ;;  %v2199_v17 = vadd.f32 1.0, %v12333_v3  ;;  %v2202_v25 = vmul.f32 -0.5, %v12333_v3  ;;  %v12345_v22 = vld [vmem:[#allocation308_spill] sm:$0xff]  ;;  %v12530_v61 = vld [vmem:[#allocation77_spill] sm:$0xff] }
 0x295   : > { %vm8677_vm15 = vmor %vm12330_vm6, %vm12329_vm13  ;;  %v2455_v59 = vadd.f32 %v2454_v23, %v2392_v37  ;;  %v2518_v54 = vsel %vm8608_vm0, %v3228_v14, 0.0  ;;  %vm12334_vm4 = vcmp.eq.s32.totalorder %v12215_v46, 10  ;;  %vm12335_vm10 = vcmp.eq.s32.totalorder %v12215_v46, 0  ;;  %v12344_v23 = vld [vmem:[#allocation272_spill] sm:$0xff] }
 0x296   : > { %vm8690_vm8 = vmor %vm12335_vm10, %vm12334_vm4  ;;  %vm12338_vm13 = vcmp.lt.s32.totalorder %v12027_v50, %v11824_v51  ;;  %v8705_v37 = vmul.f32 %v12206_v57, %v2185_v18  ;;  %vm12343_vm0 = vnez %v12342_v44  ;;  %vm12348_vm4 = vcmp.lt.s32.totalorder %v12214_v19, %v11824_v51  ;;  %v12349_v50 = vld [vmem:[#allocation106_spill] sm:$0xff]  ;;  %v12374_v19 = vld [vmem:[#allocation135_spill] sm:$0xff] }
 0x297   : > { %vm8700_vm9 = vmand %vm12338_vm13, %vm8629_vm14  ;;  %v12346_v14 = vsel %vm12343_vm0, %v12344_v23, %v12345_v22  ;;  %v2394_v28 = vsel %vm12348_vm4, %v2330_v41, 0.0  ;;  %v2580_v49 = vadd.f32 %v2579_v35, %v2517_v34  ;;  %vm12351_vm6 = vcmp.eq.s32.totalorder %v12096_v47, 4294967286  ;;  %v3229_v23 = vld [vmem:[%s3561_s21 + $0x70] sm:$0xff] }
 0x298   : > { %12341 = vst [vmem:[#allocation281_spill] sm:$0xff] %v8705_v37  ;;  %v2332_v45 = vsub.f32 %v12347_v4, %v12346_v14  ;;  %vm8724_vm11 = vmor %vm8446_vm12, %vm12351_vm6  ;;  %v8729_v4 = vmul.f32 0.6931472, %v8337_v48  ;;  %v12355_v41 = vand.u32 2147483647, %v12076_v52  ;;  %v12356_v34 = vmov 0  ;;  %v8768_v37 = vpop.eup %3187 }
 0x299   : > { %v2194_v35 = vadd.f32 1.0, %v2193_v32  ;;  %v2456_v44 = vadd.f32 %v2455_v59, %v2393_v31  ;;  %v2519_v47 = vsel %vm8652_vm3, %v3229_v23, 0.0  ;;  %vm12358_vm12 = vcmp.eq.s32.totalorder %v12236_v62, 10  ;;  %v12368_v31 = vld [vmem:[#allocation275_spill] sm:$0xff]  ;;  %v12369_v59 = vld [vmem:[#allocation309_spill] sm:$0xff]  ;;  %v12413_v16 = vld [vmem:[#allocation152_spill] sm:$0xff] }
 0x29a   : > { %12354 = vst [vmem:[#allocation171_spill] sm:$0xff] %v8729_v4  ;;  %vm8733_vm0 = vcmp.lt.f32.partialorder %v12355_v41, 0.0004427343  ;;  %vm12359_vm6 = vcmp.eq.s32.totalorder %v12236_v62, 0  ;;  %vm12362_vm10 = vcmp.lt.s32.totalorder %v12048_v63, %v11824_v51  ;;  %v2208_v32 = vadd.f32 1.0, %v12365_v11  ;;  %v12371_v14 = vld [vmem:[#allocation69_spill] sm:$0xff] }
 0x29b   : > { %v12357_v34 = vsel %vm8733_vm0, 4294967295, %v12356_v34  ;;  %vm8744_vm4 = vmor %vm12359_vm6, %vm12358_vm12  ;;  %vm12367_vm3 = vnez %v12366_v55  ;;  %vm12372_vm12 = vcmp.lt.s32.totalorder %v12235_v24, %v11824_v51  ;;  %v2581_v23 = vadd.f32 %v2580_v49, %v2518_v54  ;;  %v12373_v63 = vld [vmem:[#allocation107_spill] sm:$0xff]  ;;  %v3230_v54 = vld [vmem:[%s3561_s21 + $0x78] sm:$0xff] }
 0x29c   : > { %vm8754_vm13 = vmand %vm12362_vm10, %vm8677_vm15  ;;  %v12370_v22 = vsel %vm12367_vm3, %v12368_v31, %v12369_v59  ;;  %v2395_v39 = vsel %vm12372_vm12, %v2331_v5, 0.0  ;;  %vm12375_vm14 = vcmp.eq.s32.totalorder %v12122_v7, 4294967286  ;;  %3191 = vlog2.f32 %v2199_v17  ;;  %v12391_v59 = vld [vmem:[#allocation310_spill] sm:$0xff]  ;;  %v12453_v52 = vld [vmem:[#allocation313_spill] sm:$0xff] }
 0x29d   : > { %v2333_v41 = vsub.f32 %v12371_v14, %v12370_v22  ;;  %vm8778_vm3 = vmor %vm8493_vm1, %vm12375_vm14  ;;  %v2203_v5 = vadd.f32 1.0, %v2202_v25  ;;  %v2457_v49 = vadd.f32 %v2456_v44, %v2394_v28  ;;  %v2520_v31 = vsel %vm8700_vm9, %v3230_v54, 0.0  ;;  %v12388_v28 = vld [vmem:[#allocation298_spill] sm:$0xff]  ;;  %v12390_v44 = vld [vmem:[#allocation277_spill] sm:$0xff] }
 0x29e   : > { %vm12378_vm12 = vcmp.eq.s32.totalorder %v12258_v60, 10  ;;  %vm12379_vm15 = vcmp.eq.s32.totalorder %v12258_v60, 0  ;;  %v12380_v7 = vmov 0  ;;  %vm12382_vm14 = vcmp.lt.s32.totalorder %v12071_v12, %v11824_v51  ;;  %v12393_v22 = vld [vmem:[#allocation149_spill] sm:$0xff]  ;;  %v12490_v6 = vld [vmem:[#allocation192_spill] sm:$0xff]  ;;  %v12535_v48 = vld [vmem:[#allocation214_spill] sm:$0xff] }
 0x29f   : > { %vm8789_vm10 = vmor %vm12379_vm15, %vm12378_vm12  ;;  %v12385_v17 = vand.u32 2147483647, %v12127_v21  ;;  %v12386_v25 = vmov 0  ;;  %vm12389_vm15 = vnez %v12388_v28  ;;  %v2582_v54 = vadd.f32 %v2581_v23, %v2519_v47  ;;  %v12395_v21 = vld [vmem:[#allocation108_spill] sm:$0xff] }
 0x2a0   : > { %v12381_v7 = vsel %vm8789_vm10, 4294967295, %v12380_v7  ;;  %vm8799_vm6 = vmand %vm12382_vm14, %vm8724_vm11  ;;  %v12392_v18 = vsel %vm12389_vm15, %v12390_v44, %v12391_v59  ;;  %vm12394_vm11 = vcmp.lt.s32.totalorder %v12257_v33, %v11824_v51  ;;  %v2211_v47 = vmul.f32 -0.5, %v12365_v11  ;;  %v3231_v59 = vld [vmem:[%s3561_s21 + $0x80] sm:$0xff] }
 0x2a1   : > { %vm8805_vm9 = vcmp.lt.f32.partialorder %v12385_v17, 0.0004427343  ;;  %v2334_v14 = vsub.f32 %v12393_v22, %v12392_v18  ;;  %v2396_v12 = vsel %vm12394_vm11, %v2332_v45, 0.0  ;;  %v12396_v17 = vld [vmem:[#allocation146_spill] sm:$0xff]  ;;  %v2458_v23 = vadd.f32 %v2457_v49, %v2395_v39  ;;  %v12410_v22 = vld [vmem:[#allocation280_spill] sm:$0xff] }
 0x2a2   : > { %v12387_v25 = vsel %vm8805_vm9, 4294967295, %v12386_v25  ;;  %vm12397_vm9 = vcmp.eq.s32.totalorder %v12146_v42, 4294967286  ;;  %v2521_v18 = vsel %vm8754_vm13, %v3231_v59, 0.0  ;;  %v8839_v42 = vpop.eup %3189  ;;  %vm12405_vm12 = vcmp.lt.s32.totalorder %v12095_v36, %v11824_v51  ;;  %v12408_v49 = vld [vmem:[#allocation302_spill] sm:$0xff]  ;;  %v12415_v36 = vld [vmem:[#allocation109_spill] sm:$0xff] }
 0x2a3   : > { %vm8827_vm10 = vmor %vm8541_vm7, %vm12397_vm9  ;;  %vm12401_vm7 = vcmp.eq.s32.totalorder %v12286_v1, 10  ;;  %vm12402_vm9 = vcmp.eq.s32.totalorder %v12286_v1, 0  ;;  %v8860_v39 = vmul.f32 %v12248_v13, %v2194_v35  ;;  %vm12409_vm13 = vnez %v12408_v49  ;;  %v12411_v59 = vld [vmem:[#allocation194_spill] sm:$0xff]  ;;  %v12433_v49 = vld [vmem:[#allocation311_spill] sm:$0xff] }
 0x2a4   : > { %vm8845_vm15 = vmor %vm12402_vm9, %vm12401_vm7  ;;  %v12412_v45 = vsel %vm12409_vm13, %v12410_v22, %v12411_v59  ;;  %vm12414_vm7 = vcmp.lt.s32.totalorder %v12285_v0, %v11824_v51  ;;  %v2583_v44 = vadd.f32 %v2582_v54, %v2520_v31  ;;  %vm12417_vm11 = vcmp.eq.s32.totalorder %v12170_v2, 4294967286  ;;  %v3232_v31 = vld [vmem:[%s3561_s21 + $0x88] sm:$0xff] }
 0x2a5   : > { %vm8855_vm14 = vmand %vm12405_vm12, %vm8778_vm3  ;;  %v2335_v4 = vsub.f32 %v12413_v16, %v12412_v45  ;;  %v2397_v55 = vsel %vm12414_vm7, %v2333_v41, 0.0  ;;  %vm12418_vm1 = vnez %v12295_v20  ;;  %3193 = vlog2.f32 %v2208_v32  ;;  %v12425_v20 = vld [vmem:[#allocation96_spill] sm:$0xff]  ;;  %v12430_v45 = vld [vmem:[#allocation303_spill] sm:$0xff] }
 0x2a6   : > { %vm8879_vm5 = vmor %vm12418_vm1, %vm12417_vm11  ;;  %v2459_v41 = vadd.f32 %v2458_v23, %v2396_v12  ;;  %v2522_v54 = vsel %vm8799_vm6, %v3232_v31, 0.0  ;;  %vm12421_vm13 = vcmp.eq.s32.totalorder %v12308_v10, 10  ;;  %vm12422_vm7 = vcmp.eq.s32.totalorder %v12308_v10, 0  ;;  %v12432_v23 = vld [vmem:[#allocation290_spill] sm:$0xff]  ;;  %v12435_v59 = vld [vmem:[#allocation71_spill] sm:$0xff] }
 0x2a7   : > { %vm8891_vm3 = vmor %vm12422_vm7, %vm12421_vm13  ;;  %vm12426_vm11 = vcmp.lt.s32.totalorder %v12425_v20, %v11824_v51  ;;  %v8906_v12 = vmul.f32 0.6931472, %v12429_v38  ;;  %vm12431_vm6 = vnez %v12430_v45  ;;  %vm12436_vm13 = vcmp.lt.s32.totalorder %v12307_v15, %v11824_v51  ;;  %v12437_v20 = vld [vmem:[#allocation207_spill] sm:$0xff] }
 0x2a8   : > { %vm8901_vm12 = vmand %vm12426_vm11, %vm8827_vm10  ;;  %v12434_v22 = vsel %vm12431_vm6, %v12432_v23, %v12433_v49  ;;  %v2398_v28 = vsel %vm12436_vm13, %v2334_v14, 0.0  ;;  %v2584_v16 = vadd.f32 %v2583_v44, %v2521_v18  ;;  %vm12438_vm11 = vcmp.eq.s32.totalorder %v12190_v40, 4294967286  ;;  %v3233_v14 = vld [vmem:[%s3561_s21 + $0x90] sm:$0xff]  ;;  %v12562_v40 = vld [vmem:[#allocation281_spill] sm:$0xff] }
 0x2a9   : > { %v2336_v31 = vsub.f32 %v12435_v59, %v12434_v22  ;;  %vm8923_vm1 = vmor %vm8642_vm2, %vm12438_vm11  ;;  %v8928_v45 = vmul.f32 %v12333_v3, %v2203_v5  ;;  %v2212_v23 = vadd.f32 1.0, %v2211_v47  ;;  %v2460_v49 = vadd.f32 %v2459_v41, %v2397_v55  ;;  %v12450_v47 = vld [vmem:[#allocation305_spill] sm:$0xff]  ;;  %v12452_v18 = vld [vmem:[#allocation300_spill] sm:$0xff] }
 0x2aa   : > { %v2523_v44 = vsel %vm8855_vm14, %v3233_v14, 0.0  ;;  %vm12442_vm6 = vcmp.eq.s32.totalorder %v12328_v53, 10  ;;  %vm12443_vm13 = vcmp.eq.s32.totalorder %v12328_v53, 0  ;;  %vm12446_vm11 = vcmp.lt.s32.totalorder %v12145_v29, %v11824_v51  ;;  %v12455_v41 = vld [vmem:[#allocation136_spill] sm:$0xff] }
 0x2ab   : > { %12441 = vst [vmem:[#allocation119_spill] sm:$0xff] %v8928_v45  ;;  %vm8937_vm10 = vmor %vm12443_vm13, %vm12442_vm6  ;;  %v8952_v5 = vmul.f32 0.6931472, %v8573_v9  ;;  %vm12451_vm14 = vnez %v12450_v47  ;;  %vm12456_vm6 = vcmp.lt.s32.totalorder %v12327_v27, %v11824_v51  ;;  %v2585_v59 = vadd.f32 %v2584_v16, %v2522_v54  ;;  %v12463_v47 = vld [vmem:[#allocation251_spill] sm:$0xff]  ;;  %v3234_v16 = vld [vmem:[%s3561_s21 + $0x98] sm:$0xff]  ;;  %v9013_v45 = vpop.eup %3191 }
 0x2ac   : > { %vm8947_vm7 = vmand %vm12446_vm11, %vm8879_vm5  ;;  %v12454_v55 = vsel %vm12451_vm14, %v12452_v18, %v12453_v52  ;;  %v2399_v35 = vsel %vm12456_vm6, %v2335_v4, 0.0  ;;  %vm12457_vm5 = vcmp.eq.s32.totalorder %v12215_v46, 4294967286  ;;  %v12460_v9 = vand.u32 2147483647, %v12206_v57  ;;  %v12471_v54 = vld [vmem:[#allocation170_spill] sm:$0xff] }
 0x2ad   : > { %12449 = vst [vmem:[#allocation212_spill] sm:$0xff] %v8952_v5  ;;  %v2337_v22 = vsub.f32 %v12455_v41, %v12454_v55  ;;  %vm8967_vm13 = vmor %vm8690_vm8, %vm12457_vm5  ;;  %v2217_v18 = vadd.f32 1.0, %v12463_v47  ;;  %v2220_v52 = vmul.f32 -0.5, %v12463_v47  ;;  %v2461_v4 = vadd.f32 %v2460_v49, %v2398_v28  ;;  %v12472_v28 = vld [vmem:[#allocation307_spill] sm:$0xff]  ;;  %v12474_v49 = vld [vmem:[#allocation306_spill] sm:$0xff] }
 0x2ae   : > { %vm8973_vm11 = vcmp.lt.f32.partialorder %v12460_v9, 0.0004427343  ;;  %v2524_v46 = vsel %vm8901_vm12, %v3234_v16, 0.0  ;;  %vm12464_vm8 = vcmp.eq.s32.totalorder %v12350_v26, 10  ;;  %vm12465_vm14 = vcmp.eq.s32.totalorder %v12350_v26, 0  ;;  %v12475_v55 = vld [vmem:[#allocation314_spill] sm:$0xff] }
 0x2af   : > { %vm8986_vm6 = vmor %vm12465_vm14, %vm12464_vm8  ;;  %vm12468_vm2 = vcmp.lt.s32.totalorder %v12169_v30, %v11824_v51  ;;  %vm12473_vm12 = vnez %v12472_v28  ;;  %v12477_v9 = vld [vmem:[#allocation154_spill] sm:$0xff]  ;;  %vm12478_vm8 = vcmp.lt.s32.totalorder %v12349_v50, %v11824_v51  ;;  %v2586_v38 = vadd.f32 %v2585_v59, %v2523_v44  ;;  %v12493_v59 = vld [vmem:[#allocation195_spill] sm:$0xff]  ;;  %v9107_v43 = vpop.eup %3193 }
 0x2b0   : > { %vm8996_vm9 = vmand %vm12468_vm2, %vm8923_vm1  ;;  %v12476_v41 = vsel %vm12473_vm12, %v12474_v49, %v12475_v55  ;;  %v2400_v30 = vsel %vm12478_vm8, %v2336_v31, 0.0  ;;  %vm12479_vm1 = vcmp.eq.s32.totalorder %v12236_v62, 4294967286  ;;  %v9024_v28 = vmul.f32 %v12365_v11, %v2212_v23  ;;  %v12489_v23 = vld [vmem:[#allocation253_spill] sm:$0xff]  ;;  %v12634_v62 = vld [vmem:[#allocation19_spill] sm:$0xff] }
 0x2b1   : > { %v2338_v16 = vsub.f32 %v12477_v9, %v12476_v41  ;;  %vm9019_vm2 = vmor %vm8744_vm4, %vm12479_vm1  ;;  %v2462_v55 = vadd.f32 %v2461_v4, %v2399_v35  ;;  %v3235_v41 = vld [vmem:[%s3561_s21 + $0xa0] sm:$0xff]  ;;  %vm12482_vm14 = vcmp.eq.s32.totalorder %v12374_v19, 10  ;;  %vm12483_vm12 = vcmp.eq.s32.totalorder %v12374_v19, 0  ;;  %v12492_v35 = vld [vmem:[#allocation312_spill] sm:$0xff] }
 0x2b2   : > { %v2525_v31 = vsel %vm8947_vm7, %v3235_v41, 0.0  ;;  %vm9034_vm8 = vmor %vm12483_vm12, %vm12482_vm14  ;;  %vm12486_vm1 = vcmp.lt.s32.totalorder %v12189_v58, %v11824_v51  ;;  %v2226_v44 = vadd.f32 1.0, %v12489_v23  ;;  %vm12491_vm7 = vnez %v12490_v6  ;;  %v12495_v9 = vld [vmem:[#allocation74_spill] sm:$0xff] }
 0x2b3   : > { %vm9044_vm5 = vmand %vm12486_vm1, %vm8967_vm13  ;;  %v12494_v4 = vsel %vm12491_vm7, %v12492_v35, %v12493_v59  ;;  %vm12496_vm14 = vcmp.lt.s32.totalorder %v12373_v63, %v11824_v51  ;;  %v2587_v49 = vadd.f32 %v2586_v38, %v2524_v46  ;;  %vm12497_vm12 = vcmp.eq.s32.totalorder %v12258_v60, 4294967286  ;;  %v12513_v38 = vld [vmem:[#allocation70_spill] sm:$0xff] }
 0x2b4   : > { %v2339_v41 = vsub.f32 %v12495_v9, %v12494_v4  ;;  %v2401_v29 = vsel %vm12496_vm14, %v2337_v22, 0.0  ;;  %vm12498_vm13 = vnez %v12381_v7  ;;  %v2221_v35 = vadd.f32 1.0, %v2220_v52  ;;  %v3236_v4 = vld [vmem:[%s3561_s21 + $0xa8] sm:$0xff]  ;;  %v12506_v7 = vld [vmem:[#allocation100_spill] sm:$0xff] }
 0x2b5   : > { %vm9062_vm1 = vmor %vm12498_vm13, %vm12497_vm12  ;;  %v2463_v59 = vadd.f32 %v2462_v55, %v2400_v30  ;;  %v2526_v22 = vsel %vm8996_vm9, %v3236_v4, 0.0  ;;  %vm12502_vm7 = vcmp.eq.s32.totalorder %v12396_v17, 10  ;;  %vm12503_vm14 = vcmp.eq.s32.totalorder %v12396_v17, 0  ;;  %v12515_v55 = vld [vmem:[#allocation315_spill] sm:$0xff]  ;;  %v12516_v9 = vld [vmem:[#allocation78_spill] sm:$0xff] }
 0x2b6   : > { %vm9077_vm12 = vmor %vm12503_vm14, %vm12502_vm7  ;;  %vm12507_vm4 = vcmp.lt.s32.totalorder %v12506_v7, %v11824_v51  ;;  %v12510_v46 = vand.u32 2147483647, %v12248_v13  ;;  %v12511_v8 = vmov 0  ;;  %v2229_v30 = vmul.f32 -0.5, %v12489_v23  ;;  %v12518_v4 = vld [vmem:[#allocation56_spill] sm:$0xff]  ;;  %v12550_v52 = vld [vmem:[#allocation62_spill] sm:$0xff] }
 0x2b7   : > { %vm9087_vm0 = vmand %vm12507_vm4, %vm9019_vm2  ;;  %vm12514_vm7 = vnez %v12513_v38  ;;  %vm12519_vm2 = vcmp.lt.s32.totalorder %v12395_v21, %v11824_v51  ;;  %v2588_v5 = vadd.f32 %v2587_v49, %v2525_v31  ;;  %vm12520_vm4 = vcmp.eq.s32.totalorder %v12286_v1, 4294967286  ;;  %v12533_v49 = vld [vmem:[#allocation80_spill] sm:$0xff]  ;;  %v12627_v1 = vld [vmem:[#allocation258_spill] sm:$0xff] }
 0x2b8   : > { %vm9093_vm9 = vcmp.lt.f32.partialorder %v12510_v46, 0.0004427343  ;;  %v12517_v32 = vsel %vm12514_vm7, %v12515_v55, %v12516_v9  ;;  %v2402_v7 = vsel %vm12519_vm2, %v2338_v16, 0.0  ;;  %vm9113_vm14 = vmor %vm8845_vm15, %vm12520_vm4  ;;  %v9118_v46 = vmul.f32 0.6931472, %v8768_v37  ;;  %v3237_v55 = vld [vmem:[%s3561_s21 + $0xb0] sm:$0xff] }
 0x2b9   : > { %v12512_v8 = vsel %vm9093_vm9, 4294967295, %v12511_v8  ;;  %v2340_v6 = vsub.f32 %v12518_v4, %v12517_v32  ;;  %3195 = vlog2.f32 %v2217_v18  ;;  %v2464_v38 = vadd.f32 %v2463_v59, %v2401_v29  ;;  %v12532_v18 = vld [vmem:[#allocation45_spill] sm:$0xff] }
 0x2ba   : > { %v2527_v16 = vsel %vm9044_vm5, %v3237_v55, 0.0  ;;  %vm12523_vm7 = vcmp.eq.s32.totalorder %v12416_v56, 10  ;;  %vm12524_vm2 = vcmp.eq.s32.totalorder %v12416_v56, 0  ;;  %vm12527_vm4 = vcmp.lt.s32.totalorder %v12235_v24, %v11824_v51  ;;  %v3238_v4 = vld [vmem:[%s3561_s21 + $0xb8] sm:$0xff]  ;;  %v12569_v24 = vld [vmem:[#allocation266_spill] sm:$0xff] }
 0x2bb   : > { %vm9127_vm13 = vmor %vm12524_vm2, %vm12523_vm7  ;;  %3197 = vlog2.f32 %v2226_v44  ;;  %vm12531_vm5 = vnez %v12530_v61  ;;  %vm12536_vm7 = vcmp.lt.s32.totalorder %v12415_v36, %v11824_v51  ;;  %v2589_v58 = vadd.f32 %v2588_v5, %v2526_v22  ;;  %v12549_v22 = vld [vmem:[#allocation153_spill] sm:$0xff]  ;;  %v12553_v61 = vld [vmem:[#allocation14_spill] sm:$0xff] }
 0x2bc   : > { %vm9137_vm9 = vmand %vm12527_vm4, %vm9062_vm1  ;;  %v12534_v31 = vsel %vm12531_vm5, %v12532_v18, %v12533_v49  ;;  %v2403_v59 = vsel %vm12536_vm7, %v2339_v41, 0.0  ;;  %vm12537_vm2 = vcmp.eq.s32.totalorder %v12308_v10, 4294967286  ;;  %v9159_v44 = vmul.f32 %v12463_v47, %v2221_v35  ;;  %v12547_v35 = vld [vmem:[#allocation79_spill] sm:$0xff]  ;;  %v12566_v37 = vld [vmem:[#allocation197_spill] sm:$0xff] }
 0x2bd   : > { %v2341_v29 = vsub.f32 %v12535_v48, %v12534_v31  ;;  %vm9154_vm1 = vmor %vm8891_vm3, %vm12537_vm2  ;;  %v2232_v9 = vand.u32 2147483647, %v12489_v23  ;;  %v2465_v32 = vadd.f32 %v2464_v38, %v2402_v7  ;;  %v2528_v41 = vsel %vm9087_vm0, %v3238_v4, 0.0  ;;  %v12552_v38 = vld [vmem:[#allocation215_spill] sm:$0xff]  ;;  %v3239_v4 = vld [vmem:[%s3561_s21 + $0xc0] sm:$0xff] }
 0x2be   : > { %vm12540_vm4 = vcmp.eq.s32.totalorder %v12437_v20, 10  ;;  %vm12541_vm5 = vcmp.eq.s32.totalorder %v12437_v20, 0  ;;  %vm1187_vm3 = vcmp.eq.s32.totalorder %v12437_v20, 4294967286  ;;  %vm12544_vm2 = vcmp.lt.s32.totalorder %v12257_v33, %v11824_v51  ;;  %v3259_v20 = vld [vmem:[%s3561_s21 + $0x160] sm:$0xff] }
 0x2bf   : > { %vm9169_vm7 = vmor %vm12541_vm5, %vm12540_vm4  ;;  %v2230_v5 = vadd.f32 1.0, %v2229_v30  ;;  %vm12548_vm0 = vnez %v12547_v35  ;;  %vm12554_vm4 = vcmp.lt.s32.totalorder %v12553_v61, %v11824_v51  ;;  %v2590_v13 = vadd.f32 %v2589_v58, %v2527_v16  ;;  %v12558_v30 = vld [vmem:[#allocation255_spill] sm:$0xff]  ;;  %v12568_v58 = vld [vmem:[#allocation81_spill] sm:$0xff] }
 0x2c0   : > { %vm9179_vm15 = vmand %vm12544_vm2, %vm9113_vm14  ;;  %v12551_v7 = vsel %vm12548_vm0, %v12549_v22, %v12550_v52  ;;  %v2404_v18 = vsel %vm12554_vm4, %v2340_v6, 0.0  ;;  %vm12555_vm5 = vcmp.eq.s32.totalorder %v12328_v53, 4294967286  ;;  %v2235_v49 = vadd.f32 1.0, %v12558_v30  ;;  %v12572_v52 = vld [vmem:[#allocation15_spill] sm:$0xff]  ;;  %v12604_v53 = vld [vmem:[#allocation17_spill] sm:$0xff] }
 0x2c1   : > { %v2342_v55 = vsub.f32 %v12552_v38, %v12551_v7  ;;  %vm9196_vm14 = vmor %vm8937_vm10, %vm12555_vm5  ;;  %v2238_v31 = vmul.f32 -0.5, %v12558_v30  ;;  %v2466_v48 = vadd.f32 %v2465_v32, %v2403_v59  ;;  %v2529_v35 = vsel %vm9137_vm9, %v3239_v4, 0.0  ;;  %v12571_v32 = vld [vmem:[#allocation216_spill] sm:$0xff] }
 0x2c2   : > { %vm12559_vm2 = vcmp.lt.s32.totalorder %v12285_v0, %v11824_v51  ;;  %v2189_v6 = vsel %vm8973_vm11, %v12562_v40, %v9118_v46  ;;  %v12563_v16 = vand.u32 2147483647, %v12333_v3  ;;  %vm12567_vm9 = vnez %v12566_v37  ;;  %v3240_v37 = vld [vmem:[%s3561_s21 + $0xc8] sm:$0xff] }
 0x2c3   : > { %vm9210_vm0 = vmand %vm12559_vm2, %vm9154_vm1  ;;  %v12570_v0 = vsel %vm12567_vm9, %v12568_v58, %v12569_v24  ;;  %vm12573_vm1 = vcmp.lt.s32.totalorder %v12572_v52, %v11824_v51  ;;  %v2591_v38 = vadd.f32 %v2590_v13, %v2528_v41  ;;  %vm12574_vm4 = vcmp.eq.s32.totalorder %v12350_v26, 4294967286  ;;  %v12582_v41 = vld [vmem:[#allocation199_spill] sm:$0xff]  ;;  %v12586_v58 = vld [vmem:[#allocation16_spill] sm:$0xff] }
 0x2c4   : > { %vm9220_vm10 = vcmp.lt.f32.partialorder %v12563_v16, 0.0004427343  ;;  %v2343_v22 = vsub.f32 %v12571_v32, %v12570_v0  ;;  %v2405_v7 = vsel %vm12573_vm1, %v2341_v29, 0.0  ;;  %vm9237_vm5 = vmor %vm8986_vm6, %vm12574_vm4  ;;  %v9242_v61 = vmul.f32 0.6931472, %v8839_v42  ;;  %v12580_v42 = vld [vmem:[#allocation110_spill] sm:$0xff] }
 0x2c5   : > { %v2241_v4 = vand.u32 2147483647, %v12558_v30  ;;  %v2467_v16 = vadd.f32 %v2466_v48, %v2404_v18  ;;  %v2530_v29 = vsel %vm9179_vm15, %v3240_v37, 0.0  ;;  %vm12577_vm2 = vcmp.lt.s32.totalorder %v12307_v15, %v11824_v51  ;;  %v12583_v18 = vld [vmem:[#allocation67_spill] sm:$0xff]  ;;  %v12585_v48 = vld [vmem:[#allocation217_spill] sm:$0xff]  ;;  %v12618_v26 = vld [vmem:[#allocation220_spill] sm:$0xff] }
 0x2c6   : > { %vm9253_vm6 = vmand %vm12577_vm2, %vm9196_vm14  ;;  %v9258_v57 = vmul.f32 %v12489_v23, %v2230_v5  ;;  %vm12581_vm9 = vnez %v12580_v42  ;;  %vm12587_vm15 = vcmp.lt.s32.totalorder %v12586_v58, %v11824_v51  ;;  %v2592_v24 = vadd.f32 %v2591_v38, %v2529_v35  ;;  %v12598_v38 = vld [vmem:[#allocation66_spill] sm:$0xff]  ;;  %v12745_v46 = vld [vmem:[#allocation59_spill] sm:$0xff] }
 0x2c7   : > { %v12584_v13 = vsel %vm12581_vm9, %v12582_v41, %v12583_v18  ;;  %v2406_v33 = vsel %vm12587_vm15, %v2342_v55, 0.0  ;;  %vm12588_vm14 = vcmp.eq.s32.totalorder %v12374_v19, 4294967286  ;;  %v12591_v5 = vand.u32 2147483647, %v12365_v11  ;;  %v3241_v55 = vld [vmem:[%s3561_s21 + $0xd0] sm:$0xff]  ;;  %v12597_v11 = vld [vmem:[#allocation257_spill] sm:$0xff]  ;;  %v9305_v41 = vpop.eup %3195 }
 0x2c8   : > { %v2344_v2 = vsub.f32 %v12585_v48, %v12584_v13  ;;  %vm9273_vm1 = vmor %vm9034_vm8, %vm12588_vm14  ;;  %3199 = vlog2.f32 %v2235_v49  ;;  %v2239_v32 = vadd.f32 1.0, %v2238_v31  ;;  %v2468_v52 = vadd.f32 %v2467_v16, %v2405_v7  ;;  %v12600_v49 = vld [vmem:[#allocation111_spill] sm:$0xff]  ;;  %v12601_v31 = vld [vmem:[#allocation113_spill] sm:$0xff] }
 0x2c9   : > { %vm9279_vm4 = vcmp.lt.f32.partialorder %v12591_v5, 0.0004427343  ;;  %v2531_v19 = vsel %vm9210_vm0, %v3241_v55, 0.0  ;;  %vm12594_vm8 = vcmp.lt.s32.totalorder %v12327_v27, %v11824_v51  ;;  %v2244_v35 = vadd.f32 1.0, %v12597_v11  ;;  %v12603_v16 = vld [vmem:[#allocation219_spill] sm:$0xff]  ;;  %v12616_v5 = vld [vmem:[#allocation165_spill] sm:$0xff] }
 0x2ca   : > { %vm9291_vm2 = vmand %vm12594_vm8, %vm9237_vm5  ;;  %vm12599_vm9 = vnez %v12598_v38  ;;  %vm12605_vm0 = vcmp.lt.s32.totalorder %v12604_v53, %v11824_v51  ;;  %v2593_v42 = vadd.f32 %v2592_v24, %v2530_v29  ;;  %vm12606_vm5 = vcmp.eq.s32.totalorder %v12396_v17, 4294967286  ;;  %v3242_v29 = vld [vmem:[%s3561_s21 + $0xd8] sm:$0xff]  ;;  %v9323_v17 = vpop.eup %3197  ;;  %v12619_v38 = vld [vmem:[#allocation18_spill] sm:$0xff] }
 0x2cb   : > { %v12602_v7 = vsel %vm12599_vm9, %v12600_v49, %v12601_v31  ;;  %v2407_v3 = vsel %vm12605_vm0, %v2343_v22, 0.0  ;;  %vm9311_vm15 = vmor %vm9077_vm12, %vm12606_vm5  ;;  %vm12609_vm14 = vnez %v12512_v8  ;;  %v2247_v13 = vmul.f32 -0.5, %v12597_v11  ;;  %v12613_v24 = vld [vmem:[#allocation112_spill] sm:$0xff]  ;;  %v3243_v53 = vld [vmem:[%s3561_s21 + $0xe0] sm:$0xff] }
 0x2cc   : > { %v2345_v37 = vsub.f32 %v12603_v16, %v12602_v7  ;;  %v2198_v18 = vsel %vm12609_vm14, %v8860_v39, %v9242_v61  ;;  %v2469_v22 = vadd.f32 %v2468_v52, %v2406_v33  ;;  %v2532_v48 = vsel %vm9253_vm6, %v3242_v29, 0.0  ;;  %v12615_v33 = vld [vmem:[#allocation163_spill] sm:$0xff]  ;;  %v12753_v61 = vld [vmem:[#allocation234_spill] sm:$0xff] }
 0x2cd   : > { %vm12610_vm12 = vcmp.lt.s32.totalorder %v12349_v50, %v11824_v51  ;;  %v2250_v58 = vand.u32 2147483647, %v12597_v11  ;;  %vm12614_vm9 = vnez %v12613_v24  ;;  %vm12620_vm6 = vcmp.lt.s32.totalorder %v12619_v38, %v11824_v51  ;;  %v12646_v38 = vld [vmem:[#allocation222_spill] sm:$0xff] }
 0x2ce   : > { %vm9330_vm8 = vmand %vm12610_vm12, %vm9273_vm1  ;;  %v12617_v52 = vsel %vm12614_vm9, %v12615_v33, %v12616_v5  ;;  %v2408_v15 = vsel %vm12620_vm6, %v2344_v2, 0.0  ;;  %v2594_v49 = vadd.f32 %v2593_v42, %v2531_v19  ;;  %vm12621_vm0 = vcmp.eq.s32.totalorder %v12416_v56, 4294967286  ;;  %v12628_v19 = vld [vmem:[#allocation164_spill] sm:$0xff]  ;;  %v12658_v56 = vld [vmem:[#allocation201_spill] sm:$0xff] }
 0x2cf   : > { %v2346_v55 = vsub.f32 %v12618_v26, %v12617_v52  ;;  %vm9348_vm1 = vmor %vm9127_vm13, %vm12621_vm0  ;;  %v9353_v31 = vmul.f32 0.6931472, %v9013_v45  ;;  %v9356_v7 = vmul.f32 %v12558_v30, %v2239_v32  ;;  %v2470_v16 = vadd.f32 %v2469_v22, %v2407_v3  ;;  %v12630_v32 = vld [vmem:[#allocation270_spill] sm:$0xff]  ;;  %v12631_v42 = vld [vmem:[#allocation64_spill] sm:$0xff] }
 0x2d0   : > { %v2533_v2 = vsel %vm9291_vm2, %v3243_v53, 0.0  ;;  %vm12624_vm5 = vcmp.lt.s32.totalorder %v12373_v63, %v11824_v51  ;;  %v2253_v45 = vadd.f32 1.0, %v12627_v1  ;;  %vm12629_vm12 = vnez %v12628_v19  ;;  %v12633_v22 = vld [vmem:[#allocation221_spill] sm:$0xff]  ;;  %v3244_v52 = vld [vmem:[%s3561_s21 + $0xe8] sm:$0xff]  ;;  %v3245_v19 = vld [vmem:[%s3561_s21 + $0xf0] sm:$0xff] }
 0x2d1   : > { %vm9366_vm13 = vmand %vm12624_vm5, %vm9311_vm15  ;;  %v12632_v3 = vsel %vm12629_vm12, %v12630_v32, %v12631_v42  ;;  %vm12635_vm2 = vcmp.lt.s32.totalorder %v12634_v62, %v11824_v51  ;;  %v2595_v24 = vadd.f32 %v2594_v49, %v2532_v48  ;;  %v9389_v33 = vmul.f32 0.6931472, %v9107_v43  ;;  %v12643_v43 = vld [vmem:[#allocation114_spill] sm:$0xff]  ;;  %v12644_v48 = vld [vmem:[#allocation85_spill] sm:$0xff] }
 0x2d2   : > { %v2347_v29 = vsub.f32 %v12633_v22, %v12632_v3  ;;  %v2409_v27 = vsel %vm12635_vm2, %v2345_v37, 0.0  ;;  %vm9384_vm15 = vmor %vm9169_vm7, %vm1187_vm3  ;;  %3201 = vlog2.f32 %v2244_v35  ;;  %v2471_v5 = vadd.f32 %v2470_v16, %v2408_v15  ;;  %v12641_v37 = vld [vmem:[#allocation115_spill] sm:$0xff]  ;;  %v12647_v49 = vld [vmem:[#allocation20_spill] sm:$0xff] }
 0x2d3   : > { %v2534_v26 = vsel %vm9330_vm8, %v3244_v52, 0.0  ;;  %vm12638_vm9 = vcmp.lt.s32.totalorder %v12395_v21, %v11824_v51  ;;  %v2248_v10 = vadd.f32 1.0, %v2247_v13  ;;  %vm12642_vm7 = vnez %v12641_v37  ;;  %v12649_v16 = vld [vmem:[#allocation119_spill] sm:$0xff]  ;;  %v12656_v3 = vld [vmem:[#allocation166_spill] sm:$0xff]  ;;  %v12662_v63 = vld [vmem:[#allocation21_spill] sm:$0xff]  ;;  %v9444_v52 = vpop.eup %3199 }
 0x2d4   : > { %vm9399_vm6 = vmand %vm12638_vm9, %vm9348_vm1  ;;  %v12645_v35 = vsel %vm12642_vm7, %v12643_v43, %v12644_v48  ;;  %vm12648_vm3 = vcmp.lt.s32.totalorder %v12647_v49, %v11824_v51  ;;  %v2596_v50 = vadd.f32 %v2595_v24, %v2533_v2  ;;  %v2207_v21 = vsel %vm9220_vm10, %v12649_v16, %v9353_v31  ;;  %v12659_v22 = vld [vmem:[#allocation202_spill] sm:$0xff]  ;;  %v12664_v37 = vld [vmem:[#allocation259_spill] sm:$0xff] }
 0x2d5   : > { %v2348_v15 = vsub.f32 %v12646_v38, %v12645_v35  ;;  %v2410_v60 = vsel %vm12648_vm3, %v2346_v55, 0.0  ;;  %v2256_v13 = vmul.f32 -0.5, %v12627_v1  ;;  %v2472_v53 = vadd.f32 %v2471_v5, %v2409_v27  ;;  %v12661_v27 = vld [vmem:[#allocation224_spill] sm:$0xff]  ;;  %v12665_v49 = vld [vmem:[#allocation86_spill] sm:$0xff]  ;;  %v12761_v16 = vld [vmem:[#allocation235_spill] sm:$0xff] }
 0x2d6   : > { %v2535_v32 = vsel %vm9366_vm13, %v3245_v19, 0.0  ;;  %vm12650_vm8 = vcmp.lt.s32.totalorder %v12415_v36, %v11824_v51  ;;  %v12653_v2 = vand.u32 2147483647, %v12463_v47  ;;  %3203 = vlog2.f32 %v2253_v45  ;;  %v3246_v48 = vld [vmem:[%s3561_s21 + $0xf8] sm:$0xff]  ;;  %v12764_v0 = vld [vmem:[#allocation162_spill] sm:$0xff] }
 0x2d7   : > { %vm9425_vm0 = vmand %vm12650_vm8, %vm9384_vm15  ;;  %vm12657_vm5 = vnez %v12656_v3  ;;  %vm12663_vm13 = vcmp.lt.s32.totalorder %v12662_v63, %v11824_v51  ;;  %v2597_v5 = vadd.f32 %v2596_v50, %v2534_v26  ;;  %v2259_v47 = vand.u32 2147483647, %v12627_v1  ;;  %v12668_v26 = vld [vmem:[#allocation169_spill] sm:$0xff]  ;;  %v12671_v3 = vld [vmem:[#allocation22_spill] sm:$0xff] }
 0x2d8   : > { %vm9431_vm1 = vcmp.lt.f32.partialorder %v12653_v2, 0.0004427343  ;;  %v12660_v62 = vsel %vm12657_vm5, %v12658_v56, %v12659_v22  ;;  %v2411_v36 = vsel %vm12663_vm13, %v2347_v29, 0.0  ;;  %v2262_v43 = vadd.f32 1.0, %v12664_v37  ;;  %v12667_v29 = vld [vmem:[#allocation84_spill] sm:$0xff]  ;;  %v12670_v19 = vld [vmem:[#allocation225_spill] sm:$0xff] }
 0x2d9   : > { %v2349_v24 = vsub.f32 %v12661_v27, %v12660_v62  ;;  %v2473_v45 = vadd.f32 %v2472_v53, %v2410_v60  ;;  %v2536_v35 = vsel %vm9399_vm6, %v3246_v48, 0.0  ;;  %vm12666_vm12 = vnez %v12665_v49  ;;  %v3247_v27 = vld [vmem:[%s3561_s21 + $0x100] sm:$0xff] }
 0x2da   : > { %v12669_v50 = vsel %vm12666_vm12, %v12667_v29, %v12668_v26  ;;  %vm12672_vm2 = vcmp.lt.s32.totalorder %v12671_v3, %v11824_v51  ;;  %v2598_v53 = vadd.f32 %v2597_v5, %v2535_v32  ;;  %vm9466_vm15 = vcmp.lt.f32.partialorder %v2232_v9, 0.0004427343  ;;  %v12675_v49 = vld [vmem:[#allocation117_spill] sm:$0xff]  ;;  %v12680_v9 = vld [vmem:[#allocation226_spill] sm:$0xff]  ;;  %v12681_v29 = vld [vmem:[#allocation23_spill] sm:$0xff] }
 0x2db   : > { %v2350_v2 = vsub.f32 %v12670_v19, %v12669_v50  ;;  %v2412_v60 = vsel %vm12672_vm2, %v2348_v15, 0.0  ;;  %v9471_v56 = vmul.f32 %v12597_v11, %v2248_v10  ;;  %v2257_v22 = vadd.f32 1.0, %v2256_v13  ;;  %v12677_v15 = vld [vmem:[#allocation116_spill] sm:$0xff]  ;;  %v12678_v32 = vld [vmem:[#allocation269_spill] sm:$0xff] }
 0x2dc   : > { %v2474_v62 = vadd.f32 %v2473_v45, %v2411_v36  ;;  %v2537_v63 = vsel %vm9425_vm0, %v3247_v27, 0.0  ;;  %v2265_v48 = vmul.f32 -0.5, %v12664_v37  ;;  %vm12676_vm9 = vnez %v12675_v49  ;;  %v3248_v45 = vld [vmem:[%s3561_s21 + $0x108] sm:$0xff]  ;;  %v12683_v26 = vld [vmem:[#allocation73_spill] sm:$0xff]  ;;  %v12686_v27 = vld [vmem:[#allocation76_spill] sm:$0xff] }
 0x2dd   : > { %v12679_v23 = vsel %vm12676_vm9, %v12677_v15, %v12678_v32  ;;  %vm12682_vm6 = vcmp.lt.s32.totalorder %v12681_v29, %v11824_v51  ;;  %v2599_v13 = vadd.f32 %v2598_v53, %v2536_v35  ;;  %3205 = vlog2.f32 %v2262_v43  ;;  %v12685_v19 = vld [vmem:[#allocation261_spill] sm:$0xff]  ;;  %v12688_v49 = vld [vmem:[#allocation167_spill] sm:$0xff]  ;;  %v12689_v15 = vld [vmem:[#allocation88_spill] sm:$0xff]  ;;  %v9500_v35 = vpop.eup %3201 }
 0x2de   : > { %v2351_v5 = vsub.f32 %v12680_v9, %v12679_v23  ;;  %v2413_v10 = vsel %vm12682_vm6, %v2349_v24, 0.0  ;;  %v2268_v36 = vand.u32 2147483647, %v12664_v37  ;;  %v2475_v55 = vadd.f32 %v2474_v62, %v2412_v60  ;;  %v12691_v23 = vld [vmem:[#allocation227_spill] sm:$0xff]  ;;  %v12692_v29 = vld [vmem:[#allocation24_spill] sm:$0xff] }
 0x2df   : > { %vm12684_vm7 = vnez %v12683_v26  ;;  %v2271_v3 = vadd.f32 1.0, %v12685_v19  ;;  %vm12687_vm3 = vnez %v12686_v27  ;;  %vm12693_vm8 = vcmp.lt.s32.totalorder %v12692_v29, %v11824_v51  ;;  %v12694_v26 = vld [vmem:[#allocation218_spill] sm:$0xff]  ;;  %v12702_v29 = vld [vmem:[#allocation25_spill] sm:$0xff] }
 0x2e0   : > { %v2538_v50 = vsel %vm12684_vm7, %v3248_v45, 0.0  ;;  %v12690_v32 = vsel %vm12687_vm3, %v12688_v49, %v12689_v15  ;;  %v2414_v24 = vsel %vm12693_vm8, %v2350_v2, 0.0  ;;  %v2600_v43 = vadd.f32 %v2599_v13, %v2537_v63  ;;  %v3249_v45 = vld [vmem:[%s3561_s21 + $0x110] sm:$0xff]  ;;  %v12701_v63 = vld [vmem:[#allocation229_spill] sm:$0xff]  ;;  %v9527_v38 = vpop.eup %3203 }
 0x2e1   : > { %v2352_v9 = vsub.f32 %v12691_v23, %v12690_v32  ;;  %v9503_v60 = vmul.f32 0.6931472, %v9305_v41  ;;  %v9506_v53 = vmul.f32 %v12627_v1, %v2257_v22  ;;  %v2476_v62 = vadd.f32 %v2475_v55, %v2413_v10  ;;  %v12696_v15 = vld [vmem:[#allocation175_spill] sm:$0xff]  ;;  %v12698_v32 = vld [vmem:[#allocation204_spill] sm:$0xff] }
 0x2e2   : > { %vm12695_vm0 = vnez %v12694_v26  ;;  %v2266_v49 = vadd.f32 1.0, %v2265_v48  ;;  %vm12697_vm5 = vnez %v12696_v15  ;;  %v12699_v23 = vld [vmem:[#allocation208_spill] sm:$0xff]  ;;  %vm12703_vm13 = vcmp.lt.s32.totalorder %v12702_v29, %v11824_v51  ;;  %v12704_v26 = vld [vmem:[#allocation223_spill] sm:$0xff] }
 0x2e3   : > { %v2539_v27 = vsel %vm12695_vm0, %v3249_v45, 0.0  ;;  %v12700_v2 = vsel %vm12697_vm5, %v12698_v32, %v12699_v23  ;;  %v2415_v41 = vsel %vm12703_vm13, %v2351_v5, 0.0  ;;  %v2601_v22 = vadd.f32 %v2600_v43, %v2538_v50  ;;  %v3250_v48 = vld [vmem:[%s3561_s21 + $0x118] sm:$0xff]  ;;  %v12706_v32 = vld [vmem:[#allocation271_spill] sm:$0xff]  ;;  %v12711_v5 = vld [vmem:[#allocation230_spill] sm:$0xff] }
 0x2e4   : > { %v2353_v13 = vsub.f32 %v12701_v63, %v12700_v2  ;;  %v9521_v10 = vmul.f32 0.6931472, %v9323_v17  ;;  %v2274_v55 = vmul.f32 -0.5, %v12685_v19  ;;  %v2477_v45 = vadd.f32 %v2476_v62, %v2414_v24  ;;  %v12708_v23 = vld [vmem:[#allocation144_spill] sm:$0xff]  ;;  %v12709_v2 = vld [vmem:[#allocation171_spill] sm:$0xff]  ;;  %v12712_v43 = vld [vmem:[#allocation26_spill] sm:$0xff] }
 0x2e5   : > { %vm12705_vm12 = vnez %v12704_v26  ;;  %3207 = vlog2.f32 %v2271_v3  ;;  %vm12707_vm2 = vnez %v12706_v32  ;;  %vm12713_vm9 = vcmp.lt.s32.totalorder %v12712_v43, %v11824_v51  ;;  %v12714_v26 = vld [vmem:[#allocation228_spill] sm:$0xff] }
 0x2e6   : > { %v2540_v15 = vsel %vm12705_vm12, %v3250_v48, 0.0  ;;  %v12710_v63 = vsel %vm12707_vm2, %v12708_v23, %v12709_v2  ;;  %v2416_v17 = vsel %vm12713_vm9, %v2352_v9, 0.0  ;;  %v2602_v24 = vadd.f32 %v2601_v22, %v2539_v27  ;;  %v3251_v48 = vld [vmem:[%s3561_s21 + $0x120] sm:$0xff]  ;;  %v12720_v22 = vld [vmem:[#allocation231_spill] sm:$0xff] }
 0x2e7   : > { %v2354_v50 = vsub.f32 %v12711_v5, %v12710_v63  ;;  %v2225_v62 = vsel %vm9431_vm1, %v9159_v44, %v9503_v60  ;;  %v2277_v3 = vand.u32 2147483647, %v12685_v19  ;;  %v2478_v29 = vadd.f32 %v2477_v45, %v2415_v41  ;;  %v12721_v45 = vld [vmem:[#allocation27_spill] sm:$0xff] }
 0x2e8   : > { %vm12715_vm6 = vnez %v12714_v26  ;;  %vm9548_vm7 = vcmp.lt.f32.partialorder %v2241_v4, 0.0004427343  ;;  %v9553_v9 = vmul.f32 %v12664_v37, %v2266_v49  ;;  %vm12718_vm3 = vnez %v12357_v34  ;;  %v12723_v63 = vld [vmem:[#allocation263_spill] sm:$0xff]  ;;  %v12724_v49 = vld [vmem:[#allocation156_spill] sm:$0xff] }
 0x2e9   : > { %v2541_v32 = vsel %vm12715_vm6, %v3251_v48, 0.0  ;;  %v12719_v27 = vsel %vm12718_vm3, %v12471_v54, %v8906_v12  ;;  %vm12722_vm8 = vcmp.lt.s32.totalorder %v12721_v45, %v11824_v51  ;;  %v2603_v30 = vadd.f32 %v2602_v24, %v2540_v15  ;;  %v3252_v48 = vld [vmem:[%s3561_s21 + $0x128] sm:$0xff]  ;;  %v12728_v54 = vld [vmem:[#allocation212_spill] sm:$0xff] }
 0x2ea   : > { %v2355_v41 = vsub.f32 %v12720_v22, %v12719_v27  ;;  %v2417_v2 = vsel %vm12722_vm8, %v2353_v13, 0.0  ;;  %v2275_v4 = vadd.f32 1.0, %v2274_v55  ;;  %v2280_v5 = vadd.f32 1.0, %v12723_v63  ;;  %v12727_v12 = vld [vmem:[#allocation198_spill] sm:$0xff]  ;;  %v12730_v13 = vld [vmem:[#allocation232_spill] sm:$0xff] }
 0x2eb   : > { %v2479_v43 = vadd.f32 %v2478_v29, %v2416_v17  ;;  %vm12725_vm0 = vnez %v12724_v49  ;;  %vm12726_vm5 = vnez %v12387_v25  ;;  %v12731_v55 = vld [vmem:[#allocation28_spill] sm:$0xff]  ;;  %v2604_v24 = vadd.f32 %v2603_v30, %v2541_v32  ;;  %v9581_v29 = vpop.eup %3205  ;;  %v12733_v25 = vld [vmem:[#allocation158_spill] sm:$0xff]  ;;  %v12738_v32 = vld [vmem:[#allocation75_spill] sm:$0xff] }
 0x2ec   : > { %v2542_v26 = vsel %vm12725_vm0, %v3252_v48, 0.0  ;;  %v12729_v27 = vsel %vm12726_vm5, %v12727_v12, %v12728_v54  ;;  %vm12732_vm13 = vcmp.lt.s32.totalorder %v12731_v55, %v11824_v51  ;;  %v2283_v22 = vmul.f32 -0.5, %v12723_v63  ;;  %v3253_v49 = vld [vmem:[%s3561_s21 + $0x130] sm:$0xff] }
 0x2ed   : > { %v2356_v15 = vsub.f32 %v12730_v13, %v12729_v27  ;;  %v2418_v17 = vsel %vm12732_vm13, %v2354_v50, 0.0  ;;  %v2286_v45 = vand.u32 2147483647, %v12723_v63  ;;  %v2480_v48 = vadd.f32 %v2479_v43, %v2417_v2  ;;  %v12737_v50 = vld [vmem:[#allocation265_spill] sm:$0xff]  ;;  %v12741_v55 = vld [vmem:[#allocation48_spill] sm:$0xff] }
 0x2ee   : > { %vm12734_vm12 = vnez %v12733_v25  ;;  %vm9590_vm2 = vcmp.lt.f32.partialorder %v2250_v58, 0.0004427343  ;;  %v2289_v54 = vadd.f32 1.0, %v12737_v50  ;;  %v2357_v30 = vsub.f32 %v12738_v32, %v2189_v6  ;;  %v12739_v2 = vld [vmem:[#allocation29_spill] sm:$0xff] }
 0x2ef   : > { %v2543_v34 = vsel %vm12734_vm12, %v3253_v49, 0.0  ;;  %vm12740_vm9 = vcmp.lt.s32.totalorder %v12739_v2, %v11824_v51  ;;  %v2605_v27 = vadd.f32 %v2604_v24, %v2542_v26  ;;  %v2237_v11 = vmul.f32 0.6931472, %v9444_v52  ;;  %v3254_v13 = vld [vmem:[%s3561_s21 + $0x138] sm:$0xff]  ;;  %v3255_v24 = vld [vmem:[%s3561_s21 + $0x140] sm:$0xff]  ;;  %v3208_v25 = vpop.eup %3207 }
 0x2f0   : > { %v2419_v43 = vsel %vm12740_vm9, %v2355_v41, 0.0  ;;  %3209 = vlog2.f32 %v2280_v5  ;;  %v2481_v58 = vadd.f32 %v2480_v48, %v2418_v17  ;;  %vm12742_vm6 = vnez %v12741_v55  ;;  %v12746_v6 = vld [vmem:[#allocation233_spill] sm:$0xff]  ;;  %v12747_v41 = vld [vmem:[#allocation30_spill] sm:$0xff]  ;;  %v12749_v48 = vld [vmem:[#allocation140_spill] sm:$0xff] }
 0x2f1   : > { %v2544_v49 = vsel %vm12742_vm6, %v3254_v13, 0.0  ;;  %vm9610_vm3 = vcmp.lt.f32.partialorder %v2259_v47, 0.0004427343  ;;  %v2298_v40 = vadd.f32 1.0, %v12745_v46  ;;  %v2358_v52 = vsub.f32 %v12746_v6, %v2198_v18  ;;  %v3257_v13 = vld [vmem:[%s3561_s21 + $0x150] sm:$0xff]  ;;  %v3258_v6 = vld [vmem:[%s3561_s21 + $0x158] sm:$0xff] }
 0x2f2   : > { %vm12748_vm11 = vcmp.lt.s32.totalorder %v12747_v41, %v11824_v51  ;;  %v2606_v26 = vadd.f32 %v2605_v27, %v2543_v34  ;;  %v9625_v1 = vmul.f32 %v12685_v19, %v2275_v4  ;;  %v2284_v47 = vadd.f32 1.0, %v2283_v22  ;;  %v12754_v19 = vld [vmem:[#allocation31_spill] sm:$0xff] }
 0x2f3   : > { %v2420_v5 = vsel %vm12748_vm11, %v2356_v15, 0.0  ;;  %v2482_v17 = vadd.f32 %v2481_v58, %v2419_v43  ;;  %vm12750_vm8 = vnez %v12749_v48  ;;  %vm9632_vm14 = vcmp.lt.f32.partialorder %v2268_v36, 0.0004427343  ;;  %v3256_v22 = vld [vmem:[%s3561_s21 + $0x148] sm:$0xff] }
 0x2f4   : > { %v2545_v8 = vsel %vm12750_vm8, %v3255_v24, 0.0  ;;  %3211 = vlog2.f32 %v2289_v54  ;;  %v2359_v18 = vsub.f32 %v12753_v61, %v2207_v21  ;;  %vm12755_vm0 = vcmp.lt.s32.totalorder %v12754_v19, %v11824_v51  ;;  %v12756_v54 = vld [vmem:[#allocation206_spill] sm:$0xff]  ;;  %v12779_v61 = vld [vmem:[#allocation155_spill] sm:$0xff] }
 0x2f5   : > { %v2421_v4 = vsel %vm12755_vm0, %v2357_v30, 0.0  ;;  %v2607_v34 = vadd.f32 %v2606_v26, %v2544_v49  ;;  %v2292_v37 = vmul.f32 -0.5, %v12737_v50  ;;  %v2295_v36 = vand.u32 2147483647, %v12737_v50  ;;  %v12762_v30 = vld [vmem:[#allocation32_spill] sm:$0xff] }
 0x2f6   : > { %v2483_v15 = vadd.f32 %v2482_v17, %v2420_v5  ;;  %vm12757_vm5 = vnez %v12756_v54  ;;  %vm9650_vm13 = vcmp.lt.f32.partialorder %v2277_v3, 0.0004427343  ;;  %3213 = vlog2.f32 %v2298_v40 }
 0x2f7   : > { %v2546_v59 = vsel %vm12757_vm5, %v3256_v22, 0.0  ;;  %v12760_v31 = vsel %vm9279_vm4, %v9024_v28, %v9389_v33  ;;  %vm12763_vm10 = vcmp.lt.s32.totalorder %v12762_v30, %v11824_v51  ;;  %v2608_v43 = vadd.f32 %v2607_v34, %v2545_v8 }
 0x2f8   : > { %v2360_v21 = vsub.f32 %v12761_v16, %v12760_v31  ;;  %v2422_v2 = vsel %vm12763_vm10, %v2358_v52, 0.0  ;;  %v2243_v3 = vsel %vm9548_vm7, %v9356_v7, %v2237_v11  ;;  %v2246_v27 = vmul.f32 0.6931472, %v9500_v35  ;;  %v12768_v7 = vld [vmem:[#allocation47_spill] sm:$0xff]  ;;  %v12769_v35 = vld [vmem:[#allocation33_spill] sm:$0xff] }
 0x2f9   : > { %v2484_v58 = vadd.f32 %v2483_v15, %v2421_v4  ;;  %vm12765_vm12 = vnez %v12764_v0  ;;  %v9671_v28 = vmul.f32 %v12723_v63, %v2284_v47  ;;  %vm9673_vm4 = vcmp.lt.f32.partialorder %v2286_v45, 0.0004427343  ;;  %v12771_v52 = vld [vmem:[#allocation147_spill] sm:$0xff]  ;;  %v12784_v15 = vld [vmem:[#allocation210_spill] sm:$0xff]  ;;  %v12786_v31 = vld [vmem:[#allocation237_spill] sm:$0xff] }
 0x2fa   : > { %v2547_v55 = vsel %vm12765_vm12, %v3257_v13, 0.0  ;;  %v2361_v23 = vsub.f32 %v12768_v7, %v2225_v62  ;;  %vm12770_vm7 = vcmp.lt.s32.totalorder %v12769_v35, %v11824_v51  ;;  %v2609_v49 = vadd.f32 %v2608_v43, %v2546_v59  ;;  %v12776_v62 = vld [vmem:[#allocation200_spill] sm:$0xff]  ;;  %v3210_v17 = vpop.eup %3209  ;;  %v12782_v4 = vld [vmem:[#allocation35_spill] sm:$0xff]  ;;  %v12792_v7 = vld [vmem:[#allocation37_spill] sm:$0xff] }
 0x2fb   : > { %v2423_v11 = vsel %vm12770_vm7, %v2359_v18, 0.0  ;;  %v2255_v63 = vmul.f32 0.6931472, %v9527_v38  ;;  %v2293_v40 = vadd.f32 1.0, %v2292_v37  ;;  %v2485_v45 = vadd.f32 %v2484_v58, %v2422_v2  ;;  %v12777_v38 = vld [vmem:[#allocation34_spill] sm:$0xff]  ;;  %v12781_v18 = vld [vmem:[#allocation236_spill] sm:$0xff] }
 0x2fc   : > { %vm12772_vm9 = vnez %v12771_v52  ;;  %vm9690_vm6 = vcmp.lt.f32.partialorder %v2295_v36, 0.0004427343  ;;  %v2301_v44 = vmul.f32 -0.5, %v12745_v46  ;;  %v12775_v60 = vsel %vm9466_vm15, %v9258_v57, %v9521_v10  ;;  %v3260_v36 = vld [vmem:[%s3561_s21 + $0x168] sm:$0xff]  ;;  %v3261_v43 = vld [vmem:[%s3561_s21 + $0x170] sm:$0xff] }
 0x2fd   : > { %v2548_v41 = vsel %vm12772_vm9, %v3258_v6, 0.0  ;;  %v2362_v5 = vsub.f32 %v12776_v62, %v12775_v60  ;;  %vm12778_vm1 = vcmp.lt.s32.totalorder %v12777_v38, %v11824_v51  ;;  %v2610_v47 = vadd.f32 %v2609_v49, %v2547_v55  ;;  %v12791_v0 = vld [vmem:[#allocation203_spill] sm:$0xff]  ;;  %v3262_v49 = vld [vmem:[%s3561_s21 + $0x178] sm:$0xff]  ;;  %v12797_v52 = vld [vmem:[#allocation38_spill] sm:$0xff] }
 0x2fe   : > { %v2424_v26 = vsel %vm12778_vm1, %v2360_v21, 0.0  ;;  %v2252_v24 = vsel %vm9590_vm2, %v9471_v56, %v2246_v27  ;;  %v2264_v48 = vmul.f32 0.6931472, %v9581_v29  ;;  %v2486_v8 = vadd.f32 %v2485_v45, %v2423_v11  ;;  %v3212_v54 = vpop.eup %3211  ;;  %v12787_v21 = vld [vmem:[#allocation36_spill] sm:$0xff]  ;;  %v3263_v62 = vld [vmem:[%s3561_s21 + $0x180] sm:$0xff] }
 0x2ff   : > { %vm12780_vm11 = vnez %v12779_v61  ;;  %v2304_v10 = vand.u32 2147483647, %v12745_v46  ;;  %v2363_v19 = vsub.f32 %v12781_v18, %v2243_v3  ;;  %vm12783_vm15 = vcmp.lt.s32.totalorder %v12782_v4, %v11824_v51  ;;  %v12789_v3 = vld [vmem:[#allocation211_spill] sm:$0xff] }
 0x300   : > { %v2549_v57 = vsel %vm12780_vm11, %v3259_v20, 0.0  ;;  %v2425_v34 = vsel %vm12783_vm15, %v2361_v23, 0.0  ;;  %v2611_v37 = vadd.f32 %v2610_v47, %v2548_v41  ;;  %v2261_v56 = vsel %vm9610_vm3, %v9506_v53, %v2255_v63  ;;  %v3214_v58 = vpop.eup %3213  ;;  %v12794_v63 = vld [vmem:[#allocation148_spill] sm:$0xff]  ;;  %v12806_v20 = vld [vmem:[#allocation137_spill] sm:$0xff] }
 0x301   : > { %v2273_v29 = vmul.f32 0.6931472, %v3208_v25  ;;  %v2487_v12 = vadd.f32 %v2486_v8, %v2424_v26  ;;  %vm12785_vm2 = vnez %v12784_v15  ;;  %v2302_v59 = vadd.f32 1.0, %v2301_v44  ;;  %v12803_v26 = vld [vmem:[#allocation239_spill] sm:$0xff] }
 0x302   : > { %v2550_v22 = vsel %vm12785_vm2, %v3260_v36, 0.0  ;;  %v2364_v16 = vsub.f32 %v12786_v31, %v2252_v24  ;;  %vm12788_vm8 = vcmp.lt.s32.totalorder %v12787_v21, %v11824_v51  ;;  %v2612_v2 = vadd.f32 %v2611_v37, %v2549_v57  ;;  %v3264_v8 = vld [vmem:[%s3561_s21 + $0x188] sm:$0xff]  ;;  %v12808_v57 = vld [vmem:[#allocation213_spill] sm:$0xff]  ;;  %v12813_v36 = vld [vmem:[#allocation68_spill] sm:$0xff] }
 0x303   : > { %v2426_v30 = vsel %vm12788_vm8, %v2362_v5, 0.0  ;;  %v2270_v53 = vsel %vm9632_vm14, %v9553_v9, %v2264_v48  ;;  %v2282_v14 = vmul.f32 0.6931472, %v3210_v17  ;;  %v2488_v25 = vadd.f32 %v2487_v12, %v2425_v34  ;;  %v12799_v5 = vld [vmem:[#allocation142_spill] sm:$0xff]  ;;  %v12804_v17 = vld [vmem:[#allocation39_spill] sm:$0xff]  ;;  %v12811_v34 = vld [vmem:[#allocation40_spill] sm:$0xff] }
 0x304   : > { %vm12790_vm3 = vnez %v12789_v3  ;;  %v2294_v13 = vmul.f32 %v12737_v50, %v2293_v40  ;;  %v2365_v55 = vsub.f32 %v12791_v0, %v2261_v56  ;;  %vm12793_vm0 = vcmp.lt.s32.totalorder %v12792_v7, %v11824_v51  ;;  %v12796_v40 = vld [vmem:[#allocation238_spill] sm:$0xff]  ;;  %v3265_v12 = vld [vmem:[%s3561_s21 + $0x190] sm:$0xff] }
 0x305   : > { %v2551_v27 = vsel %vm12790_vm3, %v3261_v43, 0.0  ;;  %v2427_v23 = vsel %vm12793_vm0, %v2363_v19, 0.0  ;;  %v2613_v35 = vadd.f32 %v2612_v2, %v2550_v22  ;;  %v2279_v9 = vsel %vm9650_vm13, %v9625_v1, %v2273_v29  ;;  %v12810_v19 = vld [vmem:[#allocation141_spill] sm:$0xff]  ;;  %v12815_v22 = vld [vmem:[#allocation150_spill] sm:$0xff]  ;;  %v12818_v2 = vld [vmem:[#allocation72_spill] sm:$0xff] }
 0x306   : > { %v2291_v39 = vmul.f32 0.6931472, %v3212_v54  ;;  %v2489_v11 = vadd.f32 %v2488_v25, %v2426_v30  ;;  %vm12795_vm14 = vnez %v12794_v63  ;;  %v2303_v50 = vmul.f32 %v12745_v46, %v2302_v59  ;;  %v12816_v59 = vld [vmem:[#allocation41_spill] sm:$0xff]  ;;  %v12820_v25 = vld [vmem:[#allocation42_spill] sm:$0xff] }
 0x307   : > { %v2552_v45 = vsel %vm12795_vm14, %v3262_v49, 0.0  ;;  %v2366_v6 = vsub.f32 %v12796_v40, %v2270_v53  ;;  %vm12798_vm5 = vcmp.lt.s32.totalorder %v12797_v52, %v11824_v51  ;;  %v2614_v44 = vadd.f32 %v2613_v35, %v2551_v27  ;;  %v3266_v30 = vld [vmem:[%s3561_s21 + $0x198] sm:$0xff]  ;;  %v3269_v40 = vld [vmem:[%s3561_s21 + $0x1b0] sm:$0xff] }
 0x308   : > { %v2428_v41 = vsel %vm12798_vm5, %v2364_v16, 0.0  ;;  %v2288_v1 = vsel %vm9673_vm4, %v9671_v28, %v2282_v14  ;;  %v2300_v32 = vmul.f32 0.6931472, %v3214_v58  ;;  %v2490_v60 = vadd.f32 %v2489_v11, %v2427_v23  ;;  %v3267_v58 = vld [vmem:[%s3561_s21 + $0x1a0] sm:$0xff]  ;;  %v12828_v49 = vld [vmem:[#allocation44_spill] sm:$0xff] }
 0x309   : > { %vm12800_vm13 = vnez %v12799_v5  ;;  %vm9754_vm10 = vcmp.lt.f32.partialorder %v2304_v10, 0.0004427343  ;;  %v2367_v47 = vsub.f32 %v12803_v26, %v2279_v9  ;;  %vm12805_vm12 = vcmp.lt.s32.totalorder %v12804_v17, %v11824_v51  ;;  %v3268_v9 = vld [vmem:[%s3561_s21 + $0x1a8] sm:$0xff] }
 0x30a   : > { %v2553_v38 = vsel %vm12800_vm13, %v3263_v62, 0.0  ;;  %v2429_v24 = vsel %vm12805_vm12, %v2365_v55, 0.0  ;;  %v2615_v48 = vadd.f32 %v2614_v44, %v2552_v45  ;;  %v2297_v28 = vsel %vm9690_vm6, %v2294_v13, %v2291_v39  ;;  %v12822_v13 = vld [vmem:[#allocation57_spill] sm:$0xff]  ;;  %v12824_v55 = vld [vmem:[#allocation43_spill] sm:$0xff]  ;;  %v12826_v39 = vld [vmem:[#allocation138_spill] sm:$0xff] }
 0x30b   : > { %v2491_v33 = vadd.f32 %v2490_v60, %v2428_v41  ;;  %vm12807_vm4 = vnez %v12806_v20  ;;  %v12809_v10 = vsub.f32 0.0, %v12808_v57  ;;  %v2368_v4 = vsub.f32 %v12810_v19, %v2288_v1  ;;  %v3270_v1 = vld [vmem:[%s3561_s21 + $0x1b8] sm:$0xff]  ;;  %v3272_v17 = vld [vmem:[%s3561_s21 + $0x1c8] sm:$0xff] }
 0x30c   : > { %v2554_v61 = vsel %vm12807_vm4, %v3264_v8, 0.0  ;;  %vm12812_vm7 = vcmp.lt.s32.totalorder %v12811_v34, %v11824_v51  ;;  %v2616_v56 = vadd.f32 %v2615_v48, %v2553_v38  ;;  %v2306_v42 = vsel %vm9754_vm10, %v2303_v50, %v2300_v32  ;;  %v12832_v32 = vld [vmem:[#allocation46_spill] sm:$0xff]  ;;  %v12834_v38 = vld [vmem:[#allocation49_spill] sm:$0xff]  ;;  %v3273_v8 = vld [vmem:[%s3561_s21 + $0x1d0] sm:$0xff] }
 0x30d   : > { %v1474_v18 = vmin.f32 %v12809_v10, 0.0  ;;  %v2430_v37 = vsel %vm12812_vm7, %v2366_v6, 0.0  ;;  %v2492_v29 = vadd.f32 %v2491_v33, %v2429_v24  ;;  %vm12814_vm9 = vnez %v12813_v36  ;;  %v12830_v6 = vld [vmem:[#allocation139_spill] sm:$0xff]  ;;  %v12836_v24 = vld [vmem:[#allocation50_spill] sm:$0xff]  ;;  %v12840_v19 = vld [vmem:[#allocation52_spill] sm:$0xff] }
 0x30e   : > { %v2555_v15 = vsel %vm12814_vm9, %v3265_v12, 0.0  ;;  %v2369_v54 = vsub.f32 %v12815_v22, %v2297_v28  ;;  %vm12817_vm6 = vcmp.lt.s32.totalorder %v12816_v59, %v11824_v51  ;;  %v2617_v16 = vadd.f32 %v2616_v56, %v2554_v61  ;;  %v12838_v20 = vld [vmem:[#allocation51_spill] sm:$0xff]  ;;  %v3275_v56 = vld [vmem:[%s3561_s21 + $0x1e0] sm:$0xff] }
 0x30f   : > { %v2431_v31 = vsel %vm12817_vm6, %v2367_v47, 0.0  ;;  %v2493_v21 = vadd.f32 %v2492_v29, %v2430_v37  ;;  %vm12819_vm1 = vnez %v12818_v2  ;;  %v2370_v14 = vsub.f32 %v1474_v18, %v2306_v42  ;;  %v3274_v18 = vld [vmem:[%s3561_s21 + $0x1d8] sm:$0xff]  ;;  %v12842_v42 = vld [vmem:[#allocation54_spill] sm:$0xff]  ;;  %v12844_v22 = vld [vmem:[#allocation55_spill] sm:$0xff] }
 0x310   : > { %v2556_v53 = vsel %vm12819_vm1, %v3266_v30, 0.0  ;;  %vm12821_vm11 = vcmp.lt.s32.totalorder %v12820_v25, %v11824_v51  ;;  %v2618_v3 = vadd.f32 %v2617_v16, %v2555_v15  ;;  %vm12823_vm15 = vnez %v12822_v13  ;;  %v3276_v15 = vld [vmem:[%s3561_s21 + $0x1e8] sm:$0xff] }
 0x311   : > { %v2432_v43 = vsel %vm12821_vm11, %v2368_v4, 0.0  ;;  %v2494_v27 = vadd.f32 %v2493_v21, %v2431_v31  ;;  %v2557_v0 = vsel %vm12823_vm15, %v3267_v58, 0.0  ;;  %vm12825_vm2 = vcmp.lt.s32.totalorder %v12824_v55, %v11824_v51  ;;  %v3277_v31 = vld [vmem:[%s3561_s21 + $0x1f0] sm:$0xff] }
 0x312   : > { %v2433_v7 = vsel %vm12825_vm2, %v2369_v54, 0.0  ;;  %v2619_v23 = vadd.f32 %v2618_v3, %v2556_v53  ;;  %vm12827_vm8 = vnez %v12826_v39  ;;  %vm12829_vm3 = vcmp.lt.s32.totalorder %v12828_v49, %v11824_v51  ;;  %v3271_v51 = vld [vmem:[%s3561_s21 + $0x1c0] sm:$0xff]  ;;  %v12846_v16 = vld [vmem:[#allocation151_spill] sm:$0xff] }
 0x313   : > { %v2495_v35 = vadd.f32 %v2494_v27, %v2432_v43  ;;  %v2558_v11 = vsel %vm12827_vm8, %v3268_v9, 0.0  ;;  %v2434_v63 = vsel %vm12829_vm3, %v2370_v14, 0.0  ;;  %vm12831_vm0 = vnez %v12830_v6 }
 0x314   : > { %v2620_v45 = vadd.f32 %v2619_v23, %v2557_v0  ;;  %v2559_v52 = vsel %vm12831_vm0, %v3269_v40, 0.0  ;;  %vm12833_vm14 = vnez %v12832_v32  ;;  %vm12835_vm5 = vnez %v12834_v38 }
 0x315   : > { %v2496_v50 = vadd.f32 %v2495_v35, %v2433_v7  ;;  %v2560_v60 = vsel %vm12833_vm14, %v3270_v1, 0.0  ;;  %v2561_v46 = vsel %vm12835_vm5, %v3271_v51, 0.0  ;;  %vm12837_vm13 = vnez %v12836_v24 }
 0x316   : > { %v2621_v41 = vadd.f32 %v2620_v45, %v2558_v11  ;;  %v2562_v48 = vsel %vm12837_vm13, %v3272_v17, 0.0  ;;  %vm12839_vm10 = vnez %v12838_v20  ;;  %vm12841_vm12 = vnez %v12840_v19 }
 0x317   : > { %v2497_v44 = vadd.f32 %v2496_v50, %v2434_v63  ;;  %v2563_v61 = vsel %vm12839_vm10, %v3273_v8, 0.0  ;;  %v2564_v4 = vsel %vm12841_vm12, %v3274_v18, 0.0  ;;  %vm12843_vm4 = vnez %v12842_v42 }
 0x318   : > { %v2622_v62 = vadd.f32 %v2621_v41, %v2559_v52  ;;  %v2565_v29 = vsel %vm12843_vm4, %v3275_v56, 0.0  ;;  %vm12845_vm7 = vnez %v12844_v22  ;;  %vm12847_vm9 = vnez %v12846_v16 }
 0x319   : > { %v2498_v5 = vrot.slane %v2497_v44, 4  ;;  %v2566_v54 = vsel %vm12845_vm7, %v3276_v15, 0.0  ;;  %v2567_v21 = vsel %vm12847_vm9, %v3277_v31, 0.0 }
 0x31a   : > { %v2623_v26 = vadd.f32 %v2622_v62, %v2560_v60 }
 0x31b   : > { %v2499_v47 = vadd.f32 %v2498_v5, %v2497_v44 }
 0x31c   : > { %v2624_v28 = vadd.f32 %v2623_v26, %v2561_v46 }
 0x31d   : > { %v2500_v33 = vrot.slane %v2499_v47, 2 }
 0x31e   : > { %v2625_v57 = vadd.f32 %v2624_v28, %v2562_v48 }
 0x31f   : > { %v2501_v10 = vadd.f32 %v2500_v33, %v2499_v47 }
 0x320   : > { %v2626_v34 = vadd.f32 %v2625_v57, %v2563_v61 }
 0x321   : > { %v2502_v37 = vrot.slane %v2501_v10, 1 }
 0x322   : > { %v2627_v12 = vadd.f32 %v2626_v34, %v2564_v4 }
 0x323   : > { %v2503_v36 = vadd.f32 %v2502_v37, %v2501_v10 }
 0x324   : > { %v2628_v59 = vadd.f32 %v2627_v12, %v2565_v29 }
 0x325   : > { %2639 = vst [vmem:[%s175_s19] sm:$0x1] %v2503_v36 }
 0x326   : > { %v2629_v30 = vadd.f32 %v2628_v59, %v2566_v54 }
 0x327   : > { %3330 = shalt.err (!%p3327_p4)
}
 0x328   : > { %s3331_s15 = scalar_lea.hbm %s9831_s7, 16  ;;  %s3335_s4 = scalar_lea.hbm %s9915_s2, 32 }
 0x329   : > { %p3332_p6 = scmp.ne.s32.totalorder %s9831_s7, %s3331_s15  ;;  %p3336_p5 = scmp.lt.u32.totalorder %s9831_s7, %s9915_s2 }
 0x32a   : > { %p3337_p10 = scmp.lt.u32.totalorder %s3335_s4, %s3331_s15  ;;  %p3339_p9 = scmp.lt.u32.totalorder %s3331_s15, %s9831_s7 }
 0x32b   : > { %p3333_p7 = pnand %p3332_p6, %p3501_p12 }
 0x32c   : > { %p3338_p11 = por %p3337_p10, %p3336_p5 }
 0x32d   : > { %p3334_p8 = pneg %p3333_p7 }
 0x32e   : > { %p3340_p13 = por %p3339_p9, %p3338_p11 }
 0x330   : > { %p3341_p0 = pnand %p3340_p13, %p3334_p8 }
 0x332   : > { %3344 = shalt.err (!%p3341_p0)
}
 0x333   : > { %2912 = dma.vmem_to_hbm [thread:$0]  (%p3501_p12), %s9833_s26, 16, %s9831_s7, %s2642_s8   ;;  %v3278_v2 = vld [vmem:[%s3561_s21 + $0x1f8] sm:$0xff]  ;;  %v12848_v53 = vld [vmem:[#allocation159_spill] sm:$0xff]  ;;  %v2630_v25 = vadd.f32 %v2629_v30, %v2567_v21 }
 0x334   : > { %vm12849_vm6 = vnez %v12848_v53  ;;  %s181_s19 = scalar_lea.vmem [#allocation8], %s3557_s16  ;;  %s9869_s26 = scalar_lea.hbm %s9916_s3, %s2778_s18 }
 0x335   : > { %v2568_v14 = vsel %vm12849_vm6, %v3278_v2, 0.0  ;;  %s2671_s28 = sshll.u32 %s181_s19, 4  ;;  %s2646_s21 = scalar_lea.sflag [#allocation9], %s3557_s16  ;;  %s9871_s28 = int_to_ptr.vmem [resolvable:$true] %s2671_s28 }
 0x336   : > { %v2631_v43 = vadd.f32 %v2630_v25, %v2568_v14  ;;  %s3345_s7 = scalar_lea.vmem %s9871_s28, 16  ;;  %s3424_s8 = smov [#allocation8]  }
 0x337   : > { %p3346_p2 = scmp.ne.s32.totalorder %s9871_s28, %s3345_s7  ;;  %s3349_s10 = sshll.u32 %s3424_s8, 4  ;;  %s3350_s10 = int_to_ptr.vmem [resolvable:$false] %s3349_s10 }
 0x338   : > { %v2632_v3 = vrot.slane %v2631_v43, 4  ;;  %s3351_s0 = scalar_lea.vmem %s3350_s10, 32  ;;  %p3352_p4 = scmp.lt.s32.totalorder %s9871_s28, %s3350_s10 }
 0x339   : > { %p3347_p1 = pnand %p3346_p2, %p3501_p12  ;;  %p3353_p6 = scmp.lt.s32.totalorder %s3351_s0, %s3345_s7 }
 0x33a   : > { %v2633_v27 = vadd.f32 %v2632_v3, %v2631_v43 }
 0x33b   : > { %p3348_p3 = pneg %p3347_p1  ;;  %p3354_p7 = por %p3353_p6, %p3352_p4 }
 0x33c   : > { %v2634_v58 = vrot.slane %v2633_v27, 2 }
 0x33d   : > { %p3355_p8 = pnand %p3354_p7, %p3348_p3 }
 0x33e   : > { %v2635_v13 = vadd.f32 %v2634_v58, %v2633_v27 }
 0x340   : > { %v2636_v0 = vrot.slane %v2635_v13, 1 }
 0x342   : > { %v2637_v55 = vadd.f32 %v2636_v0, %v2635_v13 }
 0x344   : > { %2640 = vst [vmem:[%s181_s19] sm:$0x1] %v2637_v55 }
 0x345   : > { %3358 = shalt.err (!%p3355_p8)
}
 0x346   : > { %s3359_s16 = scalar_lea.hbm %s9869_s26, 16  ;;  %s3363_s14 = scalar_lea.hbm %s9916_s3, 32 }
 0x347   : > { %p3360_p5 = scmp.ne.s32.totalorder %s9869_s26, %s3359_s16  ;;  %p3364_p9 = scmp.lt.u32.totalorder %s9869_s26, %s9916_s3 }
 0x348   : > { %p3365_p13 = scmp.lt.u32.totalorder %s3363_s14, %s3359_s16  ;;  %p3367_p2 = scmp.lt.u32.totalorder %s3359_s16, %s9869_s26 }
 0x349   : > { %p3361_p10 = pnand %p3360_p5, %p3501_p12 }
 0x34a   : > { %p3366_p0 = por %p3365_p13, %p3364_p9 }
 0x34b   : > { %p3362_p11 = pneg %p3361_p10 }
 0x34c   : > { %p3368_p1 = por %p3367_p2, %p3366_p0 }
 0x34e   : > { %p3369_p3 = pnand %p3368_p1, %p3362_p11 }
 0x350   : > { %3372 = shalt.err (!%p3369_p3)
}
 0x351   : > { %2913 = dma.vmem_to_hbm [thread:$0]  (%p3501_p12), %s9871_s28, 16, %s9869_s26, %s2646_s21  }
 0x352 PF: > { %s2683_s20 = sand.u32 1, %s3405_s22   ;;  %p12850_p4 = scmp.ne.s32.totalorder %s10519_s6, 0 }
 0x353   : > { %p12851_p6 = scmp.ge.s32.totalorder %s3417_s25, 2  ;;  %s2684_s4 = scalar_lea.sflag [#allocation6], %s2683_s20 }
 0x355   : > { %p2917_p7 = pnand %p12851_p6, %p12850_p4 }
 0x357   : > { %3396 = dma.done.wait (!%p2917_p7), %s2684_s4, 16  }
 0x358   : > { %3398 = vsyncadd (!%p2917_p7), %s2684_s4, 4294967280  ;;  %s2692_s11 = scalar_lea.sflag [#allocation9], %s2683_s20 }
 0x359   : > { %3400 = dma.done.wait (!%p2917_p7), %s2692_s11, 16  }
 0x35a   : > { %3402 = vsyncadd (!%p2917_p7), %s2692_s11, 4294967280  ;;  %p24_p12 = scmp.ge.s32.totalorder %s3482_s27, 4   ;;  %s12852_s22 = smov %s3409_s23 }
 0x35b   : > { %s12853_s23 = smov %s3413_s24  ;;  %s12854_s24 = smov %s3494_s30 }
 0x35c   : > { %s12855_s25 = smov %s3482_s27  ;;  %26 = sbr.rel (!%p24_p12) target bundleno = 19 (0x13), region = 86 }
 0x363   :  { %2696 = vsyncpa [#allocation5], 1 }
 0x364   :  { %2698 = vsyncpa [#allocation5 + $0x1], 1 }
 0x365   :  { %2699 = vsyncpa [#allocation6], 1 }
 0x366   :  { %2701 = vsyncpa [#allocation6 + $0x1], 1 }
 0x367   :  { %2702 = vsyncpa [#allocation9], 1 }
 0x368   :  { %2704 = vsyncpa [#allocation9 + $0x1], 1 }

</bundles_post_ra>
